<compile_context>
chip_gen: v7x
topology: tpu7x:2x2x1
jax: 0.10.0
libtpu: 0.0.40
codegen_flags: <defaults>
</compile_context>

<pallas_src>
import jax
import jax.numpy as jnp
from jax import lax
from jax.experimental import pallas as pl
from jax.experimental.pallas import tpu as pltpu

_IMG = 32                  # input H = W (implied by nn.Linear(32 * 12 * 12, .))
_HW = _IMG * _IMG          # 1024 flattened spatial positions, row stride 32
_PAD = 128                 # lane pad so shifted windows never read OOB
_POOL_HW = 12 * 12         # 144 pooled positions per channel


def _fused_conv_pool_kernel(x_ref, w1_ref, b1_ref, w2_ref, b2_ref,
                            w3_ref, b3_ref, w4_ref, b4_ref, sel_ref,
                            o_ref, act_ref, c4_ref):
    """conv1..conv4 + ReLU + 2x2 max-pool for one sample.

    Activations live as (C, 1024) slabs (C in sublanes, flat H*W in lanes,
    row stride 32). Positions outside the shrinking valid region hold finite
    garbage that is never read by downstream valid positions.
    """
    f32 = jnp.float32

    # Zero the lane-overrun pads so shifted reads stay finite (they only ever
    # feed never-selected garbage positions).
    act_ref[:, _HW:_HW + _PAD] = jnp.zeros((act_ref.shape[0], _PAD), f32)
    c4_ref[:, _HW:_HW + _PAD] = jnp.zeros((c4_ref.shape[0], _PAD), f32)

    # Stage the input image (1, 1024) into the activation buffer.
    act_ref[0:1, 0:_HW] = x_ref[...]

    def conv3x3(w_ref_l, b_ref_l, cin, cout):
        # Shifted-slab conv: for output position p = h*32 + w,
        #   acc[c, p] = sum_{kh,kw,ci} W[c, ci, kh, kw] * act[ci, p + kh*32 + kw]
        # 9 fully-unrolled whole-image matmuls; bias added once per layer.
        acc = jnp.zeros((cout, _HW), f32)
        for kh in range(3):
            for kw in range(3):
                d = kh * _IMG + kw
                slab = act_ref[0:cin, pl.ds(d, _HW)]            # (cin, 1024)
                w_tap = w_ref_l[kh * 3 + kw]                    # (cout, cin)
                if cin == 1:
                    acc = acc + w_tap * slab                    # VPU broadcast
                else:
                    acc = acc + jnp.dot(w_tap, slab,
                                        preferred_element_type=f32)
        return acc + b_ref_l[...]                               # (cout, 1) bias

    a = jnp.maximum(conv3x3(w1_ref, b1_ref, 1, 4), 0.0)
    act_ref[0:4, 0:_HW] = a
    a = jnp.maximum(conv3x3(w2_ref, b2_ref, 4, 8), 0.0)
    act_ref[0:8, 0:_HW] = a
    a = jnp.maximum(conv3x3(w3_ref, b3_ref, 8, 16), 0.0)
    act_ref[0:16, 0:_HW] = a

    # conv4 pre-activation (bias included). ReLU is applied after the pool:
    # per-channel bias + monotone ReLU commute with the 2x2 max.
    c4_ref[0:32, 0:_HW] = conv3x3(w4_ref, b4_ref, 16, 32)

    # 2x2 max-pool as the max of four shifted copies; result is valid at
    # positions p = 64*i + 2*j (even row / even col), i, j < 12.
    a00 = c4_ref[:, pl.ds(0, _HW)]
    a01 = c4_ref[:, pl.ds(1, _HW)]
    a10 = c4_ref[:, pl.ds(_IMG, _HW)]
    a11 = c4_ref[:, pl.ds(_IMG + 1, _HW)]
    pooled = jnp.maximum(jnp.maximum(a00, a01), jnp.maximum(a10, a11))

    # Compact the strided pooled entries into dense PyTorch (C, 12*12) flatten
    # order with a single MXU matmul against a constant 0/1 selection matrix.
    dense = jnp.dot(pooled, sel_ref[...], preferred_element_type=f32)  # (32,144)
    o_ref[...] = jnp.maximum(dense, 0.0)


def fused_conv_pool(x_flat, p):
    N = x_flat.shape[0]
    return pl.pallas_call(
        _fused_conv_pool_kernel,
        out_shape=jax.ShapeDtypeStruct((N, 32, _POOL_HW), jnp.float32),
        grid=(N,),
        in_specs=[
            pl.BlockSpec((None, 1, _HW), lambda n: (n, 0, 0)),
            pl.BlockSpec((9, 4, 1), lambda n: (0, 0, 0)),
            pl.BlockSpec((4, 1), lambda n: (0, 0)),
            pl.BlockSpec((9, 8, 4), lambda n: (0, 0, 0)),
            pl.BlockSpec((8, 1), lambda n: (0, 0)),
            pl.BlockSpec((9, 16, 8), lambda n: (0, 0, 0)),
            pl.BlockSpec((16, 1), lambda n: (0, 0)),
            pl.BlockSpec((9, 32, 16), lambda n: (0, 0, 0)),
            pl.BlockSpec((32, 1), lambda n: (0, 0)),
            pl.BlockSpec((_HW, _POOL_HW), lambda n: (0, 0)),
        ],
        out_specs=pl.BlockSpec((None, 32, _POOL_HW), lambda n: (n, 0, 0)),
        scratch_shapes=[
            pltpu.VMEM((16, _HW + _PAD), jnp.float32),   # staged activations
            pltpu.VMEM((32, _HW + _PAD), jnp.float32),   # conv4 pre-activation
        ],
        compiler_params=pltpu.CompilerParams(dimension_semantics=("parallel",)),
    )(x_flat, p["w1t"], p["b1c"], p["w2t"], p["b2c"],
      p["w3t"], p["b3c"], p["w4t"], p["b4c"], p["sel"])


def _mlp_kernel(x_ref, wh_ref, bh_ref, wo1_ref, bo1_ref, wo2_ref, bo2_ref, o_ref):
    """hidden -> out1 -> out2 (no activations between them, matching forward)."""
    f32 = jnp.float32
    h = jnp.dot(x_ref[...], wh_ref[...], preferred_element_type=f32) + bh_ref[...]
    h = jnp.dot(h, wo1_ref[...], preferred_element_type=f32) + bo1_ref[...]
    o_ref[...] = jnp.dot(h, wo2_ref[...], preferred_element_type=f32) + bo2_ref[...]


def mlp_head(x, p):
    N = x.shape[0]
    vmem = pl.BlockSpec(memory_space=pltpu.MemorySpace.VMEM)
    return pl.pallas_call(
        _mlp_kernel,
        out_shape=jax.ShapeDtypeStruct((N, 2), jnp.float32),
        in_specs=[vmem] * 7,
        out_specs=vmem,
    )(x, p["wh"], p["bh"], p["wo1"], p["bo1"], p["wo2"], p["bo2"])


def init_params(key):
    """PyTorch-style uniform(+-1/sqrt(fan_in)) init, canonical layouts."""
    def uniform(k, shape, fan_in):
        bound = 1.0 / float(fan_in) ** 0.5
        return jax.random.uniform(k, shape, jnp.float32, -bound, bound)

    ks = jax.random.split(key, 14)
    p = {}
    # Conv weights in PyTorch OIHW layout, conv biases as (Cout,).
    p["w1"], p["b1"] = uniform(ks[0], (4, 1, 3, 3), 9), uniform(ks[1], (4,), 9)
    p["w2"], p["b2"] = uniform(ks[2], (8, 4, 3, 3), 36), uniform(ks[3], (8,), 36)
    p["w3"], p["b3"] = uniform(ks[4], (16, 8, 3, 3), 72), uniform(ks[5], (16,), 72)
    p["w4"], p["b4"] = uniform(ks[6], (32, 16, 3, 3), 144), uniform(ks[7], (32,), 144)
    # Linear weights as (in, out), linear biases as (1, out).
    p["wh"], p["bh"] = uniform(ks[8], (4608, 128), 4608), uniform(ks[9], (1, 128), 4608)
    p["wo1"], p["bo1"] = uniform(ks[10], (128, 64), 128), uniform(ks[11], (1, 64), 128)
    p["wo2"], p["bo2"] = uniform(ks[12], (64, 2), 64), uniform(ks[13], (1, 2), 64)
    return p


def pack_params(p):
    """One-time repack into kernel layouts + constant pool-selection matrix."""
    def taps(w_oihw):
        cout, cin = w_oihw.shape[0], w_oihw.shape[1]
        return jnp.transpose(w_oihw, (2, 3, 0, 1)).reshape(9, cout, cin)

    # sel[p, m] = 1 iff flat conv4 position p == 64*(m//12) + 2*(m%12),
    # i.e. the top-left corner of pooled window (i, j) with m = 12*i + j.
    m = jnp.arange(_POOL_HW)
    rows = 64 * (m // 12) + 2 * (m % 12)
    sel = jnp.zeros((_HW, _POOL_HW), jnp.float32).at[rows, m].set(1.0)

    packed = {"sel": sel,
              "wh": p["wh"], "bh": p["bh"],
              "wo1": p["wo1"], "bo1": p["bo1"],
              "wo2": p["wo2"], "bo2": p["bo2"]}
    for i in (1, 2, 3, 4):
        packed[f"w{i}t"] = taps(p[f"w{i}"])
        packed[f"b{i}c"] = p[f"b{i}"].reshape(-1, 1)
    return packed


@jax.jit
def network_forward(packed, x_nchw):
    N = x_nchw.shape[0]
    x_flat = x_nchw.reshape(N, 1, _HW)                 # contiguous, free
    pooled = fused_conv_pool(x_flat, packed)           # (N, 32, 144), NCHW flatten order
    feats = pooled.reshape(N, 32 * _POOL_HW)           # contiguous, free
    # Dropout(0.5) is identity at inference time.
    # TODO(synk): the reference forward calls `self.conv` (undefined), reuses
    # `self.conv2` with mismatched channels, and feeds 64/128-feature tensors
    # to nn.LSTM(input_size=32); none of that type-checks in PyTorch, so the
    # intended conv1->conv4 -> pool -> hidden -> out1 -> out2 path is
    # implemented and the LSTM stage is omitted.
    return mlp_head(feats, packed)


def reference_forward(p, x):
    """Pure-JAX reference of the same forward pass (for a sanity check)."""
    hp = lax.Precision.HIGHEST
    a = x
    for i in (1, 2, 3, 4):
        a = lax.conv_general_dilated(
            a, p[f"w{i}"], window_strides=(1, 1), padding="VALID",
            dimension_numbers=("NCHW", "OIHW", "NCHW"), precision=hp)
        a = jax.nn.relu(a + p[f"b{i}"].reshape(1, -1, 1, 1))
    a = lax.reduce_window(a, -jnp.inf, lax.max, (1, 1, 2, 2), (1, 1, 2, 2), "VALID")
    a = a.reshape(a.shape[0], -1)
    a = jnp.dot(a, p["wh"], precision=hp) + p["bh"]
    a = jnp.dot(a, p["wo1"], precision=hp) + p["bo1"]
    return jnp.dot(a, p["wo2"], precision=hp) + p["bo2"]


if __name__ == "__main__":
    key = jax.random.PRNGKey(0)
    pkey, xkey = jax.random.split(key)
    params = init_params(pkey)
    packed = pack_params(params)
    # Input spatial size 32 is implied by nn.Linear(32 * 12 * 12, ...):
    # (32 - 2*4 convs) / 2 pool = 12.
    x = jax.random.normal(xkey, (2, 1, 32, 32), jnp.float32)   # NCHW, like PyTorch
    y = network_forward(packed, x)
    jax.block_until_ready(y)
    assert y.shape == (2, 2) and y.dtype == jnp.float32

    # Loose-tolerance sanity check against the plain-JAX reference (catches
    # logic/index bugs; generous bounds absorb MXU precision differences).
    y_ref = reference_forward(params, x)
    assert jnp.allclose(y, y_ref, rtol=3e-2, atol=3e-2), (
        "max abs diff vs reference: %f" % float(jnp.max(jnp.abs(y - y_ref))))
    print("KERNEL_OK")
</pallas_src>

<mosaic_0001>
module attributes {stable_mosaic.version = 11 : i64} {
  func.func @_mlp_kernel(%arg0: memref<2x4608xf32, #tpu.memory_space<vmem>>, %arg1: memref<4608x128xf32, #tpu.memory_space<vmem>>, %arg2: memref<1x128xf32, #tpu.memory_space<vmem>>, %arg3: memref<128x64xf32, #tpu.memory_space<vmem>>, %arg4: memref<1x64xf32, #tpu.memory_space<vmem>>, %arg5: memref<64x2xf32, #tpu.memory_space<vmem>>, %arg6: memref<1x2xf32, #tpu.memory_space<vmem>>, %arg7: memref<2x2xf32, #tpu.memory_space<vmem>>) attributes {dimension_semantics = [], scalar_prefetch = 0 : i64, scratch_operands = 0 : i64, tpu.core_type = #tpu.core_type<tc>} {
    %c0 = arith.constant 0 : index
    %c0_0 = arith.constant 0 : index
    %0 = vector.load %arg0[%c0, %c0_0] : memref<2x4608xf32, #tpu.memory_space<vmem>>, vector<2x4608xf32>
    %c0_1 = arith.constant 0 : index
    %c0_2 = arith.constant 0 : index
    %1 = vector.load %arg1[%c0_1, %c0_2] : memref<4608x128xf32, #tpu.memory_space<vmem>>, vector<4608x128xf32>
    %cst = arith.constant dense<0.000000e+00> : vector<2x128xf32>
    %2 = tpu.matmul %0, %1, %cst {dimension_numbers = #tpu.dot_dimension_numbers<[1], [0], [0], [1], [0, 0, 1, 1], [], []>} : vector<2x4608xf32>, vector<4608x128xf32>, vector<2x128xf32> -> vector<2x128xf32>
    %c0_3 = arith.constant 0 : index
    %c0_4 = arith.constant 0 : index
    %3 = vector.load %arg2[%c0_3, %c0_4] : memref<1x128xf32, #tpu.memory_space<vmem>>, vector<1x128xf32>
    %4 = vector.broadcast %3 : vector<1x128xf32> to vector<2x128xf32>
    %5 = arith.addf %2, %4 : vector<2x128xf32>
    %c0_5 = arith.constant 0 : index
    %c0_6 = arith.constant 0 : index
    %6 = vector.load %arg3[%c0_5, %c0_6] : memref<128x64xf32, #tpu.memory_space<vmem>>, vector<128x64xf32>
    %cst_7 = arith.constant dense<0.000000e+00> : vector<2x64xf32>
    %7 = tpu.matmul %5, %6, %cst_7 {dimension_numbers = #tpu.dot_dimension_numbers<[1], [0], [0], [1], [0, 0, 1, 1], [], []>} : vector<2x128xf32>, vector<128x64xf32>, vector<2x64xf32> -> vector<2x64xf32>
    %c0_8 = arith.constant 0 : index
    %c0_9 = arith.constant 0 : index
    %8 = vector.load %arg4[%c0_8, %c0_9] : memref<1x64xf32, #tpu.memory_space<vmem>>, vector<1x64xf32>
    %9 = vector.broadcast %8 : vector<1x64xf32> to vector<2x64xf32>
    %10 = arith.addf %7, %9 : vector<2x64xf32>
    %c0_10 = arith.constant 0 : index
    %c0_11 = arith.constant 0 : index
    %11 = vector.load %arg5[%c0_10, %c0_11] : memref<64x2xf32, #tpu.memory_space<vmem>>, vector<64x2xf32>
    %cst_12 = arith.constant dense<0.000000e+00> : vector<2x2xf32>
    %12 = tpu.matmul %10, %11, %cst_12 {dimension_numbers = #tpu.dot_dimension_numbers<[1], [0], [0], [1], [0, 0, 1, 1], [], []>} : vector<2x64xf32>, vector<64x2xf32>, vector<2x2xf32> -> vector<2x2xf32>
    %c0_13 = arith.constant 0 : index
    %c0_14 = arith.constant 0 : index
    %13 = vector.load %arg6[%c0_13, %c0_14] : memref<1x2xf32, #tpu.memory_space<vmem>>, vector<1x2xf32>
    %14 = vector.broadcast %13 : vector<1x2xf32> to vector<2x2xf32>
    %15 = arith.addf %12, %14 : vector<2x2xf32>
    %c0_15 = arith.constant 0 : index
    %c0_16 = arith.constant 0 : index
    %16 = vector.load %arg7[%c0_15, %c0_16] : memref<2x2xf32, #tpu.memory_space<vmem>>, vector<2x2xf32>
    tpu.vector_store %arg7[%c0_15, %c0_16], %15 {strides = array<i32>} : memref<2x2xf32, #tpu.memory_space<vmem>>, vector<2x2xf32>,
    return
  }
}

module attributes {stable_mosaic.version = 11 : i64} {
  func.func @_fused_conv_pool_kernel(%arg0: i32, %arg1: memref<1x1x1024xf32, #tpu.memory_space<vmem>>, %arg2: memref<9x4x1xf32, #tpu.memory_space<vmem>>, %arg3: memref<4x1xf32, #tpu.memory_space<vmem>>, %arg4: memref<9x8x4xf32, #tpu.memory_space<vmem>>, %arg5: memref<8x1xf32, #tpu.memory_space<vmem>>, %arg6: memref<9x16x8xf32, #tpu.memory_space<vmem>>, %arg7: memref<16x1xf32, #tpu.memory_space<vmem>>, %arg8: memref<9x32x16xf32, #tpu.memory_space<vmem>>, %arg9: memref<32x1xf32, #tpu.memory_space<vmem>>, %arg10: memref<1024x144xf32, #tpu.memory_space<vmem>>, %arg11: memref<1x32x144xf32, #tpu.memory_space<vmem>>, %arg12: memref<16x1152xf32, #tpu.memory_space<vmem>>, %arg13: memref<32x1152xf32, #tpu.memory_space<vmem>>) attributes {dimension_semantics = [#tpu.dimension_semantics<parallel>], iteration_bounds = array<i64: 2>, scalar_prefetch = 0 : i64, scratch_operands = 2 : i64, tpu.core_type = #tpu.core_type<tc>, window_params = [{transform_indices = @transform_0, window_bounds = array<i64: 1, 1, 1024>}, {pipeline_mode = #tpu.pipeline_mode<synchronous>, transform_indices = @transform_1, window_bounds = array<i64: 9, 4, 1>}, {pipeline_mode = #tpu.pipeline_mode<synchronous>, transform_indices = @transform_2, window_bounds = array<i64: 4, 1>}, {pipeline_mode = #tpu.pipeline_mode<synchronous>, transform_indices = @transform_3, window_bounds = array<i64: 9, 8, 4>}, {pipeline_mode = #tpu.pipeline_mode<synchronous>, transform_indices = @transform_4, window_bounds = array<i64: 8, 1>}, {pipeline_mode = #tpu.pipeline_mode<synchronous>, transform_indices = @transform_5, window_bounds = array<i64: 9, 16, 8>}, {pipeline_mode = #tpu.pipeline_mode<synchronous>, transform_indices = @transform_6, window_bounds = array<i64: 16, 1>}, {pipeline_mode = #tpu.pipeline_mode<synchronous>, transform_indices = @transform_7, window_bounds = array<i64: 9, 32, 16>}, {pipeline_mode = #tpu.pipeline_mode<synchronous>, transform_indices = @transform_8, window_bounds = array<i64: 32, 1>}, {pipeline_mode = #tpu.pipeline_mode<synchronous>, transform_indices = @transform_9, window_bounds = array<i64: 1024, 144>}, {transform_indices = @transform_10, window_bounds = array<i64: 1, 32, 144>}]} {
    %cst = arith.constant 0.000000e+00 : f32
    %0 = vector.broadcast %cst : f32 to vector<16x128xf32>
    %c0 = arith.constant 0 : index
    %c1024 = arith.constant 1024 : index
    %1 = vector.load %arg12[%c0, %c1024] : memref<16x1152xf32, #tpu.memory_space<vmem>>, vector<16x128xf32>
    tpu.vector_store %arg12[%c0, %c1024], %0 {strides = array<i32>} : memref<16x1152xf32, #tpu.memory_space<vmem>>, vector<16x128xf32>,
    %cst_0 = arith.constant 0.000000e+00 : f32
    %2 = vector.broadcast %cst_0 : f32 to vector<32x128xf32>
    %c0_1 = arith.constant 0 : index
    %c1024_2 = arith.constant 1024 : index
    %3 = vector.load %arg13[%c0_1, %c1024_2] : memref<32x1152xf32, #tpu.memory_space<vmem>>, vector<32x128xf32>
    tpu.vector_store %arg13[%c0_1, %c1024_2], %2 {strides = array<i32>} : memref<32x1152xf32, #tpu.memory_space<vmem>>, vector<32x128xf32>,
    %c0_3 = arith.constant 0 : index
    %c0_4 = arith.constant 0 : index
    %c0_5 = arith.constant 0 : index
    %4 = vector.load %arg1[%c0_3, %c0_4, %c0_5] : memref<1x1x1024xf32, #tpu.memory_space<vmem>>, vector<1x1x1024xf32>
    %5 = vector.shape_cast %4 : vector<1x1x1024xf32> to vector<1x1024xf32>
    %c0_6 = arith.constant 0 : index
    %c0_7 = arith.constant 0 : index
    %6 = vector.load %arg12[%c0_6, %c0_7] : memref<16x1152xf32, #tpu.memory_space<vmem>>, vector<1x1024xf32>
    tpu.vector_store %arg12[%c0_6, %c0_7], %5 {strides = array<i32>} : memref<16x1152xf32, #tpu.memory_space<vmem>>, vector<1x1024xf32>,
    %cst_8 = arith.constant 0.000000e+00 : f32
    %7 = vector.broadcast %cst_8 : f32 to vector<4x1024xf32>
    %c0_9 = arith.constant 0 : index
    %c0_10 = arith.constant 0 : index
    %8 = vector.load %arg12[%c0_9, %c0_10] : memref<16x1152xf32, #tpu.memory_space<vmem>>, vector<1x1024xf32>
    %c0_11 = arith.constant 0 : index
    %c0_12 = arith.constant 0 : index
    %c0_13 = arith.constant 0 : index
    %9 = vector.load %arg2[%c0_11, %c0_12, %c0_13] : memref<9x4x1xf32, #tpu.memory_space<vmem>>, vector<1x4x1xf32>
    %10 = vector.shape_cast %9 : vector<1x4x1xf32> to vector<4x1xf32>
    %11 = vector.broadcast %10 : vector<4x1xf32> to vector<4x1024xf32>
    %12 = vector.broadcast %8 : vector<1x1024xf32> to vector<4x1024xf32>
    %13 = arith.mulf %11, %12 : vector<4x1024xf32>
    %14 = arith.addf %7, %13 : vector<4x1024xf32>
    %c0_14 = arith.constant 0 : index
    %c1 = arith.constant 1 : index
    %15 = vector.load %arg12[%c0_14, %c1] : memref<16x1152xf32, #tpu.memory_space<vmem>>, vector<1x1024xf32>
    %c1_15 = arith.constant 1 : index
    %c0_16 = arith.constant 0 : index
    %c0_17 = arith.constant 0 : index
    %16 = vector.load %arg2[%c1_15, %c0_16, %c0_17] : memref<9x4x1xf32, #tpu.memory_space<vmem>>, vector<1x4x1xf32>
    %17 = vector.shape_cast %16 : vector<1x4x1xf32> to vector<4x1xf32>
    %18 = vector.broadcast %17 : vector<4x1xf32> to vector<4x1024xf32>
    %19 = vector.broadcast %15 : vector<1x1024xf32> to vector<4x1024xf32>
    %20 = arith.mulf %18, %19 : vector<4x1024xf32>
    %21 = arith.addf %14, %20 : vector<4x1024xf32>
    %c0_18 = arith.constant 0 : index
    %c2 = arith.constant 2 : index
    %22 = vector.load %arg12[%c0_18, %c2] : memref<16x1152xf32, #tpu.memory_space<vmem>>, vector<1x1024xf32>
    %c2_19 = arith.constant 2 : index
    %c0_20 = arith.constant 0 : index
    %c0_21 = arith.constant 0 : index
    %23 = vector.load %arg2[%c2_19, %c0_20, %c0_21] : memref<9x4x1xf32, #tpu.memory_space<vmem>>, vector<1x4x1xf32>
    %24 = vector.shape_cast %23 : vector<1x4x1xf32> to vector<4x1xf32>
    %25 = vector.broadcast %24 : vector<4x1xf32> to vector<4x1024xf32>
    %26 = vector.broadcast %22 : vector<1x1024xf32> to vector<4x1024xf32>
    %27 = arith.mulf %25, %26 : vector<4x1024xf32>
    %28 = arith.addf %21, %27 : vector<4x1024xf32>
    %c0_22 = arith.constant 0 : index
    %c32 = arith.constant 32 : index
    %29 = vector.load %arg12[%c0_22, %c32] : memref<16x1152xf32, #tpu.memory_space<vmem>>, vector<1x1024xf32>
    %c3 = arith.constant 3 : index
    %c0_23 = arith.constant 0 : index
    %c0_24 = arith.constant 0 : index
    %30 = vector.load %arg2[%c3, %c0_23, %c0_24] : memref<9x4x1xf32, #tpu.memory_space<vmem>>, vector<1x4x1xf32>
    %31 = vector.shape_cast %30 : vector<1x4x1xf32> to vector<4x1xf32>
    %32 = vector.broadcast %31 : vector<4x1xf32> to vector<4x1024xf32>
    %33 = vector.broadcast %29 : vector<1x1024xf32> to vector<4x1024xf32>
    %34 = arith.mulf %32, %33 : vector<4x1024xf32>
    %35 = arith.addf %28, %34 : vector<4x1024xf32>
    %c0_25 = arith.constant 0 : index
    %c33 = arith.constant 33 : index
    %36 = vector.load %arg12[%c0_25, %c33] : memref<16x1152xf32, #tpu.memory_space<vmem>>, vector<1x1024xf32>
    %c4 = arith.constant 4 : index
    %c0_26 = arith.constant 0 : index
    %c0_27 = arith.constant 0 : index
    %37 = vector.load %arg2[%c4, %c0_26, %c0_27] : memref<9x4x1xf32, #tpu.memory_space<vmem>>, vector<1x4x1xf32>
    %38 = vector.shape_cast %37 : vector<1x4x1xf32> to vector<4x1xf32>
    %39 = vector.broadcast %38 : vector<4x1xf32> to vector<4x1024xf32>
    %40 = vector.broadcast %36 : vector<1x1024xf32> to vector<4x1024xf32>
    %41 = arith.mulf %39, %40 : vector<4x1024xf32>
    %42 = arith.addf %35, %41 : vector<4x1024xf32>
    %c0_28 = arith.constant 0 : index
    %c34 = arith.constant 34 : index
    %43 = vector.load %arg12[%c0_28, %c34] : memref<16x1152xf32, #tpu.memory_space<vmem>>, vector<1x1024xf32>
    %c5 = arith.constant 5 : index
    %c0_29 = arith.constant 0 : index
    %c0_30 = arith.constant 0 : index
    %44 = vector.load %arg2[%c5, %c0_29, %c0_30] : memref<9x4x1xf32, #tpu.memory_space<vmem>>, vector<1x4x1xf32>
    %45 = vector.shape_cast %44 : vector<1x4x1xf32> to vector<4x1xf32>
    %46 = vector.broadcast %45 : vector<4x1xf32> to vector<4x1024xf32>
    %47 = vector.broadcast %43 : vector<1x1024xf32> to vector<4x1024xf32>
    %48 = arith.mulf %46, %47 : vector<4x1024xf32>
    %49 = arith.addf %42, %48 : vector<4x1024xf32>
    %c0_31 = arith.constant 0 : index
    %c64 = arith.constant 64 : index
    %50 = vector.load %arg12[%c0_31, %c64] : memref<16x1152xf32, #tpu.memory_space<vmem>>, vector<1x1024xf32>
    %c6 = arith.constant 6 : index
    %c0_32 = arith.constant 0 : index
    %c0_33 = arith.constant 0 : index
    %51 = vector.load %arg2[%c6, %c0_32, %c0_33] : memref<9x4x1xf32, #tpu.memory_space<vmem>>, vector<1x4x1xf32>
    %52 = vector.shape_cast %51 : vector<1x4x1xf32> to vector<4x1xf32>
    %53 = vector.broadcast %52 : vector<4x1xf32> to vector<4x1024xf32>
    %54 = vector.broadcast %50 : vector<1x1024xf32> to vector<4x1024xf32>
    %55 = arith.mulf %53, %54 : vector<4x1024xf32>
    %56 = arith.addf %49, %55 : vector<4x1024xf32>
    %c0_34 = arith.constant 0 : index
    %c65 = arith.constant 65 : index
    %57 = vector.load %arg12[%c0_34, %c65] : memref<16x1152xf32, #tpu.memory_space<vmem>>, vector<1x1024xf32>
    %c7 = arith.constant 7 : index
    %c0_35 = arith.constant 0 : index
    %c0_36 = arith.constant 0 : index
    %58 = vector.load %arg2[%c7, %c0_35, %c0_36] : memref<9x4x1xf32, #tpu.memory_space<vmem>>, vector<1x4x1xf32>
    %59 = vector.shape_cast %58 : vector<1x4x1xf32> to vector<4x1xf32>
    %60 = vector.broadcast %59 : vector<4x1xf32> to vector<4x1024xf32>
    %61 = vector.broadcast %57 : vector<1x1024xf32> to vector<4x1024xf32>
    %62 = arith.mulf %60, %61 : vector<4x1024xf32>
    %63 = arith.addf %56, %62 : vector<4x1024xf32>
    %c0_37 = arith.constant 0 : index
    %c66 = arith.constant 66 : index
    %64 = vector.load %arg12[%c0_37, %c66] : memref<16x1152xf32, #tpu.memory_space<vmem>>, vector<1x1024xf32>
    %c8 = arith.constant 8 : index
    %c0_38 = arith.constant 0 : index
    %c0_39 = arith.constant 0 : index
    %65 = vector.load %arg2[%c8, %c0_38, %c0_39] : memref<9x4x1xf32, #tpu.memory_space<vmem>>, vector<1x4x1xf32>
    %66 = vector.shape_cast %65 : vector<1x4x1xf32> to vector<4x1xf32>
    %67 = vector.broadcast %66 : vector<4x1xf32> to vector<4x1024xf32>
    %68 = vector.broadcast %64 : vector<1x1024xf32> to vector<4x1024xf32>
    %69 = arith.mulf %67, %68 : vector<4x1024xf32>
    %70 = arith.addf %63, %69 : vector<4x1024xf32>
    %c0_40 = arith.constant 0 : index
    %c0_41 = arith.constant 0 : index
    %71 = vector.load %arg3[%c0_40, %c0_41] : memref<4x1xf32, #tpu.memory_space<vmem>>, vector<4x1xf32>
    %72 = vector.broadcast %71 : vector<4x1xf32> to vector<4x1024xf32>
    %73 = arith.addf %70, %72 : vector<4x1024xf32>
    %cst_42 = arith.constant 0.000000e+00 : f32
    %74 = vector.broadcast %cst_42 : f32 to vector<4x1024xf32>
    %75 = arith.maximumf %73, %74 : vector<4x1024xf32>
    %c0_43 = arith.constant 0 : index
    %c0_44 = arith.constant 0 : index
    %76 = vector.load %arg12[%c0_43, %c0_44] : memref<16x1152xf32, #tpu.memory_space<vmem>>, vector<4x1024xf32>
    tpu.vector_store %arg12[%c0_43, %c0_44], %75 {strides = array<i32>} : memref<16x1152xf32, #tpu.memory_space<vmem>>, vector<4x1024xf32>,
    %cst_45 = arith.constant 0.000000e+00 : f32
    %77 = vector.broadcast %cst_45 : f32 to vector<8x1024xf32>
    %c0_46 = arith.constant 0 : index
    %c0_47 = arith.constant 0 : index
    %78 = vector.load %arg12[%c0_46, %c0_47] : memref<16x1152xf32, #tpu.memory_space<vmem>>, vector<4x1024xf32>
    %c0_48 = arith.constant 0 : index
    %c0_49 = arith.constant 0 : index
    %c0_50 = arith.constant 0 : index
    %79 = vector.load %arg4[%c0_48, %c0_49, %c0_50] : memref<9x8x4xf32, #tpu.memory_space<vmem>>, vector<1x8x4xf32>
    %80 = vector.shape_cast %79 : vector<1x8x4xf32> to vector<8x4xf32>
    %cst_51 = arith.constant dense<0.000000e+00> : vector<8x1024xf32>
    %81 = tpu.matmul %80, %78, %cst_51 {dimension_numbers = #tpu.dot_dimension_numbers<[1], [0], [0], [1], [0, 0, 1, 1], [], []>} : vector<8x4xf32>, vector<4x1024xf32>, vector<8x1024xf32> -> vector<8x1024xf32>
    %82 = arith.addf %77, %81 : vector<8x1024xf32>
    %c0_52 = arith.constant 0 : index
    %c1_53 = arith.constant 1 : index
    %83 = vector.load %arg12[%c0_52, %c1_53] : memref<16x1152xf32, #tpu.memory_space<vmem>>, vector<4x1024xf32>
    %c1_54 = arith.constant 1 : index
    %c0_55 = arith.constant 0 : index
    %c0_56 = arith.constant 0 : index
    %84 = vector.load %arg4[%c1_54, %c0_55, %c0_56] : memref<9x8x4xf32, #tpu.memory_space<vmem>>, vector<1x8x4xf32>
    %85 = vector.shape_cast %84 : vector<1x8x4xf32> to vector<8x4xf32>
    %cst_57 = arith.constant dense<0.000000e+00> : vector<8x1024xf32>
    %86 = tpu.matmul %85, %83, %cst_57 {dimension_numbers = #tpu.dot_dimension_numbers<[1], [0], [0], [1], [0, 0, 1, 1], [], []>} : vector<8x4xf32>, vector<4x1024xf32>, vector<8x1024xf32> -> vector<8x1024xf32>
    %87 = arith.addf %82, %86 : vector<8x1024xf32>
    %c0_58 = arith.constant 0 : index
    %c2_59 = arith.constant 2 : index
    %88 = vector.load %arg12[%c0_58, %c2_59] : memref<16x1152xf32, #tpu.memory_space<vmem>>, vector<4x1024xf32>
    %c2_60 = arith.constant 2 : index
    %c0_61 = arith.constant 0 : index
    %c0_62 = arith.constant 0 : index
    %89 = vector.load %arg4[%c2_60, %c0_61, %c0_62] : memref<9x8x4xf32, #tpu.memory_space<vmem>>, vector<1x8x4xf32>
    %90 = vector.shape_cast %89 : vector<1x8x4xf32> to vector<8x4xf32>
    %cst_63 = arith.constant dense<0.000000e+00> : vector<8x1024xf32>
    %91 = tpu.matmul %90, %88, %cst_63 {dimension_numbers = #tpu.dot_dimension_numbers<[1], [0], [0], [1], [0, 0, 1, 1], [], []>} : vector<8x4xf32>, vector<4x1024xf32>, vector<8x1024xf32> -> vector<8x1024xf32>
    %92 = arith.addf %87, %91 : vector<8x1024xf32>
    %c0_64 = arith.constant 0 : index
    %c32_65 = arith.constant 32 : index
    %93 = vector.load %arg12[%c0_64, %c32_65] : memref<16x1152xf32, #tpu.memory_space<vmem>>, vector<4x1024xf32>
    %c3_66 = arith.constant 3 : index
    %c0_67 = arith.constant 0 : index
    %c0_68 = arith.constant 0 : index
    %94 = vector.load %arg4[%c3_66, %c0_67, %c0_68] : memref<9x8x4xf32, #tpu.memory_space<vmem>>, vector<1x8x4xf32>
    %95 = vector.shape_cast %94 : vector<1x8x4xf32> to vector<8x4xf32>
    %cst_69 = arith.constant dense<0.000000e+00> : vector<8x1024xf32>
    %96 = tpu.matmul %95, %93, %cst_69 {dimension_numbers = #tpu.dot_dimension_numbers<[1], [0], [0], [1], [0, 0, 1, 1], [], []>} : vector<8x4xf32>, vector<4x1024xf32>, vector<8x1024xf32> -> vector<8x1024xf32>
    %97 = arith.addf %92, %96 : vector<8x1024xf32>
    %c0_70 = arith.constant 0 : index
    %c33_71 = arith.constant 33 : index
    %98 = vector.load %arg12[%c0_70, %c33_71] : memref<16x1152xf32, #tpu.memory_space<vmem>>, vector<4x1024xf32>
    %c4_72 = arith.constant 4 : index
    %c0_73 = arith.constant 0 : index
    %c0_74 = arith.constant 0 : index
    %99 = vector.load %arg4[%c4_72, %c0_73, %c0_74] : memref<9x8x4xf32, #tpu.memory_space<vmem>>, vector<1x8x4xf32>
    %100 = vector.shape_cast %99 : vector<1x8x4xf32> to vector<8x4xf32>
    %cst_75 = arith.constant dense<0.000000e+00> : vector<8x1024xf32>
    %101 = tpu.matmul %100, %98, %cst_75 {dimension_numbers = #tpu.dot_dimension_numbers<[1], [0], [0], [1], [0, 0, 1, 1], [], []>} : vector<8x4xf32>, vector<4x1024xf32>, vector<8x1024xf32> -> vector<8x1024xf32>
    %102 = arith.addf %97, %101 : vector<8x1024xf32>
    %c0_76 = arith.constant 0 : index
    %c34_77 = arith.constant 34 : index
    %103 = vector.load %arg12[%c0_76, %c34_77] : memref<16x1152xf32, #tpu.memory_space<vmem>>, vector<4x1024xf32>
    %c5_78 = arith.constant 5 : index
    %c0_79 = arith.constant 0 : index
    %c0_80 = arith.constant 0 : index
    %104 = vector.load %arg4[%c5_78, %c0_79, %c0_80] : memref<9x8x4xf32, #tpu.memory_space<vmem>>, vector<1x8x4xf32>
    %105 = vector.shape_cast %104 : vector<1x8x4xf32> to vector<8x4xf32>
    %cst_81 = arith.constant dense<0.000000e+00> : vector<8x1024xf32>
    %106 = tpu.matmul %105, %103, %cst_81 {dimension_numbers = #tpu.dot_dimension_numbers<[1], [0], [0], [1], [0, 0, 1, 1], [], []>} : vector<8x4xf32>, vector<4x1024xf32>, vector<8x1024xf32> -> vector<8x1024xf32>
    %107 = arith.addf %102, %106 : vector<8x1024xf32>
    %c0_82 = arith.constant 0 : index
    %c64_83 = arith.constant 64 : index
    %108 = vector.load %arg12[%c0_82, %c64_83] : memref<16x1152xf32, #tpu.memory_space<vmem>>, vector<4x1024xf32>
    %c6_84 = arith.constant 6 : index
    %c0_85 = arith.constant 0 : index
    %c0_86 = arith.constant 0 : index
    %109 = vector.load %arg4[%c6_84, %c0_85, %c0_86] : memref<9x8x4xf32, #tpu.memory_space<vmem>>, vector<1x8x4xf32>
    %110 = vector.shape_cast %109 : vector<1x8x4xf32> to vector<8x4xf32>
    %cst_87 = arith.constant dense<0.000000e+00> : vector<8x1024xf32>
    %111 = tpu.matmul %110, %108, %cst_87 {dimension_numbers = #tpu.dot_dimension_numbers<[1], [0], [0], [1], [0, 0, 1, 1], [], []>} : vector<8x4xf32>, vector<4x1024xf32>, vector<8x1024xf32> -> vector<8x1024xf32>
    %112 = arith.addf %107, %111 : vector<8x1024xf32>
    %c0_88 = arith.constant 0 : index
    %c65_89 = arith.constant 65 : index
    %113 = vector.load %arg12[%c0_88, %c65_89] : memref<16x1152xf32, #tpu.memory_space<vmem>>, vector<4x1024xf32>
    %c7_90 = arith.constant 7 : index
    %c0_91 = arith.constant 0 : index
    %c0_92 = arith.constant 0 : index
    %114 = vector.load %arg4[%c7_90, %c0_91, %c0_92] : memref<9x8x4xf32, #tpu.memory_space<vmem>>, vector<1x8x4xf32>
    %115 = vector.shape_cast %114 : vector<1x8x4xf32> to vector<8x4xf32>
    %cst_93 = arith.constant dense<0.000000e+00> : vector<8x1024xf32>
    %116 = tpu.matmul %115, %113, %cst_93 {dimension_numbers = #tpu.dot_dimension_numbers<[1], [0], [0], [1], [0, 0, 1, 1], [], []>} : vector<8x4xf32>, vector<4x1024xf32>, vector<8x1024xf32> -> vector<8x1024xf32>
    %117 = arith.addf %112, %116 : vector<8x1024xf32>
    %c0_94 = arith.constant 0 : index
    %c66_95 = arith.constant 66 : index
    %118 = vector.load %arg12[%c0_94, %c66_95] : memref<16x1152xf32, #tpu.memory_space<vmem>>, vector<4x1024xf32>
    %c8_96 = arith.constant 8 : index
    %c0_97 = arith.constant 0 : index
    %c0_98 = arith.constant 0 : index
    %119 = vector.load %arg4[%c8_96, %c0_97, %c0_98] : memref<9x8x4xf32, #tpu.memory_space<vmem>>, vector<1x8x4xf32>
    %120 = vector.shape_cast %119 : vector<1x8x4xf32> to vector<8x4xf32>
    %cst_99 = arith.constant dense<0.000000e+00> : vector<8x1024xf32>
    %121 = tpu.matmul %120, %118, %cst_99 {dimension_numbers = #tpu.dot_dimension_numbers<[1], [0], [0], [1], [0, 0, 1, 1], [], []>} : vector<8x4xf32>, vector<4x1024xf32>, vector<8x1024xf32> -> vector<8x1024xf32>
    %122 = arith.addf %117, %121 : vector<8x1024xf32>
    %c0_100 = arith.constant 0 : index
    %c0_101 = arith.constant 0 : index
    %123 = vector.load %arg5[%c0_100, %c0_101] : memref<8x1xf32, #tpu.memory_space<vmem>>, vector<8x1xf32>
    %124 = vector.broadcast %123 : vector<8x1xf32> to vector<8x1024xf32>
    %125 = arith.addf %122, %124 : vector<8x1024xf32>
    %cst_102 = arith.constant 0.000000e+00 : f32
    %126 = vector.broadcast %cst_102 : f32 to vector<8x1024xf32>
    %127 = arith.maximumf %125, %126 : vector<8x1024xf32>
    %c0_103 = arith.constant 0 : index
    %c0_104 = arith.constant 0 : index
    %128 = vector.load %arg12[%c0_103, %c0_104] : memref<16x1152xf32, #tpu.memory_space<vmem>>, vector<8x1024xf32>
    tpu.vector_store %arg12[%c0_103, %c0_104], %127 {strides = array<i32>} : memref<16x1152xf32, #tpu.memory_space<vmem>>, vector<8x1024xf32>,
    %cst_105 = arith.constant 0.000000e+00 : f32
    %129 = vector.broadcast %cst_105 : f32 to vector<16x1024xf32>
    %c0_106 = arith.constant 0 : index
    %c0_107 = arith.constant 0 : index
    %130 = vector.load %arg12[%c0_106, %c0_107] : memref<16x1152xf32, #tpu.memory_space<vmem>>, vector<8x1024xf32>
    %c0_108 = arith.constant 0 : index
    %c0_109 = arith.constant 0 : index
    %c0_110 = arith.constant 0 : index
    %131 = vector.load %arg6[%c0_108, %c0_109, %c0_110] : memref<9x16x8xf32, #tpu.memory_space<vmem>>, vector<1x16x8xf32>
    %132 = vector.shape_cast %131 : vector<1x16x8xf32> to vector<16x8xf32>
    %cst_111 = arith.constant dense<0.000000e+00> : vector<16x1024xf32>
    %133 = tpu.matmul %132, %130, %cst_111 {dimension_numbers = #tpu.dot_dimension_numbers<[1], [0], [0], [1], [0, 0, 1, 1], [], []>} : vector<16x8xf32>, vector<8x1024xf32>, vector<16x1024xf32> -> vector<16x1024xf32>
    %134 = arith.addf %129, %133 : vector<16x1024xf32>
    %c0_112 = arith.constant 0 : index
    %c1_113 = arith.constant 1 : index
    %135 = vector.load %arg12[%c0_112, %c1_113] : memref<16x1152xf32, #tpu.memory_space<vmem>>, vector<8x1024xf32>
    %c1_114 = arith.constant 1 : index
    %c0_115 = arith.constant 0 : index
    %c0_116 = arith.constant 0 : index
    %136 = vector.load %arg6[%c1_114, %c0_115, %c0_116] : memref<9x16x8xf32, #tpu.memory_space<vmem>>, vector<1x16x8xf32>
    %137 = vector.shape_cast %136 : vector<1x16x8xf32> to vector<16x8xf32>
    %cst_117 = arith.constant dense<0.000000e+00> : vector<16x1024xf32>
    %138 = tpu.matmul %137, %135, %cst_117 {dimension_numbers = #tpu.dot_dimension_numbers<[1], [0], [0], [1], [0, 0, 1, 1], [], []>} : vector<16x8xf32>, vector<8x1024xf32>, vector<16x1024xf32> -> vector<16x1024xf32>
    %139 = arith.addf %134, %138 : vector<16x1024xf32>
    %c0_118 = arith.constant 0 : index
    %c2_119 = arith.constant 2 : index
    %140 = vector.load %arg12[%c0_118, %c2_119] : memref<16x1152xf32, #tpu.memory_space<vmem>>, vector<8x1024xf32>
    %c2_120 = arith.constant 2 : index
    %c0_121 = arith.constant 0 : index
    %c0_122 = arith.constant 0 : index
    %141 = vector.load %arg6[%c2_120, %c0_121, %c0_122] : memref<9x16x8xf32, #tpu.memory_space<vmem>>, vector<1x16x8xf32>
    %142 = vector.shape_cast %141 : vector<1x16x8xf32> to vector<16x8xf32>
    %cst_123 = arith.constant dense<0.000000e+00> : vector<16x1024xf32>
    %143 = tpu.matmul %142, %140, %cst_123 {dimension_numbers = #tpu.dot_dimension_numbers<[1], [0], [0], [1], [0, 0, 1, 1], [], []>} : vector<16x8xf32>, vector<8x1024xf32>, vector<16x1024xf32> -> vector<16x1024xf32>
    %144 = arith.addf %139, %143 : vector<16x1024xf32>
    %c0_124 = arith.constant 0 : index
    %c32_125 = arith.constant 32 : index
    %145 = vector.load %arg12[%c0_124, %c32_125] : memref<16x1152xf32, #tpu.memory_space<vmem>>, vector<8x1024xf32>
    %c3_126 = arith.constant 3 : index
    %c0_127 = arith.constant 0 : index
    %c0_128 = arith.constant 0 : index
    %146 = vector.load %arg6[%c3_126, %c0_127, %c0_128] : memref<9x16x8xf32, #tpu.memory_space<vmem>>, vector<1x16x8xf32>
    %147 = vector.shape_cast %146 : vector<1x16x8xf32> to vector<16x8xf32>
    %cst_129 = arith.constant dense<0.000000e+00> : vector<16x1024xf32>
    %148 = tpu.matmul %147, %145, %cst_129 {dimension_numbers = #tpu.dot_dimension_numbers<[1], [0], [0], [1], [0, 0, 1, 1], [], []>} : vector<16x8xf32>, vector<8x1024xf32>, vector<16x1024xf32> -> vector<16x1024xf32>
    %149 = arith.addf %144, %148 : vector<16x1024xf32>
    %c0_130 = arith.constant 0 : index
    %c33_131 = arith.constant 33 : index
    %150 = vector.load %arg12[%c0_130, %c33_131] : memref<16x1152xf32, #tpu.memory_space<vmem>>, vector<8x1024xf32>
    %c4_132 = arith.constant 4 : index
    %c0_133 = arith.constant 0 : index
    %c0_134 = arith.constant 0 : index
    %151 = vector.load %arg6[%c4_132, %c0_133, %c0_134] : memref<9x16x8xf32, #tpu.memory_space<vmem>>, vector<1x16x8xf32>
    %152 = vector.shape_cast %151 : vector<1x16x8xf32> to vector<16x8xf32>
    %cst_135 = arith.constant dense<0.000000e+00> : vector<16x1024xf32>
    %153 = tpu.matmul %152, %150, %cst_135 {dimension_numbers = #tpu.dot_dimension_numbers<[1], [0], [0], [1], [0, 0, 1, 1], [], []>} : vector<16x8xf32>, vector<8x1024xf32>, vector<16x1024xf32> -> vector<16x1024xf32>
    %154 = arith.addf %149, %153 : vector<16x1024xf32>
    %c0_136 = arith.constant 0 : index
    %c34_137 = arith.constant 34 : index
    %155 = vector.load %arg12[%c0_136, %c34_137] : memref<16x1152xf32, #tpu.memory_space<vmem>>, vector<8x1024xf32>
    %c5_138 = arith.constant 5 : index
    %c0_139 = arith.constant 0 : index
    %c0_140 = arith.constant 0 : index
    %156 = vector.load %arg6[%c5_138, %c0_139, %c0_140] : memref<9x16x8xf32, #tpu.memory_space<vmem>>, vector<1x16x8xf32>
    %157 = vector.shape_cast %156 : vector<1x16x8xf32> to vector<16x8xf32>
    %cst_141 = arith.constant dense<0.000000e+00> : vector<16x1024xf32>
    %158 = tpu.matmul %157, %155, %cst_141 {dimension_numbers = #tpu.dot_dimension_numbers<[1], [0], [0], [1], [0, 0, 1, 1], [], []>} : vector<16x8xf32>, vector<8x1024xf32>, vector<16x1024xf32> -> vector<16x1024xf32>
    %159 = arith.addf %154, %158 : vector<16x1024xf32>
    %c0_142 = arith.constant 0 : index
    %c64_143 = arith.constant 64 : index
    %160 = vector.load %arg12[%c0_142, %c64_143] : memref<16x1152xf32, #tpu.memory_space<vmem>>, vector<8x1024xf32>
    %c6_144 = arith.constant 6 : index
    %c0_145 = arith.constant 0 : index
    %c0_146 = arith.constant 0 : index
    %161 = vector.load %arg6[%c6_144, %c0_145, %c0_146] : memref<9x16x8xf32, #tpu.memory_space<vmem>>, vector<1x16x8xf32>
    %162 = vector.shape_cast %161 : vector<1x16x8xf32> to vector<16x8xf32>
    %cst_147 = arith.constant dense<0.000000e+00> : vector<16x1024xf32>
    %163 = tpu.matmul %162, %160, %cst_147 {dimension_numbers = #tpu.dot_dimension_numbers<[1], [0], [0], [1], [0, 0, 1, 1], [], []>} : vector<16x8xf32>, vector<8x1024xf32>, vector<16x1024xf32> -> vector<16x1024xf32>
    %164 = arith.addf %159, %163 : vector<16x1024xf32>
    %c0_148 = arith.constant 0 : index
    %c65_149 = arith.constant 65 : index
    %165 = vector.load %arg12[%c0_148, %c65_149] : memref<16x1152xf32, #tpu.memory_space<vmem>>, vector<8x1024xf32>
    %c7_150 = arith.constant 7 : index
    %c0_151 = arith.constant 0 : index
    %c0_152 = arith.constant 0 : index
    %166 = vector.load %arg6[%c7_150, %c0_151, %c0_152] : memref<9x16x8xf32, #tpu.memory_space<vmem>>, vector<1x16x8xf32>
    %167 = vector.shape_cast %166 : vector<1x16x8xf32> to vector<16x8xf32>
    %cst_153 = arith.constant dense<0.000000e+00> : vector<16x1024xf32>
    %168 = tpu.matmul %167, %165, %cst_153 {dimension_numbers = #tpu.dot_dimension_numbers<[1], [0], [0], [1], [0, 0, 1, 1], [], []>} : vector<16x8xf32>, vector<8x1024xf32>, vector<16x1024xf32> -> vector<16x1024xf32>
    %169 = arith.addf %164, %168 : vector<16x1024xf32>
    %c0_154 = arith.constant 0 : index
    %c66_155 = arith.constant 66 : index
    %170 = vector.load %arg12[%c0_154, %c66_155] : memref<16x1152xf32, #tpu.memory_space<vmem>>, vector<8x1024xf32>
    %c8_156 = arith.constant 8 : index
    %c0_157 = arith.constant 0 : index
    %c0_158 = arith.constant 0 : index
    %171 = vector.load %arg6[%c8_156, %c0_157, %c0_158] : memref<9x16x8xf32, #tpu.memory_space<vmem>>, vector<1x16x8xf32>
    %172 = vector.shape_cast %171 : vector<1x16x8xf32> to vector<16x8xf32>
    %cst_159 = arith.constant dense<0.000000e+00> : vector<16x1024xf32>
    %173 = tpu.matmul %172, %170, %cst_159 {dimension_numbers = #tpu.dot_dimension_numbers<[1], [0], [0], [1], [0, 0, 1, 1], [], []>} : vector<16x8xf32>, vector<8x1024xf32>, vector<16x1024xf32> -> vector<16x1024xf32>
    %174 = arith.addf %169, %173 : vector<16x1024xf32>
    %c0_160 = arith.constant 0 : index
    %c0_161 = arith.constant 0 : index
    %175 = vector.load %arg7[%c0_160, %c0_161] : memref<16x1xf32, #tpu.memory_space<vmem>>, vector<16x1xf32>
    %176 = vector.broadcast %175 : vector<16x1xf32> to vector<16x1024xf32>
    %177 = arith.addf %174, %176 : vector<16x1024xf32>
    %cst_162 = arith.constant 0.000000e+00 : f32
    %178 = vector.broadcast %cst_162 : f32 to vector<16x1024xf32>
    %179 = arith.maximumf %177, %178 : vector<16x1024xf32>
    %c0_163 = arith.constant 0 : index
    %c0_164 = arith.constant 0 : index
    %180 = vector.load %arg12[%c0_163, %c0_164] : memref<16x1152xf32, #tpu.memory_space<vmem>>, vector<16x1024xf32>
    tpu.vector_store %arg12[%c0_163, %c0_164], %179 {strides = array<i32>} : memref<16x1152xf32, #tpu.memory_space<vmem>>, vector<16x1024xf32>,
    %cst_165 = arith.constant 0.000000e+00 : f32
    %181 = vector.broadcast %cst_165 : f32 to vector<32x1024xf32>
    %c0_166 = arith.constant 0 : index
    %c0_167 = arith.constant 0 : index
    %182 = vector.load %arg12[%c0_166, %c0_167] : memref<16x1152xf32, #tpu.memory_space<vmem>>, vector<16x1024xf32>
    %c0_168 = arith.constant 0 : index
    %c0_169 = arith.constant 0 : index
    %c0_170 = arith.constant 0 : index
    %183 = vector.load %arg8[%c0_168, %c0_169, %c0_170] : memref<9x32x16xf32, #tpu.memory_space<vmem>>, vector<1x32x16xf32>
    %184 = vector.shape_cast %183 : vector<1x32x16xf32> to vector<32x16xf32>
    %cst_171 = arith.constant dense<0.000000e+00> : vector<32x1024xf32>
    %185 = tpu.matmul %184, %182, %cst_171 {dimension_numbers = #tpu.dot_dimension_numbers<[1], [0], [0], [1], [0, 0, 1, 1], [], []>} : vector<32x16xf32>, vector<16x1024xf32>, vector<32x1024xf32> -> vector<32x1024xf32>
    %186 = arith.addf %181, %185 : vector<32x1024xf32>
    %c0_172 = arith.constant 0 : index
    %c1_173 = arith.constant 1 : index
    %187 = vector.load %arg12[%c0_172, %c1_173] : memref<16x1152xf32, #tpu.memory_space<vmem>>, vector<16x1024xf32>
    %c1_174 = arith.constant 1 : index
    %c0_175 = arith.constant 0 : index
    %c0_176 = arith.constant 0 : index
    %188 = vector.load %arg8[%c1_174, %c0_175, %c0_176] : memref<9x32x16xf32, #tpu.memory_space<vmem>>, vector<1x32x16xf32>
    %189 = vector.shape_cast %188 : vector<1x32x16xf32> to vector<32x16xf32>
    %cst_177 = arith.constant dense<0.000000e+00> : vector<32x1024xf32>
    %190 = tpu.matmul %189, %187, %cst_177 {dimension_numbers = #tpu.dot_dimension_numbers<[1], [0], [0], [1], [0, 0, 1, 1], [], []>} : vector<32x16xf32>, vector<16x1024xf32>, vector<32x1024xf32> -> vector<32x1024xf32>
    %191 = arith.addf %186, %190 : vector<32x1024xf32>
    %c0_178 = arith.constant 0 : index
    %c2_179 = arith.constant 2 : index
    %192 = vector.load %arg12[%c0_178, %c2_179] : memref<16x1152xf32, #tpu.memory_space<vmem>>, vector<16x1024xf32>
    %c2_180 = arith.constant 2 : index
    %c0_181 = arith.constant 0 : index
    %c0_182 = arith.constant 0 : index
    %193 = vector.load %arg8[%c2_180, %c0_181, %c0_182] : memref<9x32x16xf32, #tpu.memory_space<vmem>>, vector<1x32x16xf32>
    %194 = vector.shape_cast %193 : vector<1x32x16xf32> to vector<32x16xf32>
    %cst_183 = arith.constant dense<0.000000e+00> : vector<32x1024xf32>
    %195 = tpu.matmul %194, %192, %cst_183 {dimension_numbers = #tpu.dot_dimension_numbers<[1], [0], [0], [1], [0, 0, 1, 1], [], []>} : vector<32x16xf32>, vector<16x1024xf32>, vector<32x1024xf32> -> vector<32x1024xf32>
    %196 = arith.addf %191, %195 : vector<32x1024xf32>
    %c0_184 = arith.constant 0 : index
    %c32_185 = arith.constant 32 : index
    %197 = vector.load %arg12[%c0_184, %c32_185] : memref<16x1152xf32, #tpu.memory_space<vmem>>, vector<16x1024xf32>
    %c3_186 = arith.constant 3 : index
    %c0_187 = arith.constant 0 : index
    %c0_188 = arith.constant 0 : index
    %198 = vector.load %arg8[%c3_186, %c0_187, %c0_188] : memref<9x32x16xf32, #tpu.memory_space<vmem>>, vector<1x32x16xf32>
    %199 = vector.shape_cast %198 : vector<1x32x16xf32> to vector<32x16xf32>
    %cst_189 = arith.constant dense<0.000000e+00> : vector<32x1024xf32>
    %200 = tpu.matmul %199, %197, %cst_189 {dimension_numbers = #tpu.dot_dimension_numbers<[1], [0], [0], [1], [0, 0, 1, 1], [], []>} : vector<32x16xf32>, vector<16x1024xf32>, vector<32x1024xf32> -> vector<32x1024xf32>
    %201 = arith.addf %196, %200 : vector<32x1024xf32>
    %c0_190 = arith.constant 0 : index
    %c33_191 = arith.constant 33 : index
    %202 = vector.load %arg12[%c0_190, %c33_191] : memref<16x1152xf32, #tpu.memory_space<vmem>>, vector<16x1024xf32>
    %c4_192 = arith.constant 4 : index
    %c0_193 = arith.constant 0 : index
    %c0_194 = arith.constant 0 : index
    %203 = vector.load %arg8[%c4_192, %c0_193, %c0_194] : memref<9x32x16xf32, #tpu.memory_space<vmem>>, vector<1x32x16xf32>
    %204 = vector.shape_cast %203 : vector<1x32x16xf32> to vector<32x16xf32>
    %cst_195 = arith.constant dense<0.000000e+00> : vector<32x1024xf32>
    %205 = tpu.matmul %204, %202, %cst_195 {dimension_numbers = #tpu.dot_dimension_numbers<[1], [0], [0], [1], [0, 0, 1, 1], [], []>} : vector<32x16xf32>, vector<16x1024xf32>, vector<32x1024xf32> -> vector<32x1024xf32>
    %206 = arith.addf %201, %205 : vector<32x1024xf32>
    %c0_196 = arith.constant 0 : index
    %c34_197 = arith.constant 34 : index
    %207 = vector.load %arg12[%c0_196, %c34_197] : memref<16x1152xf32, #tpu.memory_space<vmem>>, vector<16x1024xf32>
    %c5_198 = arith.constant 5 : index
    %c0_199 = arith.constant 0 : index
    %c0_200 = arith.constant 0 : index
    %208 = vector.load %arg8[%c5_198, %c0_199, %c0_200] : memref<9x32x16xf32, #tpu.memory_space<vmem>>, vector<1x32x16xf32>
    %209 = vector.shape_cast %208 : vector<1x32x16xf32> to vector<32x16xf32>
    %cst_201 = arith.constant dense<0.000000e+00> : vector<32x1024xf32>
    %210 = tpu.matmul %209, %207, %cst_201 {dimension_numbers = #tpu.dot_dimension_numbers<[1], [0], [0], [1], [0, 0, 1, 1], [], []>} : vector<32x16xf32>, vector<16x1024xf32>, vector<32x1024xf32> -> vector<32x1024xf32>
    %211 = arith.addf %206, %210 : vector<32x1024xf32>
    %c0_202 = arith.constant 0 : index
    %c64_203 = arith.constant 64 : index
    %212 = vector.load %arg12[%c0_202, %c64_203] : memref<16x1152xf32, #tpu.memory_space<vmem>>, vector<16x1024xf32>
    %c6_204 = arith.constant 6 : index
    %c0_205 = arith.constant 0 : index
    %c0_206 = arith.constant 0 : index
    %213 = vector.load %arg8[%c6_204, %c0_205, %c0_206] : memref<9x32x16xf32, #tpu.memory_space<vmem>>, vector<1x32x16xf32>
    %214 = vector.shape_cast %213 : vector<1x32x16xf32> to vector<32x16xf32>
    %cst_207 = arith.constant dense<0.000000e+00> : vector<32x1024xf32>
    %215 = tpu.matmul %214, %212, %cst_207 {dimension_numbers = #tpu.dot_dimension_numbers<[1], [0], [0], [1], [0, 0, 1, 1], [], []>} : vector<32x16xf32>, vector<16x1024xf32>, vector<32x1024xf32> -> vector<32x1024xf32>
    %216 = arith.addf %211, %215 : vector<32x1024xf32>
    %c0_208 = arith.constant 0 : index
    %c65_209 = arith.constant 65 : index
    %217 = vector.load %arg12[%c0_208, %c65_209] : memref<16x1152xf32, #tpu.memory_space<vmem>>, vector<16x1024xf32>
    %c7_210 = arith.constant 7 : index
    %c0_211 = arith.constant 0 : index
    %c0_212 = arith.constant 0 : index
    %218 = vector.load %arg8[%c7_210, %c0_211, %c0_212] : memref<9x32x16xf32, #tpu.memory_space<vmem>>, vector<1x32x16xf32>
    %219 = vector.shape_cast %218 : vector<1x32x16xf32> to vector<32x16xf32>
    %cst_213 = arith.constant dense<0.000000e+00> : vector<32x1024xf32>
    %220 = tpu.matmul %219, %217, %cst_213 {dimension_numbers = #tpu.dot_dimension_numbers<[1], [0], [0], [1], [0, 0, 1, 1], [], []>} : vector<32x16xf32>, vector<16x1024xf32>, vector<32x1024xf32> -> vector<32x1024xf32>
    %221 = arith.addf %216, %220 : vector<32x1024xf32>
    %c0_214 = arith.constant 0 : index
    %c66_215 = arith.constant 66 : index
    %222 = vector.load %arg12[%c0_214, %c66_215] : memref<16x1152xf32, #tpu.memory_space<vmem>>, vector<16x1024xf32>
    %c8_216 = arith.constant 8 : index
    %c0_217 = arith.constant 0 : index
    %c0_218 = arith.constant 0 : index
    %223 = vector.load %arg8[%c8_216, %c0_217, %c0_218] : memref<9x32x16xf32, #tpu.memory_space<vmem>>, vector<1x32x16xf32>
    %224 = vector.shape_cast %223 : vector<1x32x16xf32> to vector<32x16xf32>
    %cst_219 = arith.constant dense<0.000000e+00> : vector<32x1024xf32>
    %225 = tpu.matmul %224, %222, %cst_219 {dimension_numbers = #tpu.dot_dimension_numbers<[1], [0], [0], [1], [0, 0, 1, 1], [], []>} : vector<32x16xf32>, vector<16x1024xf32>, vector<32x1024xf32> -> vector<32x1024xf32>
    %226 = arith.addf %221, %225 : vector<32x1024xf32>
    %c0_220 = arith.constant 0 : index
    %c0_221 = arith.constant 0 : index
    %227 = vector.load %arg9[%c0_220, %c0_221] : memref<32x1xf32, #tpu.memory_space<vmem>>, vector<32x1xf32>
    %228 = vector.broadcast %227 : vector<32x1xf32> to vector<32x1024xf32>
    %229 = arith.addf %226, %228 : vector<32x1024xf32>
    %c0_222 = arith.constant 0 : index
    %c0_223 = arith.constant 0 : index
    %230 = vector.load %arg13[%c0_222, %c0_223] : memref<32x1152xf32, #tpu.memory_space<vmem>>, vector<32x1024xf32>
    tpu.vector_store %arg13[%c0_222, %c0_223], %229 {strides = array<i32>} : memref<32x1152xf32, #tpu.memory_space<vmem>>, vector<32x1024xf32>,
    %c0_224 = arith.constant 0 : index
    %c0_225 = arith.constant 0 : index
    %231 = vector.load %arg13[%c0_224, %c0_225] : memref<32x1152xf32, #tpu.memory_space<vmem>>, vector<32x1024xf32>
    %c0_226 = arith.constant 0 : index
    %c1_227 = arith.constant 1 : index
    %232 = vector.load %arg13[%c0_226, %c1_227] : memref<32x1152xf32, #tpu.memory_space<vmem>>, vector<32x1024xf32>
    %c0_228 = arith.constant 0 : index
    %c32_229 = arith.constant 32 : index
    %233 = vector.load %arg13[%c0_228, %c32_229] : memref<32x1152xf32, #tpu.memory_space<vmem>>, vector<32x1024xf32>
    %c0_230 = arith.constant 0 : index
    %c33_231 = arith.constant 33 : index
    %234 = vector.load %arg13[%c0_230, %c33_231] : memref<32x1152xf32, #tpu.memory_space<vmem>>, vector<32x1024xf32>
    %235 = arith.maximumf %231, %232 : vector<32x1024xf32>
    %236 = arith.maximumf %233, %234 : vector<32x1024xf32>
    %237 = arith.maximumf %235, %236 : vector<32x1024xf32>
    %c0_232 = arith.constant 0 : index
    %c0_233 = arith.constant 0 : index
    %238 = vector.load %arg10[%c0_232, %c0_233] : memref<1024x144xf32, #tpu.memory_space<vmem>>, vector<1024x144xf32>
    %cst_234 = arith.constant dense<0.000000e+00> : vector<32x144xf32>
    %239 = tpu.matmul %237, %238, %cst_234 {dimension_numbers = #tpu.dot_dimension_numbers<[1], [0], [0], [1], [0, 0, 1, 1], [], []>} : vector<32x1024xf32>, vector<1024x144xf32>, vector<32x144xf32> -> vector<32x144xf32>
    %cst_235 = arith.constant 0.000000e+00 : f32
    %240 = vector.broadcast %cst_235 : f32 to vector<32x144xf32>
    %241 = arith.maximumf %239, %240 : vector<32x144xf32>
    %c0_236 = arith.constant 0 : index
    %c0_237 = arith.constant 0 : index
    %c0_238 = arith.constant 0 : index
    %242 = vector.load %arg11[%c0_236, %c0_237, %c0_238] : memref<1x32x144xf32, #tpu.memory_space<vmem>>, vector<1x32x144xf32>
    %243 = vector.shape_cast %242 : vector<1x32x144xf32> to vector<32x144xf32>
    %244 = vector.shape_cast %241 : vector<32x144xf32> to vector<1x32x144xf32>
    tpu.vector_store %arg11[%c0_236, %c0_237, %c0_238], %244 {strides = array<i32>} : memref<1x32x144xf32, #tpu.memory_space<vmem>>, vector<1x32x144xf32>,
    return
  }
  func.func @transform_0(%arg0: i32) -> (i32, i32, i32) {
    %c0_i32 = arith.constant 0 : i32
    %c0_i32_0 = arith.constant 0 : i32
    %c0_i32_1 = arith.constant 0 : i32
    return %arg0, %c0_i32, %c0_i32_0 : i32, i32, i32
  }
  func.func @transform_1(%arg0: i32) -> (i32, i32, i32) {
    %c0_i32 = arith.constant 0 : i32
    %c0_i32_0 = arith.constant 0 : i32
    %c0_i32_1 = arith.constant 0 : i32
    %c0_i32_2 = arith.constant 0 : i32
    return %c0_i32, %c0_i32_0, %c0_i32_1 : i32, i32, i32
  }
  func.func @transform_2(%arg0: i32) -> (i32, i32) {
    %c0_i32 = arith.constant 0 : i32
    %c0_i32_0 = arith.constant 0 : i32
    %c0_i32_1 = arith.constant 0 : i32
    return %c0_i32, %c0_i32_0 : i32, i32
  }
  func.func @transform_3(%arg0: i32) -> (i32, i32, i32) {
    %c0_i32 = arith.constant 0 : i32
    %c0_i32_0 = arith.constant 0 : i32
    %c0_i32_1 = arith.constant 0 : i32
    %c0_i32_2 = arith.constant 0 : i32
    return %c0_i32, %c0_i32_0, %c0_i32_1 : i32, i32, i32
  }
  func.func @transform_4(%arg0: i32) -> (i32, i32) {
    %c0_i32 = arith.constant 0 : i32
    %c0_i32_0 = arith.constant 0 : i32
    %c0_i32_1 = arith.constant 0 : i32
    return %c0_i32, %c0_i32_0 : i32, i32
  }
  func.func @transform_5(%arg0: i32) -> (i32, i32, i32) {
    %c0_i32 = arith.constant 0 : i32
    %c0_i32_0 = arith.constant 0 : i32
    %c0_i32_1 = arith.constant 0 : i32
    %c0_i32_2 = arith.constant 0 : i32
    return %c0_i32, %c0_i32_0, %c0_i32_1 : i32, i32, i32
  }
  func.func @transform_6(%arg0: i32) -> (i32, i32) {
    %c0_i32 = arith.constant 0 : i32
    %c0_i32_0 = arith.constant 0 : i32
    %c0_i32_1 = arith.constant 0 : i32
    return %c0_i32, %c0_i32_0 : i32, i32
  }
  func.func @transform_7(%arg0: i32) -> (i32, i32, i32) {
    %c0_i32 = arith.constant 0 : i32
    %c0_i32_0 = arith.constant 0 : i32
    %c0_i32_1 = arith.constant 0 : i32
    %c0_i32_2 = arith.constant 0 : i32
    return %c0_i32, %c0_i32_0, %c0_i32_1 : i32, i32, i32
  }
  func.func @transform_8(%arg0: i32) -> (i32, i32) {
    %c0_i32 = arith.constant 0 : i32
    %c0_i32_0 = arith.constant 0 : i32
    %c0_i32_1 = arith.constant 0 : i32
    return %c0_i32, %c0_i32_0 : i32, i32
  }
  func.func @transform_9(%arg0: i32) -> (i32, i32) {
    %c0_i32 = arith.constant 0 : i32
    %c0_i32_0 = arith.constant 0 : i32
    %c0_i32_1 = arith.constant 0 : i32
    return %c0_i32, %c0_i32_0 : i32, i32
  }
  func.func @transform_10(%arg0: i32) -> (i32, i32, i32) {
    %c0_i32 = arith.constant 0 : i32
    %c0_i32_0 = arith.constant 0 : i32
    %c0_i32_1 = arith.constant 0 : i32
    return %arg0, %c0_i32, %c0_i32_0 : i32, i32, i32
  }
}

</mosaic_0001>

<bundles_post_ra>
// kernel: network_forward.3
= control target key start
LH: loop header
LB: loop body
LE: loop exit
PB: predicated region body
PF: predicated region fallthrough
CT: control target
= control target key end

     0   :  { %v3639_v47 = vmov 1983009808   ;;  %v632_v49 = vlaneseq  ;;  %s5647_s0 = inlined_call_operand.vmem [shape: f32[2,4608], index: 0, kind: input, shape index: {}]   ;;  %s5648_s1 = inlined_call_operand.vmem [shape: f32[4608,128], index: 1, kind: input, shape index: {}]   ;;  %s5649_s2 = inlined_call_operand.vmem [shape: f32[1,128], index: 2, kind: input, shape index: {}]   ;;  %s5650_s3 = inlined_call_operand.vmem [shape: f32[128,64], index: 3, kind: input, shape index: {}]   ;;  %s5651_s4 = inlined_call_operand.vmem [shape: f32[1,64], index: 4, kind: input, shape index: {}]   ;;  %s5652_s5 = inlined_call_operand.vmem [shape: f32[64,2], index: 5, kind: input, shape index: {}]   ;;  %s5653_s6 = inlined_call_operand.vmem [shape: f32[1,2], index: 6, kind: input, shape index: {}]   ;;  %s5654_s7 = inlined_call_operand.hbm [shape: f32[2,2], index: 7, kind: output, shape index: {}]  }
   0x1   :  { %v52_v0 = vld [vmem:[%s5648_s1 + $0x80] sm:$0xff]  ;;  %v53_v1 = vld [vmem:[%s5648_s1 + $0x88] sm:$0xff]  ;;  %v54_v11 = vld [vmem:[%s5648_s1 + $0x90] sm:$0xff]  ;;  %v630_v48 = vunpack.c.l.s4 %v3639_v47 }
   0x2   :  { %v36_v2 = vld [vmem:[%s5648_s1] sm:$0xff]  ;;  %v2989_v3 = vpack.c.bf16 %v53_v1, %v52_v0  ;;  %v37_v4 = vld [vmem:[%s5648_s1 + $0x8] sm:$0xff]  ;;  %v55_v13 = vld [vmem:[%s5648_s1 + $0x98] sm:$0xff]  ;;  %v633_v0 = vshrl.u32 %v632_v49, 7 }
   0x3   :  { %v84_v5 = vld [vmem:[%s5648_s1 + $0x180] sm:$0xff]  ;;  %v85_v6 = vld [vmem:[%s5648_s1 + $0x188] sm:$0xff]  ;;  %v2991_v7 = vpack.c.bf16 %v37_v4, %v36_v2  ;;  %v38_v14 = vld [vmem:[%s5648_s1 + $0x10] sm:$0xff]  ;;  %v2993_v16 = vpack.c.bf16 %v55_v13, %v54_v11  ;;  %v631_v63 = vunpack.c.0.s8 %v630_v48 }
   0x4   :  { %v3021_v8 = vpack.c.bf16 %v85_v6, %v84_v5  ;;  %v68_v9 = vld [vmem:[%s5648_s1 + $0x100] sm:$0xff]  ;;  %v69_v10 = vld [vmem:[%s5648_s1 + $0x108] sm:$0xff]  ;;  %2990 = vmatprep.subr.bf16.mxu0 %v2989_v3  ;;  %v39_v15 = vld [vmem:[%s5648_s1 + $0x18] sm:$0xff] }
   0x5   :  { %v3023_v12 = vpack.c.bf16 %v69_v10, %v68_v9  ;;  %2992 = vmatpush3.bf16.msra.mxu0 %v2991_v7  ;;  %v2995_v17 = vpack.c.bf16 %v39_v15, %v38_v14  ;;  %v86_v18 = vld [vmem:[%s5648_s1 + $0x190] sm:$0xff]  ;;  %v87_v19 = vld [vmem:[%s5648_s1 + $0x198] sm:$0xff]  ;;  %v56_v23 = vld [vmem:[%s5648_s1 + $0xa0] sm:$0xff]  ;;  %v3834_v13 = vsub.s32 %v631_v63, %v633_v0 }
   0x6   :  { %3022 = vmatprep.subr.bf16.mxu1 %v3021_v8  ;;  %v70_v20 = vld [vmem:[%s5648_s1 + $0x110] sm:$0xff]  ;;  %v3025_v21 = vpack.c.bf16 %v87_v19, %v86_v18  ;;  %v71_v22 = vld [vmem:[%s5648_s1 + $0x118] sm:$0xff]  ;;  %v57_v24 = vld [vmem:[%s5648_s1 + $0xa8] sm:$0xff]  ;;  %2994 = vmatprep.subr.bf16.mxu0 %v2993_v16 }
   0x7   :  { %3024 = vmatpush3.bf16.msra.mxu1 %v3023_v12  ;;  %v3027_v25 = vpack.c.bf16 %v71_v22, %v70_v20  ;;  %v2997_v26 = vpack.c.bf16 %v57_v24, %v56_v23  ;;  %v40_v27 = vld [vmem:[%s5648_s1 + $0x20] sm:$0xff]  ;;  %v41_v28 = vld [vmem:[%s5648_s1 + $0x28] sm:$0xff]  ;;  %v58_v35 = vld [vmem:[%s5648_s1 + $0xb0] sm:$0xff] }
   0x8   :  { %v88_v29 = vld [vmem:[%s5648_s1 + $0x1a0] sm:$0xff]  ;;  %3026 = vmatprep.subr.bf16.mxu1 %v3025_v21  ;;  %v89_v30 = vld [vmem:[%s5648_s1 + $0x1a8] sm:$0xff]  ;;  %v2999_v33 = vpack.c.bf16 %v41_v28, %v40_v27  ;;  %v59_v36 = vld [vmem:[%s5648_s1 + $0xb8] sm:$0xff] }
   0x9   :  { %v72_v31 = vld [vmem:[%s5648_s1 + $0x120] sm:$0xff]  ;;  %v73_v32 = vld [vmem:[%s5648_s1 + $0x128] sm:$0xff]  ;;  %2996 = vmatpush3.bf16.msra.mxu0 %v2995_v17  ;;  %v3029_v34 = vpack.c.bf16 %v89_v30, %v88_v29  ;;  %v42_v37 = vld [vmem:[%s5648_s1 + $0x30] sm:$0xff]  ;;  %v3001_v39 = vpack.c.bf16 %v59_v36, %v58_v35 }
   0xa   :  { %2998 = vmatprep.subr.bf16.mxu0 %v2997_v26  ;;  %v3031_v38 = vpack.c.bf16 %v73_v32, %v72_v31  ;;  %v43_v40 = vld [vmem:[%s5648_s1 + $0x38] sm:$0xff]  ;;  %v90_v41 = vld [vmem:[%s5648_s1 + $0x1b0] sm:$0xff]  ;;  %v60_v46 = vld [vmem:[%s5648_s1 + $0xc0] sm:$0xff] }
   0xb   :  { %3028 = vmatpush3.bf16.msra.mxu1 %v3027_v25  ;;  %v91_v42 = vld [vmem:[%s5648_s1 + $0x1b8] sm:$0xff]  ;;  %v74_v44 = vld [vmem:[%s5648_s1 + $0x130] sm:$0xff]  ;;  %v61_v50 = vld [vmem:[%s5648_s1 + $0xc8] sm:$0xff]  ;;  %v3003_v51 = vpack.c.bf16 %v43_v40, %v42_v37 }
   0xc   :  { %3030 = vmatprep.subr.bf16.mxu1 %v3029_v34  ;;  %v3033_v43 = vpack.c.bf16 %v91_v42, %v90_v41  ;;  %v75_v45 = vld [vmem:[%s5648_s1 + $0x138] sm:$0xff]  ;;  %v92_v52 = vld [vmem:[%s5648_s1 + $0x1c0] sm:$0xff]  ;;  %v93_v53 = vld [vmem:[%s5648_s1 + $0x1c8] sm:$0xff]  ;;  %v3005_v55 = vpack.c.bf16 %v61_v50, %v60_v46 }
   0xd   :  { %3000 = vmatpush3.bf16.msra.mxu0 %v2999_v33  ;;  %v3035_v54 = vpack.c.bf16 %v75_v45, %v74_v44  ;;  %v44_v56 = vld [vmem:[%s5648_s1 + $0x40] sm:$0xff]  ;;  %v45_v57 = vld [vmem:[%s5648_s1 + $0x48] sm:$0xff]  ;;  %v3037_v59 = vpack.c.bf16 %v93_v53, %v92_v52  ;;  %v62_v61 = vld [vmem:[%s5648_s1 + $0xd0] sm:$0xff] }
   0xe   :  { %3002 = vmatprep.subr.bf16.mxu0 %v3001_v39  ;;  %v76_v58 = vld [vmem:[%s5648_s1 + $0x140] sm:$0xff]  ;;  %v77_v60 = vld [vmem:[%s5648_s1 + $0x148] sm:$0xff]  ;;  %v63_v62 = vld [vmem:[%s5648_s1 + $0xd8] sm:$0xff]  ;;  %v3007_v3 = vpack.c.bf16 %v45_v57, %v44_v56 }
   0xf   :  { %3032 = vmatpush3.bf16.msra.mxu1 %v3031_v38  ;;  %v94_v1 = vld [vmem:[%s5648_s1 + $0x1d0] sm:$0xff]  ;;  %v95_v2 = vld [vmem:[%s5648_s1 + $0x1d8] sm:$0xff]  ;;  %v3039_v4 = vpack.c.bf16 %v77_v60, %v76_v58  ;;  %v3009_v5 = vpack.c.bf16 %v63_v62, %v62_v61  ;;  %v64_v11 = vld [vmem:[%s5648_s1 + $0xe0] sm:$0xff] }
  0x10   :  { %3034 = vmatprep.subr.bf16.mxu1 %v3033_v43  ;;  %v46_v6 = vld [vmem:[%s5648_s1 + $0x50] sm:$0xff]  ;;  %v47_v7 = vld [vmem:[%s5648_s1 + $0x58] sm:$0xff]  ;;  %v3041_v9 = vpack.c.bf16 %v95_v2, %v94_v1  ;;  %v65_v12 = vld [vmem:[%s5648_s1 + $0xe8] sm:$0xff] }
  0x11   :  { %3004 = vmatpush3.bf16.msra.mxu0 %v3003_v51  ;;  %v78_v8 = vld [vmem:[%s5648_s1 + $0x150] sm:$0xff]  ;;  %v79_v10 = vld [vmem:[%s5648_s1 + $0x158] sm:$0xff]  ;;  %v96_v14 = vld [vmem:[%s5648_s1 + $0x1e0] sm:$0xff]  ;;  %v3011_v16 = vpack.c.bf16 %v47_v7, %v46_v6  ;;  %v3013_v19 = vpack.c.bf16 %v65_v12, %v64_v11 }
  0x12   :  { %3006 = vmatprep.subr.bf16.mxu0 %v3005_v55  ;;  %v97_v15 = vld [vmem:[%s5648_s1 + $0x1e8] sm:$0xff]  ;;  %v48_v17 = vld [vmem:[%s5648_s1 + $0x60] sm:$0xff]  ;;  %v3043_v18 = vpack.c.bf16 %v79_v10, %v78_v8  ;;  %v66_v25 = vld [vmem:[%s5648_s1 + $0xf0] sm:$0xff] }
  0x13   :  { %3036 = vmatpush3.bf16.msra.mxu1 %v3035_v54  ;;  %v49_v20 = vld [vmem:[%s5648_s1 + $0x68] sm:$0xff]  ;;  %v80_v21 = vld [vmem:[%s5648_s1 + $0x160] sm:$0xff]  ;;  %v3045_v23 = vpack.c.bf16 %v97_v15, %v96_v14  ;;  %v67_v26 = vld [vmem:[%s5648_s1 + $0xf8] sm:$0xff] }
  0x14   :  { %3038 = vmatprep.subr.bf16.mxu1 %v3037_v59  ;;  %v27_v22 = vld [vmem:[%s5647_s0] sm:$0xff]  ;;  %v81_v24 = vld [vmem:[%s5648_s1 + $0x168] sm:$0xff]  ;;  %v98_v29 = vld [vmem:[%s5648_s1 + $0x1f0] sm:$0xff]  ;;  %v3015_v31 = vpack.c.bf16 %v49_v20, %v48_v17  ;;  %v3017_v35 = vpack.c.bf16 %v67_v26, %v66_v25 }
  0x15   :  { %3008 = vmatpush3.bf16.msra.mxu0 %v3007_v3  ;;  %v635_v27 = vrot.slane %v27_v22, %v3834_v13  ;;  %v628_v28 = vcombine.high %v27_v22, %v27_v22  ;;  %v99_v30 = vld [vmem:[%s5648_s1 + $0x1f8] sm:$0xff]  ;;  %v3047_v34 = vpack.c.bf16 %v81_v24, %v80_v21  ;;  %v50_v36 = vld [vmem:[%s5648_s1 + $0x70] sm:$0xff]  ;;  %v116_v41 = vld [vmem:[%s5648_s1 + $0x280] sm:$0xff] }
  0x16   :  { %3010 = vmatprep.subr.bf16.mxu0 %v3009_v5  ;;  %v51_v37 = vld [vmem:[%s5648_s1 + $0x78] sm:$0xff]  ;;  %v82_v38 = vld [vmem:[%s5648_s1 + $0x170] sm:$0xff]  ;;  %v3049_v39 = vpack.c.bf16 %v99_v30, %v98_v29  ;;  %v117_v42 = vld [vmem:[%s5648_s1 + $0x288] sm:$0xff] }
  0x17   :  { %3040 = vmatpush3.bf16.msra.mxu1 %v3039_v4  ;;  %v643_v32 = vcombine.high %v635_v27, %v635_v27  ;;  %v642_v33 = vrot.slane %v628_v28, %v3834_v13  ;;  %v83_v40 = vld [vmem:[%s5648_s1 + $0x178] sm:$0xff]  ;;  %v148_v44 = vld [vmem:[%s5648_s1 + $0x380] sm:$0xff]  ;;  %v149_v45 = vld [vmem:[%s5648_s1 + $0x388] sm:$0xff]  ;;  %v3019_v46 = vpack.c.bf16 %v51_v37, %v50_v36  ;;  %v3053_v48 = vpack.c.bf16 %v117_v42, %v116_v41 }
  0x18   :  { %3042 = vmatprep.subr.bf16.mxu1 %v3041_v9  ;;  %v3051_v47 = vpack.c.bf16 %v83_v40, %v82_v38  ;;  %v100_v49 = vld [vmem:[%s5648_s1 + $0x200] sm:$0xff]  ;;  %v101_v50 = vld [vmem:[%s5648_s1 + $0x208] sm:$0xff]  ;;  %v3085_v52 = vpack.c.bf16 %v149_v45, %v148_v44  ;;  %v118_v54 = vld [vmem:[%s5648_s1 + $0x290] sm:$0xff] }
  0x19   :  { %3012 = vmatpush3.bf16.msra.mxu0 %v3011_v16  ;;  %881 = vmatprep.mubr.f32.mxu0 %v643_v32  ;;  %v644_v43 = vcombine.high %v642_v33, %v642_v33  ;;  %v132_v51 = vld [vmem:[%s5648_s1 + $0x300] sm:$0xff]  ;;  %v133_v53 = vld [vmem:[%s5648_s1 + $0x308] sm:$0xff]  ;;  %v119_v55 = vld [vmem:[%s5648_s1 + $0x298] sm:$0xff]  ;;  %v3055_v58 = vpack.c.bf16 %v101_v50, %v100_v49 }
  0x1a   :  { %3014 = vmatprep.subr.bf16.mxu0 %v3013_v19  ;;  %v150_v56 = vld [vmem:[%s5648_s1 + $0x390] sm:$0xff]  ;;  %v151_v57 = vld [vmem:[%s5648_s1 + $0x398] sm:$0xff]  ;;  %v3087_v59 = vpack.c.bf16 %v133_v53, %v132_v51  ;;  %v3057_v60 = vpack.c.bf16 %v119_v55, %v118_v54  ;;  %v120_v2 = vld [vmem:[%s5648_s1 + $0x2a0] sm:$0xff] }
  0x1b   :  { %3044 = vmatpush3.bf16.msra.mxu1 %v3043_v18  ;;  %951 = vmatprep.mubr.f32.mxu1 %v644_v43  ;;  %v102_v61 = vld [vmem:[%s5648_s1 + $0x210] sm:$0xff]  ;;  %v103_v62 = vld [vmem:[%s5648_s1 + $0x218] sm:$0xff]  ;;  %v3089_v0 = vpack.c.bf16 %v151_v57, %v150_v56  ;;  %v121_v3 = vld [vmem:[%s5648_s1 + $0x2a8] sm:$0xff] }
  0x1c   :  { %3046 = vmatprep.subr.bf16.mxu1 %v3045_v23  ;;  %v134_v63 = vld [vmem:[%s5648_s1 + $0x310] sm:$0xff]  ;;  %v135_v1 = vld [vmem:[%s5648_s1 + $0x318] sm:$0xff]  ;;  %v152_v4 = vld [vmem:[%s5648_s1 + $0x3a0] sm:$0xff]  ;;  %v3059_v6 = vpack.c.bf16 %v103_v62, %v102_v61  ;;  %v3061_v8 = vpack.c.bf16 %v121_v3, %v120_v2 }
  0x1d   :  { %3016 = vmatpush3.bf16.msra.mxu0 %v3015_v31  ;;  %v153_v5 = vld [vmem:[%s5648_s1 + $0x3a8] sm:$0xff]  ;;  %v3091_v7 = vpack.c.bf16 %v135_v1, %v134_v63  ;;  %v104_v9 = vld [vmem:[%s5648_s1 + $0x220] sm:$0xff]  ;;  %v122_v15 = vld [vmem:[%s5648_s1 + $0x2b0] sm:$0xff] }
  0x1e   :  { %3018 = vmatprep.subr.bf16.mxu0 %v3017_v35  ;;  %v105_v10 = vld [vmem:[%s5648_s1 + $0x228] sm:$0xff]  ;;  %v136_v11 = vld [vmem:[%s5648_s1 + $0x320] sm:$0xff]  ;;  %v3093_v12 = vpack.c.bf16 %v153_v5, %v152_v4  ;;  %v123_v16 = vld [vmem:[%s5648_s1 + $0x2b8] sm:$0xff] }
  0x1f   :  { %3048 = vmatpush3.bf16.msra.mxu1 %v3047_v34  ;;  %v137_v14 = vld [vmem:[%s5648_s1 + $0x328] sm:$0xff]  ;;  %v154_v17 = vld [vmem:[%s5648_s1 + $0x3b0] sm:$0xff]  ;;  %v155_v18 = vld [vmem:[%s5648_s1 + $0x3b8] sm:$0xff]  ;;  %v3063_v19 = vpack.c.bf16 %v105_v10, %v104_v9  ;;  %v3065_v21 = vpack.c.bf16 %v123_v16, %v122_v15 }
  0x20   :  { %3050 = vmatprep.subr.bf16.mxu1 %v3049_v39  ;;  %v3095_v20 = vpack.c.bf16 %v137_v14, %v136_v11  ;;  %v106_v22 = vld [vmem:[%s5648_s1 + $0x230] sm:$0xff]  ;;  %v107_v23 = vld [vmem:[%s5648_s1 + $0x238] sm:$0xff]  ;;  %v3097_v25 = vpack.c.bf16 %v155_v18, %v154_v17  ;;  %v125_v28 = vld [vmem:[%s5648_s1 + $0x2c8] sm:$0xff] }
  0x21   :  { %3020 = vmatpush3.bf16.msra.mxu0 %v3019_v46  ;;  %v138_v24 = vld [vmem:[%s5648_s1 + $0x330] sm:$0xff]  ;;  %v139_v26 = vld [vmem:[%s5648_s1 + $0x338] sm:$0xff]  ;;  %v156_v29 = vld [vmem:[%s5648_s1 + $0x3c0] sm:$0xff]  ;;  %v3067_v32 = vpack.c.bf16 %v107_v23, %v106_v22 }
  0x22   :  { %3054 = vmatprep.subr.bf16.mxu0 %v3053_v48  ;;  %v157_v30 = vld [vmem:[%s5648_s1 + $0x3c8] sm:$0xff]  ;;  %v3099_v35 = vpack.c.bf16 %v139_v26, %v138_v24  ;;  %v108_v37 = vld [vmem:[%s5648_s1 + $0x240] sm:$0xff]  ;;  %v126_v42 = vld [vmem:[%s5648_s1 + $0x2d0] sm:$0xff] }
  0x23   :  { %3052 = vmatpush3.bf16.msra.mxu1 %v3051_v47  ;;  %v28_v31 = vld [vmem:[%s5647_s0 + $0x8] sm:$0xff]  ;;  %v140_v39 = vld [vmem:[%s5648_s1 + $0x340] sm:$0xff]  ;;  %v3101_v40 = vpack.c.bf16 %v157_v30, %v156_v29  ;;  %v127_v43 = vld [vmem:[%s5648_s1 + $0x2d8] sm:$0xff] }
  0x24   :  { %3086 = vmatprep.subr.bf16.mxu1 %v3085_v52  ;;  %882 = vmatmul.mubr.f32.vlgmr.msra.gmra.mrb[0].mxu0 %v635_v27  ;;  %v124_v27 = vld [vmem:[%s5648_s1 + $0x2c0] sm:$0xff]  ;;  %v645_v34 = vcombine.high %v28_v31, %v28_v31  ;;  %v109_v38 = vld [vmem:[%s5648_s1 + $0x248] sm:$0xff]  ;;  %v158_v46 = vld [vmem:[%s5648_s1 + $0x3d0] sm:$0xff]  ;;  %v3073_v51 = vpack.c.bf16 %v127_v43, %v126_v42 }
  0x25   :  { %3056 = vmatpush3.bf16.msra.mxu0 %v3055_v58  ;;  %v3069_v36 = vpack.c.bf16 %v125_v28, %v124_v27  ;;  %v141_v41 = vld [vmem:[%s5648_s1 + $0x348] sm:$0xff]  ;;  %v159_v47 = vld [vmem:[%s5648_s1 + $0x3d8] sm:$0xff]  ;;  %v3071_v48 = vpack.c.bf16 %v109_v38, %v108_v37  ;;  %v110_v52 = vld [vmem:[%s5648_s1 + $0x250] sm:$0xff] }
  0x26   :  { %952 = vmatmul.mubr.f32.vlgmr.msra.gmra.mrb[0].mxu1 %v642_v33  ;;  %3058 = vmatprep.subr.bf16.mxu0 %v3057_v60  ;;  %v3995_v33 = vrot.slane %v28_v31, %v3834_v13  ;;  %v4018_v45 = vrot.slane %v645_v34, %v3834_v13  ;;  %v3103_v50 = vpack.c.bf16 %v141_v41, %v140_v39  ;;  %v111_v53 = vld [vmem:[%s5648_s1 + $0x258] sm:$0xff]  ;;  %v142_v54 = vld [vmem:[%s5648_s1 + $0x350] sm:$0xff]  ;;  %v128_v57 = vld [vmem:[%s5648_s1 + $0x2e0] sm:$0xff] }
  0x27   :  { %3088 = vmatpush3.bf16.msra.mxu1 %v3087_v59  ;;  %v3105_v55 = vpack.c.bf16 %v159_v47, %v158_v46  ;;  %v143_v56 = vld [vmem:[%s5648_s1 + $0x358] sm:$0xff]  ;;  %v129_v58 = vld [vmem:[%s5648_s1 + $0x2e8] sm:$0xff]  ;;  %v160_v59 = vld [vmem:[%s5648_s1 + $0x3e0] sm:$0xff]  ;;  %v3075_v61 = vpack.c.bf16 %v111_v53, %v110_v52 }
  0x28   :  { %3090 = vmatprep.subr.bf16.mxu1 %v3089_v0  ;;  %v660_v44 = vcombine.high %v3995_v33, %v3995_v33  ;;  %v661_v49 = vcombine.high %v4018_v45, %v4018_v45  ;;  %v161_v60 = vld [vmem:[%s5648_s1 + $0x3e8] sm:$0xff]  ;;  %v3107_v62 = vpack.c.bf16 %v143_v56, %v142_v54  ;;  %v3077_v63 = vpack.c.bf16 %v129_v58, %v128_v57  ;;  %v112_v0 = vld [vmem:[%s5648_s1 + $0x260] sm:$0xff]  ;;  %v130_v5 = vld [vmem:[%s5648_s1 + $0x2f0] sm:$0xff] }
  0x29   :  { %3060 = vmatpush3.bf16.msra.mxu0 %v3059_v6  ;;  %v113_v1 = vld [vmem:[%s5648_s1 + $0x268] sm:$0xff]  ;;  %v144_v2 = vld [vmem:[%s5648_s1 + $0x360] sm:$0xff]  ;;  %v3109_v3 = vpack.c.bf16 %v161_v60, %v160_v59  ;;  %v131_v6 = vld [vmem:[%s5648_s1 + $0x2f8] sm:$0xff] }
  0x2a   :  { %3062 = vmatprep.subr.bf16.mxu0 %v3061_v8  ;;  %1021 = vmatprep.mubr.f32.mxu0 %v660_v44  ;;  %v145_v4 = vld [vmem:[%s5648_s1 + $0x368] sm:$0xff]  ;;  %v163_v8 = vld [vmem:[%s5648_s1 + $0x3f8] sm:$0xff]  ;;  %v3079_v9 = vpack.c.bf16 %v113_v1, %v112_v0  ;;  %v3081_v11 = vpack.c.bf16 %v131_v6, %v130_v5  ;;  %v146_v15 = vld [vmem:[%s5648_s1 + $0x370] sm:$0xff] }
  0x2b   :  { %3092 = vmatpush3.bf16.msra.mxu1 %v3091_v7  ;;  %1091 = vmatprep.mubr.f32.mxu1 %v661_v49  ;;  %v162_v7 = vld [vmem:[%s5648_s1 + $0x3f0] sm:$0xff]  ;;  %v3111_v10 = vpack.c.bf16 %v145_v4, %v144_v2  ;;  %v115_v14 = vld [vmem:[%s5648_s1 + $0x278] sm:$0xff]  ;;  %v180_v18 = vld [vmem:[%s5648_s1 + $0x480] sm:$0xff] }
  0x2c   :  { %3094 = vmatprep.subr.bf16.mxu1 %v3093_v12  ;;  %v114_v12 = vld [vmem:[%s5648_s1 + $0x270] sm:$0xff]  ;;  %v3113_v16 = vpack.c.bf16 %v163_v8, %v162_v7  ;;  %v147_v17 = vld [vmem:[%s5648_s1 + $0x378] sm:$0xff]  ;;  %v164_v23 = vld [vmem:[%s5648_s1 + $0x400] sm:$0xff] }
  0x2d   :  { %3064 = vmatpush3.bf16.msra.mxu0 %v3063_v19  ;;  %v181_v19 = vld [vmem:[%s5648_s1 + $0x488] sm:$0xff]  ;;  %v3083_v22 = vpack.c.bf16 %v115_v14, %v114_v12  ;;  %v3115_v24 = vpack.c.bf16 %v147_v17, %v146_v15  ;;  %v196_v27 = vld [vmem:[%s5648_s1 + $0x500] sm:$0xff]  ;;  %v182_v30 = vld [vmem:[%s5648_s1 + $0x490] sm:$0xff] }
  0x2e   :  { %3066 = vmatprep.subr.bf16.mxu0 %v3065_v21  ;;  %v213_v21 = vld [vmem:[%s5648_s1 + $0x588] sm:$0xff]  ;;  %v183_v31 = vld [vmem:[%s5648_s1 + $0x498] sm:$0xff]  ;;  %v29_v37 = vld [vmem:[%s5647_s0 + $0x10] sm:$0xff] }
  0x2f   :  { %3096 = vmatpush3.bf16.msra.mxu1 %v3095_v20  ;;  %v212_v20 = vld [vmem:[%s5648_s1 + $0x580] sm:$0xff]  ;;  %v165_v26 = vld [vmem:[%s5648_s1 + $0x408] sm:$0xff]  ;;  %v215_v34 = vld [vmem:[%s5648_s1 + $0x598] sm:$0xff]  ;;  %v3121_v38 = vpack.c.bf16 %v183_v31, %v182_v30  ;;  %v4137_v42 = vrot.slane %v29_v37, %v3834_v13  ;;  %v662_v43 = vcombine.high %v29_v37, %v29_v37 }
  0x30   :  { %3098 = vmatprep.subr.bf16.mxu1 %v3097_v25  ;;  %v3117_v25 = vpack.c.bf16 %v181_v19, %v180_v18  ;;  %v197_v28 = vld [vmem:[%s5648_s1 + $0x508] sm:$0xff]  ;;  %v3149_v29 = vpack.c.bf16 %v213_v21, %v212_v20  ;;  %v166_v39 = vld [vmem:[%s5648_s1 + $0x410] sm:$0xff]  ;;  %v199_v46 = vld [vmem:[%s5648_s1 + $0x518] sm:$0xff] }
  0x31   :  { %3068 = vmatpush3.bf16.msra.mxu0 %v3067_v32  ;;  %v214_v32 = vld [vmem:[%s5648_s1 + $0x590] sm:$0xff]  ;;  %v184_v47 = vld [vmem:[%s5648_s1 + $0x4a0] sm:$0xff]  ;;  %v4158_v52 = vrot.slane %v662_v43, %v3834_v13  ;;  %v169_v56 = vld [vmem:[%s5648_s1 + $0x428] sm:$0xff] }
  0x32   :  { %3070 = vmatprep.subr.bf16.mxu0 %v3069_v36  ;;  %v3151_v36 = vpack.c.bf16 %v197_v28, %v196_v27  ;;  %v198_v41 = vld [vmem:[%s5648_s1 + $0x510] sm:$0xff]  ;;  %v3153_v44 = vpack.c.bf16 %v215_v34, %v214_v32  ;;  %v216_v49 = vld [vmem:[%s5648_s1 + $0x5a0] sm:$0xff]  ;;  %v201_v59 = vld [vmem:[%s5648_s1 + $0x528] sm:$0xff] }
  0x33   :  { %3100 = vmatpush3.bf16.msra.mxu1 %v3099_v35  ;;  %v3119_v35 = vpack.c.bf16 %v165_v26, %v164_v23  ;;  %v200_v57 = vld [vmem:[%s5648_s1 + $0x520] sm:$0xff]  ;;  %v186_v60 = vld [vmem:[%s5648_s1 + $0x4b0] sm:$0xff]  ;;  %v171_v4 = vld [vmem:[%s5648_s1 + $0x438] sm:$0xff] }
  0x34   :  { %3102 = vmatprep.subr.bf16.mxu1 %v3101_v40  ;;  %v167_v40 = vld [vmem:[%s5648_s1 + $0x418] sm:$0xff]  ;;  %v3159_v1 = vpack.c.bf16 %v201_v59, %v200_v57  ;;  %v202_v5 = vld [vmem:[%s5648_s1 + $0x530] sm:$0xff]  ;;  %v188_v8 = vld [vmem:[%s5648_s1 + $0x4c0] sm:$0xff] }
  0x35   :  { %3072 = vmatpush3.bf16.msra.mxu0 %v3071_v48  ;;  %v185_v48 = vld [vmem:[%s5648_s1 + $0x4a8] sm:$0xff]  ;;  %v3123_v53 = vpack.c.bf16 %v167_v40, %v166_v39  ;;  %v203_v7 = vld [vmem:[%s5648_s1 + $0x538] sm:$0xff]  ;;  %v204_v18 = vld [vmem:[%s5648_s1 + $0x540] sm:$0xff] }
  0x36   :  { %3074 = vmatprep.subr.bf16.mxu0 %v3073_v51  ;;  %v677_v51 = vcombine.high %v4137_v42, %v4137_v42  ;;  %v3125_v54 = vpack.c.bf16 %v185_v48, %v184_v47  ;;  %v3163_v14 = vpack.c.bf16 %v203_v7, %v202_v5  ;;  %v173_v17 = vld [vmem:[%s5648_s1 + $0x448] sm:$0xff]  ;;  %v190_v21 = vld [vmem:[%s5648_s1 + $0x4d0] sm:$0xff]  ;;  %v207_v32 = vld [vmem:[%s5648_s1 + $0x558] sm:$0xff] }
  0x37   :  { %3104 = vmatpush3.bf16.msra.mxu1 %v3103_v50  ;;  %v217_v50 = vld [vmem:[%s5648_s1 + $0x5a8] sm:$0xff]  ;;  %v222_v23 = vld [vmem:[%s5648_s1 + $0x5d0] sm:$0xff]  ;;  %v192_v34 = vld [vmem:[%s5648_s1 + $0x4e0] sm:$0xff] }
  0x38   :  { %3106 = vmatprep.subr.bf16.mxu1 %v3105_v55  ;;  %v168_v55 = vld [vmem:[%s5648_s1 + $0x420] sm:$0xff]  ;;  %v3157_v58 = vpack.c.bf16 %v217_v50, %v216_v49  ;;  %v205_v20 = vld [vmem:[%s5648_s1 + $0x548] sm:$0xff]  ;;  %v174_v28 = vld [vmem:[%s5648_s1 + $0x450] sm:$0xff] }
  0x39   :  { %3076 = vmatpush3.bf16.msra.mxu0 %v3075_v61  ;;  %v187_v61 = vld [vmem:[%s5648_s1 + $0x4b8] sm:$0xff]  ;;  %v3127_v0 = vpack.c.bf16 %v169_v56, %v168_v55  ;;  %v3167_v26 = vpack.c.bf16 %v205_v20, %v204_v18  ;;  %v206_v30 = vld [vmem:[%s5648_s1 + $0x550] sm:$0xff]  ;;  %v225_v37 = vld [vmem:[%s5648_s1 + $0x5e8] sm:$0xff] }
  0x3a   :  { %3078 = vmatprep.subr.bf16.mxu0 %v3077_v63  ;;  %v219_v63 = vld [vmem:[%s5648_s1 + $0x5b8] sm:$0xff]  ;;  %v3129_v2 = vpack.c.bf16 %v187_v61, %v186_v60  ;;  %v3171_v39 = vpack.c.bf16 %v207_v32, %v206_v30  ;;  %v177_v43 = vld [vmem:[%s5648_s1 + $0x468] sm:$0xff]  ;;  %v194_v48 = vld [vmem:[%s5648_s1 + $0x4f0] sm:$0xff] }
  0x3b   :  { %3108 = vmatpush3.bf16.msra.mxu1 %v3107_v62  ;;  %v218_v62 = vld [vmem:[%s5648_s1 + $0x5b0] sm:$0xff]  ;;  %v209_v47 = vld [vmem:[%s5648_s1 + $0x568] sm:$0xff]  ;;  %v195_v49 = vld [vmem:[%s5648_s1 + $0x4f8] sm:$0xff] }
  0x3c   :  { %3110 = vmatprep.subr.bf16.mxu1 %v3109_v3  ;;  %v170_v3 = vld [vmem:[%s5648_s1 + $0x430] sm:$0xff]  ;;  %v3161_v6 = vpack.c.bf16 %v219_v63, %v218_v62  ;;  %v3145_v55 = vpack.c.bf16 %v195_v49, %v194_v48  ;;  %v179_v57 = vld [vmem:[%s5648_s1 + $0x478] sm:$0xff]  ;;  %v244_v60 = vld [vmem:[%s5648_s1 + $0x680] sm:$0xff] }
  0x3d   :  { %3080 = vmatpush3.bf16.msra.mxu0 %v3079_v9  ;;  %v189_v9 = vld [vmem:[%s5648_s1 + $0x4c8] sm:$0xff]  ;;  %v3131_v12 = vpack.c.bf16 %v171_v4, %v170_v3  ;;  %v226_v50 = vld [vmem:[%s5648_s1 + $0x5f0] sm:$0xff]  ;;  %v211_v59 = vld [vmem:[%s5648_s1 + $0x578] sm:$0xff] }
  0x3e   :  { %3082 = vmatprep.subr.bf16.mxu0 %v3081_v11  ;;  %v221_v11 = vld [vmem:[%s5648_s1 + $0x5c8] sm:$0xff]  ;;  %v3133_v15 = vpack.c.bf16 %v189_v9, %v188_v8  ;;  %v178_v56 = vld [vmem:[%s5648_s1 + $0x470] sm:$0xff]  ;;  %v276_v62 = vld [vmem:[%s5648_s1 + $0x780] sm:$0xff] }
  0x3f   :  { %3112 = vmatpush3.bf16.msra.mxu1 %v3111_v10  ;;  %v220_v10 = vld [vmem:[%s5648_s1 + $0x5c0] sm:$0xff]  ;;  %v245_v61 = vld [vmem:[%s5648_s1 + $0x688] sm:$0xff]  ;;  %v246_v9 = vld [vmem:[%s5648_s1 + $0x690] sm:$0xff] }
  0x40   :  { %3114 = vmatprep.subr.bf16.mxu1 %v3113_v16  ;;  %v172_v16 = vld [vmem:[%s5648_s1 + $0x440] sm:$0xff]  ;;  %v3165_v19 = vpack.c.bf16 %v221_v11, %v220_v10  ;;  %v277_v63 = vld [vmem:[%s5648_s1 + $0x788] sm:$0xff]  ;;  %v3181_v3 = vpack.c.bf16 %v245_v61, %v244_v60  ;;  %v247_v10 = vld [vmem:[%s5648_s1 + $0x698] sm:$0xff] }
  0x41   :  { %3084 = vmatpush3.bf16.msra.mxu0 %v3083_v22  ;;  %v191_v22 = vld [vmem:[%s5648_s1 + $0x4d8] sm:$0xff]  ;;  %v228_v4 = vld [vmem:[%s5648_s1 + $0x600] sm:$0xff]  ;;  %v229_v5 = vld [vmem:[%s5648_s1 + $0x608] sm:$0xff]  ;;  %v3213_v7 = vpack.c.bf16 %v277_v63, %v276_v62  ;;  %v3185_v18 = vpack.c.bf16 %v247_v10, %v246_v9 }
  0x42   :  { %3118 = vmatprep.subr.bf16.mxu0 %v3117_v25  ;;  %v3135_v25 = vpack.c.bf16 %v173_v17, %v172_v16  ;;  %v3137_v27 = vpack.c.bf16 %v191_v22, %v190_v21  ;;  %v261_v8 = vld [vmem:[%s5648_s1 + $0x708] sm:$0xff]  ;;  %v3183_v16 = vpack.c.bf16 %v229_v5, %v228_v4  ;;  %v231_v20 = vld [vmem:[%s5648_s1 + $0x618] sm:$0xff]  ;;  %v262_v21 = vld [vmem:[%s5648_s1 + $0x710] sm:$0xff] }
  0x43   :  { %3116 = vmatpush3.bf16.msra.mxu1 %v3115_v24  ;;  %v223_v24 = vld [vmem:[%s5648_s1 + $0x5d8] sm:$0xff]  ;;  %v266_v48 = vld [vmem:[%s5648_s1 + $0x730] sm:$0xff]  ;;  %v269_v61 = vld [vmem:[%s5648_s1 + $0x748] sm:$0xff] }
  0x44   :  { %3150 = vmatprep.subr.bf16.mxu1 %v3149_v29  ;;  %1022 = vmatmul.mubr.f32.vlgmr.msra.gmra.mrb[2].mxu0 %v3995_v33  ;;  %v3155_v33 = vpack.c.bf16 %v199_v46, %v198_v41  ;;  %v175_v29 = vld [vmem:[%s5648_s1 + $0x458] sm:$0xff]  ;;  %v3169_v31 = vpack.c.bf16 %v223_v24, %v222_v23  ;;  %v176_v41 = vld [vmem:[%s5648_s1 + $0x460] sm:$0xff]  ;;  %v254_v62 = vld [vmem:[%s5648_s1 + $0x6d0] sm:$0xff] }
  0x45   :  { %3120 = vmatpush3.bf16.msra.mxu0 %v3119_v35  ;;  %1161 = vmatprep.mubr.f32.mxu0 %v677_v51  ;;  %v193_v35 = vld [vmem:[%s5648_s1 + $0x4e8] sm:$0xff]  ;;  %v227_v51 = vld [vmem:[%s5648_s1 + $0x5f8] sm:$0xff]  ;;  %v248_v24 = vld [vmem:[%s5648_s1 + $0x6a0] sm:$0xff] }
  0x46   :  { %1092 = vmatmul.mubr.f32.vlgmr.msra.gmra.mrb[2].mxu1 %v4018_v45  ;;  %3122 = vmatprep.subr.bf16.mxu0 %v3121_v38  ;;  %v678_v45 = vcombine.high %v4158_v52, %v4158_v52  ;;  %v3139_v38 = vpack.c.bf16 %v175_v29, %v174_v28  ;;  %v3141_v40 = vpack.c.bf16 %v193_v35, %v192_v34  ;;  %v263_v23 = vld [vmem:[%s5648_s1 + $0x718] sm:$0xff]  ;;  %v281_v28 = vld [vmem:[%s5648_s1 + $0x7a8] sm:$0xff]  ;;  %v264_v35 = vld [vmem:[%s5648_s1 + $0x720] sm:$0xff] }
  0x47   :  { %3152 = vmatpush3.bf16.msra.mxu1 %v3151_v36  ;;  %v224_v36 = vld [vmem:[%s5648_s1 + $0x5e0] sm:$0xff]  ;;  %v233_v34 = vld [vmem:[%s5648_s1 + $0x628] sm:$0xff]  ;;  %v255_v63 = vld [vmem:[%s5648_s1 + $0x6d8] sm:$0xff] }
  0x48   :  { %3154 = vmatprep.subr.bf16.mxu1 %v3153_v44  ;;  %1231 = vmatprep.mubr.f32.mxu1 %v678_v45  ;;  %v208_v44 = vld [vmem:[%s5648_s1 + $0x560] sm:$0xff]  ;;  %v3173_v46 = vpack.c.bf16 %v225_v37, %v224_v36  ;;  %v210_v45 = vld [vmem:[%s5648_s1 + $0x570] sm:$0xff]  ;;  %v3201_v4 = vpack.c.bf16 %v255_v63, %v254_v62  ;;  %v271_v9 = vld [vmem:[%s5648_s1 + $0x758] sm:$0xff] }
  0x49   :  { %3124 = vmatpush3.bf16.msra.mxu0 %v3123_v53  ;;  %v3143_v53 = vpack.c.bf16 %v177_v43, %v176_v41  ;;  %v250_v37 = vld [vmem:[%s5648_s1 + $0x6b0] sm:$0xff]  ;;  %v256_v10 = vld [vmem:[%s5648_s1 + $0x6e0] sm:$0xff] }
  0x4a   :  { %3126 = vmatprep.subr.bf16.mxu0 %v3125_v54  ;;  %v3175_v54 = vpack.c.bf16 %v209_v47, %v208_v44  ;;  %v235_v47 = vld [vmem:[%s5648_s1 + $0x638] sm:$0xff]  ;;  %v238_v5 = vld [vmem:[%s5648_s1 + $0x650] sm:$0xff] }
  0x4b   :  { %3156 = vmatpush3.bf16.msra.mxu1 %v3155_v33  ;;  %v30_v33 = vld [vmem:[%s5647_s0 + $0x18] sm:$0xff]  ;;  %v326_v62 = vld [vmem:[%s5648_s1 + $0x910] sm:$0xff] }
  0x4c   :  { %3158 = vmatprep.subr.bf16.mxu1 %v3157_v58  ;;  %v3177_v58 = vpack.c.bf16 %v227_v51, %v226_v50  ;;  %v4329_v11 = vrot.slane %v30_v33, %v3834_v13  ;;  %v267_v50 = vld [vmem:[%s5648_s1 + $0x738] sm:$0xff]  ;;  %v252_v51 = vld [vmem:[%s5648_s1 + $0x6c0] sm:$0xff] }
  0x4d   :  { %3128 = vmatpush3.bf16.msra.mxu0 %v3127_v0  ;;  %v679_v0 = vcombine.high %v30_v33, %v30_v33  ;;  %v284_v33 = vld [vmem:[%s5648_s1 + $0x7c0] sm:$0xff] }
  0x4e   :  { %3130 = vmatprep.subr.bf16.mxu0 %v3129_v2  ;;  %v3179_v2 = vpack.c.bf16 %v211_v59, %v210_v45  ;;  %v236_v45 = vld [vmem:[%s5648_s1 + $0x640] sm:$0xff] }
  0x4f   :  { %3160 = vmatpush3.bf16.msra.mxu1 %v3159_v1  ;;  %v3147_v1 = vpack.c.bf16 %v179_v57, %v178_v56  ;;  %v3227_v56 = vpack.c.bf16 %v267_v50, %v266_v48  ;;  %v268_v59 = vld [vmem:[%s5648_s1 + $0x740] sm:$0xff]  ;;  %v293_v48 = vld [vmem:[%s5648_s1 + $0x808] sm:$0xff] }
  0x50   :  { %3162 = vmatprep.subr.bf16.mxu1 %v3161_v6  ;;  %v260_v6 = vld [vmem:[%s5648_s1 + $0x700] sm:$0xff] }
  0x51   :  { %3132 = vmatpush3.bf16.msra.mxu0 %v3131_v12  ;;  %v278_v12 = vld [vmem:[%s5648_s1 + $0x790] sm:$0xff]  ;;  %v3215_v17 = vpack.c.bf16 %v261_v8, %v260_v6  ;;  %v239_v6 = vld [vmem:[%s5648_s1 + $0x658] sm:$0xff] }
  0x52   :  { %3134 = vmatprep.subr.bf16.mxu0 %v3133_v15  ;;  %v4338_v15 = vrot.slane %v679_v0, %v3834_v13  ;;  %v286_v0 = vld [vmem:[%s5648_s1 + $0x7d0] sm:$0xff] }
  0x53   :  { %3164 = vmatpush3.bf16.msra.mxu1 %v3163_v14  ;;  %v279_v14 = vld [vmem:[%s5648_s1 + $0x798] sm:$0xff] }
  0x54   :  { %3166 = vmatprep.subr.bf16.mxu1 %v3165_v19  ;;  %v230_v19 = vld [vmem:[%s5648_s1 + $0x610] sm:$0xff]  ;;  %v3217_v22 = vpack.c.bf16 %v279_v14, %v278_v12  ;;  %v695_v29 = vcombine.high %v4338_v15, %v4338_v15  ;;  %v257_v12 = vld [vmem:[%s5648_s1 + $0x6e8] sm:$0xff]  ;;  %v288_v14 = vld [vmem:[%s5648_s1 + $0x7e0] sm:$0xff] }
  0x55   :  { %3136 = vmatpush3.bf16.msra.mxu0 %v3135_v25  ;;  %v249_v25 = vld [vmem:[%s5648_s1 + $0x6a8] sm:$0xff]  ;;  %v3187_v30 = vpack.c.bf16 %v231_v20, %v230_v19  ;;  %v3205_v19 = vpack.c.bf16 %v257_v12, %v256_v10  ;;  %v240_v20 = vld [vmem:[%s5648_s1 + $0x660] sm:$0xff] }
  0x56   :  { %3138 = vmatprep.subr.bf16.mxu0 %v3137_v27  ;;  %v280_v27 = vld [vmem:[%s5648_s1 + $0x7a0] sm:$0xff]  ;;  %v3189_v32 = vpack.c.bf16 %v249_v25, %v248_v24  ;;  %v273_v24 = vld [vmem:[%s5648_s1 + $0x768] sm:$0xff]  ;;  %v258_v25 = vld [vmem:[%s5648_s1 + $0x6f0] sm:$0xff] }
  0x57   :  { %3168 = vmatpush3.bf16.msra.mxu1 %v3167_v26  ;;  %v694_v26 = vcombine.high %v4329_v11, %v4329_v11  ;;  %v3221_v36 = vpack.c.bf16 %v281_v28, %v280_v27  ;;  %v290_v27 = vld [vmem:[%s5648_s1 + $0x7f0] sm:$0xff]  ;;  %v291_v28 = vld [vmem:[%s5648_s1 + $0x7f8] sm:$0xff]  ;;  %v297_v10 = vld [vmem:[%s5648_s1 + $0x828] sm:$0xff] }
  0x58   :  { %3170 = vmatprep.subr.bf16.mxu1 %v3169_v31  ;;  %v3219_v31 = vpack.c.bf16 %v263_v23, %v262_v21  ;;  %v241_v21 = vld [vmem:[%s5648_s1 + $0x668] sm:$0xff]  ;;  %v328_v12 = vld [vmem:[%s5648_s1 + $0x920] sm:$0xff] }
  0x59   :  { %3140 = vmatpush3.bf16.msra.mxu0 %v3139_v38  ;;  %v251_v38 = vld [vmem:[%s5648_s1 + $0x6b8] sm:$0xff] }
  0x5a   :  { %3142 = vmatprep.subr.bf16.mxu0 %v3141_v40  ;;  %v283_v40 = vld [vmem:[%s5648_s1 + $0x7b8] sm:$0xff]  ;;  %v3193_v44 = vpack.c.bf16 %v251_v38, %v250_v37  ;;  %v308_v37 = vld [vmem:[%s5648_s1 + $0x880] sm:$0xff]  ;;  %v309_v38 = vld [vmem:[%s5648_s1 + $0x888] sm:$0xff] }
  0x5b   :  { %3172 = vmatpush3.bf16.msra.mxu1 %v3171_v39  ;;  %v282_v39 = vld [vmem:[%s5648_s1 + $0x7b0] sm:$0xff] }
  0x5c   :  { %3174 = vmatprep.subr.bf16.mxu1 %v3173_v46  ;;  %v234_v46 = vld [vmem:[%s5648_s1 + $0x630] sm:$0xff]  ;;  %v3225_v49 = vpack.c.bf16 %v283_v40, %v282_v39  ;;  %v340_v39 = vld [vmem:[%s5648_s1 + $0x980] sm:$0xff]  ;;  %v341_v40 = vld [vmem:[%s5648_s1 + $0x988] sm:$0xff] }
  0x5d   :  { %3144 = vmatpush3.bf16.msra.mxu0 %v3143_v53  ;;  %v253_v53 = vld [vmem:[%s5648_s1 + $0x6c8] sm:$0xff]  ;;  %v3277_v50 = vpack.c.bf16 %v341_v40, %v340_v39  ;;  %v318_v39 = vld [vmem:[%s5648_s1 + $0x8d0] sm:$0xff]  ;;  %v319_v40 = vld [vmem:[%s5648_s1 + $0x8d8] sm:$0xff] }
  0x5e   :  { %3146 = vmatprep.subr.bf16.mxu0 %v3145_v55  ;;  %v3195_v55 = vpack.c.bf16 %v235_v47, %v234_v46  ;;  %v3197_v57 = vpack.c.bf16 %v253_v53, %v252_v51  ;;  %v3245_v46 = vpack.c.bf16 %v309_v38, %v308_v37  ;;  %v292_v47 = vld [vmem:[%s5648_s1 + $0x800] sm:$0xff]  ;;  %v325_v51 = vld [vmem:[%s5648_s1 + $0x908] sm:$0xff]  ;;  %v310_v53 = vld [vmem:[%s5648_s1 + $0x890] sm:$0xff] }
  0x5f   :  { %3176 = vmatpush3.bf16.msra.mxu1 %v3175_v54  ;;  %v285_v54 = vld [vmem:[%s5648_s1 + $0x7c8] sm:$0xff] }
  0x60   :  { %3178 = vmatprep.subr.bf16.mxu1 %v3177_v58  ;;  %v237_v58 = vld [vmem:[%s5648_s1 + $0x648] sm:$0xff]  ;;  %v3229_v60 = vpack.c.bf16 %v285_v54, %v284_v33  ;;  %v311_v33 = vld [vmem:[%s5648_s1 + $0x898] sm:$0xff] }
  0x61   :  { %3148 = vmatpush3.bf16.msra.mxu0 %v3147_v1  ;;  %v287_v1 = vld [vmem:[%s5648_s1 + $0x7d8] sm:$0xff]  ;;  %v333_v38 = vld [vmem:[%s5648_s1 + $0x948] sm:$0xff] }
  0x62   :  { %3182 = vmatprep.subr.bf16.mxu0 %v3181_v3  ;;  %v3231_v3 = vpack.c.bf16 %v269_v61, %v268_v59  ;;  %v3233_v8 = vpack.c.bf16 %v287_v1, %v286_v0  ;;  %v3249_v59 = vpack.c.bf16 %v311_v33, %v310_v53  ;;  %v295_v61 = vld [vmem:[%s5648_s1 + $0x818] sm:$0xff]  ;;  %v312_v1 = vld [vmem:[%s5648_s1 + $0x8a0] sm:$0xff] }
  0x63   :  { %3180 = vmatpush3.bf16.msra.mxu1 %v3179_v2  ;;  %v3199_v2 = vpack.c.bf16 %v237_v58, %v236_v45  ;;  %v3247_v45 = vpack.c.bf16 %v293_v48, %v292_v47  ;;  %v327_v0 = vld [vmem:[%s5648_s1 + $0x918] sm:$0xff]  ;;  %v3265_v47 = vpack.c.bf16 %v319_v40, %v318_v39  ;;  %v302_v48 = vld [vmem:[%s5648_s1 + $0x850] sm:$0xff]  ;;  %v320_v33 = vld [vmem:[%s5648_s1 + $0x8e0] sm:$0xff] }
  0x64   :  { %3214 = vmatprep.subr.bf16.mxu1 %v3213_v7  ;;  %1162 = vmatmul.mubr.f32.vlgmr.msra.gmra.mrb[4].mxu0 %v4137_v42  ;;  %v232_v42 = vld [vmem:[%s5648_s1 + $0x620] sm:$0xff]  ;;  %v270_v7 = vld [vmem:[%s5648_s1 + $0x750] sm:$0xff]  ;;  %v335_v53 = vld [vmem:[%s5648_s1 + $0x958] sm:$0xff] }
  0x65   :  { %3184 = vmatpush3.bf16.msra.mxu0 %v3183_v16  ;;  %1301 = vmatprep.mubr.f32.mxu0 %v694_v26  ;;  %v3191_v41 = vpack.c.bf16 %v233_v34, %v232_v42  ;;  %v289_v16 = vld [vmem:[%s5648_s1 + $0x7e8] sm:$0xff]  ;;  %v259_v26 = vld [vmem:[%s5648_s1 + $0x6f8] sm:$0xff]  ;;  %v242_v42 = vld [vmem:[%s5648_s1 + $0x670] sm:$0xff] }
  0x66   :  { %1232 = vmatmul.mubr.f32.vlgmr.msra.gmra.mrb[4].mxu1 %v4158_v52  ;;  %3186 = vmatprep.subr.bf16.mxu0 %v3185_v18  ;;  %v265_v52 = vld [vmem:[%s5648_s1 + $0x728] sm:$0xff]  ;;  %v3235_v18 = vpack.c.bf16 %v271_v9, %v270_v7  ;;  %v3237_v23 = vpack.c.bf16 %v289_v16, %v288_v14  ;;  %v243_v34 = vld [vmem:[%s5648_s1 + $0x678] sm:$0xff]  ;;  %v314_v16 = vld [vmem:[%s5648_s1 + $0x8b0] sm:$0xff] }
  0x67   :  { %3216 = vmatpush3.bf16.msra.mxu1 %v3215_v17  ;;  %1371 = vmatprep.mubr.f32.mxu1 %v695_v29  ;;  %v3223_v43 = vpack.c.bf16 %v265_v52, %v264_v35  ;;  %v3203_v17 = vpack.c.bf16 %v239_v6, %v238_v5  ;;  %v3207_v29 = vpack.c.bf16 %v241_v21, %v240_v20  ;;  %v274_v35 = vld [vmem:[%s5648_s1 + $0x770] sm:$0xff]  ;;  %v275_v52 = vld [vmem:[%s5648_s1 + $0x778] sm:$0xff]  ;;  %v345_v5 = vld [vmem:[%s5648_s1 + $0x9a8] sm:$0xff] }
  0x68   :  { %3218 = vmatprep.subr.bf16.mxu1 %v3217_v22  ;;  %v272_v22 = vld [vmem:[%s5648_s1 + $0x760] sm:$0xff]  ;;  %v390_v39 = vld [vmem:[%s5648_s1 + $0xb10] sm:$0xff] }
  0x69   :  { %3188 = vmatpush3.bf16.msra.mxu0 %v3187_v30  ;;  %v31_v30 = vld [vmem:[%s5647_s0 + $0x20] sm:$0xff] }
  0x6a   :  { %3190 = vmatprep.subr.bf16.mxu0 %v3189_v32  ;;  %v3209_v32 = vpack.c.bf16 %v259_v26, %v258_v25  ;;  %v4536_v54 = vrot.slane %v31_v30, %v3834_v13  ;;  %v330_v25 = vld [vmem:[%s5648_s1 + $0x930] sm:$0xff] }
  0x6b   :  { %3220 = vmatpush3.bf16.msra.mxu1 %v3219_v31  ;;  %v3239_v31 = vpack.c.bf16 %v273_v24, %v272_v22  ;;  %v299_v24 = vld [vmem:[%s5648_s1 + $0x838] sm:$0xff] }
  0x6c   :  { %3222 = vmatprep.subr.bf16.mxu1 %v3221_v36  ;;  %v3241_v36 = vpack.c.bf16 %v291_v28, %v290_v27  ;;  %v331_v27 = vld [vmem:[%s5648_s1 + $0x938] sm:$0xff]  ;;  %v316_v28 = vld [vmem:[%s5648_s1 + $0x8c0] sm:$0xff] }
  0x6d   :  { %3192 = vmatpush3.bf16.msra.mxu0 %v3191_v41  ;;  %v696_v41 = vcombine.high %v31_v30, %v31_v30  ;;  %v348_v30 = vld [vmem:[%s5648_s1 + $0x9c0] sm:$0xff] }
  0x6e   :  { %3194 = vmatprep.subr.bf16.mxu0 %v3193_v44  ;;  %v3243_v44 = vpack.c.bf16 %v275_v52, %v274_v35  ;;  %v300_v35 = vld [vmem:[%s5648_s1 + $0x840] sm:$0xff] }
  0x6f   :  { %3224 = vmatpush3.bf16.msra.mxu1 %v3223_v43  ;;  %v3211_v43 = vpack.c.bf16 %v243_v34, %v242_v42  ;;  %v3291_v42 = vpack.c.bf16 %v331_v27, %v330_v25  ;;  %v332_v52 = vld [vmem:[%s5648_s1 + $0x940] sm:$0xff]  ;;  %v357_v25 = vld [vmem:[%s5648_s1 + $0xa08] sm:$0xff] }
  0x70   :  { %3226 = vmatprep.subr.bf16.mxu1 %v3225_v49  ;;  %v324_v49 = vld [vmem:[%s5648_s1 + $0x900] sm:$0xff] }
  0x71   :  { %3196 = vmatpush3.bf16.msra.mxu0 %v3195_v55  ;;  %v342_v55 = vld [vmem:[%s5648_s1 + $0x990] sm:$0xff]  ;;  %v3279_v58 = vpack.c.bf16 %v325_v51, %v324_v49  ;;  %v303_v49 = vld [vmem:[%s5648_s1 + $0x858] sm:$0xff] }
  0x72   :  { %3198 = vmatprep.subr.bf16.mxu0 %v3197_v57  ;;  %v4545_v57 = vrot.slane %v696_v41, %v3834_v13  ;;  %v350_v41 = vld [vmem:[%s5648_s1 + $0x9d0] sm:$0xff] }
  0x73   :  { %3228 = vmatpush3.bf16.msra.mxu1 %v3227_v56  ;;  %v343_v56 = vld [vmem:[%s5648_s1 + $0x998] sm:$0xff] }
  0x74   :  { %3230 = vmatprep.subr.bf16.mxu1 %v3229_v60  ;;  %v294_v60 = vld [vmem:[%s5648_s1 + $0x810] sm:$0xff]  ;;  %v3281_v63 = vpack.c.bf16 %v343_v56, %v342_v55  ;;  %v712_v6 = vcombine.high %v4545_v57, %v4545_v57  ;;  %v321_v55 = vld [vmem:[%s5648_s1 + $0x8e8] sm:$0xff]  ;;  %v352_v56 = vld [vmem:[%s5648_s1 + $0x9e0] sm:$0xff] }
  0x75   :  { %3200 = vmatpush3.bf16.msra.mxu0 %v3199_v2  ;;  %v313_v2 = vld [vmem:[%s5648_s1 + $0x8a8] sm:$0xff]  ;;  %v3251_v7 = vpack.c.bf16 %v295_v61, %v294_v60  ;;  %v3269_v60 = vpack.c.bf16 %v321_v55, %v320_v33  ;;  %v304_v61 = vld [vmem:[%s5648_s1 + $0x860] sm:$0xff] }
  0x76   :  { %3202 = vmatprep.subr.bf16.mxu0 %v3201_v4  ;;  %v344_v4 = vld [vmem:[%s5648_s1 + $0x9a0] sm:$0xff]  ;;  %v3253_v9 = vpack.c.bf16 %v313_v2, %v312_v1  ;;  %v337_v1 = vld [vmem:[%s5648_s1 + $0x968] sm:$0xff]  ;;  %v322_v2 = vld [vmem:[%s5648_s1 + $0x8f0] sm:$0xff] }
  0x77   :  { %3232 = vmatpush3.bf16.msra.mxu1 %v3231_v3  ;;  %v711_v3 = vcombine.high %v4536_v54, %v4536_v54  ;;  %v3285_v14 = vpack.c.bf16 %v345_v5, %v344_v4  ;;  %v354_v4 = vld [vmem:[%s5648_s1 + $0x9f0] sm:$0xff]  ;;  %v355_v5 = vld [vmem:[%s5648_s1 + $0x9f8] sm:$0xff]  ;;  %v361_v33 = vld [vmem:[%s5648_s1 + $0xa28] sm:$0xff] }
  0x78   :  { %3234 = vmatprep.subr.bf16.mxu1 %v3233_v8  ;;  %v3283_v8 = vpack.c.bf16 %v327_v0, %v326_v62  ;;  %v305_v62 = vld [vmem:[%s5648_s1 + $0x868] sm:$0xff]  ;;  %v392_v55 = vld [vmem:[%s5648_s1 + $0xb20] sm:$0xff] }
  0x79   :  { %3204 = vmatpush3.bf16.msra.mxu0 %v3203_v17  ;;  %v315_v17 = vld [vmem:[%s5648_s1 + $0x8b8] sm:$0xff] }
  0x7a   :  { %3206 = vmatprep.subr.bf16.mxu0 %v3205_v19  ;;  %v347_v19 = vld [vmem:[%s5648_s1 + $0x9b8] sm:$0xff]  ;;  %v3257_v22 = vpack.c.bf16 %v315_v17, %v314_v16  ;;  %v372_v16 = vld [vmem:[%s5648_s1 + $0xa80] sm:$0xff]  ;;  %v373_v17 = vld [vmem:[%s5648_s1 + $0xa88] sm:$0xff] }
  0x7b   :  { %3236 = vmatpush3.bf16.msra.mxu1 %v3235_v18  ;;  %v346_v18 = vld [vmem:[%s5648_s1 + $0x9b0] sm:$0xff] }
  0x7c   :  { %3238 = vmatprep.subr.bf16.mxu1 %v3237_v23  ;;  %v298_v23 = vld [vmem:[%s5648_s1 + $0x830] sm:$0xff]  ;;  %v3289_v26 = vpack.c.bf16 %v347_v19, %v346_v18  ;;  %v404_v18 = vld [vmem:[%s5648_s1 + $0xb80] sm:$0xff]  ;;  %v405_v19 = vld [vmem:[%s5648_s1 + $0xb88] sm:$0xff] }
  0x7d   :  { %3208 = vmatpush3.bf16.msra.mxu0 %v3207_v29  ;;  %v317_v29 = vld [vmem:[%s5648_s1 + $0x8c8] sm:$0xff]  ;;  %v3341_v27 = vpack.c.bf16 %v405_v19, %v404_v18  ;;  %v382_v18 = vld [vmem:[%s5648_s1 + $0xad0] sm:$0xff]  ;;  %v383_v19 = vld [vmem:[%s5648_s1 + $0xad8] sm:$0xff] }
  0x7e   :  { %3210 = vmatprep.subr.bf16.mxu0 %v3209_v32  ;;  %v3259_v32 = vpack.c.bf16 %v299_v24, %v298_v23  ;;  %v3261_v34 = vpack.c.bf16 %v317_v29, %v316_v28  ;;  %v3309_v23 = vpack.c.bf16 %v373_v17, %v372_v16  ;;  %v356_v24 = vld [vmem:[%s5648_s1 + $0xa00] sm:$0xff]  ;;  %v389_v28 = vld [vmem:[%s5648_s1 + $0xb08] sm:$0xff]  ;;  %v374_v29 = vld [vmem:[%s5648_s1 + $0xa90] sm:$0xff] }
  0x7f   :  { %3240 = vmatpush3.bf16.msra.mxu1 %v3239_v31  ;;  %v349_v31 = vld [vmem:[%s5648_s1 + $0x9c8] sm:$0xff] }
  0x80   :  { %3242 = vmatprep.subr.bf16.mxu1 %v3241_v36  ;;  %v301_v36 = vld [vmem:[%s5648_s1 + $0x848] sm:$0xff]  ;;  %v3293_v37 = vpack.c.bf16 %v349_v31, %v348_v30  ;;  %v375_v30 = vld [vmem:[%s5648_s1 + $0xa98] sm:$0xff] }
  0x81   :  { %3212 = vmatpush3.bf16.msra.mxu0 %v3211_v43  ;;  %v351_v43 = vld [vmem:[%s5648_s1 + $0x9d8] sm:$0xff]  ;;  %v397_v17 = vld [vmem:[%s5648_s1 + $0xb48] sm:$0xff] }
  0x82   :  { %3246 = vmatprep.subr.bf16.mxu0 %v3245_v46  ;;  %v3295_v46 = vpack.c.bf16 %v333_v38, %v332_v52  ;;  %v3297_v51 = vpack.c.bf16 %v351_v43, %v350_v41  ;;  %v3313_v52 = vpack.c.bf16 %v375_v30, %v374_v29  ;;  %v359_v38 = vld [vmem:[%s5648_s1 + $0xa18] sm:$0xff]  ;;  %v376_v43 = vld [vmem:[%s5648_s1 + $0xaa0] sm:$0xff] }
  0x83   :  { %3244 = vmatpush3.bf16.msra.mxu1 %v3243_v44  ;;  %v3263_v44 = vpack.c.bf16 %v301_v36, %v300_v35  ;;  %v3311_v35 = vpack.c.bf16 %v357_v25, %v356_v24  ;;  %v391_v41 = vld [vmem:[%s5648_s1 + $0xb18] sm:$0xff]  ;;  %v3329_v24 = vpack.c.bf16 %v383_v19, %v382_v18  ;;  %v366_v25 = vld [vmem:[%s5648_s1 + $0xa50] sm:$0xff]  ;;  %v384_v30 = vld [vmem:[%s5648_s1 + $0xae0] sm:$0xff] }
  0x84   :  { %3278 = vmatprep.subr.bf16.mxu1 %v3277_v50  ;;  %1302 = vmatmul.mubr.f32.vlgmr.msra.gmra.mrb[6].mxu0 %v4329_v11  ;;  %v296_v11 = vld [vmem:[%s5648_s1 + $0x820] sm:$0xff]  ;;  %v334_v50 = vld [vmem:[%s5648_s1 + $0x950] sm:$0xff]  ;;  %v399_v29 = vld [vmem:[%s5648_s1 + $0xb58] sm:$0xff] }
  0x85   :  { %3248 = vmatpush3.bf16.msra.mxu0 %v3247_v45  ;;  %1441 = vmatprep.mubr.f32.mxu0 %v711_v3  ;;  %v3255_v20 = vpack.c.bf16 %v297_v10, %v296_v11  ;;  %v353_v45 = vld [vmem:[%s5648_s1 + $0x9e8] sm:$0xff]  ;;  %v323_v3 = vld [vmem:[%s5648_s1 + $0x8f8] sm:$0xff]  ;;  %v306_v11 = vld [vmem:[%s5648_s1 + $0x870] sm:$0xff] }
  0x86   :  { %1372 = vmatmul.mubr.f32.vlgmr.msra.gmra.mrb[6].mxu1 %v4338_v15  ;;  %3250 = vmatprep.subr.bf16.mxu0 %v3249_v59  ;;  %v329_v15 = vld [vmem:[%s5648_s1 + $0x928] sm:$0xff]  ;;  %v3299_v59 = vpack.c.bf16 %v335_v53, %v334_v50  ;;  %v3301_v0 = vpack.c.bf16 %v353_v45, %v352_v56  ;;  %v307_v10 = vld [vmem:[%s5648_s1 + $0x878] sm:$0xff]  ;;  %v378_v45 = vld [vmem:[%s5648_s1 + $0xab0] sm:$0xff] }
  0x87   :  { %3280 = vmatpush3.bf16.msra.mxu1 %v3279_v58  ;;  %1511 = vmatprep.mubr.f32.mxu1 %v712_v6  ;;  %v3287_v21 = vpack.c.bf16 %v329_v15, %v328_v12  ;;  %v3267_v58 = vpack.c.bf16 %v303_v49, %v302_v48  ;;  %v3271_v6 = vpack.c.bf16 %v305_v62, %v304_v61  ;;  %v338_v12 = vld [vmem:[%s5648_s1 + $0x970] sm:$0xff]  ;;  %v339_v15 = vld [vmem:[%s5648_s1 + $0x978] sm:$0xff]  ;;  %v409_v48 = vld [vmem:[%s5648_s1 + $0xba8] sm:$0xff] }
  0x88   :  { %3282 = vmatprep.subr.bf16.mxu1 %v3281_v63  ;;  %v336_v63 = vld [vmem:[%s5648_s1 + $0x960] sm:$0xff]  ;;  %v454_v18 = vld [vmem:[%s5648_s1 + $0xd10] sm:$0xff] }
  0x89   :  { %3252 = vmatpush3.bf16.msra.mxu0 %v3251_v7  ;;  %v32_v7 = vld [vmem:[%s5647_s0 + $0x28] sm:$0xff] }
  0x8a   :  { %3254 = vmatprep.subr.bf16.mxu0 %v3253_v9  ;;  %v3273_v9 = vpack.c.bf16 %v323_v3, %v322_v2  ;;  %v4743_v31 = vrot.slane %v32_v7, %v3834_v13  ;;  %v394_v2 = vld [vmem:[%s5648_s1 + $0xb30] sm:$0xff] }
  0x8b   :  { %3284 = vmatpush3.bf16.msra.mxu1 %v3283_v8  ;;  %v3303_v8 = vpack.c.bf16 %v337_v1, %v336_v63  ;;  %v363_v1 = vld [vmem:[%s5648_s1 + $0xa38] sm:$0xff] }
  0x8c   :  { %3286 = vmatprep.subr.bf16.mxu1 %v3285_v14  ;;  %v3305_v14 = vpack.c.bf16 %v355_v5, %v354_v4  ;;  %v395_v4 = vld [vmem:[%s5648_s1 + $0xb38] sm:$0xff]  ;;  %v380_v5 = vld [vmem:[%s5648_s1 + $0xac0] sm:$0xff] }
  0x8d   :  { %3256 = vmatpush3.bf16.msra.mxu0 %v3255_v20  ;;  %v713_v20 = vcombine.high %v32_v7, %v32_v7  ;;  %v412_v7 = vld [vmem:[%s5648_s1 + $0xbc0] sm:$0xff] }
  0x8e   :  { %3258 = vmatprep.subr.bf16.mxu0 %v3257_v22  ;;  %v3307_v22 = vpack.c.bf16 %v339_v15, %v338_v12  ;;  %v364_v12 = vld [vmem:[%s5648_s1 + $0xa40] sm:$0xff] }
  0x8f   :  { %3288 = vmatpush3.bf16.msra.mxu1 %v3287_v21  ;;  %v3275_v21 = vpack.c.bf16 %v307_v10, %v306_v11  ;;  %v3355_v11 = vpack.c.bf16 %v395_v4, %v394_v2  ;;  %v396_v15 = vld [vmem:[%s5648_s1 + $0xb40] sm:$0xff]  ;;  %v421_v2 = vld [vmem:[%s5648_s1 + $0xc08] sm:$0xff] }
  0x90   :  { %3290 = vmatprep.subr.bf16.mxu1 %v3289_v26  ;;  %v388_v26 = vld [vmem:[%s5648_s1 + $0xb00] sm:$0xff] }
  0x91   :  { %3260 = vmatpush3.bf16.msra.mxu0 %v3259_v32  ;;  %v406_v32 = vld [vmem:[%s5648_s1 + $0xb90] sm:$0xff]  ;;  %v3343_v36 = vpack.c.bf16 %v389_v28, %v388_v26  ;;  %v367_v26 = vld [vmem:[%s5648_s1 + $0xa58] sm:$0xff] }
  0x92   :  { %3262 = vmatprep.subr.bf16.mxu0 %v3261_v34  ;;  %v4752_v34 = vrot.slane %v713_v20, %v3834_v13  ;;  %v414_v20 = vld [vmem:[%s5648_s1 + $0xbd0] sm:$0xff] }
  0x93   :  { %3292 = vmatpush3.bf16.msra.mxu1 %v3291_v42  ;;  %v407_v42 = vld [vmem:[%s5648_s1 + $0xb98] sm:$0xff] }
  0x94   :  { %3294 = vmatprep.subr.bf16.mxu1 %v3293_v37  ;;  %v358_v37 = vld [vmem:[%s5648_s1 + $0xa10] sm:$0xff]  ;;  %v3345_v40 = vpack.c.bf16 %v407_v42, %v406_v32  ;;  %v729_v49 = vcombine.high %v4752_v34, %v4752_v34  ;;  %v385_v32 = vld [vmem:[%s5648_s1 + $0xae8] sm:$0xff]  ;;  %v416_v42 = vld [vmem:[%s5648_s1 + $0xbe0] sm:$0xff] }
  0x95   :  { %3264 = vmatpush3.bf16.msra.mxu0 %v3263_v44  ;;  %v377_v44 = vld [vmem:[%s5648_s1 + $0xaa8] sm:$0xff]  ;;  %v3315_v50 = vpack.c.bf16 %v359_v38, %v358_v37  ;;  %v3333_v37 = vpack.c.bf16 %v385_v32, %v384_v30  ;;  %v368_v38 = vld [vmem:[%s5648_s1 + $0xa60] sm:$0xff] }
  0x96   :  { %3266 = vmatprep.subr.bf16.mxu0 %v3265_v47  ;;  %v408_v47 = vld [vmem:[%s5648_s1 + $0xba0] sm:$0xff]  ;;  %v3317_v53 = vpack.c.bf16 %v377_v44, %v376_v43  ;;  %v401_v43 = vld [vmem:[%s5648_s1 + $0xb68] sm:$0xff]  ;;  %v386_v44 = vld [vmem:[%s5648_s1 + $0xaf0] sm:$0xff] }
  0x97   :  { %3296 = vmatpush3.bf16.msra.mxu1 %v3295_v46  ;;  %v728_v46 = vcombine.high %v4743_v31, %v4743_v31  ;;  %v3349_v56 = vpack.c.bf16 %v409_v48, %v408_v47  ;;  %v418_v47 = vld [vmem:[%s5648_s1 + $0xbf0] sm:$0xff]  ;;  %v419_v48 = vld [vmem:[%s5648_s1 + $0xbf8] sm:$0xff] }
  0x98   :  { %3298 = vmatprep.subr.bf16.mxu1 %v3297_v51  ;;  %v3347_v51 = vpack.c.bf16 %v391_v41, %v390_v39  ;;  %v369_v39 = vld [vmem:[%s5648_s1 + $0xa68] sm:$0xff] }
  0x99   :  { %3268 = vmatpush3.bf16.msra.mxu0 %v3267_v58  ;;  %v379_v58 = vld [vmem:[%s5648_s1 + $0xab8] sm:$0xff] }
  0x9a   :  { %3270 = vmatprep.subr.bf16.mxu0 %v3269_v60  ;;  %v411_v60 = vld [vmem:[%s5648_s1 + $0xbb8] sm:$0xff]  ;;  %v3321_v63 = vpack.c.bf16 %v379_v58, %v378_v45  ;;  %v436_v45 = vld [vmem:[%s5648_s1 + $0xc80] sm:$0xff]  ;;  %v437_v58 = vld [vmem:[%s5648_s1 + $0xc88] sm:$0xff] }
  0x9b   :  { %3300 = vmatpush3.bf16.msra.mxu1 %v3299_v59  ;;  %v410_v59 = vld [vmem:[%s5648_s1 + $0xbb0] sm:$0xff] }
  0x9c   :  { %3302 = vmatprep.subr.bf16.mxu1 %v3301_v0  ;;  %v362_v0 = vld [vmem:[%s5648_s1 + $0xa30] sm:$0xff]  ;;  %v3353_v3 = vpack.c.bf16 %v411_v60, %v410_v59  ;;  %v468_v59 = vld [vmem:[%s5648_s1 + $0xd80] sm:$0xff]  ;;  %v469_v60 = vld [vmem:[%s5648_s1 + $0xd88] sm:$0xff] }
  0x9d   :  { %3272 = vmatpush3.bf16.msra.mxu0 %v3271_v6  ;;  %v381_v6 = vld [vmem:[%s5648_s1 + $0xac8] sm:$0xff]  ;;  %v3405_v4 = vpack.c.bf16 %v469_v60, %v468_v59 }
  0x9e   :  { %3274 = vmatprep.subr.bf16.mxu0 %v3273_v9  ;;  %v3323_v9 = vpack.c.bf16 %v363_v1, %v362_v0  ;;  %v3325_v10 = vpack.c.bf16 %v381_v6, %v380_v5  ;;  %v3373_v0 = vpack.c.bf16 %v437_v58, %v436_v45  ;;  %v420_v1 = vld [vmem:[%s5648_s1 + $0xc00] sm:$0xff]  ;;  %v453_v5 = vld [vmem:[%s5648_s1 + $0xd08] sm:$0xff]  ;;  %v438_v6 = vld [vmem:[%s5648_s1 + $0xc90] sm:$0xff] }
  0x9f   :  { %3304 = vmatpush3.bf16.msra.mxu1 %v3303_v8  ;;  %v413_v8 = vld [vmem:[%s5648_s1 + $0xbc8] sm:$0xff] }
  0xa0   :  { %3306 = vmatprep.subr.bf16.mxu1 %v3305_v14  ;;  %v365_v14 = vld [vmem:[%s5648_s1 + $0xa48] sm:$0xff]  ;;  %v3357_v16 = vpack.c.bf16 %v413_v8, %v412_v7  ;;  %v439_v7 = vld [vmem:[%s5648_s1 + $0xc98] sm:$0xff] }
  0xa1   :  { %3276 = vmatpush3.bf16.msra.mxu0 %v3275_v21  ;;  %v415_v21 = vld [vmem:[%s5648_s1 + $0xbd8] sm:$0xff] }
  0xa2   :  { %3310 = vmatprep.subr.bf16.mxu0 %v3309_v23  ;;  %v3359_v23 = vpack.c.bf16 %v397_v17, %v396_v15  ;;  %v3361_v28 = vpack.c.bf16 %v415_v21, %v414_v20  ;;  %v3377_v15 = vpack.c.bf16 %v439_v7, %v438_v6  ;;  %v423_v17 = vld [vmem:[%s5648_s1 + $0xc18] sm:$0xff]  ;;  %v440_v21 = vld [vmem:[%s5648_s1 + $0xca0] sm:$0xff] }
  0xa3   :  { %3308 = vmatpush3.bf16.msra.mxu1 %v3307_v22  ;;  %v3327_v22 = vpack.c.bf16 %v365_v14, %v364_v12  ;;  %v3375_v12 = vpack.c.bf16 %v421_v2, %v420_v1  ;;  %v455_v20 = vld [vmem:[%s5648_s1 + $0xd18] sm:$0xff] }
  0xa4   :  { %3342 = vmatprep.subr.bf16.mxu1 %v3341_v27  ;;  %1442 = vmatmul.mubr.f32.vlgmr.msra.gmra.mrb[8].mxu0 %v4536_v54  ;;  %v360_v54 = vld [vmem:[%s5648_s1 + $0xa20] sm:$0xff]  ;;  %v398_v27 = vld [vmem:[%s5648_s1 + $0xb50] sm:$0xff] }
  0xa5   :  { %3312 = vmatpush3.bf16.msra.mxu0 %v3311_v35  ;;  %1581 = vmatprep.mubr.f32.mxu0 %v728_v46  ;;  %v3319_v61 = vpack.c.bf16 %v361_v33, %v360_v54  ;;  %v417_v35 = vld [vmem:[%s5648_s1 + $0xbe8] sm:$0xff]  ;;  %v387_v46 = vld [vmem:[%s5648_s1 + $0xaf8] sm:$0xff]  ;;  %v370_v54 = vld [vmem:[%s5648_s1 + $0xa70] sm:$0xff] }
  0xa6   :  { %1512 = vmatmul.mubr.f32.vlgmr.msra.gmra.mrb[8].mxu1 %v4545_v57  ;;  %3314 = vmatprep.subr.bf16.mxu0 %v3313_v52  ;;  %v393_v57 = vld [vmem:[%s5648_s1 + $0xb28] sm:$0xff]  ;;  %v3363_v52 = vpack.c.bf16 %v399_v29, %v398_v27  ;;  %v3365_v41 = vpack.c.bf16 %v417_v35, %v416_v42  ;;  %v371_v33 = vld [vmem:[%s5648_s1 + $0xa78] sm:$0xff] }
  0xa7   :  { %3344 = vmatpush3.bf16.msra.mxu1 %v3343_v36  ;;  %1651 = vmatprep.mubr.f32.mxu1 %v729_v49  ;;  %v3351_v62 = vpack.c.bf16 %v393_v57, %v392_v55  ;;  %v3331_v36 = vpack.c.bf16 %v367_v26, %v366_v25  ;;  %v3335_v49 = vpack.c.bf16 %v369_v39, %v368_v38  ;;  %v402_v55 = vld [vmem:[%s5648_s1 + $0xb70] sm:$0xff]  ;;  %v403_v57 = vld [vmem:[%s5648_s1 + $0xb78] sm:$0xff]  ;;  %v473_v25 = vld [vmem:[%s5648_s1 + $0xda8] sm:$0xff] }
  0xa8   :  { %3346 = vmatprep.subr.bf16.mxu1 %v3345_v40  ;;  %v400_v40 = vld [vmem:[%s5648_s1 + $0xb60] sm:$0xff] }
  0xa9   :  { %3316 = vmatpush3.bf16.msra.mxu0 %v3315_v50  ;;  %v33_v50 = vld [vmem:[%s5647_s0 + $0x30] sm:$0xff] }
  0xaa   :  { %3318 = vmatprep.subr.bf16.mxu0 %v3317_v53  ;;  %v3337_v53 = vpack.c.bf16 %v387_v46, %v386_v44  ;;  %v4950_v8 = vrot.slane %v33_v50, %v3834_v13 }
  0xab   :  { %3348 = vmatpush3.bf16.msra.mxu1 %v3347_v51  ;;  %v3367_v51 = vpack.c.bf16 %v401_v43, %v400_v40 }
  0xac   :  { %3350 = vmatprep.subr.bf16.mxu1 %v3349_v56  ;;  %v3369_v56 = vpack.c.bf16 %v419_v48, %v418_v47 }
  0xad   :  { %3320 = vmatpush3.bf16.msra.mxu0 %v3319_v61  ;;  %v730_v61 = vcombine.high %v33_v50, %v33_v50 }
  0xae   :  { %3322 = vmatprep.subr.bf16.mxu0 %v3321_v63  ;;  %v3371_v63 = vpack.c.bf16 %v403_v57, %v402_v55 }
  0xaf   :  { %3352 = vmatpush3.bf16.msra.mxu1 %v3351_v62  ;;  %v3339_v62 = vpack.c.bf16 %v371_v33, %v370_v54 }
  0xb0   :  { %3354 = vmatprep.subr.bf16.mxu1 %v3353_v3  ;;  %v452_v3 = vld [vmem:[%s5648_s1 + $0xd00] sm:$0xff] }
  0xb1   :  { %3324 = vmatpush3.bf16.msra.mxu0 %v3323_v9  ;;  %v470_v9 = vld [vmem:[%s5648_s1 + $0xd90] sm:$0xff]  ;;  %v3407_v14 = vpack.c.bf16 %v453_v5, %v452_v3 }
  0xb2   :  { %3326 = vmatprep.subr.bf16.mxu0 %v3325_v10  ;;  %v4959_v10 = vrot.slane %v730_v61, %v3834_v13 }
  0xb3   :  { %3356 = vmatpush3.bf16.msra.mxu1 %v3355_v11  ;;  %v471_v11 = vld [vmem:[%s5648_s1 + $0xd98] sm:$0xff] }
  0xb4   :  { %3358 = vmatprep.subr.bf16.mxu1 %v3357_v16  ;;  %v422_v16 = vld [vmem:[%s5648_s1 + $0xc10] sm:$0xff]  ;;  %v3409_v19 = vpack.c.bf16 %v471_v11, %v470_v9  ;;  %v746_v26 = vcombine.high %v4959_v10, %v4959_v10 }
  0xb5   :  { %3328 = vmatpush3.bf16.msra.mxu0 %v3327_v22  ;;  %v441_v22 = vld [vmem:[%s5648_s1 + $0xca8] sm:$0xff] }
  0xb6   :  { %3330 = vmatprep.subr.bf16.mxu0 %v3329_v24  ;;  %v472_v24 = vld [vmem:[%s5648_s1 + $0xda0] sm:$0xff] }
  0xb7   :  { %3360 = vmatpush3.bf16.msra.mxu1 %v3359_v23  ;;  %v745_v23 = vcombine.high %v4950_v8, %v4950_v8 }
  0xb8   :  { %3362 = vmatprep.subr.bf16.mxu1 %v3361_v28 }
  0xb9   :  { %3332 = vmatpush3.bf16.msra.mxu0 %v3331_v36 }
  0xba   :  { %3334 = vmatprep.subr.bf16.mxu0 %v3333_v37 }
  0xbb   :  { %3364 = vmatpush3.bf16.msra.mxu1 %v3363_v52 }
  0xbc   :  { %3366 = vmatprep.subr.bf16.mxu1 %v3365_v41 }
  0xbd   :  { %3336 = vmatpush3.bf16.msra.mxu0 %v3335_v49 }
  0xbe   :  { %3338 = vmatprep.subr.bf16.mxu0 %v3337_v53 }
  0xbf   :  { %3368 = vmatpush3.bf16.msra.mxu1 %v3367_v51 }
  0xc0   :  { %3370 = vmatprep.subr.bf16.mxu1 %v3369_v56 }
  0xc1   :  { %3340 = vmatpush3.bf16.msra.mxu0 %v3339_v62 }
  0xc2   :  { %3374 = vmatprep.subr.bf16.mxu0 %v3373_v0 }
  0xc3   :  { %3372 = vmatpush3.bf16.msra.mxu1 %v3371_v63 }
  0xc4   :  { %3406 = vmatprep.subr.bf16.mxu1 %v3405_v4  ;;  %1582 = vmatmul.mubr.f32.vlgmr.msra.gmra.mrb[10].mxu0 %v4743_v31 }
  0xc5   :  { %12 = vsyncpa [#allocation3], 0  ;;  %3376 = vmatpush3.bf16.msra.mxu0 %v3375_v12  ;;  %v3379_v27 = vpack.c.bf16 %v423_v17, %v422_v16  ;;  %v3411_v28 = vpack.c.bf16 %v455_v20, %v454_v18  ;;  %v3381_v31 = vpack.c.bf16 %v441_v22, %v440_v21  ;;  %v424_v29 = vld [vmem:[%s5648_s1 + $0xc20] sm:$0xff]  ;;  %v425_v30 = vld [vmem:[%s5648_s1 + $0xc28] sm:$0xff]  ;;  %v3413_v42 = vpack.c.bf16 %v473_v25, %v472_v24  ;;  %s3643_s10 = smov [#allocation2]  }
  0xc6   :  { %1652 = vmatmul.mubr.f32.vlgmr.msra.gmra.mrb[10].mxu1 %v4752_v34  ;;  %3378 = vmatprep.subr.bf16.mxu0 %v3377_v15  ;;  %v456_v32 = vld [vmem:[%s5648_s1 + $0xd20] sm:$0xff]  ;;  %v457_v34 = vld [vmem:[%s5648_s1 + $0xd28] sm:$0xff]  ;;  %v442_v35 = vld [vmem:[%s5648_s1 + $0xcb0] sm:$0xff]  ;;  %v3383_v38 = vpack.c.bf16 %v425_v30, %v424_v29  ;;  %vm3641_vm0 = vmmov 0   ;;  %vm2185_vm1 = vcmask 523264   ;;  %vm2259_vm2 = vcmask 9216  }
  0xc7   :  { %3408 = vmatpush3.bf16.msra.mxu1 %v3407_v14  ;;  %v443_v36 = vld [vmem:[%s5648_s1 + $0xcb8] sm:$0xff]  ;;  %1721 = vmatprep.mubr.f32.mxu0 %v745_v23  ;;  %v474_v52 = vld [vmem:[%s5648_s1 + $0xdb0] sm:$0xff]  ;;  %v3415_v39 = vpack.c.bf16 %v457_v34, %v456_v32  ;;  %v444_v48 = vld [vmem:[%s5648_s1 + $0xcc0] sm:$0xff] }
  0xc8   :  { %3410 = vmatprep.subr.bf16.mxu1 %v3409_v19  ;;  %v475_v37 = vld [vmem:[%s5648_s1 + $0xdb8] sm:$0xff]  ;;  %1791 = vmatprep.mubr.f32.mxu1 %v746_v26  ;;  %v3385_v40 = vpack.c.bf16 %v443_v36, %v442_v35  ;;  %v426_v41 = vld [vmem:[%s5648_s1 + $0xc30] sm:$0xff]  ;;  %v445_v49 = vld [vmem:[%s5648_s1 + $0xcc8] sm:$0xff] }
  0xc9   :  { %3380 = vmatpush3.bf16.msra.mxu0 %v3379_v27  ;;  %v427_v43 = vld [vmem:[%s5648_s1 + $0xc38] sm:$0xff]  ;;  %v458_v44 = vld [vmem:[%s5648_s1 + $0xd30] sm:$0xff]  ;;  %v3417_v46 = vpack.c.bf16 %v475_v37, %v474_v52  ;;  %v476_v50 = vld [vmem:[%s5648_s1 + $0xdc0] sm:$0xff]  ;;  %v3389_v33 = vpack.c.bf16 %v445_v49, %v444_v48 }
  0xca   :  { %3382 = vmatprep.subr.bf16.mxu0 %v3381_v31  ;;  %v459_v47 = vld [vmem:[%s5648_s1 + $0xd38] sm:$0xff]  ;;  %v477_v51 = vld [vmem:[%s5648_s1 + $0xdc8] sm:$0xff]  ;;  %v3387_v53 = vpack.c.bf16 %v427_v43, %v426_v41  ;;  %v428_v55 = vld [vmem:[%s5648_s1 + $0xc40] sm:$0xff] }
  0xcb   :  { %3412 = vmatpush3.bf16.msra.mxu1 %v3411_v28  ;;  %v3419_v54 = vpack.c.bf16 %v459_v47, %v458_v44  ;;  %v429_v56 = vld [vmem:[%s5648_s1 + $0xc48] sm:$0xff]  ;;  %v460_v57 = vld [vmem:[%s5648_s1 + $0xd40] sm:$0xff]  ;;  %v3421_v45 = vpack.c.bf16 %v477_v51, %v476_v50  ;;  %v446_v59 = vld [vmem:[%s5648_s1 + $0xcd0] sm:$0xff] }
  0xcc   :  { %3414 = vmatprep.subr.bf16.mxu1 %v3413_v42  ;;  %v461_v58 = vld [vmem:[%s5648_s1 + $0xd48] sm:$0xff]  ;;  %v447_v60 = vld [vmem:[%s5648_s1 + $0xcd8] sm:$0xff]  ;;  %v478_v61 = vld [vmem:[%s5648_s1 + $0xdd0] sm:$0xff]  ;;  %v3391_v63 = vpack.c.bf16 %v429_v56, %v428_v55 }
  0xcd   :  { %3384 = vmatpush3.bf16.msra.mxu0 %v3383_v38  ;;  %v479_v62 = vld [vmem:[%s5648_s1 + $0xdd8] sm:$0xff]  ;;  %v3423_v0 = vpack.c.bf16 %v461_v58, %v460_v57  ;;  %v3393_v1 = vpack.c.bf16 %v447_v60, %v446_v59  ;;  %v430_v2 = vld [vmem:[%s5648_s1 + $0xc50] sm:$0xff]  ;;  %v448_v7 = vld [vmem:[%s5648_s1 + $0xce0] sm:$0xff] }
  0xce   :  { %3386 = vmatprep.subr.bf16.mxu0 %v3385_v40  ;;  %v431_v3 = vld [vmem:[%s5648_s1 + $0xc58] sm:$0xff]  ;;  %v462_v4 = vld [vmem:[%s5648_s1 + $0xd50] sm:$0xff]  ;;  %v3425_v5 = vpack.c.bf16 %v479_v62, %v478_v61  ;;  %v449_v9 = vld [vmem:[%s5648_s1 + $0xce8] sm:$0xff] }
  0xcf   :  { %3416 = vmatpush3.bf16.msra.mxu1 %v3415_v39  ;;  %v463_v6 = vld [vmem:[%s5648_s1 + $0xd58] sm:$0xff]  ;;  %v480_v11 = vld [vmem:[%s5648_s1 + $0xde0] sm:$0xff]  ;;  %v481_v12 = vld [vmem:[%s5648_s1 + $0xde8] sm:$0xff]  ;;  %v3395_v14 = vpack.c.bf16 %v431_v3, %v430_v2  ;;  %v3397_v16 = vpack.c.bf16 %v449_v9, %v448_v7 }
  0xd0   :  { %3418 = vmatprep.subr.bf16.mxu1 %v3417_v46  ;;  %v3427_v15 = vpack.c.bf16 %v463_v6, %v462_v4  ;;  %v432_v17 = vld [vmem:[%s5648_s1 + $0xc60] sm:$0xff]  ;;  %v433_v18 = vld [vmem:[%s5648_s1 + $0xc68] sm:$0xff]  ;;  %v3429_v20 = vpack.c.bf16 %v481_v12, %v480_v11  ;;  %v450_v22 = vld [vmem:[%s5648_s1 + $0xcf0] sm:$0xff] }
  0xd1   :  { %3388 = vmatpush3.bf16.msra.mxu0 %v3387_v53  ;;  %v464_v19 = vld [vmem:[%s5648_s1 + $0xd60] sm:$0xff]  ;;  %v465_v21 = vld [vmem:[%s5648_s1 + $0xd68] sm:$0xff]  ;;  %v451_v23 = vld [vmem:[%s5648_s1 + $0xcf8] sm:$0xff]  ;;  %v3399_v26 = vpack.c.bf16 %v433_v18, %v432_v17 }
  0xd2   :  { %3390 = vmatprep.subr.bf16.mxu0 %v3389_v33  ;;  %v482_v24 = vld [vmem:[%s5648_s1 + $0xdf0] sm:$0xff]  ;;  %v483_v25 = vld [vmem:[%s5648_s1 + $0xdf8] sm:$0xff]  ;;  %v3431_v28 = vpack.c.bf16 %v465_v21, %v464_v19  ;;  %v3401_v31 = vpack.c.bf16 %v451_v23, %v450_v22  ;;  %v500_v35 = vld [vmem:[%s5648_s1 + $0xe80] sm:$0xff] }
  0xd3   :  { %3420 = vmatpush3.bf16.msra.mxu1 %v3419_v54  ;;  %v34_v27 = vld [vmem:[%s5647_s0 + $0x38] sm:$0xff]  ;;  %v434_v29 = vld [vmem:[%s5648_s1 + $0xc70] sm:$0xff]  ;;  %v3433_v42 = vpack.c.bf16 %v483_v25, %v482_v24  ;;  %v501_v36 = vld [vmem:[%s5648_s1 + $0xe88] sm:$0xff] }
  0xd4   :  { %3422 = vmatprep.subr.bf16.mxu1 %v3421_v45  ;;  %v435_v30 = vld [vmem:[%s5648_s1 + $0xc78] sm:$0xff]  ;;  %v466_v32 = vld [vmem:[%s5648_s1 + $0xd70] sm:$0xff]  ;;  %v532_v52 = vld [vmem:[%s5648_s1 + $0xf80] sm:$0xff]  ;;  %v747_v38 = vcombine.high %v34_v27, %v34_v27  ;;  %v3437_v41 = vpack.c.bf16 %v501_v36, %v500_v35  ;;  %v5157_v51 = vrot.slane %v34_v27, %v3834_v13 }
  0xd5   :  { %3392 = vmatpush3.bf16.msra.mxu0 %v3391_v63  ;;  %v467_v34 = vld [vmem:[%s5648_s1 + $0xd78] sm:$0xff]  ;;  %v533_v37 = vld [vmem:[%s5648_s1 + $0xf88] sm:$0xff]  ;;  %v3403_v39 = vpack.c.bf16 %v435_v30, %v434_v29  ;;  %v484_v43 = vld [vmem:[%s5648_s1 + $0xe00] sm:$0xff] }
  0xd6   :  { %3394 = vmatprep.subr.bf16.mxu0 %v3393_v1  ;;  %v3435_v40 = vpack.c.bf16 %v467_v34, %v466_v32  ;;  %v485_v44 = vld [vmem:[%s5648_s1 + $0xe08] sm:$0xff]  ;;  %v516_v46 = vld [vmem:[%s5648_s1 + $0xf00] sm:$0xff]  ;;  %v3469_v47 = vpack.c.bf16 %v533_v37, %v532_v52  ;;  %v502_v49 = vld [vmem:[%s5648_s1 + $0xe90] sm:$0xff]  ;;  %v5166_v33 = vrot.slane %v747_v38, %v3834_v13 }
  0xd7   :  { %3424 = vmatpush3.bf16.msra.mxu1 %v3423_v0  ;;  %v517_v48 = vld [vmem:[%s5648_s1 + $0xf08] sm:$0xff]  ;;  %v503_v50 = vld [vmem:[%s5648_s1 + $0xe98] sm:$0xff]  ;;  %v534_v53 = vld [vmem:[%s5648_s1 + $0xf90] sm:$0xff]  ;;  %v3439_v55 = vpack.c.bf16 %v485_v44, %v484_v43  ;;  %v762_v0 = vcombine.high %v5157_v51, %v5157_v51 }
  0xd8   :  { %3426 = vmatprep.subr.bf16.mxu1 %v3425_v5  ;;  %v535_v54 = vld [vmem:[%s5648_s1 + $0xf98] sm:$0xff]  ;;  %v3471_v56 = vpack.c.bf16 %v517_v48, %v516_v46  ;;  %v3441_v57 = vpack.c.bf16 %v503_v50, %v502_v49  ;;  %v486_v45 = vld [vmem:[%s5648_s1 + $0xe10] sm:$0xff]  ;;  %v504_v62 = vld [vmem:[%s5648_s1 + $0xea0] sm:$0xff]  ;;  %v763_v3 = vcombine.high %v5166_v33, %v5166_v33 }
  0xd9   :  { %3396 = vmatpush3.bf16.msra.mxu0 %v3395_v14  ;;  %v487_v58 = vld [vmem:[%s5648_s1 + $0xe18] sm:$0xff]  ;;  %v518_v59 = vld [vmem:[%s5648_s1 + $0xf10] sm:$0xff]  ;;  %v3473_v60 = vpack.c.bf16 %v535_v54, %v534_v53  ;;  %v505_v63 = vld [vmem:[%s5648_s1 + $0xea8] sm:$0xff] }
  0xda   :  { %3398 = vmatprep.subr.bf16.mxu0 %v3397_v16  ;;  %v519_v61 = vld [vmem:[%s5648_s1 + $0xf18] sm:$0xff]  ;;  %v536_v1 = vld [vmem:[%s5648_s1 + $0xfa0] sm:$0xff]  ;;  %v537_v2 = vld [vmem:[%s5648_s1 + $0xfa8] sm:$0xff]  ;;  %v3443_v4 = vpack.c.bf16 %v487_v58, %v486_v45  ;;  %v3445_v6 = vpack.c.bf16 %v505_v63, %v504_v62 }
  0xdb   :  { %3428 = vmatpush3.bf16.msra.mxu1 %v3427_v15  ;;  %v3475_v5 = vpack.c.bf16 %v519_v61, %v518_v59  ;;  %v489_v7 = vld [vmem:[%s5648_s1 + $0xe28] sm:$0xff]  ;;  %v520_v9 = vld [vmem:[%s5648_s1 + $0xf20] sm:$0xff]  ;;  %v3477_v11 = vpack.c.bf16 %v537_v2, %v536_v1  ;;  %v506_v12 = vld [vmem:[%s5648_s1 + $0xeb0] sm:$0xff] }
  0xdc   :  { %3430 = vmatprep.subr.bf16.mxu1 %v3429_v20  ;;  %v507_v14 = vld [vmem:[%s5648_s1 + $0xeb8] sm:$0xff]  ;;  %v538_v15 = vld [vmem:[%s5648_s1 + $0xfb0] sm:$0xff]  ;;  %v508_v25 = vld [vmem:[%s5648_s1 + $0xec0] sm:$0xff] }
  0xdd   :  { %3400 = vmatpush3.bf16.msra.mxu0 %v3399_v26  ;;  %v539_v16 = vld [vmem:[%s5648_s1 + $0xfb8] sm:$0xff]  ;;  %v3449_v19 = vpack.c.bf16 %v507_v14, %v506_v12  ;;  %v490_v20 = vld [vmem:[%s5648_s1 + $0xe30] sm:$0xff]  ;;  %v509_v26 = vld [vmem:[%s5648_s1 + $0xec8] sm:$0xff] }
  0xde   :  { %3402 = vmatprep.subr.bf16.mxu0 %v3401_v31  ;;  %v491_v21 = vld [vmem:[%s5648_s1 + $0xe38] sm:$0xff]  ;;  %v522_v22 = vld [vmem:[%s5648_s1 + $0xf30] sm:$0xff]  ;;  %v3481_v23 = vpack.c.bf16 %v539_v16, %v538_v15  ;;  %v540_v27 = vld [vmem:[%s5648_s1 + $0xfc0] sm:$0xff]  ;;  %v3453_v30 = vpack.c.bf16 %v509_v26, %v508_v25 }
  0xdf   :  { %3432 = vmatpush3.bf16.msra.mxu1 %v3431_v28  ;;  %v523_v24 = vld [vmem:[%s5648_s1 + $0xf38] sm:$0xff]  ;;  %v541_v28 = vld [vmem:[%s5648_s1 + $0xfc8] sm:$0xff]  ;;  %v3451_v31 = vpack.c.bf16 %v491_v21, %v490_v20  ;;  %v492_v32 = vld [vmem:[%s5648_s1 + $0xe40] sm:$0xff] }
  0xe0   :  { %3434 = vmatprep.subr.bf16.mxu1 %v3433_v42  ;;  %v3483_v29 = vpack.c.bf16 %v523_v24, %v522_v22  ;;  %v493_v42 = vld [vmem:[%s5648_s1 + $0xe48] sm:$0xff]  ;;  %v524_v34 = vld [vmem:[%s5648_s1 + $0xf40] sm:$0xff]  ;;  %v3485_v35 = vpack.c.bf16 %v541_v28, %v540_v27  ;;  %v510_v52 = vld [vmem:[%s5648_s1 + $0xed0] sm:$0xff] }
  0xe1   :  { %3404 = vmatpush3.bf16.msra.mxu0 %v3403_v39  ;;  %v525_v36 = vld [vmem:[%s5648_s1 + $0xf48] sm:$0xff]  ;;  %v511_v37 = vld [vmem:[%s5648_s1 + $0xed8] sm:$0xff]  ;;  %v542_v38 = vld [vmem:[%s5648_s1 + $0xfd0] sm:$0xff] }
  0xe2   :  { %3438 = vmatprep.subr.bf16.mxu0 %v3437_v41  ;;  %v543_v39 = vld [vmem:[%s5648_s1 + $0xfd8] sm:$0xff]  ;;  %v3487_v41 = vpack.c.bf16 %v525_v36, %v524_v34  ;;  %v3457_v43 = vpack.c.bf16 %v511_v37, %v510_v52  ;;  %v494_v44 = vld [vmem:[%s5648_s1 + $0xe50] sm:$0xff]  ;;  %v512_v50 = vld [vmem:[%s5648_s1 + $0xee0] sm:$0xff] }
  0xe3   :  { %3436 = vmatpush3.bf16.msra.mxu1 %v3435_v40  ;;  %v3455_v40 = vpack.c.bf16 %v493_v42, %v492_v32  ;;  %v495_v46 = vld [vmem:[%s5648_s1 + $0xe58] sm:$0xff]  ;;  %v3489_v48 = vpack.c.bf16 %v543_v39, %v542_v38  ;;  %v513_v53 = vld [vmem:[%s5648_s1 + $0xee8] sm:$0xff]  ;;  %v544_v54 = vld [vmem:[%s5648_s1 + $0xfe0] sm:$0xff] }
  0xe4   :  { %3470 = vmatprep.subr.bf16.mxu1 %v3469_v47  ;;  %1722 = vmatmul.mubr.f32.vlgmr.msra.gmra.mrb[12].mxu0 %v4950_v8  ;;  %v488_v8 = vld [vmem:[%s5648_s1 + $0xe20] sm:$0xff]  ;;  %v526_v47 = vld [vmem:[%s5648_s1 + $0xf50] sm:$0xff]  ;;  %v527_v49 = vld [vmem:[%s5648_s1 + $0xf58] sm:$0xff]  ;;  %v3461_v45 = vpack.c.bf16 %v513_v53, %v512_v50 }
  0xe5   :  { %3440 = vmatpush3.bf16.msra.mxu0 %v3439_v55  ;;  %1861 = vmatprep.mubr.f32.mxu0 %v762_v0  ;;  %v3447_v17 = vpack.c.bf16 %v489_v7, %v488_v8  ;;  %v545_v55 = vld [vmem:[%s5648_s1 + $0xfe8] sm:$0xff]  ;;  %v496_v58 = vld [vmem:[%s5648_s1 + $0xe60] sm:$0xff]  ;;  %v514_v0 = vld [vmem:[%s5648_s1 + $0xef0] sm:$0xff] }
  0xe6   :  { %1792 = vmatmul.mubr.f32.vlgmr.msra.gmra.mrb[12].mxu1 %v4959_v10  ;;  %3442 = vmatprep.subr.bf16.mxu0 %v3441_v57  ;;  %v521_v10 = vld [vmem:[%s5648_s1 + $0xf28] sm:$0xff]  ;;  %v3491_v57 = vpack.c.bf16 %v527_v49, %v526_v47  ;;  %v3493_v62 = vpack.c.bf16 %v545_v55, %v544_v54  ;;  %v515_v1 = vld [vmem:[%s5648_s1 + $0xef8] sm:$0xff]  ;;  %v2275_v2 = vld [vmem:[%s5649_s2] ss:$0 sm:$0xff] }
  0xe7   :  { %3472 = vmatpush3.bf16.msra.mxu1 %v3471_v56  ;;  %1931 = vmatprep.mubr.f32.mxu1 %v763_v3  ;;  %v3479_v18 = vpack.c.bf16 %v521_v10, %v520_v9  ;;  %v3459_v56 = vpack.c.bf16 %v495_v46, %v494_v44  ;;  %v497_v59 = vld [vmem:[%s5648_s1 + $0xe68] sm:$0xff]  ;;  %v3465_v14 = vpack.c.bf16 %v515_v1, %v514_v0  ;;  %v498_v15 = vld [vmem:[%s5648_s1 + $0xe70] sm:$0xff]  ;;  %v499_v16 = vld [vmem:[%s5648_s1 + $0xe78] sm:$0xff] }
  0xe8   :  { %3474 = vmatprep.subr.bf16.mxu1 %v3473_v60  ;;  %v528_v60 = vld [vmem:[%s5648_s1 + $0xf60] sm:$0xff]  ;;  %v529_v63 = vld [vmem:[%s5648_s1 + $0xf68] sm:$0xff]  ;;  %v3463_v9 = vpack.c.bf16 %v497_v59, %v496_v58  ;;  %v531_v20 = vld [vmem:[%s5648_s1 + $0xf78] sm:$0xff]  ;;  %v3467_v27 = vpack.c.bf16 %v499_v16, %v498_v15 }
  0xe9   :  { %3444 = vmatpush3.bf16.msra.mxu0 %v3443_v4  ;;  %v3495_v12 = vpack.c.bf16 %v529_v63, %v528_v60  ;;  %v564_v21 = vld [vmem:[%s5648_s1 + $0x1080] sm:$0xff]  ;;  %v565_v22 = vld [vmem:[%s5648_s1 + $0x1088] sm:$0xff]  ;;  %v567_v36 = vld [vmem:[%s5648_s1 + $0x1098] sm:$0xff] }
  0xea   :  { %3446 = vmatprep.subr.bf16.mxu0 %v3445_v6  ;;  %v547_v6 = vld [vmem:[%s5648_s1 + $0xff8] sm:$0xff]  ;;  %v597_v24 = vld [vmem:[%s5648_s1 + $0x1188] sm:$0xff]  ;;  %v580_v32 = vld [vmem:[%s5648_s1 + $0x1100] sm:$0xff] }
  0xeb   :  { %3476 = vmatpush3.bf16.msra.mxu1 %v3475_v5  ;;  %v546_v5 = vld [vmem:[%s5648_s1 + $0xff0] sm:$0xff]  ;;  %v581_v34 = vld [vmem:[%s5648_s1 + $0x1108] sm:$0xff]  ;;  %v599_v38 = vld [vmem:[%s5648_s1 + $0x1198] sm:$0xff] }
  0xec   :  { %3478 = vmatprep.subr.bf16.mxu1 %v3477_v11  ;;  %v35_v11 = vld [vmem:[%s5647_s0 + $0x40] sm:$0xff]  ;;  %v598_v37 = vld [vmem:[%s5648_s1 + $0x1190] sm:$0xff]  ;;  %v551_v46 = vld [vmem:[%s5648_s1 + $0x1018] sm:$0xff] }
  0xed   :  { %3448 = vmatpush3.bf16.msra.mxu0 %v3447_v17  ;;  %v530_v17 = vld [vmem:[%s5648_s1 + $0xf70] sm:$0xff]  ;;  %v764_v25 = vcombine.high %v35_v11, %v35_v11  ;;  %v5369_v52 = vrot.slane %v35_v11, %v3834_v13  ;;  %v568_v49 = vld [vmem:[%s5648_s1 + $0x10a0] sm:$0xff]  ;;  %v569_v50 = vld [vmem:[%s5648_s1 + $0x10a8] sm:$0xff] }
  0xee   :  { %3450 = vmatprep.subr.bf16.mxu0 %v3449_v19  ;;  %v3497_v19 = vpack.c.bf16 %v547_v6, %v546_v5  ;;  %v3499_v28 = vpack.c.bf16 %v531_v20, %v530_v17  ;;  %v550_v44 = vld [vmem:[%s5648_s1 + $0x1010] sm:$0xff]  ;;  %v600_v54 = vld [vmem:[%s5648_s1 + $0x11a0] sm:$0xff]  ;;  %v601_v55 = vld [vmem:[%s5648_s1 + $0x11a8] sm:$0xff]  ;;  %v3509_v58 = vpack.c.bf16 %v569_v50, %v568_v49 }
  0xef   :  { %3480 = vmatpush3.bf16.msra.mxu1 %v3479_v18  ;;  %v5378_v39 = vrot.slane %v764_v25, %v3834_v13  ;;  %v582_v47 = vld [vmem:[%s5648_s1 + $0x1110] sm:$0xff]  ;;  %v3537_v13 = vpack.c.bf16 %v599_v38, %v598_v37  ;;  %v779_v53 = vcombine.high %v5369_v52, %v5369_v52  ;;  %v553_v59 = vld [vmem:[%s5648_s1 + $0x1028] sm:$0xff]  ;;  %v584_v60 = vld [vmem:[%s5648_s1 + $0x1120] sm:$0xff] }
  0xf0   :  { %3482 = vmatprep.subr.bf16.mxu1 %v3481_v23  ;;  %v596_v23 = vld [vmem:[%s5648_s1 + $0x1180] sm:$0xff]  ;;  %v571_v63 = vld [vmem:[%s5648_s1 + $0x10b8] sm:$0xff]  ;;  %v602_v0 = vld [vmem:[%s5648_s1 + $0x11b0] sm:$0xff] }
  0xf1   :  { %3452 = vmatpush3.bf16.msra.mxu0 %v3451_v31  ;;  %v3501_v31 = vpack.c.bf16 %v565_v22, %v564_v21  ;;  %v3533_v42 = vpack.c.bf16 %v597_v24, %v596_v23  ;;  %v603_v1 = vld [vmem:[%s5648_s1 + $0x11b8] sm:$0xff]  ;;  %v554_v5 = vld [vmem:[%s5648_s1 + $0x1030] sm:$0xff]  ;;  %v572_v11 = vld [vmem:[%s5648_s1 + $0x10c0] sm:$0xff] }
  0xf2   :  { %3454 = vmatprep.subr.bf16.mxu0 %v3453_v30  ;;  %v549_v30 = vld [vmem:[%s5648_s1 + $0x1008] sm:$0xff]  ;;  %v555_v6 = vld [vmem:[%s5648_s1 + $0x1038] sm:$0xff]  ;;  %v588_v20 = vld [vmem:[%s5648_s1 + $0x1140] sm:$0xff] }
  0xf3   :  { %3484 = vmatpush3.bf16.msra.mxu1 %v3483_v29  ;;  %v548_v29 = vld [vmem:[%s5648_s1 + $0x1000] sm:$0xff]  ;;  %v3515_v15 = vpack.c.bf16 %v555_v6, %v554_v5  ;;  %v589_v22 = vld [vmem:[%s5648_s1 + $0x1148] sm:$0xff]  ;;  %v574_v23 = vld [vmem:[%s5648_s1 + $0x10d0] sm:$0xff] }
  0xf4   :  { %3486 = vmatprep.subr.bf16.mxu1 %v3485_v35  ;;  %v566_v35 = vld [vmem:[%s5648_s1 + $0x1090] sm:$0xff]  ;;  %v575_v24 = vld [vmem:[%s5648_s1 + $0x10d8] sm:$0xff]  ;;  %v577_v37 = vld [vmem:[%s5648_s1 + $0x10e8] sm:$0xff] }
  0xf5   :  { %3456 = vmatpush3.bf16.msra.mxu0 %v3455_v40  ;;  %v3503_v40 = vpack.c.bf16 %v549_v30, %v548_v29  ;;  %v606_v25 = vld [vmem:[%s5648_s1 + $0x11d0] sm:$0xff]  ;;  %v3521_v29 = vpack.c.bf16 %v575_v24, %v574_v23  ;;  %v608_v38 = vld [vmem:[%s5648_s1 + $0x11e0] sm:$0xff]  ;;  %v593_v50 = vld [vmem:[%s5648_s1 + $0x1168] sm:$0xff]  ;;  %v3640_v24 = vmov 0.0|0.0  }
  0xf6   :  { %3458 = vmatprep.subr.bf16.mxu0 %v3457_v43  ;;  %v3505_v43 = vpack.c.bf16 %v567_v36, %v566_v35  ;;  %v558_v30 = vld [vmem:[%s5648_s1 + $0x1050] sm:$0xff]  ;;  %v591_v35 = vld [vmem:[%s5648_s1 + $0x1158] sm:$0xff]  ;;  %v576_v36 = vld [vmem:[%s5648_s1 + $0x10e0] sm:$0xff] }
  0xf7   :  { %3488 = vmatpush3.bf16.msra.mxu1 %v3487_v41  ;;  %v2311_v61 = vpop.f32.mrb[0].mxu0  ;;  %v3535_v41 = vpack.c.bf16 %v581_v34, %v580_v32  ;;  %v559_v32 = vld [vmem:[%s5648_s1 + $0x1058] sm:$0xff]  ;;  %v2079_v23 = vld [vmem:[%s5650_s3 + $0x10] sm:$0xff] }
  0xf8   :  { %3490 = vmatprep.subr.bf16.mxu1 %v3489_v48  ;;  %v2312_v3 = vpop.f32.mrb[1].mxu0  ;;  %v583_v48 = vld [vmem:[%s5648_s1 + $0x1118] sm:$0xff] }
  0xf9   :  { %v2346_v4 = vpop.f32.mrb[0].mxu1  ;;  %v2313_v8 = vadd.f32 %v2312_v3, %v2311_v61  ;;  %3460 = vmatpush3.bf16.msra.mxu0 %v3459_v56  ;;  %v780_v56 = vcombine.high %v5378_v39, %v5378_v39  ;;  %v3541_v61 = vpack.c.bf16 %v601_v55, %v600_v54  ;;  %v579_v54 = vld [vmem:[%s5648_s1 + $0x10f8] sm:$0xff] }
  0xfa   :  { %v2347_v7 = vpop.f32.mrb[1].mxu1  ;;  %3462 = vmatprep.subr.bf16.mxu0 %v3461_v45  ;;  %v3539_v45 = vpack.c.bf16 %v583_v48, %v582_v47  ;;  %v561_v47 = vld [vmem:[%s5648_s1 + $0x1068] sm:$0xff] }
  0xfb   :  { %v2348_v10 = vadd.f32 %v2347_v7, %v2346_v4  ;;  %3492 = vmatpush3.bf16.msra.mxu1 %v3491_v57  ;;  %v884_v18 = vadd.f32 %v2313_v8, %v2275_v2  ;;  %v3507_v57 = vpack.c.bf16 %v551_v46, %v550_v44  ;;  %v586_v8 = vld [vmem:[%s5648_s1 + $0x1130] sm:$0xff]  ;;  %v3545_v7 = vpack.c.bf16 %v603_v1, %v602_v0  ;;  %v560_v46 = vld [vmem:[%s5648_s1 + $0x1060] sm:$0xff] }
  0xfc   :  { %3494 = vmatprep.subr.bf16.mxu1 %v3493_v62  ;;  %v570_v62 = vld [vmem:[%s5648_s1 + $0x10b0] sm:$0xff]  ;;  %v3525_v44 = vpack.c.bf16 %v577_v37, %v576_v36  ;;  %v2086_v36 = vld [vmem:[%s5650_s3 + $0x48] sm:$0xff] }
  0xfd   :  { %v5348_v26 = vadd.f32 %v2348_v10, %v884_v18  ;;  %3464 = vmatpush3.bf16.msra.mxu0 %v3463_v9  ;;  %v3513_v4 = vpack.c.bf16 %v571_v63, %v570_v62  ;;  %v587_v9 = vld [vmem:[%s5648_s1 + $0x1138] sm:$0xff]  ;;  %v573_v10 = vld [vmem:[%s5648_s1 + $0x10c8] sm:$0xff]  ;;  %v556_v18 = vld [vmem:[%s5648_s1 + $0x1040] sm:$0xff] }
  0xfe   :  { %3466 = vmatprep.subr.bf16.mxu0 %v3465_v14  ;;  %v605_v14 = vld [vmem:[%s5648_s1 + $0x11c8] sm:$0xff]  ;;  %v3547_v16 = vpack.c.bf16 %v587_v9, %v586_v8  ;;  %v3517_v17 = vpack.c.bf16 %v573_v10, %v572_v11  ;;  %v562_v62 = vld [vmem:[%s5648_s1 + $0x1070] sm:$0xff]  ;;  %v563_v63 = vld [vmem:[%s5648_s1 + $0x1078] sm:$0xff] }
  0xff   :  { %3496 = vmatpush3.bf16.msra.mxu1 %v3495_v12  ;;  %v604_v12 = vld [vmem:[%s5648_s1 + $0x11c0] sm:$0xff]  ;;  %v3531_v5 = vpack.c.bf16 %v563_v63, %v562_v62 }
 0x100   :  { %3498 = vmatprep.subr.bf16.mxu1 %v3497_v19  ;;  %v557_v19 = vld [vmem:[%s5648_s1 + $0x1048] sm:$0xff]  ;;  %v3549_v21 = vpack.c.bf16 %v605_v14, %v604_v12  ;;  %v2174_v63 = vld [vmem:[%s5652_s5 + $0x20] sm:$0xff] }
 0x101   :  { %3468 = vmatpush3.bf16.msra.mxu0 %v3467_v27  ;;  %v607_v27 = vld [vmem:[%s5648_s1 + $0x11d8] sm:$0xff] }
 0x102   :  { %3502 = vmatprep.subr.bf16.mxu0 %v3501_v31  ;;  %v3551_v31 = vpack.c.bf16 %v589_v22, %v588_v20  ;;  %v3553_v34 = vpack.c.bf16 %v607_v27, %v606_v25  ;;  %v2080_v27 = vld [vmem:[%s5650_s3 + $0x18] sm:$0xff] }
 0x103   :  { %3500 = vmatpush3.bf16.msra.mxu1 %v3499_v28  ;;  %v3519_v28 = vpack.c.bf16 %v557_v19, %v556_v18 }
 0x104   :  { %3534 = vmatprep.subr.bf16.mxu1 %v3533_v42  ;;  %1862 = vmatmul.mubr.f32.vlgmr.msra.gmra.mrb[14].mxu0 %v5157_v51  ;;  %v552_v51 = vld [vmem:[%s5648_s1 + $0x1020] sm:$0xff]  ;;  %v590_v42 = vld [vmem:[%s5648_s1 + $0x1150] sm:$0xff] }
 0x105   :  { %3504 = vmatpush3.bf16.msra.mxu0 %v3503_v40  ;;  %2001 = vmatprep.mubr.f32.mxu0 %v779_v53  ;;  %v3511_v2 = vpack.c.bf16 %v553_v59, %v552_v51  ;;  %v609_v40 = vld [vmem:[%s5648_s1 + $0x11e8] sm:$0xff]  ;;  %v578_v53 = vld [vmem:[%s5648_s1 + $0x10f0] sm:$0xff]  ;;  %v3527_v59 = vpack.c.bf16 %v561_v47, %v560_v46 }
 0x106   :  { %1932 = vmatmul.mubr.f32.vlgmr.msra.gmra.mrb[14].mxu1 %v5166_v33  ;;  %3506 = vmatprep.subr.bf16.mxu0 %v3505_v43  ;;  %v585_v33 = vld [vmem:[%s5648_s1 + $0x1128] sm:$0xff]  ;;  %v3555_v43 = vpack.c.bf16 %v591_v35, %v590_v42  ;;  %v3557_v49 = vpack.c.bf16 %v609_v40, %v608_v38  ;;  %v2084_v42 = vld [vmem:[%s5650_s3 + $0x38] sm:$0xff]  ;;  %v2085_v35 = vld [vmem:[%s5650_s3 + $0x40] sm:$0xff] }
 0x107   :  { %3536 = vmatpush3.bf16.msra.mxu1 %v3535_v41  ;;  %2071 = vmatprep.mubr.f32.mxu1 %v780_v56  ;;  %v3543_v3 = vpack.c.bf16 %v585_v33, %v584_v60  ;;  %v3523_v41 = vpack.c.bf16 %v559_v32, %v558_v30  ;;  %v3529_v33 = vpack.c.bf16 %v579_v54, %v578_v53  ;;  %v2083_v32 = vld [vmem:[%s5650_s3 + $0x30] sm:$0xff]  ;;  %v2088_v40 = vld [vmem:[%s5650_s3 + $0x58] sm:$0xff] }
 0x108   :  { %3538 = vmatprep.subr.bf16.mxu1 %v3537_v13  ;;  %v592_v13 = vld [vmem:[%s5648_s1 + $0x1160] sm:$0xff]  ;;  %v3578_v37 = vpack.c.bf16 %v2086_v36, %v2085_v35  ;;  %v2087_v38 = vld [vmem:[%s5650_s3 + $0x50] sm:$0xff]  ;;  %v2092_v54 = vld [vmem:[%s5650_s3 + $0x78] sm:$0xff] }
 0x109   :  { %3508 = vmatpush3.bf16.msra.mxu0 %v3507_v57  ;;  %v610_v57 = vld [vmem:[%s5648_s1 + $0x11f0] sm:$0xff]  ;;  %v2276_v36 = vld [vmem:[%s5651_s4] ss:$0 sm:$0xff] }
 0x10a   :  { %3510 = vmatprep.subr.bf16.mxu0 %v3509_v58  ;;  %v2091_v53 = vld [vmem:[%s5650_s3 + $0x70] sm:$0xff] }
 0x10b   :  { %3540 = vmatpush3.bf16.msra.mxu1 %v3539_v45  ;;  %v611_v45 = vld [vmem:[%s5648_s1 + $0x11f8] sm:$0xff] }
 0x10c   :  { %3542 = vmatprep.subr.bf16.mxu1 %v3541_v61  ;;  %v3559_v61 = vpack.c.bf16 %v593_v50, %v592_v13  ;;  %v3561_v1 = vpack.c.bf16 %v611_v45, %v610_v57 }
 0x10d   :  { %3512 = vmatpush3.bf16.msra.mxu0 %v3511_v2  ;;  %v594_v2 = vld [vmem:[%s5648_s1 + $0x1170] sm:$0xff] }
 0x10e   :  { %3514 = vmatprep.subr.bf16.mxu0 %v3513_v4 }
 0x10f   :  { %3544 = vmatpush3.bf16.msra.mxu1 %v3543_v3  ;;  %v595_v3 = vld [vmem:[%s5648_s1 + $0x1178] sm:$0xff]  ;;  %s2267_s1 = sshll.u32 %s3643_s10, 4  ;;  %s2268_s1 = int_to_ptr.vmem [resolvable:$true] %s2267_s1 }
 0x110   :  { %3546 = vmatprep.subr.bf16.mxu1 %v3545_v7  ;;  %v3563_v6 = vpack.c.bf16 %v595_v3, %v594_v2  ;;  %p3620_p1 = scmp.lt.s32.totalorder %s2268_s1, %s2268_s1 }
 0x111   :  { %3516 = vmatpush3.bf16.msra.mxu0 %v3515_v15 }
 0x112   :  { %3518 = vmatprep.subr.bf16.mxu0 %v3517_v17 }
 0x113   :  { %3548 = vmatpush3.bf16.msra.mxu1 %v3547_v16 }
 0x114   :  { %3550 = vmatprep.subr.bf16.mxu1 %v3549_v21 }
 0x115   :  { %3520 = vmatpush3.bf16.msra.mxu0 %v3519_v28  ;;  %v3569_v28 = vpack.c.bf16 %v2080_v27, %v2079_v23 }
 0x116   :  { %3522 = vmatprep.subr.bf16.mxu0 %v3521_v29  ;;  %v2082_v29 = vld [vmem:[%s5650_s3 + $0x28] sm:$0xff] }
 0x117   :  { %3552 = vmatpush3.bf16.msra.mxu1 %v3551_v31  ;;  %v2381_v48 = vpop.f32.mrb[2].mxu0  ;;  %v2081_v31 = vld [vmem:[%s5650_s3 + $0x20] sm:$0xff] }
 0x118   :  { %3554 = vmatprep.subr.bf16.mxu1 %v3553_v34  ;;  %v2382_v55 = vpop.f32.mrb[3].mxu0  ;;  %v3572_v30 = vpack.c.bf16 %v2082_v29, %v2081_v31  ;;  %v3575_v34 = vpack.c.bf16 %v2084_v42, %v2083_v32  ;;  %v2176_v42 = vld [vmem:[%s5652_s5 + $0x30] sm:$0xff] }
 0x119   :  { %v2416_v56 = vpop.f32.mrb[2].mxu1  ;;  %v2383_v58 = vadd.f32 %v2382_v55, %v2381_v48  ;;  %3524 = vmatpush3.bf16.msra.mxu0 %v3523_v41  ;;  %v3581_v41 = vpack.c.bf16 %v2088_v40, %v2087_v38 }
 0x11a   :  { %v2417_v51 = vpop.f32.mrb[3].mxu1  ;;  %3526 = vmatprep.subr.bf16.mxu0 %v3525_v44  ;;  %v2090_v44 = vld [vmem:[%s5650_s3 + $0x68] sm:$0xff] }
 0x11b   :  { %v2418_v60 = vadd.f32 %v2417_v51, %v2416_v56  ;;  %3556 = vmatpush3.bf16.msra.mxu1 %v3555_v43  ;;  %v1024_v0 = vadd.f32 %v2383_v58, %v5348_v26  ;;  %v2089_v43 = vld [vmem:[%s5650_s3 + $0x60] sm:$0xff]  ;;  %v3587_v56 = vpack.c.bf16 %v2092_v54, %v2091_v53  ;;  %v3642_v58 = vmov 0.0  }
 0x11c   :  { %3558 = vmatprep.subr.bf16.mxu1 %v3557_v49  ;;  %v3584_v46 = vpack.c.bf16 %v2090_v44, %v2089_v43  ;;  %v2170_v51 = vld [vmem:[%s5652_s5] sm:$0xff] }
 0x11d   :  { %v1094_v4 = vadd.f32 %v2418_v60, %v1024_v0  ;;  %3528 = vmatpush3.bf16.msra.mxu0 %v3527_v59  ;;  %v2171_v59 = vld [vmem:[%s5652_s5 + $0x8] sm:$0xff]  ;;  %v2172_v60 = vld [vmem:[%s5652_s5 + $0x10] sm:$0xff] }
 0x11e   :  { %3530 = vmatprep.subr.bf16.mxu0 %v3529_v33  ;;  %v2173_v33 = vld [vmem:[%s5652_s5 + $0x18] sm:$0xff]  ;;  %v2175_v0 = vld [vmem:[%s5652_s5 + $0x28] sm:$0xff] }
 0x11f   :  { %3560 = vmatpush3.bf16.msra.mxu1 %v3559_v61  ;;  %v3590_v61 = vpack.c.bf16 %v2171_v59, %v2170_v51  ;;  %v3593_v62 = vpack.c.bf16 %v2173_v33, %v2172_v60 }
 0x120   :  { %3562 = vmatprep.subr.bf16.mxu1 %v3561_v1  ;;  %v3596_v1 = vpack.c.bf16 %v2175_v0, %v2174_v63 }
 0x121   :  { %3532 = vmatpush3.bf16.msra.mxu0 %v3531_v5 }
 0x122   :  { %3565 = vmatprep.subr.bf16.mxu0 %v3640_v24 }
 0x123   :  { %3564 = vmatpush3.bf16.msra.mxu1 %v3563_v6 }
 0x124   :  { %2002 = vmatmul.mubr.f32.vlgmr.msra.gmra.mrb[16].mxu0 %v5369_v52  ;;  %v2077_v52 = vld [vmem:[%s5650_s3] sm:$0xff]  ;;  %3589 = vmatprep.subr.bf16.mxu1 %v3640_v24 }
 0x125   :  { %2967 = vmatprep.mubr.msk.f32.mxu0 %vm3641_vm0, %v3642_v58 }
 0x126   :  { %2072 = vmatmul.mubr.f32.vlgmr.msra.gmra.mrb[16].mxu1 %v5378_v39  ;;  %v2078_v39 = vld [vmem:[%s5650_s3 + $0x8] sm:$0xff] }
 0x127   :  { %v3566_v25 = vpack.c.bf16 %v2078_v39, %v2077_v52  ;;  %2986 = vmatprep.mubr.msk.f32.mxu1 %vm3641_vm0, %v3642_v58  ;;  %3591 = vmatpush3.bf16.msra.mxu1 %v3590_v61 }
 0x128   :  { %3592 = vmatprep.subr.bf16.mxu1 %v3640_v24 }
 0x129   :  { %3567 = vmatpush3.bf16.msra.mxu0 %v3566_v25 }
 0x12a   :  { %3568 = vmatprep.subr.bf16.mxu0 %v3640_v24 }
 0x12b   :  { %3594 = vmatpush3.bf16.msra.mxu1 %v3593_v62 }
 0x12c   :  { %3595 = vmatprep.subr.bf16.mxu1 %v3640_v24 }
 0x12d   :  { %3570 = vmatpush3.bf16.msra.mxu0 %v3569_v28 }
 0x12e   :  { %3571 = vmatprep.subr.bf16.mxu0 %v3640_v24 }
 0x12f   :  { %3597 = vmatpush3.bf16.msra.mxu1 %v3596_v1 }
 0x130   :  { %3598 = vmatprep.subr.bf16.mxu1 %v3640_v24 }
 0x131   :  { %3573 = vmatpush3.bf16.msra.mxu0 %v3572_v30 }
 0x132   :  { %3574 = vmatprep.subr.bf16.mxu0 %v3640_v24 }
 0x135   :  { %3576 = vmatpush3.bf16.msra.mxu0 %v3575_v34  ;;  %v2177_v34 = vld [vmem:[%s5652_s5 + $0x38] sm:$0xff]  ;;  %s3615_s5 = scalar_lea.vmem %s2268_s1, 32 }
 0x136   :  { %3577 = vmatprep.subr.bf16.mxu0 %v3640_v24  ;;  %v3599_v35 = vpack.c.bf16 %v2177_v34, %v2176_v42  ;;  %p3616_p0 = scmp.ne.s32.totalorder %s2268_s1, %s3615_s5  ;;  %p3621_p2 = scmp.lt.s32.totalorder %s3615_s5, %s3615_s5 }
 0x137   :  { %v2451_v26 = vpop.f32.mrb[4].mxu0 }
 0x138   :  { %v2452_v8 = vpop.f32.mrb[5].mxu0  ;;  %3600 = vmatpush3.bf16.msra.mxu1 %v3599_v35  ;;  %p3622_p3 = por %p3621_p2, %p3620_p1 }
 0x139   :  { %v2486_v7 = vpop.f32.mrb[4].mxu1  ;;  %v2453_v9 = vadd.f32 %v2452_v8, %v2451_v26  ;;  %3579 = vmatpush3.bf16.msra.mxu0 %v3578_v37 }
 0x13a   :  { %v2487_v11 = vpop.f32.mrb[5].mxu1  ;;  %3580 = vmatprep.subr.bf16.mxu0 %v3640_v24  ;;  %p3623_p4 = pnand %p3622_p3, %p3616_p0 }
 0x13b   :  { %v2488_v10 = vadd.f32 %v2487_v11, %v2486_v7  ;;  %v1164_v12 = vadd.f32 %v2453_v9, %v1094_v4 }
 0x13d   :  { %v1234_v14 = vadd.f32 %v2488_v10, %v1164_v12  ;;  %3582 = vmatpush3.bf16.msra.mxu0 %v3581_v41  ;;  %v2277_v41 = vld [vmem:[%s5653_s6] ss:$0 sm:$0xff] }
 0x13e   :  { %3583 = vmatprep.subr.bf16.mxu0 %v3640_v24 }
 0x141   :  { %3585 = vmatpush3.bf16.msra.mxu0 %v3584_v46 }
 0x142   :  { %3586 = vmatprep.subr.bf16.mxu0 %v3640_v24 }
 0x145   :  { %3588 = vmatpush3.bf16.msra.mxu0 %v3587_v56 }
 0x157   :  { %v2521_v15 = vpop.f32.mrb[6].mxu0 }
 0x158   :  { %v2522_v16 = vpop.f32.mrb[7].mxu0 }
 0x159   :  { %v2556_v17 = vpop.f32.mrb[6].mxu1  ;;  %v2523_v18 = vadd.f32 %v2522_v16, %v2521_v15 }
 0x15a   :  { %v2557_v19 = vpop.f32.mrb[7].mxu1 }
 0x15b   :  { %v2558_v20 = vadd.f32 %v2557_v19, %v2556_v17  ;;  %v1304_v21 = vadd.f32 %v2523_v18, %v1234_v14 }
 0x15d   :  { %v1374_v22 = vadd.f32 %v2558_v20, %v1304_v21 }
 0x177   :  { %v2591_v47 = vpop.f32.mrb[8].mxu0 }
 0x178   :  { %v2592_v13 = vpop.f32.mrb[9].mxu0 }
 0x179   :  { %v2626_v48 = vpop.f32.mrb[8].mxu1  ;;  %v2593_v49 = vadd.f32 %v2592_v13, %v2591_v47 }
 0x17a   :  { %v2627_v50 = vpop.f32.mrb[9].mxu1 }
 0x17b   :  { %v2628_v55 = vadd.f32 %v2627_v50, %v2626_v48  ;;  %v1444_v57 = vadd.f32 %v2593_v49, %v1374_v22 }
 0x17d   :  { %v1514_v45 = vadd.f32 %v2628_v55, %v1444_v57 }
 0x197   :  { %v2661_v2 = vpop.f32.mrb[10].mxu0 }
 0x198   :  { %v2662_v3 = vpop.f32.mrb[11].mxu0 }
 0x199   :  { %v2696_v4 = vpop.f32.mrb[10].mxu1  ;;  %v2663_v5 = vadd.f32 %v2662_v3, %v2661_v2 }
 0x19a   :  { %v2697_v6 = vpop.f32.mrb[11].mxu1 }
 0x19b   :  { %v2698_v26 = vadd.f32 %v2697_v6, %v2696_v4  ;;  %v1584_v8 = vadd.f32 %v2663_v5, %v1514_v45 }
 0x19d   :  { %v1654_v7 = vadd.f32 %v2698_v26, %v1584_v8 }
 0x1b7   :  { %v2731_v9 = vpop.f32.mrb[12].mxu0 }
 0x1b8   :  { %v2732_v11 = vpop.f32.mrb[13].mxu0 }
 0x1b9   :  { %v2766_v10 = vpop.f32.mrb[12].mxu1  ;;  %v2733_v12 = vadd.f32 %v2732_v11, %v2731_v9 }
 0x1ba   :  { %v2767_v14 = vpop.f32.mrb[13].mxu1 }
 0x1bb   :  { %v2768_v15 = vadd.f32 %v2767_v14, %v2766_v10  ;;  %v1724_v16 = vadd.f32 %v2733_v12, %v1654_v7 }
 0x1bd   :  { %v1794_v17 = vadd.f32 %v2768_v15, %v1724_v16 }
 0x1d7   :  { %v2801_v18 = vpop.f32.mrb[14].mxu0 }
 0x1d8   :  { %v2802_v19 = vpop.f32.mrb[15].mxu0 }
 0x1d9   :  { %v2836_v20 = vpop.f32.mrb[14].mxu1  ;;  %v2803_v21 = vadd.f32 %v2802_v19, %v2801_v18 }
 0x1da   :  { %v2837_v22 = vpop.f32.mrb[15].mxu1 }
 0x1db   :  { %v2838_v52 = vadd.f32 %v2837_v22, %v2836_v20  ;;  %v1864_v39 = vadd.f32 %v2803_v21, %v1794_v17 }
 0x1dd   :  { %v1934_v23 = vadd.f32 %v2838_v52, %v1864_v39 }
 0x1f7   :  { %v2871_v24 = vpop.f32.mrb[16].mxu0 }
 0x1f8   :  { %v2872_v25 = vpop.f32.mrb[17].mxu0 }
 0x1f9   :  { %v2906_v27 = vpop.f32.mrb[16].mxu1  ;;  %v2873_v28 = vadd.f32 %v2872_v25, %v2871_v24 }
 0x1fa   :  { %v2907_v31 = vpop.f32.mrb[17].mxu1 }
 0x1fb   :  { %v2908_v29 = vadd.f32 %v2907_v31, %v2906_v27  ;;  %v2004_v30 = vadd.f32 %v2873_v28, %v1934_v23 }
 0x1fd   :  { %v2074_v32 = vadd.f32 %v2908_v29, %v2004_v30 }
 0x1ff   :  { %2968 = vmatmul.mubr.f32.vlgmr.msra.gmra.mrb[18].mxu0 %v2074_v32 }
 0x2d2   :  { %v2166_v37 = vpop.f32.mrb[18].mxu0 }
 0x2d3   :  { %v2167_v38 = vadd.f32 %v2276_v36, %v2166_v37  ;;  %v2969_v40 = vpop.f32.mrb[19].mxu0 }
 0x2d5   :  { %2987 = vmatmul.mubr.msk.f32.vlgmr.msra.gmra.mrb[18].mxu1 %vm2185_vm1, %v2167_v38 }
 0x3a8   :  { %v2255_v43 = vpop.f32.mrb[18].mxu1 }
 0x3a9   :  { %v2256_v44 = vadd.f32 %v2277_v41, %v2255_v43  ;;  %v2988_v46 = vpop.f32.mrb[19].mxu1 }
 0x3ab   :  { %2260 = vst.msk [vmem:[#allocation2] sm:$0x3] %vm2259_vm2, %v2256_v44 }
 0x3ac   :  { %3626 = shalt.err (!%p3623_p4)
}
 0x3ad   :  { %s3627_s12 = scalar_lea.hbm %s5654_s7, 32 }
 0x3ae   :  { %p3628_p5 = scmp.ne.s32.totalorder %s5654_s7, %s3627_s12  ;;  %p3631_p6 = scmp.lt.u32.totalorder %s3627_s12, %s5654_s7 }
 0x3b0   :  { %p3633_p7 = pnand %p3631_p6, %p3628_p5 }
 0x3b2   :  { %3636 = shalt.err (!%p3633_p7)
}
 0x3b3   :  { %2270 = dma.vmem_to_hbm [thread:$0]  %s2268_s1, 32, %s5654_s7, [#allocation3]  }
 0x3b4   :  { %3637 = dma.done.wait [#allocation3], 32  }
 0x3b5   :  { %3638 = vsyncadd [#allocation3], 4294967264 }
 0x3b6   :  { %2274 = vsyncpa [#allocation3], 1 }

// kernel: network_forward.2
= control target key start
LH: loop header
LB: loop body
LE: loop exit
PB: predicated region body
PF: predicated region fallthrough
CT: control target
= control target key end

     0   :  { %s14794_s13 = smov 0   ;;  %s18621_s0 = inlined_call_operand.vmem [shape: f32[2,1,1024], index: 0, kind: input, shape index: {}]   ;;  %s18622_s1 = inlined_call_operand.vmem [shape: f32[9,4,1], index: 1, kind: input, shape index: {}]   ;;  %s18623_s2 = inlined_call_operand.vmem [shape: f32[4,1], index: 2, kind: input, shape index: {}]   ;;  %s18624_s3 = inlined_call_operand.vmem [shape: f32[9,8,4], index: 3, kind: input, shape index: {}]   ;;  %s18625_s4 = inlined_call_operand.vmem [shape: f32[8,1], index: 4, kind: input, shape index: {}]   ;;  %s18626_s5 = inlined_call_operand.vmem [shape: f32[9,16,8], index: 5, kind: input, shape index: {}]   ;;  %s18627_s6 = inlined_call_operand.vmem [shape: f32[16,1], index: 6, kind: input, shape index: {}]   ;;  %s18628_s7 = inlined_call_operand.vmem [shape: f32[9,32,16], index: 7, kind: input, shape index: {}]   ;;  %s18629_s8 = inlined_call_operand.vmem [shape: f32[32,1], index: 8, kind: input, shape index: {}]   ;;  %s18630_s9 = inlined_call_operand.vmem [shape: f32[1024,144], index: 9, kind: input, shape index: {}]   ;;  %s18631_s10 = inlined_call_operand.vmem [shape: f32[2,32,144], index: 10, kind: output, shape index: {}]  }
   0x1 LB: > { %s12895_s14 = sadd.s32 4294967295, %s14727_s13   ;;  %p12899_p0 = scmp.ge.s32.totalorder %s14727_s13, 1  ;;  %s14727_s13 = sphi %s14794_s13, %s20_s13  }
   0x2   : > { %p311_p1 = scmp.lt.s32.totalorder %s14727_s13, 3 }
   0x4   : > { %p312_p2 = pnand %p12899_p0, %p311_p1 }
   0x6   : > { %315 = sbr.rel (%p312_p2) target bundleno = 2550 (0x9f6), region = 60 }
   0xd   : > { %v12903_v0 = vld [vmem:[%s18622_s1 + $0x4] sm:$0xf]  ;;  %p348_p3 = scmp.lt.s32.totalorder %s12895_s14, 1  ;;  %v14729_v1 = vmov 0   ;;  %v12905_v2 = vld [vmem:[%s18622_s1 + $0xc] sm:$0xf]  ;;  %v376_v13 = vlaneseq }
   0xe   : > { %14184 = vset.pattern.permute.xlu0 %v14729_v1  ;;  %14185 = vset.pattern.permute.xlu1 %v14729_v1  ;;  %v12904_v3 = vld [vmem:[%s18622_s1 + $0x8] sm:$0xf]  ;;  %v12906_v4 = vld [vmem:[%s18622_s1 + $0x10] sm:$0xf]  ;;  %v14730_v5 = vmov 0.0   ;;  %s14731_s21 = smov 127  }
   0xf   : > { %441 = vperm.xlu0 %14184, %v12903_v0   ;;  %624 = vperm.xlu1 %14185, %v12905_v2   ;;  %s18682_s14 = smov (!%p348_p3, %s12895_s14), 1  ;;  %357 = vst [vmem:[#allocation2 + $0x40] sm:$0xff] %v14730_v5  ;;  %v12907_v6 = vld [vmem:[%s18622_s1 + $0x14] sm:$0xf]  ;;  %v12908_v7 = vld [vmem:[%s18622_s1 + $0x18] sm:$0xf] }
  0x10   : > { %s12900_s23 = sshll.u32 %s18682_s14, 3  ;;  %1190 = vmatprep.mubr.f32.mxu0 %v14730_v5  ;;  %1261 = vmatprep.mubr.f32.mxu1 %v14730_v5  ;;  %v12909_v9 = vld [vmem:[%s18622_s1 + $0x1c] sm:$0xf]  ;;  %v12910_v10 = vld [vmem:[%s18622_s1 + $0x20] sm:$0xf]  ;;  %v14838_v14 = vshrl.u32 %v376_v13, 7 }
  0x11   : > { %s351_s26 = scalar_lea.vmem %s18621_s0, %s12900_s23  ;;  %v369_v11 = vld [vmem:[%s18622_s1] sm:$0xf]  ;;  %s14732_s22 = smov 126   ;;  %vm527_vm0 = vcmask 1039360   ;;  %vm595_vm1 = vcmask 1031168   ;;  %vm663_vm2 = vcmask 785408  }
  0x12   : > { %v363_v8 = vld [vmem:[%s351_s26] sm:$0xff]  ;;  %v386_v17 = vsub.s32 2, %v14838_v14  ;;  %v382_v19 = vsub.s32 1, %v14838_v14  ;;  %v390_v22 = vsub.s32 3, %v14838_v14  ;;  %v14852_v23 = vsub.s32 0, %v14838_v14  ;;  %s14733_s23 = smov 96  }
  0x13   : > { %556 = vperm.xlu0 %14184, %v12904_v3   ;;  %692 = vperm.xlu1 %14185, %v12906_v4   ;;  %364 = vst [vmem:[#allocation2] ss:$8 sm:$0xf] %v363_v8  ;;  %365 = vst [vmem:[#allocation2] ss:$8 sm:$0xf0] %v363_v8 }
  0x14   : > { %v1028_v12 = vld [vmem:[%s18623_s2] sm:$0xf]  ;;  %v18635_v25 = vsub.s32 4, %v14838_v14  ;;  %v18634_v26 = vsub.s32 5, %v14838_v14  ;;  %v18633_v42 = vsub.s32 6, %v14838_v14  ;;  %v18632_v43 = vsub.s32 7, %v14838_v14 }
  0x15   : > { %s14734_s24 = smov 95   ;;  %s14735_s25 = smov 94   ;;  %vm731_vm3 = vcmask 777216   ;;  %vm799_vm4 = vcmask 769024   ;;  %vm867_vm5 = vcmask 523264   ;;  %vm935_vm6 = vcmask 515072  }
  0x16   : > { %v436_v51 = vld [vmem:[#allocation2 + $0x40] ss:$8 sm:$0x1]  ;;  %s14736_s26 = smov 64   ;;  %s14737_s27 = smov 63   ;;  %vm1003_vm7 = vcmask 506880  }
  0x17   : > { %760 = vperm.xlu0 %14184, %v12907_v6   ;;  %828 = vperm.xlu1 %14185, %v12908_v7   ;;  %v14912_v54 = vrot.slane %v436_v51, %v14852_v23  ;;  %s14738_s28 = smov 62   ;;  %vm1109_vm8 = vcmask 1043456   ;;  %vm1105_vm9 = vcmask 31744   ;;  %vm4173_vm10 = vcmask 64512   ;;  %s13293_s30 = sshll.u32 %s18682_s14, 6 }
  0x18   : > { %vm7560_vm11 = vcmask 130048   ;;  %s18604_s15 = scalar_lea.vmem %s18631_s10, %s13293_s30 }
  0x1a   : > { %v432_v15 = vld [vmem:[#allocation2] ss:$8 sm:$0xf] }
  0x1b   : > { %896 = vperm.xlu0 %14184, %v12909_v9   ;;  %964 = vperm.xlu1 %14185, %v12910_v10   ;;  %v433_v16 = vld [vmem:[#allocation2] ss:$8 sm:$0xf0] }
  0x1c   : > { %v434_v18 = vor.u32 %v433_v16, %v432_v15 }
  0x1e   : > { %v14844_v20 = vrot.slane %v434_v18, %v386_v17  ;;  %v14848_v21 = vrot.slane %v434_v18, %v382_v19  ;;  %v14860_v29 = vrot.slane %v434_v18, %v390_v22  ;;  %v14863_v30 = vrot.slane %v434_v18, %v14852_v23 }
  0x1f   : > { %372 = vperm.xlu0 %14184, %v369_v11   ;;  %1031 = vperm.xlu1 %14185, %v1028_v12   ;;  %v14871_v33 = vrot.slane %v434_v18, %v18635_v25  ;;  %v14875_v34 = vrot.slane %v434_v18, %v18634_v26  ;;  %v14897_v46 = vrot.slane %v434_v18, %v18633_v42 }
  0x20   : > { %v14901_v47 = vrot.slane %v434_v18, %v18632_v43 }
  0x8e   : > { %v442_v24 = vpop.permute.xlu0 %441  ;;  %v625_v50 = vpop.permute.xlu1 %624 }
  0x8f   : > { %v493_v27 = vmul.f32 %v14844_v20, %v442_v24  ;;  %v492_v28 = vmul.f32 %v14848_v21, %v442_v24  ;;  %v494_v31 = vmul.f32 %v14860_v29, %v442_v24  ;;  %v491_v32 = vmul.f32 %v14863_v30, %v442_v24 }
  0x90   : > { %v495_v35 = vmul.f32 %v14871_v33, %v442_v24  ;;  %v496_v36 = vmul.f32 %v14875_v34, %v442_v24  ;;  %v497_v48 = vmul.f32 %v14897_v46, %v442_v24  ;;  %v498_v49 = vmul.f32 %v14901_v47, %v442_v24 }
  0x91   : > { %513 = vrot.lane.b32.xlu0 %v493_v27, %s14731_s21  ;;  %511 = vrot.lane.b32.xlu1 %v492_v28, %s14731_s21  ;;  %v628_v52 = vmul.f32 %v625_v50, %v14848_v21  ;;  %v629_v53 = vmul.f32 %v625_v50, %v14844_v20  ;;  %v630_v55 = vmul.f32 %v625_v50, %v14860_v29 }
  0x92   : > { %v557_v37 = vpop.permute.xlu0 %556  ;;  %v499_v56 = vmul.f32 %v14912_v54, %v442_v24  ;;  %v627_v57 = vmul.f32 %v625_v50, %v14863_v30  ;;  %v631_v58 = vmul.f32 %v625_v50, %v14871_v33  ;;  %v632_v59 = vmul.f32 %v625_v50, %v14875_v34  ;;  %v693_v61 = vpop.permute.xlu1 %692 }
  0x93   : > { %v560_v38 = vmul.f32 %v557_v37, %v14848_v21  ;;  %v561_v39 = vmul.f32 %v557_v37, %v14844_v20  ;;  %v562_v40 = vmul.f32 %v557_v37, %v14860_v29  ;;  %v559_v41 = vmul.f32 %v557_v37, %v14863_v30 }
  0x94   : > { %v563_v44 = vmul.f32 %v557_v37, %v14871_v33  ;;  %v564_v45 = vmul.f32 %v557_v37, %v14875_v34  ;;  %v565_v60 = vmul.f32 %v557_v37, %v14897_v46  ;;  %v566_v62 = vmul.f32 %v557_v37, %v14901_v47 }
  0x95   : > { %515 = vrot.lane.b32.xlu1 %v494_v31, %s14731_s21  ;;  %509 = vrot.lane.b32.xlu0 %v491_v32, %s14731_s21  ;;  %v696_v63 = vmul.f32 %v693_v61, %v14848_v21  ;;  %v697_v0 = vmul.f32 %v693_v61, %v14844_v20  ;;  %v698_v1 = vmul.f32 %v693_v61, %v14860_v29 }
  0x96   : > { %v567_v2 = vmul.f32 %v557_v37, %v14912_v54  ;;  %v695_v3 = vmul.f32 %v693_v61, %v14863_v30  ;;  %v699_v4 = vmul.f32 %v693_v61, %v14871_v33  ;;  %v700_v5 = vmul.f32 %v693_v61, %v14875_v34  ;;  %v761_v8 = vpop.permute.xlu0 %760  ;;  %v829_v24 = vpop.permute.xlu1 %828 }
  0x97   : > { %v633_v6 = vmul.f32 %v625_v50, %v14897_v46  ;;  %v634_v7 = vmul.f32 %v625_v50, %v14901_v47  ;;  %v764_v9 = vmul.f32 %v761_v8, %v14848_v21  ;;  %v765_v10 = vmul.f32 %v761_v8, %v14844_v20 }
  0x98   : > { %v766_v11 = vmul.f32 %v761_v8, %v14860_v29  ;;  %v635_v12 = vmul.f32 %v625_v50, %v14912_v54  ;;  %v763_v13 = vmul.f32 %v761_v8, %v14863_v30  ;;  %v767_v15 = vmul.f32 %v761_v8, %v14871_v33 }
  0x99   : > { %517 = vrot.lane.b32.xlu1 %v495_v35, %s14731_s21  ;;  %519 = vrot.lane.b32.xlu0 %v496_v36, %s14731_s21  ;;  %v768_v16 = vmul.f32 %v761_v8, %v14875_v34  ;;  %v701_v18 = vmul.f32 %v693_v61, %v14897_v46  ;;  %v702_v27 = vmul.f32 %v693_v61, %v14901_v47 }
  0x9a   : > { %v832_v28 = vmul.f32 %v829_v24, %v14848_v21  ;;  %v833_v31 = vmul.f32 %v829_v24, %v14844_v20  ;;  %v834_v32 = vmul.f32 %v829_v24, %v14860_v29  ;;  %v831_v35 = vmul.f32 %v829_v24, %v14863_v30  ;;  %v965_v50 = vpop.permute.xlu1 %964 }
  0x9b   : > { %v703_v36 = vmul.f32 %v693_v61, %v14912_v54  ;;  %v836_v37 = vmul.f32 %v829_v24, %v14875_v34  ;;  %v838_v61 = vmul.f32 %v829_v24, %v14901_v47 }
  0x9d   : > { %579 = vrot.lane.b32.xlu1 %v560_v38, %s14732_s22  ;;  %581 = vrot.lane.b32.xlu0 %v561_v39, %s14732_s22  ;;  %v835_v38 = vmul.f32 %v829_v24, %v14871_v33  ;;  %v770_v39 = vmul.f32 %v761_v8, %v14901_v47 }
  0xa1   : > { %583 = vrot.lane.b32.xlu1 %v562_v40, %s14732_s22  ;;  %577 = vrot.lane.b32.xlu0 %v559_v41, %s14732_s22  ;;  %v769_v40 = vmul.f32 %v761_v8, %v14897_v46  ;;  %v897_v41 = vpop.permute.xlu0 %896 }
  0xa2   : > { %v903_v51 = vmul.f32 %v897_v41, %v14871_v33 }
  0xa5   : > { %585 = vrot.lane.b32.xlu1 %v563_v44, %s14732_s22  ;;  %587 = vrot.lane.b32.xlu0 %v564_v45, %s14732_s22  ;;  %v901_v44 = vmul.f32 %v897_v41, %v14844_v20  ;;  %v900_v45 = vmul.f32 %v897_v41, %v14848_v21 }
  0xa9   : > { %521 = vrot.lane.b32.xlu1 %v497_v48, %s14731_s21  ;;  %523 = vrot.lane.b32.xlu0 %v498_v49, %s14731_s21  ;;  %v771_v48 = vmul.f32 %v761_v8, %v14912_v54  ;;  %v902_v49 = vmul.f32 %v897_v41, %v14860_v29  ;;  %v906_v8 = vmul.f32 %v897_v41, %v14901_v47 }
  0xad   : > { %647 = vrot.lane.b32.xlu1 %v628_v52, %s14733_s23  ;;  %649 = vrot.lane.b32.xlu0 %v629_v53, %s14733_s23  ;;  %v899_v52 = vmul.f32 %v897_v41, %v14863_v30  ;;  %v14996_v53 = vpop.permute.xlu0 %372 }
  0xb1   : > { %651 = vrot.lane.b32.xlu1 %v630_v55, %s14733_s23  ;;  %525 = vrot.lane.b32.xlu0 %v499_v56, %s14731_s21  ;;  %v14998_v55 = vpop.permute.xlu1 %1031  ;;  %v837_v56 = vmul.f32 %v829_v24, %v14897_v46 }
  0xb2   : > { %18650 = vst [vmem:[#allocation4_spill] sm:$0xff] %v14998_v55 }
  0xb5   : > { %645 = vrot.lane.b32.xlu1 %v627_v57, %s14733_s23  ;;  %653 = vrot.lane.b32.xlu0 %v631_v58, %s14733_s23  ;;  %v904_v57 = vmul.f32 %v897_v41, %v14875_v34 }
  0xb9   : > { %655 = vrot.lane.b32.xlu1 %v632_v59, %s14733_s23  ;;  %589 = vrot.lane.b32.xlu0 %v565_v60, %s14732_s22  ;;  %v968_v60 = vmul.f32 %v965_v50, %v14848_v21 }
  0xbd   : > { %591 = vrot.lane.b32.xlu1 %v566_v62, %s14732_s22  ;;  %715 = vrot.lane.b32.xlu0 %v696_v63, %s14734_s24 }
  0xc1   : > { %717 = vrot.lane.b32.xlu1 %v697_v0, %s14734_s24  ;;  %719 = vrot.lane.b32.xlu0 %v698_v1, %s14734_s24  ;;  %v970_v0 = vmul.f32 %v965_v50, %v14860_v29  ;;  %v969_v1 = vmul.f32 %v965_v50, %v14844_v20  ;;  %v972_v20 = vmul.f32 %v965_v50, %v14875_v34 }
  0xc5   : > { %593 = vrot.lane.b32.xlu1 %v567_v2, %s14732_s22  ;;  %713 = vrot.lane.b32.xlu0 %v695_v3, %s14734_s24  ;;  %v967_v3 = vmul.f32 %v965_v50, %v14863_v30 }
  0xc9   : > { %721 = vrot.lane.b32.xlu1 %v699_v4, %s14734_s24  ;;  %723 = vrot.lane.b32.xlu0 %v700_v5, %s14734_s24  ;;  %v839_v4 = vmul.f32 %v829_v24, %v14912_v54 }
  0xcd   : > { %657 = vrot.lane.b32.xlu1 %v633_v6, %s14733_s23  ;;  %659 = vrot.lane.b32.xlu0 %v634_v7, %s14733_s23  ;;  %v971_v6 = vmul.f32 %v965_v50, %v14871_v33  ;;  %v973_v33 = vmul.f32 %v965_v50, %v14897_v46 }
  0xd1   : > { %783 = vrot.lane.b32.xlu1 %v764_v9, %s14735_s25  ;;  %785 = vrot.lane.b32.xlu0 %v765_v10, %s14735_s25  ;;  %v905_v9 = vmul.f32 %v897_v41, %v14897_v46 }
  0xd5   : > { %787 = vrot.lane.b32.xlu1 %v766_v11, %s14735_s25  ;;  %661 = vrot.lane.b32.xlu0 %v635_v12, %s14733_s23  ;;  %v907_v11 = vmul.f32 %v897_v41, %v14912_v54 }
  0xd9   : > { %781 = vrot.lane.b32.xlu1 %v763_v13, %s14735_s25  ;;  %789 = vrot.lane.b32.xlu0 %v767_v15, %s14735_s25  ;;  %v975_v15 = vmul.f32 %v965_v50, %v14912_v54 }
  0xdd   : > { %791 = vrot.lane.b32.xlu1 %v768_v16, %s14735_s25  ;;  %725 = vrot.lane.b32.xlu0 %v701_v18, %s14734_s24  ;;  %v974_v16 = vmul.f32 %v965_v50, %v14901_v47  ;;  %v15060_v18 = vld [vmem:[#allocation2 + $0x40] sm:$0xf] }
  0xde   : > { %18651 = vst [vmem:[#allocation5_spill] sm:$0xff] %v15060_v18 }
  0xe1   : > { %727 = vrot.lane.b32.xlu1 %v702_v27, %s14734_s24  ;;  %851 = vrot.lane.b32.xlu0 %v832_v28, %s14736_s26 }
  0xe5   : > { %853 = vrot.lane.b32.xlu1 %v833_v31, %s14736_s26  ;;  %855 = vrot.lane.b32.xlu0 %v834_v32, %s14736_s26 }
  0xe9   : > { %849 = vrot.lane.b32.xlu1 %v831_v35, %s14736_s26  ;;  %729 = vrot.lane.b32.xlu0 %v703_v36, %s14734_s24 }
  0xed   : > { %859 = vrot.lane.b32.xlu1 %v836_v37, %s14736_s26  ;;  %857 = vrot.lane.b32.xlu0 %v835_v38, %s14736_s26 }
  0xf1   : > { %795 = vrot.lane.b32.xlu1 %v770_v39, %s14735_s25  ;;  %793 = vrot.lane.b32.xlu0 %v769_v40, %s14735_s25 }
  0xf5   : > { %921 = vrot.lane.b32.xlu1 %v901_v44, %s14737_s27  ;;  %919 = vrot.lane.b32.xlu0 %v900_v45, %s14737_s27 }
  0xf9   : > { %797 = vrot.lane.b32.xlu1 %v771_v48, %s14735_s25  ;;  %923 = vrot.lane.b32.xlu0 %v902_v49, %s14737_s27 }
  0xfd   : > { %925 = vrot.lane.b32.xlu1 %v903_v51, %s14737_s27  ;;  %917 = vrot.lane.b32.xlu0 %v899_v52, %s14737_s27 }
 0x101   : > { %861 = vrot.lane.b32.xlu1 %v837_v56, %s14736_s26  ;;  %927 = vrot.lane.b32.xlu0 %v904_v57, %s14737_s27 }
 0x103   : > { %v15004_v58 = vpop.permute.xlu0 %513  ;;  %v15006_v59 = vpop.permute.xlu1 %511 }
 0x105   : > { %987 = vrot.lane.b32.xlu1 %v968_v60, %s14738_s28  ;;  %863 = vrot.lane.b32.xlu0 %v838_v61, %s14736_s26 }
 0x107   : > { %v15012_v62 = vpop.permute.xlu1 %515  ;;  %v15014_v63 = vpop.permute.xlu0 %509 }
 0x109   : > { %991 = vrot.lane.b32.xlu1 %v970_v0, %s14738_s28  ;;  %989 = vrot.lane.b32.xlu0 %v969_v1, %s14738_s28 }
 0x10b   : > { %v15020_v21 = vpop.permute.xlu1 %517  ;;  %v15022_v2 = vpop.permute.xlu0 %519 }
 0x10d   : > { %985 = vrot.lane.b32.xlu1 %v967_v3, %s14738_s28  ;;  %865 = vrot.lane.b32.xlu0 %v839_v4, %s14736_s26 }
 0x10f   : > { %v15028_v5 = vpop.permute.xlu1 %579  ;;  %v15030_v29 = vpop.permute.xlu0 %581 }
 0x111   : > { %995 = vrot.lane.b32.xlu1 %v972_v20, %s14738_s28  ;;  %993 = vrot.lane.b32.xlu0 %v971_v6, %s14738_s28 }
 0x113   : > { %v15036_v7 = vpop.permute.xlu1 %583  ;;  %v15038_v30 = vpop.permute.xlu0 %577 }
 0x115   : > { %931 = vrot.lane.b32.xlu1 %v906_v8, %s14737_s27  ;;  %929 = vrot.lane.b32.xlu0 %v905_v9, %s14737_s27  ;;  %v367_v8 = vld [vmem:[#allocation2] ss:$8 sm:$0xf0] }
 0x116   : > { %v366_v9 = vld [vmem:[#allocation2] ss:$8 sm:$0xf] }
 0x117   : > { %v15044_v10 = vpop.permute.xlu1 %585  ;;  %v15046_v34 = vpop.permute.xlu0 %587 }
 0x119   : > { %997 = vrot.lane.b32.xlu1 %v973_v33, %s14738_s28  ;;  %933 = vrot.lane.b32.xlu0 %v907_v11, %s14737_s27 }
 0x11b   : > { %v15052_v12 = vpop.permute.xlu1 %521  ;;  %v15054_v13 = vpop.permute.xlu0 %523 }
 0x11d   : > { %1001 = vrot.lane.b32.xlu1 %v975_v15, %s14738_s28  ;;  %999 = vrot.lane.b32.xlu0 %v974_v16, %s14738_s28  ;;  %v368_v15 = vor.u32 %v367_v8, %v366_v9  ;;  %v18661_v8 = vsub.s32 5, %v14838_v14 }
 0x11f   : > { %v15062_v46 = vpop.permute.xlu1 %647  ;;  %v15064_v24 = vpop.permute.xlu0 %649  ;;  %v383_v42 = vrot.slane %v368_v15, %v382_v19  ;;  %v387_v26 = vrot.slane %v368_v15, %v386_v17  ;;  %v379_v25 = vrot.slane %v368_v15, %v14852_v23  ;;  %v399_v9 = vrot.slane %v368_v15, %v18661_v8 }
 0x121   : > { %1731 = vrot.lane.b32.xlu1 %v15060_v18, %s14732_s22  ;;  %1095 = vrot.lane.b32.xlu0 %v15060_v18, %s14731_s21  ;;  %v417_v23 = vmul.f32 %v383_v42, %v14996_v53  ;;  %v530_v42 = vsel %vm527_vm0, %v15004_v58, %v15012_v62 }
 0x123   : > { %v15070_v27 = vpop.permute.xlu1 %651  ;;  %v15072_v54 = vpop.permute.xlu0 %525 }
 0x125   : > { %2409 = vrot.lane.b32.xlu1 %v15060_v18, %s14734_s24  ;;  %2070 = vrot.lane.b32.xlu0 %v15060_v18, %s14733_s23 }
 0x127   : > { %v15078_v47 = vpop.permute.xlu1 %645  ;;  %v15080_v28 = vpop.permute.xlu0 %653 }
 0x129   : > { %3087 = vrot.lane.b32.xlu1 %v15060_v18, %s14736_s26  ;;  %2748 = vrot.lane.b32.xlu0 %v15060_v18, %s14735_s25  ;;  %v391_v18 = vrot.slane %v368_v15, %v390_v22  ;;  %v418_v22 = vmul.f32 %v387_v26, %v14996_v53 }
 0x12b   : > { %v15086_v31 = vpop.permute.xlu1 %655  ;;  %v15088_v32 = vpop.permute.xlu0 %589  ;;  %v419_v8 = vmul.f32 %v391_v18, %v14996_v53  ;;  %v528_v18 = vsel %vm527_vm0, %v15014_v63, %v15006_v59  ;;  %v596_v63 = vsel %vm595_vm1, %v15038_v30, %v15028_v5 }
 0x12f   : > { %v15090_v35 = vpop.permute.xlu1 %591  ;;  %v15092_v36 = vpop.permute.xlu0 %715 }
 0x133   : > { %v15094_v37 = vpop.permute.xlu1 %717  ;;  %v15096_v38 = vpop.permute.xlu0 %719 }
 0x137   : > { %v15098_v39 = vpop.permute.xlu1 %593  ;;  %v15100_v40 = vpop.permute.xlu0 %713 }
 0x13b   : > { %v15102_v41 = vpop.permute.xlu1 %721  ;;  %v15104_v44 = vpop.permute.xlu0 %723 }
 0x13f   : > { %v15106_v45 = vpop.permute.xlu1 %657  ;;  %v15108_v48 = vpop.permute.xlu0 %659 }
 0x140   : > { %18652 = vst [vmem:[#allocation6_spill] sm:$0xff] %v15108_v48 }
 0x143   : > { %v15110_v49 = vpop.permute.xlu1 %783  ;;  %v15112_v50 = vpop.permute.xlu0 %785 }
 0x147   : > { %v15114_v51 = vpop.permute.xlu1 %787  ;;  %v15116_v52 = vpop.permute.xlu0 %661 }
 0x148   : > { %18653 = vst [vmem:[#allocation7_spill] sm:$0xff] %v15116_v52  ;;  %v18663_v52 = vsub.s32 7, %v14838_v14 }
 0x14a   : > { %v407_v19 = vrot.slane %v368_v15, %v18663_v52  ;;  %v531_v52 = vsel %vm527_vm0, %v15012_v62, %v15020_v21  ;;  %v546_v62 = vadd.f32 %v530_v42, %v418_v22  ;;  %v667_v42 = vsel %vm663_vm2, %v15070_v27, %v15080_v28 }
 0x14b   : > { %v15118_v56 = vpop.permute.xlu1 %781  ;;  %v15120_v57 = vpop.permute.xlu0 %789 }
 0x14f   : > { %v15122_v60 = vpop.permute.xlu1 %791  ;;  %v15124_v61 = vpop.permute.xlu0 %725 }
 0x150   : > { %18654 = vst [vmem:[#allocation8_spill] sm:$0xff] %v15124_v61 }
 0x153   : > { %v15126_v0 = vpop.permute.xlu1 %727  ;;  %v15128_v1 = vpop.permute.xlu0 %851 }
 0x154   : > { %18655 = vst [vmem:[#allocation9_spill] sm:$0xff] %v15126_v0 }
 0x157   : > { %v15130_v3 = vpop.permute.xlu1 %853  ;;  %v15132_v4 = vpop.permute.xlu0 %855 }
 0x15b   : > { %v15134_v20 = vpop.permute.xlu1 %849  ;;  %v15136_v6 = vpop.permute.xlu0 %729 }
 0x15c   : > { %18656 = vst [vmem:[#allocation10_spill] sm:$0xff] %v15136_v6  ;;  %v18660_v6 = vsub.s32 4, %v14838_v14 }
 0x15e   : > { %v395_v0 = vrot.slane %v368_v15, %v18660_v6  ;;  %v416_v6 = vmul.f32 %v379_v25, %v14996_v53  ;;  %v423_v25 = vmul.f32 %v407_v19, %v14996_v53  ;;  %v547_v19 = vadd.f32 %v531_v52, %v419_v8 }
 0x15f   : > { %v15138_v33 = vpop.permute.xlu1 %859  ;;  %v15140_v11 = vpop.permute.xlu0 %857 }
 0x160   : > { %18657 = vst [vmem:[#allocation11_spill] sm:$0xff] %v15138_v33  ;;  %v420_v55 = vmul.f32 %v395_v0, %v14996_v53 }
 0x163   : > { %v15142_v16 = vpop.permute.xlu1 %795  ;;  %v15144_v43 = vpop.permute.xlu0 %793 }
 0x164   : > { %18658 = vst [vmem:[#allocation12_spill] sm:$0xff] %v15142_v16  ;;  %18659 = vst [vmem:[#allocation13_spill] sm:$0xff] %v15144_v43  ;;  %v18662_v16 = vsub.s32 6, %v14838_v14  ;;  %v529_v14 = vsel %vm527_vm0, %v15006_v59, %v15004_v58  ;;  %v598_v58 = vsel %vm595_vm1, %v15030_v29, %v15036_v7 }
 0x165   : > { %v545_v59 = vadd.f32 %v529_v14, %v417_v23  ;;  %v614_v61 = vadd.f32 %v598_v58, %v546_v62  ;;  %v533_v23 = vsel %vm527_vm0, %v15022_v2, %v15052_v12  ;;  %v664_v14 = vsel %vm663_vm2, %v15078_v47, %v15062_v46 }
 0x166   : > { %v403_v43 = vrot.slane %v368_v15, %v18662_v16  ;;  %v421_v16 = vmul.f32 %v399_v9, %v14996_v53  ;;  %v544_v9 = vadd.f32 %v528_v18, %v416_v6  ;;  %v534_v6 = vsel %vm527_vm0, %v15052_v12, %v15054_v13 }
 0x167   : > { %v15161_v48 = vpop.permute.xlu1 %921  ;;  %v15163_v17 = vpop.permute.xlu0 %919  ;;  %v869_v58 = vsel %vm867_vm5, %v15128_v1, %v15130_v3 }
 0x168   : > { %v422_v26 = vmul.f32 %v403_v43, %v14996_v53  ;;  %v532_v43 = vsel %vm527_vm0, %v15020_v21, %v15022_v2  ;;  %v597_v53 = vsel %vm595_vm1, %v15028_v5, %v15030_v29  ;;  %v599_v21 = vsel %vm595_vm1, %v15036_v7, %v15044_v10 }
 0x169   : > { %v548_v33 = vadd.f32 %v532_v43, %v420_v55  ;;  %v613_v29 = vadd.f32 %v597_v53, %v545_v59  ;;  %v612_v30 = vadd.f32 %v596_v63, %v544_v9  ;;  %v665_v7 = vsel %vm663_vm2, %v15062_v46, %v15064_v24 }
 0x16a   : > { %v666_v55 = vsel %vm663_vm2, %v15064_v24, %v15070_v27  ;;  %v535_v2 = vsel %vm527_vm0, %v15054_v13, %v15072_v54  ;;  %v549_v12 = vadd.f32 %v533_v23, %v421_v16  ;;  %v733_v24 = vsel %vm731_vm3, %v15092_v36, %v15094_v37 }
 0x16b   : > { %v15185_v0 = vpop.permute.xlu1 %797  ;;  %v15187_v15 = vpop.permute.xlu0 %923  ;;  %v15236_v18 = vadd.f32 %v534_v6, %v422_v26  ;;  %v681_v13 = vadd.f32 %v665_v7, %v613_v29  ;;  %v682_v54 = vadd.f32 %v666_v55, %v614_v61  ;;  %v668_v46 = vsel %vm663_vm2, %v15080_v28, %v15086_v31 }
 0x16c   : > { %18664 = vst [vmem:[#allocation14_spill] sm:$0xff] %v15185_v0  ;;  %v600_v0 = vsel %vm595_vm1, %v15044_v10, %v15046_v34  ;;  %v615_v10 = vadd.f32 %v599_v21, %v547_v19  ;;  %v15245_v27 = vadd.f32 %v535_v2, %v423_v25  ;;  %v680_v52 = vadd.f32 %v664_v14, %v612_v30 }
 0x16d   : > { %v616_v8 = vadd.f32 %v600_v0, %v548_v33  ;;  %v734_v33 = vsel %vm731_vm3, %v15094_v37, %v15096_v38  ;;  %v801_v0 = vsel %vm799_vm4, %v15110_v49, %v15112_v50  ;;  %v802_v37 = vsel %vm799_vm4, %v15112_v50, %v15114_v51 }
 0x16e   : > { %v683_v61 = vadd.f32 %v667_v42, %v615_v10  ;;  %v601_v28 = vsel %vm595_vm1, %v15046_v34, %v15088_v32  ;;  %v749_v26 = vadd.f32 %v733_v24, %v681_v13  ;;  %v750_v43 = vadd.f32 %v734_v33, %v682_v54 }
 0x16f   : > { %v15210_v22 = vpop.permute.xlu1 %925  ;;  %v918_v5 = vpop.permute.xlu0 %917  ;;  %v684_v53 = vadd.f32 %v668_v46, %v616_v8  ;;  %v732_v25 = vsel %vm731_vm3, %v15100_v40, %v15092_v36  ;;  %v870_v50 = vsel %vm867_vm5, %v15130_v3, %v15132_v4  ;;  %v735_v59 = vsel %vm731_vm3, %v15096_v38, %v15102_v41  ;;  %v18667_v46 = vld [vmem:[#allocation4_spill] sm:$0xff] }
 0x170   : > { %v736_v34 = vsel %vm731_vm3, %v15102_v41, %v15104_v44  ;;  %v817_v62 = vadd.f32 %v801_v0, %v749_v26  ;;  %v818_v63 = vadd.f32 %v802_v37, %v750_v43  ;;  %v617_v40 = vadd.f32 %v601_v28, %v549_v12 }
 0x171   : > { %v800_v19 = vsel %vm799_vm4, %v15118_v56, %v15110_v49  ;;  %v937_v3 = vsel %vm935_vm6, %v15163_v17, %v15161_v48  ;;  %v938_v38 = vsel %vm935_vm6, %v15161_v48, %v15187_v15  ;;  %v602_v41 = vsel %vm595_vm1, %v15088_v32, %v15090_v35 }
 0x172   : > { %v748_v21 = vadd.f32 %v732_v25, %v680_v52  ;;  %v885_v29 = vadd.f32 %v869_v58, %v817_v62  ;;  %v886_v23 = vadd.f32 %v870_v50, %v818_v63  ;;  %v603_v30 = vsel %vm595_vm1, %v15090_v35, %v15098_v39 }
 0x173   : > { %v15241_v47 = vpop.permute.xlu1 %861  ;;  %v15243_v16 = vpop.permute.xlu0 %927  ;;  %v751_v49 = vadd.f32 %v735_v59, %v683_v61  ;;  %v752_v56 = vadd.f32 %v736_v34, %v684_v53  ;;  %v868_v6 = vsel %vm867_vm5, %v15134_v20, %v15128_v1  ;;  %v803_v48 = vsel %vm799_vm4, %v15114_v51, %v15120_v57  ;;  %v18668_v59 = vld [vmem:[#allocation6_spill] sm:$0xff] }
 0x174   : > { %v816_v7 = vadd.f32 %v800_v19, %v748_v21  ;;  %v953_v55 = vadd.f32 %v937_v3, %v885_v29  ;;  %v954_v32 = vadd.f32 %v938_v38, %v886_v23  ;;  %v804_v2 = vsel %vm799_vm4, %v15120_v57, %v15122_v60  ;;  %v18665_v57 = vld [vmem:[#allocation8_spill] sm:$0xff]  ;;  %v18670_v38 = vld [vmem:[#allocation13_spill] sm:$0xff] }
 0x175   : > { %v936_v35 = vsel %vm935_vm6, %v918_v5, %v15163_v17  ;;  %v871_v51 = vsel %vm867_vm5, %v15132_v4, %v15140_v11  ;;  %v669_v42 = vsel %vm663_vm2, %v15086_v31, %v15106_v45  ;;  %v819_v24 = vadd.f32 %v803_v48, %v751_v49  ;;  %v18666_v5 = vld [vmem:[#allocation11_spill] sm:$0xff] }
 0x176   : > { %v884_v20 = vadd.f32 %v868_v6, %v816_v7  ;;  %v737_v17 = vsel %vm731_vm3, %v15104_v44, %v18665_v57  ;;  %v872_v33 = vsel %vm867_vm5, %v15140_v11, %v18666_v5  ;;  %v820_v13 = vadd.f32 %v804_v2, %v752_v56  ;;  %v18672_v56 = vld [vmem:[#allocation10_spill] sm:$0xff] }
 0x177   : > { %v988_v9 = vpop.permute.xlu1 %987  ;;  %v15271_v36 = vpop.permute.xlu0 %863  ;;  %v887_v61 = vadd.f32 %v871_v51, %v819_v24  ;;  %v939_v31 = vsel %vm935_vm6, %v15187_v15, %v15210_v22  ;;  %v940_v44 = vsel %vm935_vm6, %v15210_v22, %v15243_v16  ;;  %v618_v25 = vadd.f32 %v602_v41, %v15236_v18  ;;  %v18669_v15 = vld [vmem:[#allocation7_spill] sm:$0xff]  ;;  %v18671_v41 = vld [vmem:[#allocation9_spill] sm:$0xff] }
 0x178   : > { %v952_v54 = vadd.f32 %v936_v35, %v884_v20  ;;  %v888_v11 = vadd.f32 %v872_v33, %v820_v13  ;;  %v619_v58 = vadd.f32 %v603_v30, %v15245_v27  ;;  %v685_v50 = vadd.f32 %v669_v42, %v617_v40  ;;  %v18673_v35 = vld [vmem:[#allocation12_spill] sm:$0xff] }
 0x179   : > { %v670_v34 = vsel %vm663_vm2, %v15106_v45, %v18668_v59  ;;  %v671_v62 = vsel %vm663_vm2, %v18668_v59, %v18669_v15  ;;  %v955_v22 = vadd.f32 %v939_v31, %v887_v61  ;;  %v805_v27 = vsel %vm799_vm4, %v15122_v60, %v18670_v38 }
 0x17a   : > { %v956_v63 = vadd.f32 %v940_v44, %v888_v11  ;;  %v753_v18 = vadd.f32 %v737_v17, %v685_v50  ;;  %v738_v21 = vsel %vm731_vm3, %v18665_v57, %v18671_v41  ;;  %v686_v49 = vadd.f32 %v670_v34, %v618_v25 }
 0x17b   : > { %v992_v10 = vpop.permute.xlu1 %991  ;;  %v990_v8 = vpop.permute.xlu0 %989  ;;  %v739_v6 = vsel %vm731_vm3, %v18671_v41, %v18672_v56  ;;  %v873_v60 = vsel %vm867_vm5, %v18666_v5, %v15241_v47  ;;  %v687_v7 = vadd.f32 %v671_v62, %v619_v58  ;;  %v874_v57 = vsel %vm867_vm5, %v15241_v47, %v15271_v36  ;;  %v12911_v56 = vld [vmem:[%s18624_s3 + $0x8] sm:$0xff] }
 0x17c   : > { %v1005_v39 = vsel %vm1003_vm7, %v988_v9, %v990_v8  ;;  %v1006_v1 = vsel %vm1003_vm7, %v990_v8, %v992_v10  ;;  %v821_v48 = vadd.f32 %v805_v27, %v753_v18  ;;  %v754_v2 = vadd.f32 %v738_v21, %v686_v49 }
 0x17d   : > { %v1021_v14 = vadd.f32 %v1005_v39, %v953_v55  ;;  %v1022_v12 = vadd.f32 %v1006_v1, %v954_v32  ;;  %v806_v39 = vsel %vm799_vm4, %v18670_v38, %v18673_v35  ;;  %v18674_v1 = vld [vmem:[#allocation14_spill] sm:$0xff] }
 0x17e   : > { %v807_v20 = vsel %vm799_vm4, %v18673_v35, %v18674_v1  ;;  %v822_v13 = vadd.f32 %v806_v39, %v754_v2 }
 0x17f   : > { %v1035_v52 = vadd.f32 %v18667_v46, %v1021_v14  ;;  %v1036_v4 = vadd.f32 %v18667_v46, %v1022_v12  ;;  %v986_v0 = vpop.permute.xlu1 %985  ;;  %v866_v37 = vpop.permute.xlu0 %865  ;;  %v755_v14 = vadd.f32 %v739_v6, %v687_v7  ;;  %v889_v12 = vadd.f32 %v873_v60, %v821_v48  ;;  %v18675_v60 = vld [vmem:[#allocation5_spill] sm:$0xff] }
 0x180   : > { %v1004_v28 = vsel %vm1003_vm7, %v986_v0, %v988_v9  ;;  %v875_v17 = vsel %vm867_vm5, %v15271_v36, %v866_v37  ;;  %v890_v37 = vadd.f32 %v874_v57, %v822_v13 }
 0x181   : > { %v1043_v26 = vmax.f32 %v1035_v52, 0.0  ;;  %v1044_v43 = vmax.f32 %v1036_v4, 0.0  ;;  %v1020_v53 = vadd.f32 %v1004_v28, %v952_v54  ;;  %v823_v54 = vadd.f32 %v807_v20, %v755_v14 }
 0x183   : > { %1051 = vst [vmem:[#allocation2 + $0x8] sm:$0xf] %v1043_v26  ;;  %1052 = vst [vmem:[#allocation2 + $0x10] sm:$0xf] %v1044_v43  ;;  %v1034_v9 = vadd.f32 %v18667_v46, %v1020_v53  ;;  %v996_v19 = vpop.permute.xlu1 %995  ;;  %v994_v3 = vpop.permute.xlu0 %993  ;;  %v891_v61 = vadd.f32 %v875_v17, %v823_v54 }
 0x184   : > { %v1007_v40 = vsel %vm1003_vm7, %v992_v10, %v994_v3  ;;  %v1008_v45 = vsel %vm1003_vm7, %v994_v3, %v996_v19 }
 0x185   : > { %v1042_v29 = vmax.f32 %v1034_v9, 0.0  ;;  %v1023_v23 = vadd.f32 %v1007_v40, %v955_v22  ;;  %v1024_v30 = vadd.f32 %v1008_v45, %v956_v63 }
 0x187   : > { %1050 = vst [vmem:[#allocation2] sm:$0xf] %v1042_v29  ;;  %v1037_v55 = vadd.f32 %v18667_v46, %v1023_v23  ;;  %v1038_v32 = vadd.f32 %v18667_v46, %v1024_v30  ;;  %v932_v10 = vpop.permute.xlu1 %931  ;;  %v930_v8 = vpop.permute.xlu0 %929 }
 0x188   : > { %v941_v51 = vsel %vm935_vm6, %v15243_v16, %v930_v8  ;;  %v942_v47 = vsel %vm935_vm6, %v930_v8, %v932_v10 }
 0x189   : > { %v1045_v42 = vmax.f32 %v1037_v55, 0.0  ;;  %v1046_v24 = vmax.f32 %v1038_v32, 0.0  ;;  %v957_v16 = vadd.f32 %v941_v51, %v889_v12  ;;  %v958_v28 = vadd.f32 %v942_v47, %v890_v37  ;;  %v15518_v55 = vld [vmem:[#allocation2 + $0x40] sm:$0xff] }
 0x18a   : > { %v15360_v5 = vld [vmem:[#allocation2 + $0x10] sm:$0xf]  ;;  %v15362_v33 = vld [vmem:[#allocation2 + $0x8] sm:$0xf] }
 0x18b   : > { %1053 = vst [vmem:[#allocation2 + $0x18] sm:$0xf] %v1045_v42  ;;  %1054 = vst [vmem:[#allocation2 + $0x20] sm:$0xf] %v1046_v24  ;;  %v998_v52 = vpop.permute.xlu1 %997  ;;  %v934_v4 = vpop.permute.xlu0 %933  ;;  %1083 = vrot.lane.b32.xlu1 %v15360_v5, %s14731_s21  ;;  %1081 = vrot.lane.b32.xlu0 %v15362_v33, %s14731_s21  ;;  %v4086_v42 = vld [vmem:[%s18625_s4] sm:$0xff] }
 0x18c   : > { %v1009_v36 = vsel %vm1003_vm7, %v996_v19, %v998_v52  ;;  %v943_v0 = vsel %vm935_vm6, %v932_v10, %v934_v4  ;;  %v1066_v24 = vld [vmem:[%s18624_s3] sm:$0xff] }
 0x18d   : > { %v1025_v31 = vadd.f32 %v1009_v36, %v957_v16  ;;  %v959_v26 = vadd.f32 %v943_v0, %v891_v61  ;;  %v12936_v36 = vld [vmem:[%s18624_s3 + $0x10] sm:$0xff] }
 0x18e   : > { %v15371_v44 = vld [vmem:[#allocation2] sm:$0xf] }
 0x18f   : > { %v1039_v11 = vadd.f32 %v18667_v46, %v1025_v31  ;;  %v1002_v43 = vpop.permute.xlu1 %1001  ;;  %v1000_v53 = vpop.permute.xlu0 %999  ;;  %1079 = vrot.lane.b32.xlu0 %v15371_v44, %s14731_s21 }
 0x190   : > { %v1010_v25 = vsel %vm1003_vm7, %v998_v52, %v1000_v53  ;;  %v1011_v58 = vsel %vm1003_vm7, %v1000_v53, %v1002_v43  ;;  %v12949_v53 = vld [vmem:[%s18624_s3 + $0x18] sm:$0xff] }
 0x191   : > { %v1047_v50 = vmax.f32 %v1039_v11, 0.0  ;;  %v1026_v59 = vadd.f32 %v1010_v25, %v958_v28  ;;  %v1027_v34 = vadd.f32 %v1011_v58, %v959_v26 }
 0x192   : > { %v15378_v15 = vld [vmem:[#allocation2 + $0x18] sm:$0xf]  ;;  %v15380_v62 = vld [vmem:[#allocation2 + $0x20] sm:$0xf] }
 0x193   : > { %1055 = vst [vmem:[#allocation2 + $0x28] sm:$0xf] %v1047_v50  ;;  %v1040_v22 = vadd.f32 %v18667_v46, %v1026_v59  ;;  %v1041_v63 = vadd.f32 %v18667_v46, %v1027_v34  ;;  %1085 = vrot.lane.b32.xlu1 %v15378_v15, %s14731_s21  ;;  %1087 = vrot.lane.b32.xlu0 %v15380_v62, %s14731_s21  ;;  %v15476_v46 = vpop.permute.xlu1 %1731  ;;  %v1096_v27 = vpop.permute.xlu0 %1095 }
 0x195   : > { %v1048_v9 = vmax.f32 %v1040_v22, 0.0  ;;  %v1049_v19 = vmax.f32 %v1041_v63, 0.0 }
 0x197   : > { %1056 = vst [vmem:[#allocation2 + $0x30] sm:$0xf] %v1048_v9  ;;  %1057 = vst [vmem:[#allocation2 + $0x38] sm:$0xf] %v1049_v19  ;;  %v15482_v40 = vpop.permute.xlu1 %2409  ;;  %v15484_v45 = vpop.permute.xlu0 %2070 }
 0x19a   : > { %v15388_v3 = vld [vmem:[#allocation2 + $0x28] sm:$0xf] }
 0x19b   : > { %1089 = vrot.lane.b32.xlu1 %v15388_v3, %s14731_s21  ;;  %v15494_v41 = vpop.permute.xlu1 %3087  ;;  %v15496_v21 = vpop.permute.xlu0 %2748 }
 0x19e   : > { %v15392_v18 = vld [vmem:[#allocation2 + $0x38] sm:$0xf]  ;;  %v15394_v38 = vld [vmem:[#allocation2 + $0x30] sm:$0xf] }
 0x19f   : > { %1093 = vrot.lane.b32.xlu1 %v15392_v18, %s14731_s21  ;;  %1091 = vrot.lane.b32.xlu0 %v15394_v38, %s14731_s21 }
 0x1a3   : > { %1717 = vrot.lane.b32.xlu1 %v15362_v33, %s14732_s22  ;;  %1719 = vrot.lane.b32.xlu0 %v15360_v5, %s14732_s22 }
 0x1a7   : > { %1715 = vrot.lane.b32.xlu1 %v15371_v44, %s14732_s22  ;;  %1721 = vrot.lane.b32.xlu0 %v15378_v15, %s14732_s22 }
 0x1ab   : > { %1723 = vrot.lane.b32.xlu1 %v15380_v62, %s14732_s22  ;;  %1725 = vrot.lane.b32.xlu0 %v15388_v3, %s14732_s22 }
 0x1af   : > { %1727 = vrot.lane.b32.xlu1 %v15394_v38, %s14732_s22  ;;  %1729 = vrot.lane.b32.xlu0 %v15392_v18, %s14732_s22 }
 0x1b3   : > { %2058 = vrot.lane.b32.xlu1 %v15360_v5, %s14733_s23  ;;  %2056 = vrot.lane.b32.xlu0 %v15362_v33, %s14733_s23 }
 0x1b7   : > { %2060 = vrot.lane.b32.xlu1 %v15378_v15, %s14733_s23  ;;  %2054 = vrot.lane.b32.xlu0 %v15371_v44, %s14733_s23 }
 0x1bb   : > { %2064 = vrot.lane.b32.xlu1 %v15388_v3, %s14733_s23  ;;  %2062 = vrot.lane.b32.xlu0 %v15380_v62, %s14733_s23 }
 0x1bf   : > { %2068 = vrot.lane.b32.xlu1 %v15392_v18, %s14733_s23  ;;  %2066 = vrot.lane.b32.xlu0 %v15394_v38, %s14733_s23 }
 0x1c3   : > { %2395 = vrot.lane.b32.xlu1 %v15362_v33, %s14734_s24  ;;  %2397 = vrot.lane.b32.xlu0 %v15360_v5, %s14734_s24 }
 0x1c7   : > { %2393 = vrot.lane.b32.xlu1 %v15371_v44, %s14734_s24  ;;  %2399 = vrot.lane.b32.xlu0 %v15378_v15, %s14734_s24 }
 0x1cb   : > { %2401 = vrot.lane.b32.xlu1 %v15380_v62, %s14734_s24  ;;  %2403 = vrot.lane.b32.xlu0 %v15388_v3, %s14734_s24 }
 0x1cf   : > { %2405 = vrot.lane.b32.xlu1 %v15394_v38, %s14734_s24  ;;  %2407 = vrot.lane.b32.xlu0 %v15392_v18, %s14734_s24 }
 0x1d3   : > { %2736 = vrot.lane.b32.xlu1 %v15360_v5, %s14735_s25  ;;  %2734 = vrot.lane.b32.xlu0 %v15362_v33, %s14735_s25 }
 0x1d7   : > { %2738 = vrot.lane.b32.xlu1 %v15378_v15, %s14735_s25  ;;  %2732 = vrot.lane.b32.xlu0 %v15371_v44, %s14735_s25 }
 0x1db   : > { %2742 = vrot.lane.b32.xlu1 %v15388_v3, %s14735_s25  ;;  %2740 = vrot.lane.b32.xlu0 %v15380_v62, %s14735_s25 }
 0x1df   : > { %2746 = vrot.lane.b32.xlu1 %v15392_v18, %s14735_s25  ;;  %2744 = vrot.lane.b32.xlu0 %v15394_v38, %s14735_s25 }
 0x1e3   : > { %3073 = vrot.lane.b32.xlu1 %v15362_v33, %s14736_s26  ;;  %3075 = vrot.lane.b32.xlu0 %v15360_v5, %s14736_s26 }
 0x1e7   : > { %3071 = vrot.lane.b32.xlu1 %v15371_v44, %s14736_s26  ;;  %3077 = vrot.lane.b32.xlu0 %v15378_v15, %s14736_s26 }
 0x1eb   : > { %3079 = vrot.lane.b32.xlu1 %v15380_v62, %s14736_s26  ;;  %3081 = vrot.lane.b32.xlu0 %v15388_v3, %s14736_s26 }
 0x1ef   : > { %3083 = vrot.lane.b32.xlu1 %v15394_v38, %s14736_s26  ;;  %3085 = vrot.lane.b32.xlu0 %v15392_v18, %s14736_s26 }
 0x1f3   : > { %3414 = vrot.lane.b32.xlu1 %v15360_v5, %s14737_s27  ;;  %3412 = vrot.lane.b32.xlu0 %v15362_v33, %s14737_s27 }
 0x1f7   : > { %3416 = vrot.lane.b32.xlu1 %v15378_v15, %s14737_s27  ;;  %3410 = vrot.lane.b32.xlu0 %v15371_v44, %s14737_s27 }
 0x1fb   : > { %3420 = vrot.lane.b32.xlu1 %v15388_v3, %s14737_s27  ;;  %3418 = vrot.lane.b32.xlu0 %v15380_v62, %s14737_s27 }
 0x1fd   : > { %v1084_v29 = vpop.permute.xlu1 %1083  ;;  %v1082_v23 = vpop.permute.xlu0 %1081 }
 0x1fe   : > { %v1098_v30 = vsel %vm527_vm0, %v1082_v23, %v1084_v29 }
 0x1ff   : > { %12912 = vmatprep.subr.msk.mxu0 %vm1109_vm8, %v1098_v30  ;;  %3424 = vrot.lane.b32.xlu1 %v15392_v18, %s14737_s27 }
 0x200   : > { %3422 = vrot.lane.b32.xlu0 %v15394_v38, %s14737_s27 }
 0x201   : > { %v1080_v49 = vpop.permute.xlu0 %1079 }
 0x202   : > { %v1097_v6 = vsel %vm527_vm0, %v1080_v49, %v1082_v23 }
 0x203   : > { %3751 = vrot.lane.b32.xlu1 %v15362_v33, %s14738_s28  ;;  %12913 = vmatpush1.msk.msra.mxu0 %vm1109_vm8, %v1097_v6 }
 0x204   : > { %3426 = vrot.lane.b32.xlu0 %v18675_v60, %s14737_s27  ;;  %12914 = vmatmul.mubr.msk.f32.vlgmr.msra.gmra.mrb[0].mxu0 %vm1105_vm9, %v12911_v56 }
 0x205   : > { %v1086_v7 = vpop.permute.xlu1 %1085  ;;  %v1088_v48 = vpop.permute.xlu0 %1087  ;;  %1332 = vmatprep.mubr.f32.mxu0 %v15518_v55 }
 0x206   : > { %v1100_v32 = vsel %vm527_vm0, %v1086_v7, %v1088_v48  ;;  %v1099_v10 = vsel %vm527_vm0, %v1084_v29, %v1086_v7 }
 0x207   : > { %3749 = vrot.lane.b32.xlu1 %v15371_v44, %s14738_s28  ;;  %12915 = vmatprep.subr.msk.mxu1 %vm1109_vm8, %v1100_v32 }
 0x208   : > { %3753 = vrot.lane.b32.xlu0 %v15360_v5, %s14738_s28  ;;  %12916 = vmatpush1.msk.msra.mxu1 %vm1109_vm8, %v1099_v10 }
 0x209   : > { %12917 = vmatmul.mubr.msk.f32.vlgmr.msra.gmra.mrb[0].mxu1 %vm1105_vm9, %v12911_v56 }
 0x20a   : > { %1403 = vmatprep.mubr.f32.mxu1 %v15518_v55 }
 0x20b   : > { %3757 = vrot.lane.b32.xlu1 %v15380_v62, %s14738_s28 }
 0x20c   : > { %3755 = vrot.lane.b32.xlu0 %v15378_v15, %s14738_s28 }
 0x20d   : > { %v1090_v8 = vpop.permute.xlu1 %1089 }
 0x20e   : > { %v1101_v51 = vsel %vm527_vm0, %v1088_v48, %v1090_v8 }
 0x20f   : > { %3761 = vrot.lane.b32.xlu1 %v15394_v38, %s14738_s28 }
 0x210   : > { %3759 = vrot.lane.b32.xlu0 %v15388_v3, %s14738_s28 }
 0x211   : > { %v1094_v2 = vpop.permute.xlu1 %1093  ;;  %v1092_v35 = vpop.permute.xlu0 %1091 }
 0x212   : > { %v1103_v39 = vsel %vm527_vm0, %v1092_v35, %v1094_v2  ;;  %v1102_v1 = vsel %vm527_vm0, %v1090_v8, %v1092_v35  ;;  %v1104_v20 = vsel %vm527_vm0, %v1094_v2, %v1096_v27 }
 0x213   : > { %3765 = vrot.lane.b32.xlu1 %v18675_v60, %s14738_s28  ;;  %12918 = vmatprep.subr.msk.mxu0 %vm1109_vm8, %v1102_v1  ;;  %v12975_v1 = vld [vmem:[%s18624_s3 + $0x28] sm:$0xff] }
 0x214   : > { %3763 = vrot.lane.b32.xlu0 %v15392_v18, %s14738_s28  ;;  %12921 = vmatprep.subr.msk.mxu1 %vm1109_vm8, %v1104_v20 }
 0x215   : > { %12919 = vmatpush1.msk.msra.mxu0 %vm1109_vm8, %v1101_v51  ;;  %12922 = vmatpush1.msk.msra.mxu1 %vm1109_vm8, %v1103_v39  ;;  %v1718_v14 = vpop.permute.xlu1 %1717  ;;  %v1720_v12 = vpop.permute.xlu0 %1719 }
 0x216   : > { %12920 = vmatmul.mubr.msk.f32.vlgmr.msra.gmra.mrb[2].mxu0 %vm1105_vm9, %v12911_v56  ;;  %12923 = vmatmul.mubr.msk.f32.vlgmr.msra.gmra.mrb[2].mxu1 %vm1105_vm9, %v12911_v56 }
 0x217   : > { %12924 = vmatprep.subr.msk.mxu0 %vm1109_vm8, %v15362_v33  ;;  %12927 = vmatprep.subr.msk.mxu1 %vm1109_vm8, %v15378_v15 }
 0x218   : > { %12925 = vmatpush1.msk.msra.mxu0 %vm1109_vm8, %v15371_v44  ;;  %12928 = vmatpush1.msk.msra.mxu1 %vm1109_vm8, %v15360_v5  ;;  %v1734_v5 = vsel %vm595_vm1, %v1718_v14, %v1720_v12 }
 0x219   : > { %4089 = vperm.xlu0 %14184, %v4086_v42   ;;  %12930 = vmatprep.subr.msk.mxu0 %vm1109_vm8, %v15388_v3  ;;  %v1716_v57 = vpop.permute.xlu1 %1715  ;;  %v1722_v17 = vpop.permute.xlu0 %1721 }
 0x21a   : > { %12933 = vmatprep.subr.msk.mxu1 %vm1109_vm8, %v15392_v18  ;;  %1493 = vmatprep.mubr.f32.mxu0 %v15518_v55  ;;  %v1733_v16 = vsel %vm595_vm1, %v1716_v57, %v1718_v14  ;;  %v1735_v52 = vsel %vm595_vm1, %v1720_v12, %v1722_v17 }
 0x21b   : > { %1564 = vmatprep.mubr.f32.mxu1 %v15518_v55  ;;  %12926 = vmatmul.mubr.msk.f32.vlgmr.msra.gmra.mrb[0].mxu0 %vm1105_vm9, %v1066_v24 }
 0x21c   : > { %12929 = vmatmul.mubr.msk.f32.vlgmr.msra.gmra.mrb[0].mxu1 %vm1105_vm9, %v1066_v24  ;;  %12931 = vmatpush1.msk.msra.mxu0 %vm1109_vm8, %v15380_v62 }
 0x21d   : > { %12934 = vmatpush1.msk.msra.mxu1 %vm1109_vm8, %v15394_v38  ;;  %12937 = vmatprep.subr.msk.mxu0 %vm1109_vm8, %v1734_v5  ;;  %v1724_v33 = vpop.permute.xlu1 %1723  ;;  %v1726_v13 = vpop.permute.xlu0 %1725 }
 0x21e   : > { %1635 = vmatprep.mubr.f32.mxu0 %v15518_v55  ;;  %1706 = vmatprep.mubr.f32.mxu1 %v15518_v55  ;;  %v1736_v54 = vsel %vm595_vm1, %v1722_v17, %v1724_v33  ;;  %v1737_v31 = vsel %vm595_vm1, %v1724_v33, %v1726_v13 }
 0x21f   : > { %12932 = vmatmul.mubr.msk.f32.vlgmr.msra.gmra.mrb[2].mxu0 %vm1105_vm9, %v1066_v24  ;;  %12940 = vmatprep.subr.msk.mxu1 %vm1109_vm8, %v1736_v54 }
 0x220   : > { %12938 = vmatpush1.msk.msra.mxu0 %vm1109_vm8, %v1733_v16  ;;  %12935 = vmatmul.mubr.msk.f32.vlgmr.msra.gmra.mrb[2].mxu1 %vm1105_vm9, %v1066_v24 }
 0x221   : > { %12941 = vmatpush1.msk.msra.mxu1 %vm1109_vm8, %v1735_v52  ;;  %v1728_v4 = vpop.permute.xlu1 %1727  ;;  %v1730_v47 = vpop.permute.xlu0 %1729  ;;  %1824 = vmatprep.mubr.f32.mxu0 %v15518_v55 }
 0x222   : > { %v1739_v0 = vsel %vm595_vm1, %v1728_v4, %v1730_v47  ;;  %1895 = vmatprep.mubr.f32.mxu1 %v15518_v55  ;;  %v1738_v37 = vsel %vm595_vm1, %v1726_v13, %v1728_v4  ;;  %v1740_v61 = vsel %vm595_vm1, %v1730_v47, %v15476_v46  ;;  %v12988_v47 = vld [vmem:[%s18624_s3 + $0x30] sm:$0xff] }
 0x223   : > { %12943 = vmatprep.subr.msk.mxu0 %vm1109_vm8, %v1738_v37  ;;  %12946 = vmatprep.subr.msk.mxu1 %vm1109_vm8, %v1740_v61 }
 0x224   : > { %12939 = vmatmul.mubr.msk.f32.vlgmr.msra.gmra.mrb[0].mxu0 %vm1105_vm9, %v12936_v36  ;;  %12942 = vmatmul.mubr.msk.f32.vlgmr.msra.gmra.mrb[0].mxu1 %vm1105_vm9, %v12936_v36 }
 0x225   : > { %12944 = vmatpush1.msk.msra.mxu0 %vm1109_vm8, %v1737_v31  ;;  %12947 = vmatpush1.msk.msra.mxu1 %vm1109_vm8, %v1739_v0  ;;  %v2059_v44 = vpop.permute.xlu1 %2058  ;;  %v2057_v28 = vpop.permute.xlu0 %2056 }
 0x226   : > { %v2073_v11 = vsel %vm663_vm2, %v2057_v28, %v2059_v44  ;;  %1966 = vmatprep.mubr.f32.mxu0 %v15518_v55  ;;  %2037 = vmatprep.mubr.f32.mxu1 %v15518_v55 }
 0x227   : > { %12950 = vmatprep.subr.msk.mxu0 %vm1109_vm8, %v2073_v11 }
 0x228   : > { %12945 = vmatmul.mubr.msk.f32.vlgmr.msra.gmra.mrb[2].mxu0 %vm1105_vm9, %v12936_v36  ;;  %12948 = vmatmul.mubr.msk.f32.vlgmr.msra.gmra.mrb[2].mxu1 %vm1105_vm9, %v12936_v36 }
 0x229   : > { %v2061_v26 = vpop.permute.xlu1 %2060  ;;  %v2055_v43 = vpop.permute.xlu0 %2054  ;;  %2163 = vmatprep.mubr.f32.mxu0 %v15518_v55  ;;  %2234 = vmatprep.mubr.f32.mxu1 %v15518_v55 }
 0x22a   : > { %v2072_v25 = vsel %vm663_vm2, %v2055_v43, %v2057_v28  ;;  %v2074_v34 = vsel %vm663_vm2, %v2059_v44, %v2061_v26 }
 0x22b   : > { %12951 = vmatpush1.msk.msra.mxu0 %vm1109_vm8, %v2072_v25 }
 0x22c   : > { %12952 = vmatmul.mubr.msk.f32.vlgmr.msra.gmra.mrb[0].mxu0 %vm1105_vm9, %v12949_v53 }
 0x22d   : > { %v2065_v58 = vpop.permute.xlu1 %2064  ;;  %v2063_v50 = vpop.permute.xlu0 %2062  ;;  %2305 = vmatprep.mubr.f32.mxu0 %v15518_v55 }
 0x22e   : > { %v2075_v59 = vsel %vm663_vm2, %v2061_v26, %v2063_v50  ;;  %v2076_v19 = vsel %vm663_vm2, %v2063_v50, %v2065_v58 }
 0x22f   : > { %12953 = vmatprep.subr.msk.mxu1 %vm1109_vm8, %v2075_v59 }
 0x230   : > { %12954 = vmatpush1.msk.msra.mxu1 %vm1109_vm8, %v2074_v34  ;;  %v13001_v34 = vld [vmem:[%s18624_s3 + $0x38] sm:$0xff] }
 0x231   : > { %v2069_v15 = vpop.permute.xlu1 %2068  ;;  %v2067_v62 = vpop.permute.xlu0 %2066  ;;  %12955 = vmatmul.mubr.msk.f32.vlgmr.msra.gmra.mrb[0].mxu1 %vm1105_vm9, %v12949_v53 }
 0x232   : > { %v2078_v22 = vsel %vm663_vm2, %v2067_v62, %v2069_v15  ;;  %v2077_v63 = vsel %vm663_vm2, %v2065_v58, %v2067_v62  ;;  %v2079_v9 = vsel %vm663_vm2, %v2069_v15, %v15484_v45  ;;  %2376 = vmatprep.mubr.f32.mxu1 %v15518_v55  ;;  %v12962_v45 = vld [vmem:[%s18624_s3 + $0x20] sm:$0xff] }
 0x233   : > { %12956 = vmatprep.subr.msk.mxu0 %vm1109_vm8, %v2077_v63  ;;  %12959 = vmatprep.subr.msk.mxu1 %vm1109_vm8, %v2079_v9 }
 0x234   : > { %12957 = vmatpush1.msk.msra.mxu0 %vm1109_vm8, %v2076_v19  ;;  %12960 = vmatpush1.msk.msra.mxu1 %vm1109_vm8, %v2078_v22 }
 0x235   : > { %v2396_v3 = vpop.permute.xlu1 %2395  ;;  %v2398_v18 = vpop.permute.xlu0 %2397  ;;  %12958 = vmatmul.mubr.msk.f32.vlgmr.msra.gmra.mrb[2].mxu0 %vm1105_vm9, %v12949_v53  ;;  %12961 = vmatmul.mubr.msk.f32.vlgmr.msra.gmra.mrb[2].mxu1 %vm1105_vm9, %v12949_v53 }
 0x236   : > { %v2412_v38 = vsel %vm731_vm3, %v2396_v3, %v2398_v18  ;;  %2502 = vmatprep.mubr.f32.mxu0 %v15518_v55  ;;  %2573 = vmatprep.mubr.f32.mxu1 %v15518_v55 }
 0x237   : > { %12963 = vmatprep.subr.msk.mxu0 %vm1109_vm8, %v2412_v38 }
 0x239   : > { %v2394_v46 = vpop.permute.xlu1 %2393  ;;  %v2400_v27 = vpop.permute.xlu0 %2399 }
 0x23a   : > { %v2411_v29 = vsel %vm731_vm3, %v2394_v46, %v2396_v3  ;;  %v2413_v56 = vsel %vm731_vm3, %v2398_v18, %v2400_v27 }
 0x23b   : > { %12964 = vmatpush1.msk.msra.mxu0 %vm1109_vm8, %v2411_v29 }
 0x23c   : > { %12965 = vmatmul.mubr.msk.f32.vlgmr.msra.gmra.mrb[0].mxu0 %vm1105_vm9, %v12962_v45 }
 0x23d   : > { %v2402_v23 = vpop.permute.xlu1 %2401  ;;  %v2404_v30 = vpop.permute.xlu0 %2403  ;;  %2644 = vmatprep.mubr.f32.mxu0 %v15518_v55 }
 0x23e   : > { %v2414_v49 = vsel %vm731_vm3, %v2400_v27, %v2402_v23  ;;  %v2415_v10 = vsel %vm731_vm3, %v2402_v23, %v2404_v30 }
 0x23f   : > { %12966 = vmatprep.subr.msk.mxu1 %vm1109_vm8, %v2414_v49 }
 0x240   : > { %12967 = vmatpush1.msk.msra.mxu1 %vm1109_vm8, %v2413_v56 }
 0x241   : > { %v2406_v6 = vpop.permute.xlu1 %2405  ;;  %v2408_v60 = vpop.permute.xlu0 %2407  ;;  %12968 = vmatmul.mubr.msk.f32.vlgmr.msra.gmra.mrb[0].mxu1 %vm1105_vm9, %v12962_v45 }
 0x242   : > { %v2417_v7 = vsel %vm731_vm3, %v2406_v6, %v2408_v60  ;;  %v2416_v48 = vsel %vm731_vm3, %v2404_v30, %v2406_v6  ;;  %v2418_v32 = vsel %vm731_vm3, %v2408_v60, %v15482_v40  ;;  %2715 = vmatprep.mubr.f32.mxu1 %v15518_v55  ;;  %v13014_v6 = vld [vmem:[%s18624_s3 + $0x40] sm:$0xff] }
 0x243   : > { %12969 = vmatprep.subr.msk.mxu0 %vm1109_vm8, %v2416_v48  ;;  %12972 = vmatprep.subr.msk.mxu1 %vm1109_vm8, %v2418_v32 }
 0x244   : > { %12970 = vmatpush1.msk.msra.mxu0 %vm1109_vm8, %v2415_v10  ;;  %12973 = vmatpush1.msk.msra.mxu1 %vm1109_vm8, %v2417_v7 }
 0x245   : > { %v2737_v8 = vpop.permute.xlu1 %2736  ;;  %v2735_v2 = vpop.permute.xlu0 %2734  ;;  %12971 = vmatmul.mubr.msk.f32.vlgmr.msra.gmra.mrb[2].mxu0 %vm1105_vm9, %v12962_v45  ;;  %12974 = vmatmul.mubr.msk.f32.vlgmr.msra.gmra.mrb[2].mxu1 %vm1105_vm9, %v12962_v45 }
 0x246   : > { %v2751_v40 = vsel %vm799_vm4, %v2735_v2, %v2737_v8  ;;  %2841 = vmatprep.mubr.f32.mxu0 %v15518_v55  ;;  %2912 = vmatprep.mubr.f32.mxu1 %v15518_v55 }
 0x247   : > { %12976 = vmatprep.subr.msk.mxu0 %vm1109_vm8, %v2751_v40 }
 0x249   : > { %v2739_v35 = vpop.permute.xlu1 %2738  ;;  %v2733_v39 = vpop.permute.xlu0 %2732 }
 0x24a   : > { %v2750_v20 = vsel %vm799_vm4, %v2733_v39, %v2735_v2  ;;  %v2752_v42 = vsel %vm799_vm4, %v2737_v8, %v2739_v35 }
 0x24b   : > { %12977 = vmatpush1.msk.msra.mxu0 %vm1109_vm8, %v2750_v20 }
 0x24c   : > { %12978 = vmatmul.mubr.msk.f32.vlgmr.msra.gmra.mrb[0].mxu0 %vm1105_vm9, %v12975_v1 }
 0x24d   : > { %v2743_v51 = vpop.permute.xlu1 %2742  ;;  %v2741_v14 = vpop.permute.xlu0 %2740  ;;  %2983 = vmatprep.mubr.f32.mxu0 %v15518_v55 }
 0x24e   : > { %v2753_v12 = vsel %vm799_vm4, %v2739_v35, %v2741_v14  ;;  %v2754_v13 = vsel %vm799_vm4, %v2741_v14, %v2743_v51 }
 0x24f   : > { %12979 = vmatprep.subr.msk.mxu1 %vm1109_vm8, %v2753_v12 }
 0x250   : > { %12980 = vmatpush1.msk.msra.mxu1 %vm1109_vm8, %v2752_v42 }
 0x251   : > { %v2747_v24 = vpop.permute.xlu1 %2746  ;;  %v2745_v57 = vpop.permute.xlu0 %2744  ;;  %12981 = vmatmul.mubr.msk.f32.vlgmr.msra.gmra.mrb[0].mxu1 %vm1105_vm9, %v12975_v1 }
 0x252   : > { %v2756_v17 = vsel %vm799_vm4, %v2745_v57, %v2747_v24  ;;  %v2755_v5 = vsel %vm799_vm4, %v2743_v51, %v2745_v57  ;;  %v2757_v33 = vsel %vm799_vm4, %v2747_v24, %v15496_v21  ;;  %3054 = vmatprep.mubr.f32.mxu1 %v15518_v55 }
 0x253   : > { %12982 = vmatprep.subr.msk.mxu0 %vm1109_vm8, %v2755_v5  ;;  %12985 = vmatprep.subr.msk.mxu1 %vm1109_vm8, %v2757_v33 }
 0x254   : > { %12983 = vmatpush1.msk.msra.mxu0 %vm1109_vm8, %v2754_v13  ;;  %12986 = vmatpush1.msk.msra.mxu1 %vm1109_vm8, %v2756_v17 }
 0x255   : > { %v3074_v54 = vpop.permute.xlu1 %3073  ;;  %v3076_v16 = vpop.permute.xlu0 %3075  ;;  %12984 = vmatmul.mubr.msk.f32.vlgmr.msra.gmra.mrb[2].mxu0 %vm1105_vm9, %v12975_v1  ;;  %12987 = vmatmul.mubr.msk.f32.vlgmr.msra.gmra.mrb[2].mxu1 %vm1105_vm9, %v12975_v1 }
 0x256   : > { %v3090_v21 = vsel %vm867_vm5, %v3074_v54, %v3076_v16  ;;  %3180 = vmatprep.mubr.f32.mxu0 %v15518_v55  ;;  %3251 = vmatprep.mubr.f32.mxu1 %v15518_v55 }
 0x257   : > { %12989 = vmatprep.subr.msk.mxu0 %vm1109_vm8, %v3090_v21 }
 0x259   : > { %v3072_v52 = vpop.permute.xlu1 %3071  ;;  %v3078_v4 = vpop.permute.xlu0 %3077 }
 0x25a   : > { %v3089_v36 = vsel %vm867_vm5, %v3072_v52, %v3074_v54  ;;  %v3091_v31 = vsel %vm867_vm5, %v3076_v16, %v3078_v4 }
 0x25b   : > { %12990 = vmatpush1.msk.msra.mxu0 %vm1109_vm8, %v3089_v36 }
 0x25c   : > { %12991 = vmatmul.mubr.msk.f32.vlgmr.msra.gmra.mrb[0].mxu0 %vm1105_vm9, %v12988_v47 }
 0x25d   : > { %v3080_v0 = vpop.permute.xlu1 %3079  ;;  %v3082_v37 = vpop.permute.xlu0 %3081  ;;  %3322 = vmatprep.mubr.f32.mxu0 %v15518_v55 }
 0x25e   : > { %v3092_v61 = vsel %vm867_vm5, %v3078_v4, %v3080_v0  ;;  %v3093_v53 = vsel %vm867_vm5, %v3080_v0, %v3082_v37 }
 0x25f   : > { %12992 = vmatprep.subr.msk.mxu1 %vm1109_vm8, %v3092_v61 }
 0x260   : > { %12993 = vmatpush1.msk.msra.mxu1 %vm1109_vm8, %v3091_v31 }
 0x261   : > { %v3084_v44 = vpop.permute.xlu1 %3083  ;;  %v3086_v28 = vpop.permute.xlu0 %3085  ;;  %12994 = vmatmul.mubr.msk.f32.vlgmr.msra.gmra.mrb[0].mxu1 %vm1105_vm9, %v12988_v47 }
 0x262   : > { %v3095_v11 = vsel %vm867_vm5, %v3084_v44, %v3086_v28  ;;  %v3094_v26 = vsel %vm867_vm5, %v3082_v37, %v3084_v44  ;;  %v3096_v43 = vsel %vm867_vm5, %v3086_v28, %v15494_v41  ;;  %3393 = vmatprep.mubr.f32.mxu1 %v15518_v55 }
 0x263   : > { %12995 = vmatprep.subr.msk.mxu0 %vm1109_vm8, %v3094_v26  ;;  %12998 = vmatprep.subr.msk.mxu1 %vm1109_vm8, %v3096_v43 }
 0x264   : > { %12996 = vmatpush1.msk.msra.mxu0 %vm1109_vm8, %v3093_v53  ;;  %12999 = vmatpush1.msk.msra.mxu1 %vm1109_vm8, %v3095_v11 }
 0x265   : > { %v3415_v25 = vpop.permute.xlu1 %3414  ;;  %v3413_v58 = vpop.permute.xlu0 %3412  ;;  %12997 = vmatmul.mubr.msk.f32.vlgmr.msra.gmra.mrb[2].mxu0 %vm1105_vm9, %v12988_v47  ;;  %13000 = vmatmul.mubr.msk.f32.vlgmr.msra.gmra.mrb[2].mxu1 %vm1105_vm9, %v12988_v47 }
 0x266   : > { %v3429_v41 = vsel %vm935_vm6, %v3413_v58, %v3415_v25  ;;  %3519 = vmatprep.mubr.f32.mxu0 %v15518_v55  ;;  %3590 = vmatprep.mubr.f32.mxu1 %v15518_v55 }
 0x267   : > { %13002 = vmatprep.subr.msk.mxu0 %vm1109_vm8, %v3429_v41 }
 0x269   : > { %v3417_v50 = vpop.permute.xlu1 %3416  ;;  %v3411_v59 = vpop.permute.xlu0 %3410 }
 0x26a   : > { %v3428_v15 = vsel %vm935_vm6, %v3411_v59, %v3413_v58  ;;  %v3430_v9 = vsel %vm935_vm6, %v3415_v25, %v3417_v50 }
 0x26b   : > { %13003 = vmatpush1.msk.msra.mxu0 %vm1109_vm8, %v3428_v15 }
 0x26c   : > { %13004 = vmatmul.mubr.msk.f32.vlgmr.msra.gmra.mrb[0].mxu0 %vm1105_vm9, %v13001_v34 }
 0x26d   : > { %v3421_v62 = vpop.permute.xlu1 %3420  ;;  %v3419_v22 = vpop.permute.xlu0 %3418  ;;  %3661 = vmatprep.mubr.f32.mxu0 %v15518_v55 }
 0x26e   : > { %v3431_v63 = vsel %vm935_vm6, %v3417_v50, %v3419_v22  ;;  %v3432_v38 = vsel %vm935_vm6, %v3419_v22, %v3421_v62  ;;  %v13027_v50 = vld [vmem:[%s18626_s5 + $0x10] sm:$0xff]  ;;  %v13028_v22 = vld [vmem:[%s18626_s5 + $0x18] sm:$0xff] }
 0x26f   : > { %13005 = vmatprep.subr.msk.mxu1 %vm1109_vm8, %v3431_v63 }
 0x270   : > { %13006 = vmatpush1.msk.msra.mxu1 %vm1109_vm8, %v3430_v9 }
 0x271   : > { %v3425_v19 = vpop.permute.xlu1 %3424  ;;  %13007 = vmatmul.mubr.msk.f32.vlgmr.msra.gmra.mrb[0].mxu1 %vm1105_vm9, %v13001_v34 }
 0x272   : > { %v3423_v3 = vpop.permute.xlu0 %3422  ;;  %3732 = vmatprep.mubr.f32.mxu1 %v15518_v55 }
 0x273   : > { %v3433_v18 = vsel %vm935_vm6, %v3421_v62, %v3423_v3  ;;  %v3434_v29 = vsel %vm935_vm6, %v3423_v3, %v3425_v19 }
 0x274   : > { %13008 = vmatprep.subr.msk.mxu0 %vm1109_vm8, %v3433_v18 }
 0x275   : > { %13009 = vmatpush1.msk.msra.mxu0 %vm1109_vm8, %v3432_v38  ;;  %v3752_v46 = vpop.permute.xlu1 %3751 }
 0x276   : > { %v3427_v27 = vpop.permute.xlu0 %3426  ;;  %13010 = vmatmul.mubr.msk.f32.vlgmr.msra.gmra.mrb[2].mxu0 %vm1105_vm9, %v13001_v34 }
 0x277   : > { %v3435_v45 = vsel %vm935_vm6, %v3425_v19, %v3427_v27  ;;  %3858 = vmatprep.mubr.f32.mxu0 %v15518_v55 }
 0x278   : > { %13011 = vmatprep.subr.msk.mxu1 %vm1109_vm8, %v3435_v45 }
 0x279   : > { %13012 = vmatpush1.msk.msra.mxu1 %vm1109_vm8, %v3434_v29  ;;  %v3750_v23 = vpop.permute.xlu1 %3749 }
 0x27a   : > { %v3767_v30 = vsel %vm1003_vm7, %v3750_v23, %v3752_v46  ;;  %v3754_v49 = vpop.permute.xlu0 %3753  ;;  %13013 = vmatmul.mubr.msk.f32.vlgmr.msra.gmra.mrb[2].mxu1 %vm1105_vm9, %v13001_v34 }
 0x27b   : > { %v3768_v56 = vsel %vm1003_vm7, %v3752_v46, %v3754_v49  ;;  %3929 = vmatprep.mubr.f32.mxu1 %v15518_v55 }
 0x27c   : > { %13015 = vmatprep.subr.msk.mxu0 %vm1109_vm8, %v3768_v56 }
 0x27d   : > { %13016 = vmatpush1.msk.msra.mxu0 %vm1109_vm8, %v3767_v30  ;;  %v3758_v60 = vpop.permute.xlu1 %3757  ;;  %v4124_v30 = vld [vmem:[%s18626_s5] sm:$0xff] }
 0x27e   : > { %13017 = vmatmul.mubr.msk.f32.vlgmr.msra.gmra.mrb[0].mxu0 %vm1105_vm9, %v13014_v6  ;;  %v3756_v7 = vpop.permute.xlu0 %3755 }
 0x27f   : > { %v3769_v48 = vsel %vm1003_vm7, %v3754_v49, %v3756_v7  ;;  %v3770_v32 = vsel %vm1003_vm7, %v3756_v7, %v3758_v60  ;;  %4000 = vmatprep.mubr.f32.mxu0 %v15518_v55 }
 0x280   : > { %13018 = vmatprep.subr.msk.mxu1 %vm1109_vm8, %v3770_v32 }
 0x281   : > { %13019 = vmatpush1.msk.msra.mxu1 %vm1109_vm8, %v3769_v48  ;;  %v3762_v10 = vpop.permute.xlu1 %3761  ;;  %v7371_v48 = vld [vmem:[%s18627_s6] sm:$0xff] }
 0x282   : > { %13020 = vmatmul.mubr.msk.f32.vlgmr.msra.gmra.mrb[0].mxu1 %vm1105_vm9, %v13014_v6  ;;  %v3760_v8 = vpop.permute.xlu0 %3759 }
 0x283   : > { %v3771_v2 = vsel %vm1003_vm7, %v3758_v60, %v3760_v8  ;;  %v3772_v40 = vsel %vm1003_vm7, %v3760_v8, %v3762_v10  ;;  %4071 = vmatprep.mubr.f32.mxu1 %v15518_v55  ;;  %v4125_v60 = vld [vmem:[%s18626_s5 + $0x8] sm:$0xff] }
 0x284   : > { %13021 = vmatprep.subr.msk.mxu0 %vm1109_vm8, %v3772_v40 }
 0x285   : > { %13022 = vmatpush1.msk.msra.mxu0 %vm1109_vm8, %v3771_v2  ;;  %v3766_v35 = vpop.permute.xlu1 %3765  ;;  %v7372_v2 = vld [vmem:[%s18627_s6 + $0x8] sm:$0xff] }
 0x286   : > { %13023 = vmatmul.mubr.msk.f32.vlgmr.msra.gmra.mrb[2].mxu0 %vm1105_vm9, %v13014_v6  ;;  %v3764_v39 = vpop.permute.xlu0 %3763 }
 0x287   : > { %v3773_v1 = vsel %vm1003_vm7, %v3762_v10, %v3764_v39  ;;  %v3774_v20 = vsel %vm1003_vm7, %v3764_v39, %v3766_v35  ;;  %4244 = vmatprep.mubr.f32.mxu0 %v15518_v55 }
 0x288   : > { %13024 = vmatprep.subr.msk.mxu1 %vm1109_vm8, %v3774_v20 }
 0x289   : > { %13025 = vmatpush1.msk.msra.mxu1 %vm1109_vm8, %v3773_v1 }
 0x28a   : > { %13026 = vmatmul.mubr.msk.f32.vlgmr.msra.gmra.mrb[2].mxu1 %vm1105_vm9, %v13014_v6 }
 0x28b   : > { %4321 = vmatprep.mubr.f32.mxu1 %v15518_v55 }
 0x298   : > { %v4090_v51 = vpop.permute.xlu0 %4089 }
 0x351   : > { %v3860_v14 = vpop.f32.mrb[0].mxu0 }
 0x352   : > { %v4092_v12 = vadd.f32 %v4090_v51, %v3860_v14  ;;  %v3862_v42 = vpop.f32.mrb[1].mxu0 }
 0x353   : > { %v4093_v57 = vadd.f32 %v4090_v51, %v3862_v42 }
 0x354   : > { %v15779_v24 = vmax.f32 %v4092_v12, 0.0 }
 0x355   : > { %v3931_v17 = vpop.f32.mrb[0].mxu1  ;;  %v15783_v13 = vmax.f32 %v4093_v57, 0.0  ;;  %v13046_v57 = vld [vmem:[%s18626_s5 + $0x28] sm:$0xff] }
 0x356   : > { %v4094_v5 = vadd.f32 %v4090_v51, %v3931_v17  ;;  %v3933_v33 = vpop.f32.mrb[1].mxu1  ;;  %4139 = vrot.lane.b32.xlu1 %v15779_v24, %s14731_s21 }
 0x357   : > { %v4095_v16 = vadd.f32 %v4090_v51, %v3933_v33 }
 0x358   : > { %v15785_v54 = vmax.f32 %v4094_v5, 0.0 }
 0x359   : > { %v4002_v21 = vpop.f32.mrb[2].mxu0  ;;  %v15791_v47 = vmax.f32 %v4095_v16, 0.0 }
 0x35a   : > { %v4096_v52 = vadd.f32 %v4090_v51, %v4002_v21  ;;  %v4004_v4 = vpop.f32.mrb[3].mxu0  ;;  %4143 = vrot.lane.b32.xlu0 %v15785_v54, %s14731_s21  ;;  %4141 = vrot.lane.b32.xlu1 %v15783_v13, %s14731_s21 }
 0x35b   : > { %v4097_v0 = vadd.f32 %v4090_v51, %v4004_v4 }
 0x35c   : > { %v15793_v36 = vmax.f32 %v4096_v52, 0.0 }
 0x35d   : > { %v4073_v37 = vpop.f32.mrb[2].mxu1  ;;  %v15799_v44 = vmax.f32 %v4097_v0, 0.0 }
 0x35e   : > { %v4098_v61 = vadd.f32 %v4090_v51, %v4073_v37  ;;  %v4075_v31 = vpop.f32.mrb[3].mxu1  ;;  %4145 = vrot.lane.b32.xlu0 %v15791_v47, %s14731_s21  ;;  %4147 = vrot.lane.b32.xlu1 %v15793_v36, %s14731_s21  ;;  %v13055_v37 = vld [vmem:[%s18626_s5 + $0x30] sm:$0xff] }
 0x35f   : > { %v4099_v11 = vadd.f32 %v4090_v51, %v4075_v31  ;;  %v13045_v51 = vld [vmem:[%s18626_s5 + $0x20] sm:$0xff] }
 0x360   : > { %v15801_v28 = vmax.f32 %v4098_v61, 0.0  ;;  %v16042_v31 = vld [vmem:[#allocation2 + $0x40] sm:$0xff] }
 0x361   : > { %v15807_v26 = vmax.f32 %v4099_v11, 0.0 }
 0x362   : > { %4149 = vrot.lane.b32.xlu0 %v15799_v44, %s14731_s21  ;;  %4151 = vrot.lane.b32.xlu1 %v15801_v28, %s14731_s21 }
 0x366   : > { %4153 = vrot.lane.b32.xlu0 %v15807_v26, %s14731_s21  ;;  %4155 = vrot.lane.b32.xlu1 %v15518_v55, %s14731_s21 }
 0x36a   : > { %4807 = vrot.lane.b32.xlu0 %v15783_v13, %s14732_s22  ;;  %4809 = vrot.lane.b32.xlu1 %v15785_v54, %s14732_s22 }
 0x36e   : > { %4805 = vrot.lane.b32.xlu0 %v15779_v24, %s14732_s22  ;;  %4811 = vrot.lane.b32.xlu1 %v15791_v47, %s14732_s22 }
 0x372   : > { %4813 = vrot.lane.b32.xlu0 %v15793_v36, %s14732_s22  ;;  %5174 = vrot.lane.b32.xlu1 %v15783_v13, %s14733_s23 }
 0x376   : > { %4817 = vrot.lane.b32.xlu0 %v15801_v28, %s14732_s22  ;;  %5172 = vrot.lane.b32.xlu1 %v15779_v24, %s14733_s23 }
 0x37a   : > { %4821 = vrot.lane.b32.xlu0 %v15518_v55, %s14732_s22  ;;  %5180 = vrot.lane.b32.xlu1 %v15793_v36, %s14733_s23 }
 0x37e   : > { %5176 = vrot.lane.b32.xlu0 %v15785_v54, %s14733_s23  ;;  %4815 = vrot.lane.b32.xlu1 %v15799_v44, %s14732_s22 }
 0x382   : > { %5178 = vrot.lane.b32.xlu0 %v15791_v47, %s14733_s23  ;;  %4819 = vrot.lane.b32.xlu1 %v15807_v26, %s14732_s22 }
 0x386   : > { %5541 = vrot.lane.b32.xlu0 %v15783_v13, %s14734_s24  ;;  %5184 = vrot.lane.b32.xlu1 %v15801_v28, %s14733_s23 }
 0x38a   : > { %5539 = vrot.lane.b32.xlu0 %v15779_v24, %s14734_s24  ;;  %5188 = vrot.lane.b32.xlu1 %v15518_v55, %s14733_s23 }
 0x38e   : > { %5547 = vrot.lane.b32.xlu0 %v15793_v36, %s14734_s24  ;;  %5543 = vrot.lane.b32.xlu1 %v15785_v54, %s14734_s24 }
 0x392   : > { %5182 = vrot.lane.b32.xlu0 %v15799_v44, %s14733_s23  ;;  %5545 = vrot.lane.b32.xlu1 %v15791_v47, %s14734_s24 }
 0x396   : > { %5186 = vrot.lane.b32.xlu0 %v15807_v26, %s14733_s23  ;;  %5908 = vrot.lane.b32.xlu1 %v15783_v13, %s14735_s25 }
 0x39a   : > { %5551 = vrot.lane.b32.xlu0 %v15801_v28, %s14734_s24  ;;  %5906 = vrot.lane.b32.xlu1 %v15779_v24, %s14735_s25 }
 0x39e   : > { %5555 = vrot.lane.b32.xlu0 %v15518_v55, %s14734_s24  ;;  %5549 = vrot.lane.b32.xlu1 %v15799_v44, %s14734_s24 }
 0x3a2   : > { %5910 = vrot.lane.b32.xlu0 %v15785_v54, %s14735_s25  ;;  %5553 = vrot.lane.b32.xlu1 %v15807_v26, %s14734_s24 }
 0x3a6   : > { %5912 = vrot.lane.b32.xlu0 %v15791_v47, %s14735_s25  ;;  %5914 = vrot.lane.b32.xlu1 %v15793_v36, %s14735_s25 }
 0x3aa   : > { %6275 = vrot.lane.b32.xlu0 %v15783_v13, %s14736_s26  ;;  %5918 = vrot.lane.b32.xlu1 %v15801_v28, %s14735_s25 }
 0x3ae   : > { %6273 = vrot.lane.b32.xlu0 %v15779_v24, %s14736_s26  ;;  %5922 = vrot.lane.b32.xlu1 %v15518_v55, %s14735_s25 }
 0x3b2   : > { %5916 = vrot.lane.b32.xlu0 %v15799_v44, %s14735_s25  ;;  %6277 = vrot.lane.b32.xlu1 %v15785_v54, %s14736_s26 }
 0x3b6   : > { %5920 = vrot.lane.b32.xlu0 %v15807_v26, %s14735_s25  ;;  %6279 = vrot.lane.b32.xlu1 %v15791_v47, %s14736_s26 }
 0x3ba   : > { %6281 = vrot.lane.b32.xlu0 %v15793_v36, %s14736_s26  ;;  %6642 = vrot.lane.b32.xlu1 %v15783_v13, %s14737_s27 }
 0x3be   : > { %6285 = vrot.lane.b32.xlu0 %v15801_v28, %s14736_s26  ;;  %6283 = vrot.lane.b32.xlu1 %v15799_v44, %s14736_s26 }
 0x3c2   : > { %6289 = vrot.lane.b32.xlu0 %v15518_v55, %s14736_s26  ;;  %6287 = vrot.lane.b32.xlu1 %v15807_v26, %s14736_s26 }
 0x3c6   : > { %6644 = vrot.lane.b32.xlu0 %v15785_v54, %s14737_s27  ;;  %6640 = vrot.lane.b32.xlu1 %v15779_v24, %s14737_s27 }
 0x3c8   : > { %v4140_v43 = vpop.permute.xlu1 %4139 }
 0x3ca   : > { %6646 = vrot.lane.b32.xlu0 %v15791_v47, %s14737_s27  ;;  %6648 = vrot.lane.b32.xlu1 %v15793_v36, %s14737_s27 }
 0x3cc   : > { %v4144_v53 = vpop.permute.xlu0 %4143  ;;  %v4142_v25 = vpop.permute.xlu1 %4141 }
 0x3cd   : > { %v4158_v58 = vsel %vm527_vm0, %v4142_v25, %v4144_v53  ;;  %v4157_v41 = vsel %vm527_vm0, %v4140_v43, %v4142_v25 }
 0x3ce   : > { %7009 = vrot.lane.b32.xlu0 %v15783_v13, %s14738_s28  ;;  %6652 = vrot.lane.b32.xlu1 %v15801_v28, %s14737_s27 }
 0x3cf   : > { %4180 = vmatprep.subr.mxu0 %v4158_v58 }
 0x3d0   : > { %4181 = vmatpush1.msra.mxu0 %v4157_v41  ;;  %v4146_v59 = vpop.permute.xlu0 %4145  ;;  %v4148_v34 = vpop.permute.xlu1 %4147 }
 0x3d1   : > { %13029 = vmatmul.mubr.msk.f32.vlgmr.msra.gmra.mrb[4].mxu0 %vm4173_vm10, %v13027_v50  ;;  %v4160_v15 = vsel %vm527_vm0, %v4146_v59, %v4148_v34  ;;  %v4159_v62 = vsel %vm527_vm0, %v4144_v53, %v4146_v59 }
 0x3d2   : > { %6650 = vrot.lane.b32.xlu0 %v15799_v44, %s14737_s27  ;;  %6656 = vrot.lane.b32.xlu1 %v15518_v55, %s14737_s27 }
 0x3d3   : > { %4257 = vmatprep.subr.mxu1 %v4160_v15  ;;  %4250 = vmatprep.mubr.f32.mxu0 %v15518_v55 }
 0x3d4   : > { %4258 = vmatpush1.msra.mxu1 %v4159_v62  ;;  %v4150_v63 = vpop.permute.xlu0 %4149  ;;  %v4152_v9 = vpop.permute.xlu1 %4151 }
 0x3d5   : > { %13030 = vmatmul.mubr.msk.f32.gmra.mrb[6].mxu0 %vm4173_vm10, %v13028_v22  ;;  %13031 = vmatmul.mubr.msk.f32.vlgmr.msra.gmra.mrb[4].mxu1 %vm4173_vm10, %v13027_v50  ;;  %v4162_v19 = vsel %vm527_vm0, %v4150_v63, %v4152_v9  ;;  %v4161_v3 = vsel %vm527_vm0, %v4148_v34, %v4150_v63  ;;  %v13065_v63 = vld [vmem:[%s18626_s5 + $0x40] sm:$0xff] }
 0x3d6   : > { %6654 = vrot.lane.b32.xlu0 %v15807_v26, %s14737_s27  ;;  %7011 = vrot.lane.b32.xlu1 %v15785_v54, %s14738_s28 }
 0x3d7   : > { %4334 = vmatprep.subr.mxu0 %v4162_v19  ;;  %4327 = vmatprep.mubr.f32.mxu1 %v15518_v55 }
 0x3d8   : > { %4335 = vmatpush1.msra.mxu0 %v4161_v3  ;;  %4398 = vmatprep.mubr.f32.mxu0 %v15518_v55  ;;  %v4154_v18 = vpop.permute.xlu0 %4153  ;;  %v4156_v38 = vpop.permute.xlu1 %4155 }
 0x3d9   : > { %13032 = vmatmul.mubr.msk.f32.gmra.mrb[6].mxu1 %vm4173_vm10, %v13028_v22  ;;  %13033 = vmatmul.mubr.msk.f32.vlgmr.msra.gmra.mrb[8].mxu0 %vm4173_vm10, %v13027_v50  ;;  %v4164_v46 = vsel %vm527_vm0, %v4154_v18, %v4156_v38  ;;  %v4163_v27 = vsel %vm527_vm0, %v4152_v9, %v4154_v18  ;;  %v13066_v38 = vld [vmem:[%s18626_s5 + $0x48] sm:$0xff] }
 0x3da   : > { %4494 = vmatprep.subr.mxu0 %v15783_v13  ;;  %7007 = vrot.lane.b32.xlu0 %v15779_v24, %s14738_s28 }
 0x3db   : > { %4495 = vmatpush1.msra.mxu0 %v15779_v24  ;;  %7013 = vrot.lane.b32.xlu1 %v15791_v47, %s14738_s28 }
 0x3dc   : > { %4411 = vmatprep.subr.mxu1 %v4164_v46  ;;  %4648 = vmatprep.subr.mxu0 %v15799_v44  ;;  %v4808_v45 = vpop.permute.xlu0 %4807  ;;  %v4810_v29 = vpop.permute.xlu1 %4809 }
 0x3dd   : > { %4404 = vmatprep.mubr.f32.mxu0 %v15518_v55  ;;  %4412 = vmatpush1.msra.mxu1 %v4163_v27  ;;  %v4824_v56 = vsel %vm595_vm1, %v4808_v45, %v4810_v29 }
 0x3de   : > { %4475 = vmatprep.mubr.f32.mxu1 %v15518_v55  ;;  %13034 = vmatmul.mubr.msk.f32.gmra.mrb[10].mxu0 %vm4173_vm10, %v13028_v22 }
 0x3df   : > { %13035 = vmatmul.mubr.msk.f32.vlgmr.msra.gmra.mrb[8].mxu1 %vm4173_vm10, %v13027_v50  ;;  %4571 = vmatprep.subr.mxu1 %v15791_v47 }
 0x3e0   : > { %4572 = vmatpush1.msra.mxu1 %v15785_v54  ;;  %7015 = vrot.lane.b32.xlu0 %v15793_v36, %s14738_s28  ;;  %v4806_v23 = vpop.permute.xlu0 %4805  ;;  %v4812_v49 = vpop.permute.xlu1 %4811 }
 0x3e1   : > { %7017 = vrot.lane.b32.xlu1 %v15799_v44, %s14738_s28  ;;  %4725 = vmatprep.subr.mxu1 %v15807_v26  ;;  %v4823_v40 = vsel %vm595_vm1, %v4806_v23, %v4808_v45  ;;  %v4825_v1 = vsel %vm595_vm1, %v4810_v29, %v4812_v49 }
 0x3e2   : > { %4481 = vmatprep.mubr.f32.mxu1 %v15518_v55  ;;  %4558 = vmatprep.mubr.f32.mxu0 %v15518_v55 }
 0x3e3   : > { %13036 = vmatmul.mubr.msk.f32.gmra.mrb[10].mxu1 %vm4173_vm10, %v13028_v22  ;;  %13037 = vmatmul.mubr.msk.f32.vlgmr.msra.gmra.mrb[4].mxu0 %vm4173_vm10, %v4124_v30 }
 0x3e4   : > { %4649 = vmatpush1.msra.mxu0 %v15793_v36  ;;  %7019 = vrot.lane.b32.xlu0 %v15801_v28, %s14738_s28  ;;  %v4814_v6 = vpop.permute.xlu0 %4813  ;;  %v5175_v7 = vpop.permute.xlu1 %5174 }
 0x3e5   : > { %4845 = vmatprep.subr.mxu0 %v4824_v56  ;;  %7021 = vrot.lane.b32.xlu1 %v15807_v26, %s14738_s28  ;;  %v4826_v32 = vsel %vm595_vm1, %v4812_v49, %v4814_v6 }
 0x3e6   : > { %4564 = vmatprep.mubr.f32.mxu0 %v15518_v55  ;;  %4635 = vmatprep.mubr.f32.mxu1 %v15518_v55 }
 0x3e7   : > { %13038 = vmatmul.mubr.msk.f32.gmra.mrb[6].mxu0 %vm4173_vm10, %v4125_v60  ;;  %13039 = vmatmul.mubr.msk.f32.vlgmr.msra.gmra.mrb[4].mxu1 %vm4173_vm10, %v4124_v30 }
 0x3e8   : > { %4726 = vmatpush1.msra.mxu1 %v15801_v28  ;;  %7023 = vrot.lane.b32.xlu0 %v15518_v55, %s14738_s28  ;;  %v4818_v10 = vpop.permute.xlu0 %4817  ;;  %v5173_v8 = vpop.permute.xlu1 %5172 }
 0x3e9   : > { %7375 = vperm.xlu1 %14185, %v7371_v48   ;;  %4922 = vmatprep.subr.mxu1 %v4826_v32  ;;  %v5190_v52 = vsel %vm663_vm2, %v5173_v8, %v5175_v7  ;;  %v13075_v32 = vld [vmem:[%s18626_s5 + $0x50] sm:$0xff] }
 0x3ea   : > { %4641 = vmatprep.mubr.f32.mxu1 %v15518_v55  ;;  %4712 = vmatprep.mubr.f32.mxu0 %v15518_v55 }
 0x3eb   : > { %13040 = vmatmul.mubr.msk.f32.gmra.mrb[6].mxu1 %vm4173_vm10, %v4125_v60  ;;  %13041 = vmatmul.mubr.msk.f32.vlgmr.msra.gmra.mrb[8].mxu0 %vm4173_vm10, %v4124_v30 }
 0x3ec   : > { %4846 = vmatpush1.msra.mxu0 %v4823_v40  ;;  %7380 = vperm.xlu0 %14184, %v7372_v2   ;;  %v4822_v35 = vpop.permute.xlu0 %4821  ;;  %v16000_v39 = vpop.permute.xlu1 %5180  ;;  %v13076_v2 = vld [vmem:[%s18626_s5 + $0x58] sm:$0xff] }
 0x3ed   : > { %4718 = vmatprep.mubr.f32.mxu0 %v15518_v55  ;;  %4789 = vmatprep.mubr.f32.mxu1 %v15518_v55 }
 0x3ef   : > { %13042 = vmatmul.mubr.msk.f32.gmra.mrb[10].mxu0 %vm4173_vm10, %v4125_v60  ;;  %13043 = vmatmul.mubr.msk.f32.vlgmr.msra.gmra.mrb[8].mxu1 %vm4173_vm10, %v4124_v30 }
 0x3f0   : > { %4923 = vmatpush1.msra.mxu1 %v4825_v1  ;;  %4795 = vmatprep.mubr.f32.mxu1 %v15518_v55  ;;  %v5177_v20 = vpop.permute.xlu0 %5176  ;;  %v4816_v14 = vpop.permute.xlu1 %4815 }
 0x3f1   : > { %4909 = vmatprep.mubr.f32.mxu0 %v15518_v55  ;;  %v4828_v12 = vsel %vm595_vm1, %v4816_v14, %v4818_v10  ;;  %v4827_v42 = vsel %vm595_vm1, %v4814_v6, %v4816_v14  ;;  %v5191_v5 = vsel %vm663_vm2, %v5175_v7, %v5177_v20 }
 0x3f2   : > { %4999 = vmatprep.subr.mxu0 %v4828_v12 }
 0x3f3   : > { %13044 = vmatmul.mubr.msk.f32.gmra.mrb[10].mxu1 %vm4173_vm10, %v4125_v60  ;;  %13047 = vmatmul.mubr.msk.f32.vlgmr.msra.gmra.mrb[4].mxu0 %vm4173_vm10, %v13045_v51 }
 0x3f4   : > { %4915 = vmatprep.mubr.f32.mxu0 %v15518_v55  ;;  %4986 = vmatprep.mubr.f32.mxu1 %v15518_v55  ;;  %v5179_v24 = vpop.permute.xlu0 %5178  ;;  %v4820_v17 = vpop.permute.xlu1 %4819 }
 0x3f5   : > { %5000 = vmatpush1.msra.mxu0 %v4827_v42  ;;  %v4830_v33 = vsel %vm595_vm1, %v4820_v17, %v4822_v35  ;;  %v4829_v13 = vsel %vm595_vm1, %v4818_v10, %v4820_v17  ;;  %v5193_v21 = vsel %vm663_vm2, %v5179_v24, %v16000_v39  ;;  %v5192_v36 = vsel %vm663_vm2, %v5177_v20, %v5179_v24 }
 0x3f6   : > { %5212 = vmatprep.subr.mxu0 %v5191_v5  ;;  %5076 = vmatprep.subr.mxu1 %v4830_v33 }
 0x3f7   : > { %13048 = vmatmul.mubr.msk.f32.gmra.mrb[6].mxu0 %vm4173_vm10, %v13046_v57  ;;  %13049 = vmatmul.mubr.msk.f32.vlgmr.msra.gmra.mrb[4].mxu1 %vm4173_vm10, %v13045_v51 }
 0x3f8   : > { %4992 = vmatprep.mubr.f32.mxu1 %v15518_v55  ;;  %5063 = vmatprep.mubr.f32.mxu0 %v15518_v55  ;;  %v5542_v54 = vpop.permute.xlu0 %5541  ;;  %v5185_v16 = vpop.permute.xlu1 %5184 }
 0x3f9   : > { %5077 = vmatpush1.msra.mxu1 %v4829_v13  ;;  %v13085_v13 = vld [vmem:[%s18626_s5 + $0x60] sm:$0xff] }
 0x3fa   : > { %5289 = vmatprep.subr.mxu1 %v5193_v21 }
 0x3fb   : > { %13050 = vmatmul.mubr.msk.f32.gmra.mrb[6].mxu1 %vm4173_vm10, %v13046_v57  ;;  %13051 = vmatmul.mubr.msk.f32.vlgmr.msra.gmra.mrb[8].mxu0 %vm4173_vm10, %v13045_v51 }
 0x3fc   : > { %5213 = vmatpush1.msra.mxu0 %v5190_v52  ;;  %5069 = vmatprep.mubr.f32.mxu0 %v15518_v55  ;;  %v5540_v4 = vpop.permute.xlu0 %5539  ;;  %v5189_v47 = vpop.permute.xlu1 %5188 }
 0x3fd   : > { %5140 = vmatprep.mubr.f32.mxu1 %v15518_v55  ;;  %v5557_v50 = vsel %vm731_vm3, %v5540_v4, %v5542_v54  ;;  %v13086_v4 = vld [vmem:[%s18626_s5 + $0x68] sm:$0xff] }
 0x3ff   : > { %13052 = vmatmul.mubr.msk.f32.gmra.mrb[10].mxu0 %vm4173_vm10, %v13046_v57  ;;  %13053 = vmatmul.mubr.msk.f32.vlgmr.msra.gmra.mrb[8].mxu1 %vm4173_vm10, %v13045_v51 }
 0x400   : > { %5290 = vmatpush1.msra.mxu1 %v5192_v36  ;;  %5146 = vmatprep.mubr.f32.mxu1 %v15518_v55  ;;  %v5548_v0 = vpop.permute.xlu0 %5547  ;;  %v5544_v61 = vpop.permute.xlu1 %5543  ;;  %v13056_v55 = vld [vmem:[%s18626_s5 + $0x38] sm:$0xff] }
 0x401   : > { %5276 = vmatprep.mubr.f32.mxu0 %v16042_v31  ;;  %v5558_v53 = vsel %vm731_vm3, %v5542_v54, %v5544_v61 }
 0x403   : > { %13054 = vmatmul.mubr.msk.f32.gmra.mrb[10].mxu1 %vm4173_vm10, %v13046_v57  ;;  %13057 = vmatmul.mubr.msk.f32.vlgmr.msra.gmra.mrb[4].mxu0 %vm4173_vm10, %v13055_v37 }
 0x404   : > { %5282 = vmatprep.mubr.f32.mxu0 %v16042_v31  ;;  %5353 = vmatprep.mubr.f32.mxu1 %v16042_v31  ;;  %v5183_v44 = vpop.permute.xlu0 %5182  ;;  %v5546_v28 = vpop.permute.xlu1 %5545 }
 0x405   : > { %v5195_v11 = vsel %vm663_vm2, %v5183_v44, %v5185_v16  ;;  %v5194_v26 = vsel %vm663_vm2, %v16000_v39, %v5183_v44  ;;  %v5560_v15 = vsel %vm731_vm3, %v5546_v28, %v5548_v0  ;;  %v5559_v62 = vsel %vm731_vm3, %v5544_v61, %v5546_v28 }
 0x406   : > { %5366 = vmatprep.subr.mxu0 %v5195_v11 }
 0x407   : > { %13058 = vmatmul.mubr.msk.f32.gmra.mrb[6].mxu0 %vm4173_vm10, %v13056_v55  ;;  %13059 = vmatmul.mubr.msk.f32.vlgmr.msra.gmra.mrb[4].mxu1 %vm4173_vm10, %v13055_v37 }
 0x408   : > { %5359 = vmatprep.mubr.f32.mxu1 %v16042_v31  ;;  %5367 = vmatpush1.msra.mxu0 %v5194_v26  ;;  %v5187_v43 = vpop.permute.xlu0 %5186  ;;  %v5909_v25 = vpop.permute.xlu1 %5908 }
 0x409   : > { %5430 = vmatprep.mubr.f32.mxu0 %v16042_v31  ;;  %5579 = vmatprep.subr.mxu0 %v5558_v53  ;;  %v5197_v58 = vsel %vm663_vm2, %v5187_v43, %v5189_v47  ;;  %v5196_v41 = vsel %vm663_vm2, %v5185_v16, %v5187_v43 }
 0x40a   : > { %5443 = vmatprep.subr.mxu1 %v5197_v58 }
 0x40b   : > { %13060 = vmatmul.mubr.msk.f32.gmra.mrb[6].mxu1 %vm4173_vm10, %v13056_v55  ;;  %13061 = vmatmul.mubr.msk.f32.vlgmr.msra.gmra.mrb[8].mxu0 %vm4173_vm10, %v13055_v37 }
 0x40c   : > { %5580 = vmatpush1.msra.mxu0 %v5557_v50  ;;  %5436 = vmatprep.mubr.f32.mxu0 %v16042_v31  ;;  %v5552_v59 = vpop.permute.xlu0 %5551  ;;  %v5907_v34 = vpop.permute.xlu1 %5906  ;;  %v13096_v50 = vld [vmem:[%s18626_s5 + $0x78] sm:$0xff] }
 0x40d   : > { %5444 = vmatpush1.msra.mxu1 %v5196_v41  ;;  %5507 = vmatprep.mubr.f32.mxu1 %v16042_v31  ;;  %v5924_v56 = vsel %vm799_vm4, %v5907_v34, %v5909_v25 }
 0x40e   : > { %5656 = vmatprep.subr.mxu1 %v5560_v15 }
 0x40f   : > { %13062 = vmatmul.mubr.msk.f32.gmra.mrb[10].mxu0 %vm4173_vm10, %v13056_v55  ;;  %13063 = vmatmul.mubr.msk.f32.vlgmr.msra.gmra.mrb[8].mxu1 %vm4173_vm10, %v13055_v37 }
 0x410   : > { %5657 = vmatpush1.msra.mxu1 %v5559_v62  ;;  %5513 = vmatprep.mubr.f32.mxu1 %v16042_v31  ;;  %v5556_v22 = vpop.permute.xlu0 %5555  ;;  %v5550_v9 = vpop.permute.xlu1 %5549 }
 0x411   : > { %5643 = vmatprep.mubr.f32.mxu0 %v16042_v31  ;;  %v5562_v19 = vsel %vm731_vm3, %v5550_v9, %v5552_v59  ;;  %v5561_v3 = vsel %vm731_vm3, %v5548_v0, %v5550_v9 }
 0x412   : > { %5733 = vmatprep.subr.mxu0 %v5562_v19 }
 0x413   : > { %13064 = vmatmul.mubr.msk.f32.gmra.mrb[10].mxu1 %vm4173_vm10, %v13056_v55  ;;  %13067 = vmatmul.mubr.msk.f32.vlgmr.msra.gmra.mrb[4].mxu0 %vm4173_vm10, %v13065_v63 }
 0x414   : > { %5649 = vmatprep.mubr.f32.mxu0 %v16042_v31  ;;  %5720 = vmatprep.mubr.f32.mxu1 %v16042_v31  ;;  %v5911_v18 = vpop.permute.xlu0 %5910  ;;  %v5554_v46 = vpop.permute.xlu1 %5553 }
 0x415   : > { %5734 = vmatpush1.msra.mxu0 %v5561_v3  ;;  %v5564_v27 = vsel %vm731_vm3, %v5554_v46, %v5556_v22  ;;  %v5925_v45 = vsel %vm799_vm4, %v5909_v25, %v5911_v18  ;;  %v5563_v29 = vsel %vm731_vm3, %v5552_v59, %v5554_v46  ;;  %v13095_v25 = vld [vmem:[%s18626_s5 + $0x70] sm:$0xff]  ;;  %v13105_v46 = vld [vmem:[%s18626_s5 + $0x80] sm:$0xff] }
 0x416   : > { %5810 = vmatprep.subr.mxu1 %v5564_v27  ;;  %5946 = vmatprep.subr.mxu0 %v5925_v45 }
 0x417   : > { %13068 = vmatmul.mubr.msk.f32.gmra.mrb[6].mxu0 %vm4173_vm10, %v13066_v38  ;;  %13069 = vmatmul.mubr.msk.f32.vlgmr.msra.gmra.mrb[4].mxu1 %vm4173_vm10, %v13065_v63 }
 0x418   : > { %5726 = vmatprep.mubr.f32.mxu1 %v16042_v31  ;;  %5797 = vmatprep.mubr.f32.mxu0 %v16042_v31  ;;  %v5913_v23 = vpop.permute.xlu0 %5912  ;;  %v5915_v30 = vpop.permute.xlu1 %5914 }
 0x419   : > { %5811 = vmatpush1.msra.mxu1 %v5563_v29  ;;  %v5927_v49 = vsel %vm799_vm4, %v5913_v23, %v5915_v30  ;;  %v5926_v7 = vsel %vm799_vm4, %v5911_v18, %v5913_v23 }
 0x41a   : > { %6023 = vmatprep.subr.mxu1 %v5927_v49 }
 0x41b   : > { %13070 = vmatmul.mubr.msk.f32.gmra.mrb[6].mxu1 %vm4173_vm10, %v13066_v38  ;;  %13071 = vmatmul.mubr.msk.f32.vlgmr.msra.gmra.mrb[8].mxu0 %vm4173_vm10, %v13065_v63 }
 0x41c   : > { %5947 = vmatpush1.msra.mxu0 %v5924_v56  ;;  %5803 = vmatprep.mubr.f32.mxu0 %v16042_v31  ;;  %v6276_v6 = vpop.permute.xlu0 %6275  ;;  %v5919_v60 = vpop.permute.xlu1 %5918 }
 0x41d   : > { %5874 = vmatprep.mubr.f32.mxu1 %v16042_v31 }
 0x41f   : > { %13072 = vmatmul.mubr.msk.f32.gmra.mrb[10].mxu0 %vm4173_vm10, %v13066_v38  ;;  %13073 = vmatmul.mubr.msk.f32.vlgmr.msra.gmra.mrb[8].mxu1 %vm4173_vm10, %v13065_v63 }
 0x420   : > { %6024 = vmatpush1.msra.mxu1 %v5926_v7  ;;  %5880 = vmatprep.mubr.f32.mxu1 %v16042_v31  ;;  %v6274_v48 = vpop.permute.xlu0 %6273  ;;  %v5923_v10 = vpop.permute.xlu1 %5922 }
 0x421   : > { %6010 = vmatprep.mubr.f32.mxu0 %v16042_v31  ;;  %v6291_v42 = vsel %vm867_vm5, %v6274_v48, %v6276_v6 }
 0x423   : > { %13074 = vmatmul.mubr.msk.f32.gmra.mrb[10].mxu1 %vm4173_vm10, %v13066_v38  ;;  %13077 = vmatmul.mubr.msk.f32.vlgmr.msra.gmra.mrb[4].mxu0 %vm4173_vm10, %v13075_v32 }
 0x424   : > { %6016 = vmatprep.mubr.f32.mxu0 %v16042_v31  ;;  %6087 = vmatprep.mubr.f32.mxu1 %v16042_v31  ;;  %v5917_v8 = vpop.permute.xlu0 %5916  ;;  %v6278_v40 = vpop.permute.xlu1 %6277 }
 0x425   : > { %v5929_v35 = vsel %vm799_vm4, %v5917_v8, %v5919_v60  ;;  %v5928_v39 = vsel %vm799_vm4, %v5915_v30, %v5917_v8  ;;  %v6292_v20 = vsel %vm867_vm5, %v6276_v6, %v6278_v40  ;;  %v13106_v30 = vld [vmem:[%s18626_s5 + $0x88] sm:$0xff] }
 0x426   : > { %6100 = vmatprep.subr.mxu0 %v5929_v35 }
 0x427   : > { %13078 = vmatmul.mubr.msk.f32.gmra.mrb[6].mxu0 %vm4173_vm10, %v13076_v2  ;;  %13079 = vmatmul.mubr.msk.f32.vlgmr.msra.gmra.mrb[4].mxu1 %vm4173_vm10, %v13075_v32 }
 0x428   : > { %6093 = vmatprep.mubr.f32.mxu1 %v16042_v31  ;;  %6101 = vmatpush1.msra.mxu0 %v5928_v39  ;;  %v5921_v1 = vpop.permute.xlu0 %5920  ;;  %v6280_v51 = vpop.permute.xlu1 %6279 }
 0x429   : > { %6164 = vmatprep.mubr.f32.mxu0 %v16042_v31  ;;  %6313 = vmatprep.subr.mxu0 %v6292_v20  ;;  %v5931_v14 = vsel %vm799_vm4, %v5921_v1, %v5923_v10  ;;  %v5930_v12 = vsel %vm799_vm4, %v5919_v60, %v5921_v1  ;;  %v6293_v5 = vsel %vm867_vm5, %v6278_v40, %v6280_v51 }
 0x42a   : > { %6177 = vmatprep.subr.mxu1 %v5931_v14 }
 0x42b   : > { %13080 = vmatmul.mubr.msk.f32.gmra.mrb[6].mxu1 %vm4173_vm10, %v13076_v2  ;;  %13081 = vmatmul.mubr.msk.f32.vlgmr.msra.gmra.mrb[8].mxu0 %vm4173_vm10, %v13075_v32 }
 0x42c   : > { %6314 = vmatpush1.msra.mxu0 %v6291_v42  ;;  %6170 = vmatprep.mubr.f32.mxu0 %v16042_v31  ;;  %v6282_v24 = vpop.permute.xlu0 %6281  ;;  %v6643_v57 = vpop.permute.xlu1 %6642 }
 0x42d   : > { %6178 = vmatpush1.msra.mxu1 %v5930_v12  ;;  %6241 = vmatprep.mubr.f32.mxu1 %v16042_v31  ;;  %v6294_v17 = vsel %vm867_vm5, %v6280_v51, %v6282_v24 }
 0x42e   : > { %6390 = vmatprep.subr.mxu1 %v6294_v17 }
 0x42f   : > { %13082 = vmatmul.mubr.msk.f32.gmra.mrb[10].mxu0 %vm4173_vm10, %v13076_v2  ;;  %13083 = vmatmul.mubr.msk.f32.vlgmr.msra.gmra.mrb[8].mxu1 %vm4173_vm10, %v13075_v32 }
 0x430   : > { %6247 = vmatprep.mubr.f32.mxu1 %v16042_v31  ;;  %6377 = vmatprep.mubr.f32.mxu0 %v16042_v31  ;;  %v6286_v33 = vpop.permute.xlu0 %6285  ;;  %v6284_v54 = vpop.permute.xlu1 %6283 }
 0x431   : > { %6391 = vmatpush1.msra.mxu1 %v6293_v5  ;;  %v6296_v16 = vsel %vm867_vm5, %v6284_v54, %v6286_v33  ;;  %v6295_v21 = vsel %vm867_vm5, %v6282_v24, %v6284_v54 }
 0x432   : > { %6467 = vmatprep.subr.mxu0 %v6296_v16 }
 0x433   : > { %13084 = vmatmul.mubr.msk.f32.gmra.mrb[10].mxu1 %vm4173_vm10, %v13076_v2  ;;  %13087 = vmatmul.mubr.msk.f32.vlgmr.msra.gmra.mrb[4].mxu0 %vm4173_vm10, %v13085_v13 }
 0x434   : > { %6383 = vmatprep.mubr.f32.mxu0 %v16042_v31  ;;  %6454 = vmatprep.mubr.f32.mxu1 %v16042_v31  ;;  %v6290_v52 = vpop.permute.xlu0 %6289  ;;  %v6288_v47 = vpop.permute.xlu1 %6287 }
 0x435   : > { %6468 = vmatpush1.msra.mxu0 %v6295_v21  ;;  %v6298_v36 = vsel %vm867_vm5, %v6288_v47, %v6290_v52  ;;  %v6297_v0 = vsel %vm867_vm5, %v6286_v33, %v6288_v47 }
 0x436   : > { %6544 = vmatprep.subr.mxu1 %v6298_v36 }
 0x437   : > { %13088 = vmatmul.mubr.msk.f32.gmra.mrb[6].mxu0 %vm4173_vm10, %v13086_v4  ;;  %13089 = vmatmul.mubr.msk.f32.vlgmr.msra.gmra.mrb[4].mxu1 %vm4173_vm10, %v13085_v13 }
 0x438   : > { %6460 = vmatprep.mubr.f32.mxu1 %v16042_v31  ;;  %6531 = vmatprep.mubr.f32.mxu0 %v16042_v31  ;;  %v6645_v37 = vpop.permute.xlu0 %6644  ;;  %v6641_v61 = vpop.permute.xlu1 %6640 }
 0x439   : > { %6545 = vmatpush1.msra.mxu1 %v6297_v0  ;;  %v6659_v44 = vsel %vm935_vm6, %v6643_v57, %v6645_v37  ;;  %v6658_v55 = vsel %vm935_vm6, %v6641_v61, %v6643_v57 }
 0x43a   : > { %6680 = vmatprep.subr.mxu0 %v6659_v44 }
 0x43b   : > { %13090 = vmatmul.mubr.msk.f32.gmra.mrb[6].mxu1 %vm4173_vm10, %v13086_v4  ;;  %13091 = vmatmul.mubr.msk.f32.vlgmr.msra.gmra.mrb[8].mxu0 %vm4173_vm10, %v13085_v13 }
 0x43c   : > { %6537 = vmatprep.mubr.f32.mxu0 %v16042_v31  ;;  %6608 = vmatprep.mubr.f32.mxu1 %v16042_v31  ;;  %v6647_v28 = vpop.permute.xlu0 %6646  ;;  %v6649_v11 = vpop.permute.xlu1 %6648 }
 0x43d   : > { %6681 = vmatpush1.msra.mxu0 %v6658_v55  ;;  %v6661_v26 = vsel %vm935_vm6, %v6647_v28, %v6649_v11  ;;  %v6660_v43 = vsel %vm935_vm6, %v6645_v37, %v6647_v28 }
 0x43e   : > { %6757 = vmatprep.subr.mxu1 %v6661_v26 }
 0x43f   : > { %13092 = vmatmul.mubr.msk.f32.gmra.mrb[10].mxu0 %vm4173_vm10, %v13086_v4  ;;  %13093 = vmatmul.mubr.msk.f32.vlgmr.msra.gmra.mrb[8].mxu1 %vm4173_vm10, %v13085_v13 }
 0x440   : > { %6614 = vmatprep.mubr.f32.mxu1 %v16042_v31  ;;  %6744 = vmatprep.mubr.f32.mxu0 %v16042_v31  ;;  %v7010_v53 = vpop.permute.xlu0 %7009  ;;  %v6653_v58 = vpop.permute.xlu1 %6652 }
 0x441   : > { %6758 = vmatpush1.msra.mxu1 %v6660_v43 }
 0x443   : > { %13094 = vmatmul.mubr.msk.f32.gmra.mrb[10].mxu1 %vm4173_vm10, %v13086_v4  ;;  %13097 = vmatmul.mubr.msk.f32.vlgmr.msra.gmra.mrb[4].mxu0 %vm4173_vm10, %v13095_v25 }
 0x444   : > { %6750 = vmatprep.mubr.f32.mxu0 %v16042_v31  ;;  %6821 = vmatprep.mubr.f32.mxu1 %v16042_v31  ;;  %v6651_v41 = vpop.permute.xlu0 %6650  ;;  %v6657_v59 = vpop.permute.xlu1 %6656 }
 0x445   : > { %v6663_v34 = vsel %vm935_vm6, %v6651_v41, %v6653_v58  ;;  %v6662_v15 = vsel %vm935_vm6, %v6649_v11, %v6651_v41 }
 0x446   : > { %6834 = vmatprep.subr.mxu0 %v6663_v34 }
 0x447   : > { %13098 = vmatmul.mubr.msk.f32.gmra.mrb[6].mxu0 %vm4173_vm10, %v13096_v50  ;;  %13099 = vmatmul.mubr.msk.f32.vlgmr.msra.gmra.mrb[4].mxu1 %vm4173_vm10, %v13095_v25 }
 0x448   : > { %6827 = vmatprep.mubr.f32.mxu1 %v16042_v31  ;;  %6835 = vmatpush1.msra.mxu0 %v6662_v15  ;;  %v6655_v62 = vpop.permute.xlu0 %6654  ;;  %v7012_v22 = vpop.permute.xlu1 %7011 }
 0x449   : > { %6898 = vmatprep.mubr.f32.mxu0 %v16042_v31  ;;  %v6665_v63 = vsel %vm935_vm6, %v6655_v62, %v6657_v59  ;;  %v7026_v9 = vsel %vm1003_vm7, %v7010_v53, %v7012_v22  ;;  %v6664_v19 = vsel %vm935_vm6, %v6653_v58, %v6655_v62 }
 0x44a   : > { %6911 = vmatprep.subr.mxu1 %v6665_v63  ;;  %7047 = vmatprep.subr.mxu0 %v7026_v9 }
 0x44b   : > { %13100 = vmatmul.mubr.msk.f32.gmra.mrb[6].mxu1 %vm4173_vm10, %v13096_v50  ;;  %13101 = vmatmul.mubr.msk.f32.vlgmr.msra.gmra.mrb[8].mxu0 %vm4173_vm10, %v13095_v25 }
 0x44c   : > { %6904 = vmatprep.mubr.f32.mxu0 %v16042_v31  ;;  %6912 = vmatpush1.msra.mxu1 %v6664_v19  ;;  %v7008_v3 = vpop.permute.xlu0 %7007 }
 0x44d   : > { %6975 = vmatprep.mubr.f32.mxu1 %v16042_v31  ;;  %v7025_v18 = vsel %vm1003_vm7, %v7008_v3, %v7010_v53  ;;  %v7014_v38 = vpop.permute.xlu1 %7013 }
 0x44e   : > { %7048 = vmatpush1.msra.mxu0 %v7025_v18  ;;  %v7027_v23 = vsel %vm1003_vm7, %v7012_v22, %v7014_v38 }
 0x44f   : > { %13102 = vmatmul.mubr.msk.f32.gmra.mrb[10].mxu0 %vm4173_vm10, %v13096_v50  ;;  %13103 = vmatmul.mubr.msk.f32.vlgmr.msra.gmra.mrb[8].mxu1 %vm4173_vm10, %v13095_v25 }
 0x450   : > { %6981 = vmatprep.mubr.f32.mxu1 %v16042_v31  ;;  %7111 = vmatprep.mubr.f32.mxu0 %v16042_v31 }
 0x452   : > { %v7016_v27 = vpop.permute.xlu0 %7015 }
 0x453   : > { %13104 = vmatmul.mubr.msk.f32.gmra.mrb[10].mxu1 %vm4173_vm10, %v13096_v50  ;;  %13107 = vmatmul.mubr.msk.f32.vlgmr.msra.gmra.mrb[4].mxu0 %vm4173_vm10, %v13105_v46  ;;  %v7018_v45 = vpop.permute.xlu1 %7017  ;;  %v7028_v29 = vsel %vm1003_vm7, %v7014_v38, %v7016_v27 }
 0x454   : > { %7124 = vmatprep.subr.mxu1 %v7028_v29  ;;  %7117 = vmatprep.mubr.f32.mxu0 %v16042_v31  ;;  %v7029_v6 = vsel %vm1003_vm7, %v7016_v27, %v7018_v45 }
 0x455   : > { %7125 = vmatpush1.msra.mxu1 %v7027_v23  ;;  %7188 = vmatprep.mubr.f32.mxu1 %v16042_v31 }
 0x456   : > { %v7020_v49 = vpop.permute.xlu0 %7019 }
 0x457   : > { %13108 = vmatmul.mubr.msk.f32.gmra.mrb[6].mxu0 %vm4173_vm10, %v13106_v30  ;;  %13109 = vmatmul.mubr.msk.f32.vlgmr.msra.gmra.mrb[4].mxu1 %vm4173_vm10, %v13105_v46  ;;  %v7030_v56 = vsel %vm1003_vm7, %v7018_v45, %v7020_v49  ;;  %v7022_v60 = vpop.permute.xlu1 %7021 }
 0x458   : > { %7201 = vmatprep.subr.mxu0 %v7030_v56  ;;  %7194 = vmatprep.mubr.f32.mxu1 %v16042_v31  ;;  %v7031_v32 = vsel %vm1003_vm7, %v7020_v49, %v7022_v60 }
 0x459   : > { %7202 = vmatpush1.msra.mxu0 %v7029_v6  ;;  %7265 = vmatprep.mubr.f32.mxu0 %v16042_v31 }
 0x45a   : > { %v7024_v7 = vpop.permute.xlu0 %7023 }
 0x45b   : > { %13110 = vmatmul.mubr.msk.f32.gmra.mrb[6].mxu1 %vm4173_vm10, %v13106_v30  ;;  %13111 = vmatmul.mubr.msk.f32.vlgmr.msra.gmra.mrb[8].mxu0 %vm4173_vm10, %v13105_v46  ;;  %v7032_v48 = vsel %vm1003_vm7, %v7022_v60, %v7024_v7 }
 0x45c   : > { %7278 = vmatprep.subr.mxu1 %v7032_v48  ;;  %7271 = vmatprep.mubr.f32.mxu0 %v16042_v31 }
 0x45d   : > { %7279 = vmatpush1.msra.mxu1 %v7031_v32  ;;  %7342 = vmatprep.mubr.f32.mxu1 %v16042_v31 }
 0x45f   : > { %13112 = vmatmul.mubr.msk.f32.gmra.mrb[10].mxu0 %vm4173_vm10, %v13106_v30  ;;  %13113 = vmatmul.mubr.msk.f32.vlgmr.msra.gmra.mrb[8].mxu1 %vm4173_vm10, %v13105_v46 }
 0x460   : > { %7348 = vmatprep.mubr.f32.mxu1 %v16042_v31  ;;  %7637 = vmatprep.mubr.f32.mxu0 %v16042_v31 }
 0x463   : > { %13114 = vmatmul.mubr.msk.f32.gmra.mrb[10].mxu1 %vm4173_vm10, %v13106_v30 }
 0x464   : > { %7726 = vmatprep.mubr.f32.mxu1 %v16042_v31 }
 0x468   : > { %v7376_v10 = vpop.permute.xlu1 %7375 }
 0x46b   : > { %v16221_v39 = vpop.permute.xlu0 %7380 }
 0x526   : > { %v7113_v8 = vpop.f32.mrb[4].mxu0 }
 0x527   : > { %v7383_v2 = vadd.f32 %v7376_v10, %v7113_v8  ;;  %v7115_v40 = vpop.f32.mrb[5].mxu0 }
 0x528   : > { %v7384_v35 = vadd.f32 %v7376_v10, %v7115_v40 }
 0x529   : > { %v7399_v1 = vmax.f32 %v7383_v2, 0.0 }
 0x52a   : > { %v7400_v20 = vmax.f32 %v7384_v35, 0.0  ;;  %v7119_v51 = vpop.f32.mrb[6].mxu0  ;;  %v7190_v14 = vpop.f32.mrb[4].mxu1 }
 0x52b   : > { %7415 = vst [vmem:[#allocation2] sm:$0xff] %v7399_v1  ;;  %v7391_v12 = vadd.f32 %v16221_v39, %v7119_v51  ;;  %v7385_v42 = vadd.f32 %v7376_v10, %v7190_v14  ;;  %v7121_v24 = vpop.f32.mrb[7].mxu0  ;;  %v7192_v57 = vpop.f32.mrb[5].mxu1 }
 0x52c   : > { %7416 = vst [vmem:[#allocation2 + $0x8] sm:$0xff] %v7400_v20  ;;  %v7392_v17 = vadd.f32 %v16221_v39, %v7121_v24  ;;  %v7386_v5 = vadd.f32 %v7376_v10, %v7192_v57 }
 0x52d   : > { %v7407_v33 = vmax.f32 %v7391_v12, 0.0  ;;  %v7401_v13 = vmax.f32 %v7385_v42, 0.0 }
 0x52e   : > { %v7408_v54 = vmax.f32 %v7392_v17, 0.0  ;;  %v7402_v16 = vmax.f32 %v7386_v5, 0.0  ;;  %v7196_v21 = vpop.f32.mrb[6].mxu1  ;;  %v7267_v52 = vpop.f32.mrb[8].mxu0 }
 0x52f   : > { %7417 = vst [vmem:[#allocation2 + $0x10] sm:$0xff] %v7401_v13  ;;  %v7393_v4 = vadd.f32 %v16221_v39, %v7196_v21  ;;  %v7387_v47 = vadd.f32 %v7376_v10, %v7267_v52  ;;  %v7198_v36 = vpop.f32.mrb[7].mxu1  ;;  %v7269_v0 = vpop.f32.mrb[9].mxu0  ;;  %v16226_v37 = vpack.i.bf16 %v7401_v13, %v7400_v20  ;;  %v16228_v61 = vpack.i.bf16 %v7407_v33, %v7399_v1 }
 0x530   : > { %7418 = vst [vmem:[#allocation2 + $0x18] sm:$0xff] %v7402_v16  ;;  %v7394_v44 = vadd.f32 %v16221_v39, %v7198_v36  ;;  %v7388_v55 = vadd.f32 %v7376_v10, %v7269_v0  ;;  %v16231_v28 = vpack.c.bf16 %v7408_v54, %v7400_v20  ;;  %v16233_v11 = vpack.c.bf16 %v7407_v33, %v7399_v1 }
 0x531   : > { %v7409_v26 = vmax.f32 %v7393_v4, 0.0  ;;  %v7403_v43 = vmax.f32 %v7387_v47, 0.0  ;;  %14187 = vrot.lane.b32.xlu1 %v16226_v37, %s14731_s21 }
 0x532   : > { %v7410_v53 = vmax.f32 %v7394_v44, 0.0  ;;  %v7404_v25 = vmax.f32 %v7388_v55, 0.0  ;;  %v7273_v58 = vpop.f32.mrb[10].mxu0  ;;  %v7344_v41 = vpop.f32.mrb[8].mxu1 }
 0x533   : > { %7419 = vst [vmem:[#allocation2 + $0x20] sm:$0xff] %v7403_v43  ;;  %v7395_v50 = vadd.f32 %v16221_v39, %v7273_v58  ;;  %v7389_v59 = vadd.f32 %v7376_v10, %v7344_v41  ;;  %v7275_v34 = vpop.f32.mrb[11].mxu0  ;;  %v7346_v15 = vpop.f32.mrb[9].mxu1  ;;  %v16238_v62 = vpack.i.bf16 %v7403_v43, %v7402_v16  ;;  %v16240_v22 = vpack.i.bf16 %v7409_v26, %v7408_v54 }
 0x534   : > { %7420 = vst [vmem:[#allocation2 + $0x28] sm:$0xff] %v7404_v25  ;;  %v7396_v63 = vadd.f32 %v16221_v39, %v7275_v34  ;;  %v7390_v9 = vadd.f32 %v7376_v10, %v7346_v15  ;;  %v16243_v19 = vpack.c.bf16 %v7410_v53, %v7402_v16  ;;  %v16245_v3 = vpack.c.bf16 %v7409_v26, %v7401_v13 }
 0x535   : > { %v7411_v18 = vmax.f32 %v7395_v50, 0.0  ;;  %v7405_v38 = vmax.f32 %v7389_v59, 0.0  ;;  %14197 = vrot.lane.b32.xlu0 %v16238_v62, %s14731_s21  ;;  %14192 = vrot.lane.b32.xlu1 %v16240_v22, %s14731_s21  ;;  %v16408_v59 = vld [vmem:[%s18628_s7 + $0x20] sm:$0xff] }
 0x536   : > { %v7412_v46 = vmax.f32 %v7396_v63, 0.0  ;;  %v7406_v27 = vmax.f32 %v7390_v9, 0.0  ;;  %v7350_v45 = vpop.f32.mrb[10].mxu1 }
 0x537   : > { %7421 = vst [vmem:[#allocation2 + $0x30] sm:$0xff] %v7405_v38  ;;  %v7397_v29 = vadd.f32 %v16221_v39, %v7350_v45  ;;  %v7352_v23 = vpop.f32.mrb[11].mxu1  ;;  %v16252_v30 = vpack.i.bf16 %v7411_v18, %v7410_v53  ;;  %v16254_v49 = vpack.i.bf16 %v7405_v38, %v7404_v25  ;;  %v16256_v56 = vpack.c.bf16 %v7411_v18, %v7403_v43 }
 0x538   : > { %7422 = vst [vmem:[#allocation2 + $0x38] sm:$0xff] %v7406_v27  ;;  %v7398_v6 = vadd.f32 %v16221_v39, %v7352_v23  ;;  %v16259_v60 = vpack.c.bf16 %v7412_v46, %v7404_v25  ;;  %v16266_v32 = vpack.i.bf16 %v16042_v31, %v7406_v27 }
 0x539   : > { %v7413_v7 = vmax.f32 %v7397_v29, 0.0  ;;  %14202 = vrot.lane.b32.xlu0 %v16252_v30, %s14731_s21  ;;  %14207 = vrot.lane.b32.xlu1 %v16228_v61, %s14731_s21  ;;  %v13116_v29 = vld [vmem:[%s18628_s7 + $0x28] sm:$0xff] }
 0x53a   : > { %v7414_v48 = vmax.f32 %v7398_v6, 0.0 }
 0x53b   : > { %v16268_v10 = vpack.i.bf16 %v7413_v7, %v7412_v46  ;;  %v16270_v8 = vpack.c.bf16 %v7413_v7, %v7405_v38 }
 0x53c   : > { %v16272_v2 = vpack.c.bf16 %v7414_v48, %v7406_v27  ;;  %v16279_v40 = vpack.i.bf16 %v16042_v31, %v7414_v48 }
 0x53d   : > { %14212 = vrot.lane.b32.xlu0 %v16254_v49, %s14731_s21  ;;  %14217 = vrot.lane.b32.xlu1 %v16266_v32, %s14731_s21 }
 0x541   : > { %14222 = vrot.lane.b32.xlu0 %v16268_v10, %s14731_s21  ;;  %14227 = vrot.lane.b32.xlu1 %v16279_v40, %s14731_s21 }
 0x545   : > { %14232 = vrot.lane.b32.xlu0 %v16226_v37, %s14732_s22  ;;  %14237 = vrot.lane.b32.xlu1 %v16238_v62, %s14732_s22 }
 0x549   : > { %14242 = vrot.lane.b32.xlu0 %v16240_v22, %s14732_s22  ;;  %14247 = vrot.lane.b32.xlu1 %v16252_v30, %s14732_s22 }
 0x54d   : > { %14252 = vrot.lane.b32.xlu0 %v16228_v61, %s14732_s22  ;;  %14257 = vrot.lane.b32.xlu1 %v16254_v49, %s14732_s22 }
 0x551   : > { %14262 = vrot.lane.b32.xlu0 %v16266_v32, %s14732_s22  ;;  %14267 = vrot.lane.b32.xlu1 %v16268_v10, %s14732_s22 }
 0x555   : > { %14272 = vrot.lane.b32.xlu0 %v16279_v40, %s14732_s22  ;;  %14277 = vrot.lane.b32.xlu1 %v16226_v37, %s14733_s23 }
 0x559   : > { %14282 = vrot.lane.b32.xlu0 %v16238_v62, %s14733_s23  ;;  %14287 = vrot.lane.b32.xlu1 %v16240_v22, %s14733_s23 }
 0x55d   : > { %14292 = vrot.lane.b32.xlu0 %v16252_v30, %s14733_s23  ;;  %14297 = vrot.lane.b32.xlu1 %v16228_v61, %s14733_s23 }
 0x561   : > { %14302 = vrot.lane.b32.xlu0 %v16254_v49, %s14733_s23  ;;  %14307 = vrot.lane.b32.xlu1 %v16266_v32, %s14733_s23 }
 0x565   : > { %14312 = vrot.lane.b32.xlu0 %v16268_v10, %s14733_s23  ;;  %14317 = vrot.lane.b32.xlu1 %v16279_v40, %s14733_s23 }
 0x569   : > { %14322 = vrot.lane.b32.xlu0 %v16226_v37, %s14734_s24  ;;  %14327 = vrot.lane.b32.xlu1 %v16238_v62, %s14734_s24 }
 0x56d   : > { %14332 = vrot.lane.b32.xlu0 %v16240_v22, %s14734_s24  ;;  %14337 = vrot.lane.b32.xlu1 %v16252_v30, %s14734_s24 }
 0x571   : > { %14342 = vrot.lane.b32.xlu0 %v16228_v61, %s14734_s24  ;;  %14347 = vrot.lane.b32.xlu1 %v16254_v49, %s14734_s24 }
 0x575   : > { %14352 = vrot.lane.b32.xlu0 %v16266_v32, %s14734_s24  ;;  %14357 = vrot.lane.b32.xlu1 %v16268_v10, %s14734_s24 }
 0x579   : > { %14362 = vrot.lane.b32.xlu0 %v16279_v40, %s14734_s24  ;;  %14367 = vrot.lane.b32.xlu1 %v16226_v37, %s14735_s25 }
 0x57d   : > { %14372 = vrot.lane.b32.xlu0 %v16238_v62, %s14735_s25  ;;  %14377 = vrot.lane.b32.xlu1 %v16240_v22, %s14735_s25 }
 0x581   : > { %14382 = vrot.lane.b32.xlu0 %v16252_v30, %s14735_s25  ;;  %14387 = vrot.lane.b32.xlu1 %v16228_v61, %s14735_s25 }
 0x585   : > { %14392 = vrot.lane.b32.xlu0 %v16254_v49, %s14735_s25  ;;  %14397 = vrot.lane.b32.xlu1 %v16266_v32, %s14735_s25 }
 0x589   : > { %14402 = vrot.lane.b32.xlu0 %v16268_v10, %s14735_s25  ;;  %14407 = vrot.lane.b32.xlu1 %v16279_v40, %s14735_s25 }
 0x58d   : > { %14412 = vrot.lane.b32.xlu0 %v16226_v37, %s14736_s26  ;;  %14417 = vrot.lane.b32.xlu1 %v16238_v62, %s14736_s26 }
 0x591   : > { %14422 = vrot.lane.b32.xlu0 %v16240_v22, %s14736_s26  ;;  %14427 = vrot.lane.b32.xlu1 %v16252_v30, %s14736_s26 }
 0x595   : > { %14432 = vrot.lane.b32.xlu0 %v16228_v61, %s14736_s26  ;;  %14437 = vrot.lane.b32.xlu1 %v16254_v49, %s14736_s26 }
 0x599   : > { %14442 = vrot.lane.b32.xlu0 %v16266_v32, %s14736_s26  ;;  %14447 = vrot.lane.b32.xlu1 %v16268_v10, %s14736_s26 }
 0x59d   : > { %14452 = vrot.lane.b32.xlu0 %v16279_v40, %s14736_s26  ;;  %14457 = vrot.lane.b32.xlu1 %v16226_v37, %s14737_s27 }
 0x5a1   : > { %14462 = vrot.lane.b32.xlu0 %v16238_v62, %s14737_s27  ;;  %14467 = vrot.lane.b32.xlu1 %v16240_v22, %s14737_s27 }
 0x5a3   : > { %v14188_v35 = vpop.permute.xlu1 %14187 }
 0x5a4   : > { %v14190_v39 = vunpack.i.h.bf16 %v14188_v35  ;;  %v14189_v1 = vunpack.i.l.bf16 %v14188_v35 }
 0x5a5   : > { %14472 = vrot.lane.b32.xlu0 %v16252_v30, %s14737_s27  ;;  %14477 = vrot.lane.b32.xlu1 %v16228_v61, %s14737_s27 }
 0x5a6   : > { %v7529_v57 = vsel %vm527_vm0, %v14189_v1, %v14190_v39 }
 0x5a7   : > { %v14198_v20 = vpop.permute.xlu0 %14197  ;;  %v14193_v51 = vpop.permute.xlu1 %14192 }
 0x5a8   : > { %v14195_v14 = vunpack.i.h.bf16 %v14193_v51  ;;  %v14194_v12 = vunpack.i.l.bf16 %v14193_v51  ;;  %v14200_v42 = vunpack.i.h.bf16 %v14198_v20  ;;  %v14199_v24 = vunpack.i.l.bf16 %v14198_v20  ;;  %v13117_v20 = vld [vmem:[%s18628_s7 + $0x30] sm:$0xff] }
 0x5a9   : > { %14482 = vrot.lane.b32.xlu0 %v16254_v49, %s14737_s27  ;;  %14487 = vrot.lane.b32.xlu1 %v16266_v32, %s14737_s27 }
 0x5aa   : > { %v7537_v17 = vsel %vm527_vm0, %v14194_v12, %v14195_v14  ;;  %v7530_v4 = vsel %vm527_vm0, %v14190_v39, %v14199_v24  ;;  %v7531_v47 = vsel %vm527_vm0, %v14199_v24, %v14200_v42 }
 0x5ab   : > { %v14203_v5 = vpop.permute.xlu0 %14202  ;;  %v14208_v33 = vpop.permute.xlu1 %14207  ;;  %v13294_v13 = vpack.c.bf16 %v7537_v17, %v7529_v57 }
 0x5ac   : > { %v14205_v54 = vunpack.i.h.bf16 %v14203_v5  ;;  %v14204_v16 = vunpack.i.l.bf16 %v14203_v5  ;;  %v14210_v21 = vunpack.i.h.bf16 %v14208_v33  ;;  %v14209_v52 = vunpack.i.l.bf16 %v14208_v33  ;;  %v16509_v5 = vld [vmem:[#allocation2 + $0x40] sm:$0xff] }
 0x5ad   : > { %13295 = vmatprep.subr.bf16.mxu0 %v13294_v13  ;;  %14492 = vrot.lane.b32.xlu0 %v16268_v10, %s14737_s27 }
 0x5ae   : > { %v7538_v36 = vsel %vm527_vm0, %v14195_v14, %v14204_v16  ;;  %v7536_v0 = vsel %vm527_vm0, %v14210_v21, %v14194_v12  ;;  %v7528_v44 = vsel %vm527_vm0, %v14209_v52, %v14189_v1  ;;  %14497 = vrot.lane.b32.xlu1 %v16279_v40, %s14737_s27  ;;  %v7539_v55 = vsel %vm527_vm0, %v14204_v16, %v14205_v54 }
 0x5af   : > { %v14213_v26 = vpop.permute.xlu0 %14212  ;;  %v14218_v43 = vpop.permute.xlu1 %14217  ;;  %v13298_v53 = vpack.c.bf16 %v7539_v55, %v7531_v47  ;;  %v13296_v25 = vpack.c.bf16 %v7536_v0, %v7528_v44  ;;  %v13300_v58 = vpack.c.bf16 %v7538_v36, %v7530_v4  ;;  %v7448_v36 = vld [vmem:[%s18628_s7 + $0x8] sm:$0xff] }
 0x5b0   : > { %v14215_v41 = vunpack.i.h.bf16 %v14213_v26  ;;  %v14214_v50 = vunpack.i.l.bf16 %v14213_v26  ;;  %v14220_v34 = vunpack.i.h.bf16 %v14218_v43  ;;  %v14219_v15 = vunpack.i.l.bf16 %v14218_v43 }
 0x5b1   : > { %13299 = vmatprep.subr.bf16.mxu1 %v13298_v53  ;;  %14502 = vrot.lane.b32.xlu0 %v16226_v37, %s14738_s28  ;;  %v7450_v53 = vld [vmem:[%s18628_s7 + $0x18] sm:$0xff] }
 0x5b2   : > { %14507 = vrot.lane.b32.xlu1 %v16238_v62, %s14738_s28  ;;  %13297 = vmatpush1.bf16.msra.mxu0 %v13296_v25  ;;  %v7533_v37 = vsel %vm527_vm0, %v14214_v50, %v14215_v41  ;;  %v7534_v48 = vsel %vm527_vm0, %v14215_v41, %v14219_v15  ;;  %v7535_v35 = vsel %vm527_vm0, %v14219_v15, %v14220_v34 }
 0x5b3   : > { %13301 = vmatpush1.bf16.msra.mxu1 %v13300_v58  ;;  %v14223_v63 = vpop.permute.xlu0 %14222  ;;  %v14228_v9 = vpop.permute.xlu1 %14227 }
 0x5b4   : > { %v14225_v18 = vunpack.i.h.bf16 %v14223_v63  ;;  %v14224_v38 = vunpack.i.l.bf16 %v14223_v63  ;;  %v14230_v46 = vunpack.i.h.bf16 %v14228_v9  ;;  %v14229_v27 = vunpack.i.l.bf16 %v14228_v9 }
 0x5b5   : > { %13119 = vmatmul.mubr.msk.f32.vlgmr.msra.gmra.mrb[12].mxu0 %vm7560_vm11, %v16408_v59  ;;  %14512 = vrot.lane.b32.xlu0 %v16240_v22, %s14738_s28  ;;  %v7532_v22 = vsel %vm527_vm0, %v14200_v42, %v14214_v50 }
 0x5b6   : > { %v7540_v62 = vsel %vm527_vm0, %v14205_v54, %v14224_v38  ;;  %v7542_v45 = vsel %vm527_vm0, %v14225_v18, %v14229_v27  ;;  %13123 = vmatmul.mubr.msk.f32.vlgmr.msra.gmra.mrb[12].mxu1 %vm7560_vm11, %v16408_v59  ;;  %14517 = vrot.lane.b32.xlu1 %v16252_v30, %s14738_s28  ;;  %v7541_v23 = vsel %vm527_vm0, %v14224_v38, %v14225_v18 }
 0x5b7   : > { %7643 = vmatprep.mubr.f32.mxu0 %v16042_v31  ;;  %7732 = vmatprep.mubr.f32.mxu1 %v16042_v31  ;;  %v13302_v6 = vpack.c.bf16 %v7541_v23, %v7533_v37  ;;  %v7543_v7 = vsel %vm527_vm0, %v14229_v27, %v14230_v46  ;;  %v13304_v30 = vpack.c.bf16 %v7540_v62, %v7532_v22 }
 0x5b8   : > { %v13306_v39 = vpack.c.bf16 %v7543_v7, %v7535_v35  ;;  %v13308_v1 = vpack.c.bf16 %v7542_v45, %v7534_v48 }
 0x5b9   : > { %13120 = vmatmul.mubr.msk.f32.gmra.mrb[14].mxu0 %vm7560_vm11, %v13116_v29  ;;  %14522 = vrot.lane.b32.xlu0 %v16228_v61, %s14738_s28  ;;  %v13118_v61 = vld [vmem:[%s18628_s7 + $0x38] sm:$0xff] }
 0x5ba   : > { %13124 = vmatmul.mubr.msk.f32.gmra.mrb[14].mxu1 %vm7560_vm11, %v13116_v29  ;;  %14527 = vrot.lane.b32.xlu1 %v16254_v49, %s14738_s28  ;;  %v11610_v49 = vld [vmem:[%s18629_s8 + $0x10] sm:$0xff] }
 0x5bb   : > { %13303 = vmatprep.subr.bf16.mxu0 %v13302_v6  ;;  %13307 = vmatprep.subr.bf16.mxu1 %v13306_v39 }
 0x5bc   : > { %13305 = vmatpush1.bf16.msra.mxu0 %v13304_v30  ;;  %13309 = vmatpush1.bf16.msra.mxu1 %v13308_v1 }
 0x5bd   : > { %7649 = vmatprep.mubr.f32.mxu0 %v16042_v31  ;;  %13311 = vmatprep.subr.bf16.mxu0 %v16231_v28  ;;  %v11608_v28 = vld [vmem:[%s18629_s8] sm:$0xff] }
 0x5be   : > { %13315 = vmatprep.subr.bf16.mxu1 %v16243_v19  ;;  %13121 = vmatmul.mubr.msk.f32.gmra.mrb[16].mxu0 %vm7560_vm11, %v13117_v20  ;;  %v11609_v19 = vld [vmem:[%s18629_s8 + $0x8] sm:$0xff] }
 0x5bf   : > { %7738 = vmatprep.mubr.f32.mxu1 %v16042_v31  ;;  %14532 = vrot.lane.b32.xlu0 %v16266_v32, %s14738_s28  ;;  %v16470_v32 = vpop.permute.xlu0 %14232 }
 0x5c0   : > { %13125 = vmatmul.mubr.msk.f32.gmra.mrb[16].mxu1 %vm7560_vm11, %v13117_v20  ;;  %14537 = vrot.lane.b32.xlu1 %v16268_v10, %s14738_s28  ;;  %v16475_v10 = vpop.permute.xlu1 %14237  ;;  %v14235_v12 = vunpack.i.h.bf16 %v16470_v32  ;;  %v14234_v42 = vunpack.i.l.bf16 %v16470_v32 }
 0x5c1   : > { %7655 = vmatprep.mubr.f32.mxu0 %v16042_v31  ;;  %7744 = vmatprep.mubr.f32.mxu1 %v16042_v31  ;;  %v14240_v57 = vunpack.i.h.bf16 %v16475_v10  ;;  %v14239_v17 = vunpack.i.l.bf16 %v16475_v10 }
 0x5c2   : > { %13122 = vmatmul.mubr.msk.f32.gmra.mrb[18].mxu0 %vm7560_vm11, %v13118_v61  ;;  %v8339_v54 = vsel %vm595_vm1, %v14234_v42, %v14235_v12 }
 0x5c3   : > { %14542 = vrot.lane.b32.xlu0 %v16279_v40, %s14738_s28  ;;  %7815 = vmatprep.mubr.f32.mxu0 %v16042_v31  ;;  %v11611_v40 = vld [vmem:[%s18629_s8 + $0x18] sm:$0xff]  ;;  %v8341_v52 = vsel %vm595_vm1, %v14239_v17, %v14240_v57  ;;  %v8340_v46 = vsel %vm595_vm1, %v14235_v12, %v14239_v17 }
 0x5c4   : > { %13126 = vmatmul.mubr.msk.f32.gmra.mrb[18].mxu1 %vm7560_vm11, %v13118_v61  ;;  %11614 = vperm.xlu1 %14185, %v11608_v28  }
 0x5c5   : > { %7904 = vmatprep.mubr.f32.mxu1 %v16042_v31 }
 0x5c6   : > { %13127 = vmatmul.mubr.msk.f32.vlgmr.msra.gmra.mrb[20].mxu0 %vm7560_vm11, %v16408_v59 }
 0x5c7   : > { %13313 = vmatpush1.bf16.msra.mxu0 %v16233_v11  ;;  %11619 = vperm.xlu0 %14184, %v11609_v19   ;;  %v16488_v11 = vpop.permute.xlu0 %14242 }
 0x5c8   : > { %11624 = vperm.xlu1 %14185, %v11610_v49   ;;  %13131 = vmatmul.mubr.msk.f32.vlgmr.msra.gmra.mrb[20].mxu1 %vm7560_vm11, %v16408_v59 }
 0x5c9   : > { %13317 = vmatpush1.bf16.msra.mxu1 %v16245_v3  ;;  %13319 = vmatprep.subr.bf16.mxu0 %v16259_v60  ;;  %v16493_v3 = vpop.permute.xlu1 %14247  ;;  %v14245_v60 = vunpack.i.h.bf16 %v16488_v11 }
 0x5ca   : > { %13323 = vmatprep.subr.bf16.mxu1 %v16272_v2  ;;  %7821 = vmatprep.mubr.f32.mxu0 %v16042_v31  ;;  %v14244_v2 = vunpack.i.l.bf16 %v16488_v11  ;;  %v14250_v51 = vunpack.i.h.bf16 %v16493_v3  ;;  %v14249_v14 = vunpack.i.l.bf16 %v16493_v3  ;;  %v16613_v11 = vld [vmem:[%s18628_s7 + $0x40] sm:$0xff] }
 0x5cb   : > { %13128 = vmatmul.mubr.msk.f32.gmra.mrb[22].mxu0 %vm7560_vm11, %v13116_v29  ;;  %7910 = vmatprep.mubr.f32.mxu1 %v16042_v31  ;;  %v14253_v24 = vpop.permute.xlu0 %14252 }
 0x5cc   : > { %11629 = vperm.xlu0 %14184, %v11611_v40   ;;  %13132 = vmatmul.mubr.msk.f32.gmra.mrb[22].mxu1 %vm7560_vm11, %v13116_v29  ;;  %v8347_v33 = vsel %vm595_vm1, %v14244_v2, %v14245_v60  ;;  %v8349_v13 = vsel %vm595_vm1, %v14249_v14, %v14250_v51  ;;  %v14255_v44 = vunpack.i.h.bf16 %v14253_v24  ;;  %v14254_v55 = vunpack.i.l.bf16 %v14253_v24 }
 0x5cd   : > { %7827 = vmatprep.mubr.f32.mxu0 %v16042_v31  ;;  %7916 = vmatprep.mubr.f32.mxu1 %v16042_v31  ;;  %v16521_v16 = vpop.permute.xlu1 %14257  ;;  %v13326_v21 = vpack.c.bf16 %v8347_v33, %v8339_v54  ;;  %v13330_v47 = vpack.c.bf16 %v8349_v13, %v8341_v52  ;;  %v8348_v9 = vsel %vm595_vm1, %v14245_v60, %v14249_v14  ;;  %v13152_v33 = vld [vmem:[%s18628_s7 + $0x48] sm:$0xff]  ;;  %v13153_v13 = vld [vmem:[%s18628_s7 + $0x50] sm:$0xff] }
 0x5ce   : > { %v14260_v41 = vunpack.i.h.bf16 %v16521_v16  ;;  %v14259_v50 = vunpack.i.l.bf16 %v16521_v16  ;;  %v8346_v59 = vsel %vm595_vm1, %v14255_v44, %v14244_v2  ;;  %v8338_v34 = vsel %vm595_vm1, %v14254_v55, %v14234_v42 }
 0x5cf   : > { %13129 = vmatmul.mubr.msk.f32.gmra.mrb[24].mxu0 %vm7560_vm11, %v13117_v20  ;;  %v16527_v4 = vpop.permute.xlu0 %14262  ;;  %v13328_v37 = vpack.c.bf16 %v8346_v59, %v8338_v34  ;;  %v13332_v45 = vpack.c.bf16 %v8348_v9, %v8340_v46 }
 0x5d0   : > { %13133 = vmatmul.mubr.msk.f32.gmra.mrb[24].mxu1 %vm7560_vm11, %v13117_v20  ;;  %7833 = vmatprep.mubr.f32.mxu0 %v16042_v31  ;;  %v14265_v15 = vunpack.i.h.bf16 %v16527_v4  ;;  %v14264_v63 = vunpack.i.l.bf16 %v16527_v4  ;;  %v8343_v62 = vsel %vm595_vm1, %v14259_v50, %v14260_v41  ;;  %v8342_v60 = vsel %vm595_vm1, %v14240_v57, %v14259_v50 }
 0x5d1   : > { %7922 = vmatprep.mubr.f32.mxu1 %v16042_v31  ;;  %v7447_v31 = vld [vmem:[%s18628_s7] sm:$0xff]  ;;  %v16543_v0 = vpop.permute.xlu1 %14267 }
 0x5d2   : > { %v14270_v26 = vunpack.i.h.bf16 %v16543_v0  ;;  %v14269_v43 = vunpack.i.l.bf16 %v16543_v0  ;;  %v8345_v23 = vsel %vm595_vm1, %v14264_v63, %v14265_v15 }
 0x5d3   : > { %13130 = vmatmul.mubr.msk.f32.gmra.mrb[26].mxu0 %vm7560_vm11, %v13118_v61 }
 0x5d4   : > { %13134 = vmatmul.mubr.msk.f32.gmra.mrb[26].mxu1 %vm7560_vm11, %v13118_v61  ;;  %8005 = vmatprep.mubr.f32.mxu0 %v16509_v5  ;;  %v8351_v18 = vsel %vm595_vm1, %v14269_v43, %v14270_v26  ;;  %v8350_v19 = vsel %vm595_vm1, %v14250_v51, %v14269_v43  ;;  %v8344_v51 = vsel %vm595_vm1, %v14260_v41, %v14264_v63 }
 0x5d5   : > { %8094 = vmatprep.mubr.f32.mxu1 %v16509_v5  ;;  %v16573_v27 = vpop.permute.xlu1 %14277  ;;  %v13334_v29 = vpack.c.bf16 %v8351_v18, %v8343_v62  ;;  %v13336_v14 = vpack.c.bf16 %v8350_v19, %v8342_v60 }
 0x5d6   : > { %v14280_v20 = vunpack.i.h.bf16 %v16573_v27  ;;  %v14279_v61 = vunpack.i.l.bf16 %v16573_v27 }
 0x5d7   : > { %13135 = vmatmul.mubr.msk.f32.vlgmr.msra.gmra.mrb[12].mxu0 %vm7560_vm11, %v7447_v31 }
 0x5d8   : > { %13321 = vmatpush1.bf16.msra.mxu0 %v16256_v56  ;;  %13139 = vmatmul.mubr.msk.f32.vlgmr.msra.gmra.mrb[12].mxu1 %vm7560_vm11, %v7447_v31  ;;  %v7449_v56 = vld [vmem:[%s18628_s7 + $0x10] sm:$0xff]  ;;  %v8812_v12 = vsel %vm663_vm2, %v14279_v61, %v14280_v20 }
 0x5d9   : > { %13325 = vmatpush1.bf16.msra.mxu1 %v16270_v8  ;;  %13327 = vmatprep.subr.bf16.mxu0 %v13326_v21  ;;  %v16546_v8 = vpop.permute.xlu0 %14272  ;;  %v16584_v7 = vpop.permute.xlu1 %14287 }
 0x5da   : > { %13331 = vmatprep.subr.bf16.mxu1 %v13330_v47  ;;  %8011 = vmatprep.mubr.f32.mxu0 %v16509_v5  ;;  %v14275_v25 = vunpack.i.h.bf16 %v16546_v8  ;;  %v14274_v58 = vunpack.i.l.bf16 %v16546_v8  ;;  %v14290_v35 = vunpack.i.h.bf16 %v16584_v7  ;;  %v14289_v30 = vunpack.i.l.bf16 %v16584_v7 }
 0x5db   : > { %13136 = vmatmul.mubr.msk.f32.gmra.mrb[14].mxu0 %vm7560_vm11, %v7448_v36  ;;  %8100 = vmatprep.mubr.f32.mxu1 %v16509_v5 }
 0x5dc   : > { %13140 = vmatmul.mubr.msk.f32.gmra.mrb[14].mxu1 %vm7560_vm11, %v7448_v36  ;;  %8017 = vmatprep.mubr.f32.mxu0 %v16509_v5  ;;  %v8353_v38 = vsel %vm595_vm1, %v14274_v58, %v14275_v25  ;;  %v8352_v40 = vsel %vm595_vm1, %v14270_v26, %v14274_v58  ;;  %v8820_v3 = vsel %vm663_vm2, %v14289_v30, %v14290_v35 }
 0x5dd   : > { %8106 = vmatprep.mubr.f32.mxu1 %v16509_v5  ;;  %v16578_v22 = vpop.permute.xlu0 %14282  ;;  %v13338_v6 = vpack.c.bf16 %v8353_v38, %v8345_v23  ;;  %v14298_v28 = vpop.permute.xlu1 %14297  ;;  %v13340_v42 = vpack.c.bf16 %v8352_v40, %v8344_v51  ;;  %v13342_v10 = vpack.c.bf16 %v8820_v3, %v8812_v12  ;;  %v13173_v12 = vld [vmem:[%s18628_s7 + $0x70] sm:$0xff] }
 0x5de   : > { %v14285_v49 = vunpack.i.h.bf16 %v16578_v22  ;;  %v14284_v32 = vunpack.i.l.bf16 %v16578_v22  ;;  %v14300_v21 = vunpack.i.h.bf16 %v14298_v28  ;;  %v14299_v52 = vunpack.i.l.bf16 %v14298_v28  ;;  %v16727_v28 = vld [vmem:[%s18628_s7 + $0x60] sm:$0xff] }
 0x5df   : > { %13137 = vmatmul.mubr.msk.f32.gmra.mrb[16].mxu0 %vm7560_vm11, %v7449_v56 }
 0x5e0   : > { %13141 = vmatmul.mubr.msk.f32.gmra.mrb[16].mxu1 %vm7560_vm11, %v7449_v56  ;;  %8023 = vmatprep.mubr.f32.mxu0 %v16509_v5  ;;  %v8814_v57 = vsel %vm663_vm2, %v14284_v32, %v14285_v49  ;;  %v8811_v55 = vsel %vm663_vm2, %v14299_v52, %v14279_v61  ;;  %v8819_v26 = vsel %vm663_vm2, %v14300_v21, %v14289_v30 }
 0x5e1   : > { %8112 = vmatprep.mubr.f32.mxu1 %v16509_v5  ;;  %v16589_v48 = vpop.permute.xlu0 %14292  ;;  %v16636_v17 = vpop.permute.xlu1 %14307  ;;  %v8813_v50 = vsel %vm663_vm2, %v14280_v20, %v14284_v32  ;;  %v13344_v59 = vpack.c.bf16 %v8819_v26, %v8811_v55 }
 0x5e2   : > { %v14295_v39 = vunpack.i.h.bf16 %v16589_v48  ;;  %v14294_v1 = vunpack.i.l.bf16 %v16589_v48  ;;  %v14310_v43 = vunpack.i.h.bf16 %v16636_v17 }
 0x5e3   : > { %13138 = vmatmul.mubr.msk.f32.gmra.mrb[18].mxu0 %vm7560_vm11, %v7450_v53 }
 0x5e4   : > { %13142 = vmatmul.mubr.msk.f32.gmra.mrb[18].mxu1 %vm7560_vm11, %v7450_v53  ;;  %8183 = vmatprep.mubr.f32.mxu0 %v16509_v5  ;;  %v8822_v2 = vsel %vm663_vm2, %v14294_v1, %v14295_v39  ;;  %v8821_v25 = vsel %vm663_vm2, %v14290_v35, %v14294_v1 }
 0x5e5   : > { %8272 = vmatprep.mubr.f32.mxu1 %v16509_v5  ;;  %v16629_v24 = vpop.permute.xlu0 %14302  ;;  %v16654_v16 = vpop.permute.xlu1 %14317  ;;  %v13348_v63 = vpack.c.bf16 %v8821_v25, %v8813_v50 }
 0x5e6   : > { %v14319_v0 = vunpack.i.l.bf16 %v16654_v16  ;;  %v14305_v8 = vunpack.i.h.bf16 %v16629_v24  ;;  %v14304_v44 = vunpack.i.l.bf16 %v16629_v24 }
 0x5e7   : > { %13143 = vmatmul.mubr.msk.f32.vlgmr.msra.gmra.mrb[20].mxu0 %vm7560_vm11, %v7447_v31 }
 0x5e8   : > { %13329 = vmatpush1.bf16.msra.mxu0 %v13328_v37  ;;  %13147 = vmatmul.mubr.msk.f32.vlgmr.msra.gmra.mrb[20].mxu1 %vm7560_vm11, %v7447_v31  ;;  %v13346_v31 = vpack.c.bf16 %v8822_v2, %v8814_v57  ;;  %v8816_v15 = vsel %vm663_vm2, %v14304_v44, %v14305_v8 }
 0x5e9   : > { %13333 = vmatpush1.bf16.msra.mxu1 %v13332_v45  ;;  %13335 = vmatprep.subr.bf16.mxu0 %v13334_v29  ;;  %v16651_v54 = vpop.permute.xlu0 %14312  ;;  %v16691_v38 = vpop.permute.xlu1 %14327 }
 0x5ea   : > { %13339 = vmatprep.subr.bf16.mxu1 %v13338_v6  ;;  %8189 = vmatprep.mubr.f32.mxu0 %v16509_v5  ;;  %v14315_v4 = vunpack.i.h.bf16 %v16651_v54  ;;  %v14314_v47 = vunpack.i.l.bf16 %v16651_v54  ;;  %v14330_v1 = vunpack.i.h.bf16 %v16691_v38  ;;  %v14329_v20 = vunpack.i.l.bf16 %v16691_v38 }
 0x5eb   : > { %13144 = vmatmul.mubr.msk.f32.gmra.mrb[22].mxu0 %vm7560_vm11, %v7448_v36  ;;  %8278 = vmatprep.mubr.f32.mxu1 %v16509_v5 }
 0x5ec   : > { %13148 = vmatmul.mubr.msk.f32.gmra.mrb[22].mxu1 %vm7560_vm11, %v7448_v36  ;;  %8195 = vmatprep.mubr.f32.mxu0 %v16509_v5  ;;  %v13154_v36 = vld [vmem:[%s18628_s7 + $0x58] sm:$0xff]  ;;  %v8824_v58 = vsel %vm663_vm2, %v14314_v47, %v14315_v4  ;;  %v8823_v30 = vsel %vm663_vm2, %v14295_v39, %v14314_v47  ;;  %v8825_v61 = vsel %vm663_vm2, %v14315_v4, %v14319_v0 }
 0x5ed   : > { %8284 = vmatprep.mubr.f32.mxu1 %v16509_v5  ;;  %v16685_v34 = vpop.permute.xlu0 %14322  ;;  %v13350_v9 = vpack.c.bf16 %v8824_v58, %v8816_v15  ;;  %v16703_v37 = vpop.permute.xlu1 %14337  ;;  %v8815_v39 = vsel %vm663_vm2, %v14285_v49, %v14304_v44  ;;  %v9287_v49 = vsel %vm731_vm3, %v14329_v20, %v14330_v1 }
 0x5ee   : > { %v14340_v29 = vunpack.i.h.bf16 %v16703_v37  ;;  %v14339_v23 = vunpack.i.l.bf16 %v16703_v37  ;;  %v14325_v6 = vunpack.i.h.bf16 %v16685_v34  ;;  %v14324_v7 = vunpack.i.l.bf16 %v16685_v34 }
 0x5ef   : > { %13145 = vmatmul.mubr.msk.f32.gmra.mrb[24].mxu0 %vm7560_vm11, %v7449_v56  ;;  %v13352_v40 = vpack.c.bf16 %v8823_v30, %v8815_v39 }
 0x5f0   : > { %13149 = vmatmul.mubr.msk.f32.gmra.mrb[24].mxu1 %vm7560_vm11, %v7449_v56  ;;  %8201 = vmatprep.mubr.f32.mxu0 %v16509_v5  ;;  %v14320_v56 = vunpack.i.h.bf16 %v16654_v16  ;;  %v9295_v19 = vsel %vm731_vm3, %v14339_v23, %v14340_v29  ;;  %v9286_v44 = vsel %vm731_vm3, %v14325_v6, %v14329_v20 }
 0x5f1   : > { %8290 = vmatprep.mubr.f32.mxu1 %v16509_v5  ;;  %v16698_v27 = vpop.permute.xlu0 %14332  ;;  %v16743_v60 = vpop.permute.xlu1 %14347  ;;  %v13362_v51 = vpack.c.bf16 %v9295_v19, %v9287_v49 }
 0x5f2   : > { %v8826_v41 = vsel %vm663_vm2, %v14319_v0, %v14320_v56  ;;  %v14335_v62 = vunpack.i.h.bf16 %v16698_v27  ;;  %v14334_v45 = vunpack.i.l.bf16 %v16698_v27  ;;  %v14350_v16 = vunpack.i.h.bf16 %v16743_v60 }
 0x5f3   : > { %13146 = vmatmul.mubr.msk.f32.gmra.mrb[26].mxu0 %vm7560_vm11, %v7450_v53  ;;  %v14349_v21 = vunpack.i.l.bf16 %v16743_v60 }
 0x5f4   : > { %13150 = vmatmul.mubr.msk.f32.gmra.mrb[26].mxu1 %vm7560_vm11, %v7450_v53  ;;  %8446 = vmatprep.mubr.f32.mxu0 %v16509_v5  ;;  %v14309_v53 = vunpack.i.l.bf16 %v16636_v17  ;;  %v9293_v48 = vsel %vm731_vm3, %v14334_v45, %v14335_v62  ;;  %v9294_v56 = vsel %vm731_vm3, %v14335_v62, %v14339_v23 }
 0x5f5   : > { %8535 = vmatprep.mubr.f32.mxu1 %v16509_v5  ;;  %v14343_v35 = vpop.permute.xlu0 %14342 }
 0x5f6   : > { %v8818_v18 = vsel %vm663_vm2, %v14309_v53, %v14310_v43  ;;  %v8817_v32 = vsel %vm663_vm2, %v14305_v8, %v14309_v53  ;;  %v14344_v57 = vunpack.i.l.bf16 %v14343_v35  ;;  %v9289_v43 = vsel %vm731_vm3, %v14349_v21, %v14350_v16 }
 0x5f7   : > { %13155 = vmatmul.mubr.msk.f32.vlgmr.msra.gmra.mrb[12].mxu0 %vm7560_vm11, %v16613_v11  ;;  %v13354_v46 = vpack.c.bf16 %v8826_v41, %v8818_v18  ;;  %v13356_v3 = vpack.c.bf16 %v8825_v61, %v8817_v32  ;;  %v13364_v53 = vpack.c.bf16 %v9294_v56, %v9286_v44 }
 0x5f8   : > { %13337 = vmatpush1.bf16.msra.mxu0 %v13336_v14  ;;  %13159 = vmatmul.mubr.msk.f32.vlgmr.msra.gmra.mrb[12].mxu1 %vm7560_vm11, %v16613_v11  ;;  %v13172_v14 = vld [vmem:[%s18628_s7 + $0x68] sm:$0xff]  ;;  %v9284_v52 = vsel %vm731_vm3, %v14344_v57, %v14324_v7 }
 0x5f9   : > { %13341 = vmatpush1.bf16.msra.mxu1 %v13340_v42  ;;  %13343 = vmatprep.subr.bf16.mxu0 %v13342_v10  ;;  %v16750_v2 = vpop.permute.xlu0 %14352  ;;  %v16765_v42 = vpop.permute.xlu1 %14357  ;;  %v14345_v10 = vunpack.i.h.bf16 %v14343_v35  ;;  %v16841_v35 = vld [vmem:[%s18628_s7 + $0x80] sm:$0xff] }
 0x5fa   : > { %13347 = vmatprep.subr.bf16.mxu1 %v13346_v31  ;;  %8452 = vmatprep.mubr.f32.mxu0 %v16509_v5  ;;  %v14360_v17 = vunpack.i.h.bf16 %v16765_v42  ;;  %v14359_v31 = vunpack.i.l.bf16 %v16765_v42  ;;  %v14355_v47 = vunpack.i.h.bf16 %v16750_v2 }
 0x5fb   : > { %13156 = vmatmul.mubr.msk.f32.gmra.mrb[14].mxu0 %vm7560_vm11, %v13152_v33  ;;  %8541 = vmatprep.mubr.f32.mxu1 %v16509_v5  ;;  %v9292_v4 = vsel %vm731_vm3, %v14345_v10, %v14334_v45 }
 0x5fc   : > { %13160 = vmatmul.mubr.msk.f32.gmra.mrb[14].mxu1 %vm7560_vm11, %v13152_v33  ;;  %8458 = vmatprep.mubr.f32.mxu0 %v16509_v5  ;;  %v9297_v0 = vsel %vm731_vm3, %v14359_v31, %v14360_v17  ;;  %v13360_v55 = vpack.c.bf16 %v9292_v4, %v9284_v52  ;;  %v9296_v45 = vsel %vm731_vm3, %v14340_v29, %v14359_v31 }
 0x5fd   : > { %8547 = vmatprep.mubr.f32.mxu1 %v16509_v5  ;;  %v16768_v24 = vpop.permute.xlu0 %14362  ;;  %v16799_v26 = vpop.permute.xlu1 %14367  ;;  %v13366_v25 = vpack.c.bf16 %v9297_v0, %v9289_v43  ;;  %v9288_v29 = vsel %vm731_vm3, %v14330_v1, %v14349_v21 }
 0x5fe   : > { %v14364_v54 = vunpack.i.l.bf16 %v16768_v24  ;;  %v14369_v27 = vunpack.i.l.bf16 %v16799_v26  ;;  %v13368_v61 = vpack.c.bf16 %v9296_v45, %v9288_v29 }
 0x5ff   : > { %13157 = vmatmul.mubr.msk.f32.gmra.mrb[16].mxu0 %vm7560_vm11, %v13153_v13 }
 0x600   : > { %13161 = vmatmul.mubr.msk.f32.gmra.mrb[16].mxu1 %vm7560_vm11, %v13153_v13  ;;  %8464 = vmatprep.mubr.f32.mxu0 %v16509_v5 }
 0x601   : > { %8553 = vmatprep.mubr.f32.mxu1 %v16509_v5  ;;  %v16805_v41 = vpop.permute.xlu0 %14372 }
 0x602   : > { %v14375_v23 = vunpack.i.h.bf16 %v16805_v41 }
 0x603   : > { %13158 = vmatmul.mubr.msk.f32.gmra.mrb[18].mxu0 %vm7560_vm11, %v13154_v36 }
 0x604   : > { %13162 = vmatmul.mubr.msk.f32.gmra.mrb[18].mxu1 %vm7560_vm11, %v13154_v36  ;;  %8624 = vmatprep.mubr.f32.mxu0 %v16509_v5 }
 0x605   : > { %8713 = vmatprep.mubr.f32.mxu1 %v16509_v5  ;;  %v16817_v34 = vpop.permute.xlu0 %14382 }
 0x606   : > { %v14384_v18 = vunpack.i.l.bf16 %v16817_v34 }
 0x607   : > { %13163 = vmatmul.mubr.msk.f32.vlgmr.msra.gmra.mrb[20].mxu0 %vm7560_vm11, %v16613_v11 }
 0x608   : > { %13345 = vmatpush1.bf16.msra.mxu0 %v13344_v59  ;;  %13167 = vmatmul.mubr.msk.f32.vlgmr.msra.gmra.mrb[20].mxu1 %vm7560_vm11, %v16613_v11  ;;  %v9285_v11 = vsel %vm731_vm3, %v14324_v7, %v14325_v6  ;;  %v16812_v59 = vpop.permute.xlu1 %14377  ;;  %v14374_v6 = vunpack.i.l.bf16 %v16805_v41  ;;  %v9298_v7 = vsel %vm731_vm3, %v14360_v17, %v14364_v54 }
 0x609   : > { %13349 = vmatpush1.bf16.msra.mxu1 %v13348_v63  ;;  %13351 = vmatprep.subr.bf16.mxu0 %v13350_v9  ;;  %v13358_v22 = vpack.c.bf16 %v9293_v48, %v9285_v11  ;;  %v14380_v15 = vunpack.i.h.bf16 %v16812_v59  ;;  %v14379_v63 = vunpack.i.l.bf16 %v16812_v59  ;;  %v14385_v9 = vunpack.i.h.bf16 %v16817_v34  ;;  %v16857_v39 = vpop.permute.xlu0 %14392  ;;  %v13193_v11 = vld [vmem:[%s18628_s7 + $0x90] sm:$0xff] }
 0x60a   : > { %13355 = vmatprep.subr.bf16.mxu1 %v13354_v46  ;;  %8630 = vmatprep.mubr.f32.mxu0 %v16509_v5  ;;  %v14370_v46 = vunpack.i.h.bf16 %v16799_v26  ;;  %v9760_v1 = vsel %vm799_vm4, %v14374_v6, %v14375_v23  ;;  %v14394_v10 = vunpack.i.l.bf16 %v16857_v39 }
 0x60b   : > { %13164 = vmatmul.mubr.msk.f32.gmra.mrb[22].mxu0 %vm7560_vm11, %v13152_v33  ;;  %8719 = vmatprep.mubr.f32.mxu1 %v16509_v5  ;;  %v9766_v37 = vsel %vm799_vm4, %v14379_v63, %v14380_v15  ;;  %v9768_v30 = vsel %vm799_vm4, %v14384_v18, %v14385_v9 }
 0x60c   : > { %13168 = vmatmul.mubr.msk.f32.gmra.mrb[22].mxu1 %vm7560_vm11, %v13152_v33  ;;  %8636 = vmatprep.mubr.f32.mxu0 %v16509_v5  ;;  %v13174_v33 = vld [vmem:[%s18628_s7 + $0x78] sm:$0xff]  ;;  %v14388_v62 = vpop.permute.xlu1 %14387  ;;  %v13378_v32 = vpack.c.bf16 %v9768_v30, %v9760_v1  ;;  %v9759_v21 = vsel %vm799_vm4, %v14370_v46, %v14374_v6 }
 0x60d   : > { %8725 = vmatprep.mubr.f32.mxu1 %v16509_v5  ;;  %v14389_v49 = vunpack.i.l.bf16 %v14388_v62 }
 0x60f   : > { %13165 = vmatmul.mubr.msk.f32.gmra.mrb[24].mxu0 %vm7560_vm11, %v13153_v13  ;;  %v9757_v57 = vsel %vm799_vm4, %v14389_v49, %v14369_v27 }
 0x610   : > { %13169 = vmatmul.mubr.msk.f32.gmra.mrb[24].mxu1 %vm7560_vm11, %v13153_v13  ;;  %8642 = vmatprep.mubr.f32.mxu0 %v16509_v5  ;;  %v14365_v13 = vunpack.i.h.bf16 %v16768_v24  ;;  %v16864_v19 = vpop.permute.xlu1 %14397  ;;  %v14395_v24 = vunpack.i.h.bf16 %v16857_v39 }
 0x611   : > { %8731 = vmatprep.mubr.f32.mxu1 %v16509_v5  ;;  %v14400_v31 = vunpack.i.h.bf16 %v16864_v19 }
 0x612   : > { %v9299_v8 = vsel %vm731_vm3, %v14364_v54, %v14365_v13  ;;  %v9767_v13 = vsel %vm799_vm4, %v14380_v15, %v14384_v18 }
 0x613   : > { %13166 = vmatmul.mubr.msk.f32.gmra.mrb[26].mxu0 %vm7560_vm11, %v13154_v36 }
 0x614   : > { %13170 = vmatmul.mubr.msk.f32.gmra.mrb[26].mxu1 %vm7560_vm11, %v13154_v36  ;;  %8919 = vmatprep.mubr.f32.mxu0 %v16509_v5  ;;  %v14354_v36 = vunpack.i.l.bf16 %v16750_v2  ;;  %v16882_v60 = vpop.permute.xlu1 %14407 }
 0x615   : > { %9008 = vmatprep.mubr.f32.mxu1 %v16509_v5  ;;  %v14409_v42 = vunpack.i.l.bf16 %v16882_v60 }
 0x616   : > { %v9291_v58 = vsel %vm731_vm3, %v14354_v36, %v14355_v47  ;;  %v9290_v20 = vsel %vm731_vm3, %v14350_v16, %v14354_v36  ;;  %v9762_v47 = vsel %vm799_vm4, %v14394_v10, %v14395_v24  ;;  %v13380_v36 = vpack.c.bf16 %v9767_v13, %v9759_v21 }
 0x617   : > { %13175 = vmatmul.mubr.msk.f32.vlgmr.msra.gmra.mrb[12].mxu0 %vm7560_vm11, %v16727_v28  ;;  %v13370_v50 = vpack.c.bf16 %v9299_v8, %v9291_v58  ;;  %v13372_v48 = vpack.c.bf16 %v9298_v7, %v9290_v20 }
 0x618   : > { %13353 = vmatpush1.bf16.msra.mxu0 %v13352_v40  ;;  %13179 = vmatmul.mubr.msk.f32.vlgmr.msra.gmra.mrb[12].mxu1 %vm7560_vm11, %v16727_v28  ;;  %v13192_v40 = vld [vmem:[%s18628_s7 + $0x88] sm:$0xff]  ;;  %v16919_v8 = vpop.permute.xlu1 %14417 }
 0x619   : > { %13357 = vmatpush1.bf16.msra.mxu1 %v13356_v3  ;;  %13359 = vmatprep.subr.bf16.mxu0 %v13358_v22  ;;  %v16879_v3 = vpop.permute.xlu0 %14402  ;;  %v14390_v22 = vunpack.i.h.bf16 %v14388_v62  ;;  %v14420_v18 = vunpack.i.h.bf16 %v16919_v8  ;;  %v16955_v62 = vld [vmem:[%s18628_s7 + $0xa0] sm:$0xff] }
 0x61a   : > { %13363 = vmatprep.subr.bf16.mxu1 %v13362_v51  ;;  %8925 = vmatprep.mubr.f32.mxu0 %v16509_v5  ;;  %v14405_v2 = vunpack.i.h.bf16 %v16879_v3  ;;  %v14404_v51 = vunpack.i.l.bf16 %v16879_v3 }
 0x61b   : > { %13176 = vmatmul.mubr.msk.f32.gmra.mrb[14].mxu0 %vm7560_vm11, %v13172_v14  ;;  %9014 = vmatprep.mubr.f32.mxu1 %v16509_v5  ;;  %v9765_v17 = vsel %vm799_vm4, %v14390_v22, %v14379_v63 }
 0x61c   : > { %13180 = vmatmul.mubr.msk.f32.gmra.mrb[14].mxu1 %vm7560_vm11, %v13172_v14  ;;  %8931 = vmatprep.mubr.f32.mxu0 %v16509_v5  ;;  %v9770_v54 = vsel %vm799_vm4, %v14404_v51, %v14405_v2  ;;  %v13376_v52 = vpack.c.bf16 %v9765_v17, %v9757_v57  ;;  %v16931_v26 = vpop.permute.xlu1 %14427  ;;  %v9769_v63 = vsel %vm799_vm4, %v14385_v9, %v14404_v51 }
 0x61d   : > { %9020 = vmatprep.mubr.f32.mxu1 %v16509_v5  ;;  %v16913_v4 = vpop.permute.xlu0 %14412  ;;  %v13382_v56 = vpack.c.bf16 %v9770_v54, %v9762_v47  ;;  %v14429_v58 = vunpack.i.l.bf16 %v16931_v26  ;;  %v9761_v9 = vsel %vm799_vm4, %v14375_v23, %v14394_v10 }
 0x61e   : > { %v14414_v59 = vunpack.i.l.bf16 %v16913_v4  ;;  %v13384_v7 = vpack.c.bf16 %v9769_v63, %v9761_v9 }
 0x61f   : > { %13177 = vmatmul.mubr.msk.f32.gmra.mrb[16].mxu0 %vm7560_vm11, %v13173_v12 }
 0x620   : > { %13181 = vmatmul.mubr.msk.f32.gmra.mrb[16].mxu1 %vm7560_vm11, %v13173_v12  ;;  %8937 = vmatprep.mubr.f32.mxu0 %v16509_v5  ;;  %v16971_v29 = vpop.permute.xlu1 %14437 }
 0x621   : > { %9026 = vmatprep.mubr.f32.mxu1 %v16509_v5  ;;  %v14439_v22 = vunpack.i.l.bf16 %v16971_v29 }
 0x623   : > { %13178 = vmatmul.mubr.msk.f32.gmra.mrb[18].mxu0 %vm7560_vm11, %v13174_v33 }
 0x624   : > { %13182 = vmatmul.mubr.msk.f32.gmra.mrb[18].mxu1 %vm7560_vm11, %v13174_v33  ;;  %9097 = vmatprep.mubr.f32.mxu0 %v16509_v5 }
 0x625   : > { %9186 = vmatprep.mubr.f32.mxu1 %v16509_v5 }
 0x627   : > { %13183 = vmatmul.mubr.msk.f32.vlgmr.msra.gmra.mrb[20].mxu0 %vm7560_vm11, %v16727_v28 }
 0x628   : > { %13361 = vmatpush1.bf16.msra.mxu0 %v13360_v55  ;;  %13187 = vmatmul.mubr.msk.f32.vlgmr.msra.gmra.mrb[20].mxu1 %vm7560_vm11, %v16727_v28  ;;  %v9758_v28 = vsel %vm799_vm4, %v14369_v27, %v14370_v46  ;;  %v16926_v55 = vpop.permute.xlu0 %14422  ;;  %v14419_v46 = vunpack.i.l.bf16 %v16919_v8  ;;  %v9771_v27 = vsel %vm799_vm4, %v14405_v2, %v14409_v42 }
 0x629   : > { %13365 = vmatpush1.bf16.msra.mxu1 %v13364_v53  ;;  %13367 = vmatprep.subr.bf16.mxu0 %v13366_v25  ;;  %v13374_v38 = vpack.c.bf16 %v9766_v37, %v9758_v28  ;;  %v14425_v43 = vunpack.i.h.bf16 %v16926_v55  ;;  %v14424_v53 = vunpack.i.l.bf16 %v16926_v55  ;;  %v14430_v25 = vunpack.i.h.bf16 %v16931_v26  ;;  %v13213_v28 = vld [vmem:[%s18628_s7 + $0xb0] sm:$0xff] }
 0x62a   : > { %13371 = vmatprep.subr.bf16.mxu1 %v13370_v50  ;;  %9103 = vmatprep.mubr.f32.mxu0 %v16509_v5  ;;  %v14415_v50 = vunpack.i.h.bf16 %v16913_v4  ;;  %v10233_v23 = vsel %vm867_vm5, %v14419_v46, %v14420_v18 }
 0x62b   : > { %13184 = vmatmul.mubr.msk.f32.gmra.mrb[22].mxu0 %vm7560_vm11, %v13172_v14  ;;  %9192 = vmatprep.mubr.f32.mxu1 %v16509_v5  ;;  %v10239_v34 = vsel %vm867_vm5, %v14424_v53, %v14425_v43  ;;  %v10241_v45 = vsel %vm867_vm5, %v14429_v58, %v14430_v25 }
 0x62c   : > { %13188 = vmatmul.mubr.msk.f32.gmra.mrb[22].mxu1 %vm7560_vm11, %v13172_v14  ;;  %9109 = vmatprep.mubr.f32.mxu0 %v16509_v5  ;;  %v13194_v14 = vld [vmem:[%s18628_s7 + $0x98] sm:$0xff]  ;;  %v14433_v15 = vpop.permute.xlu0 %14432  ;;  %v13394_v20 = vpack.c.bf16 %v10241_v45, %v10233_v23  ;;  %v10232_v10 = vsel %vm867_vm5, %v14415_v50, %v14419_v46 }
 0x62d   : > { %9198 = vmatprep.mubr.f32.mxu1 %v16509_v5  ;;  %v14434_v1 = vunpack.i.l.bf16 %v14433_v15 }
 0x62f   : > { %13185 = vmatmul.mubr.msk.f32.gmra.mrb[24].mxu0 %vm7560_vm11, %v13173_v12  ;;  %v10230_v49 = vsel %vm867_vm5, %v14434_v1, %v14414_v59 }
 0x630   : > { %13189 = vmatmul.mubr.msk.f32.gmra.mrb[24].mxu1 %vm7560_vm11, %v13173_v12  ;;  %9115 = vmatprep.mubr.f32.mxu0 %v16509_v5  ;;  %v14410_v12 = vunpack.i.h.bf16 %v16882_v60  ;;  %v16978_v30 = vpop.permute.xlu0 %14442  ;;  %v14440_v60 = vunpack.i.h.bf16 %v16971_v29 }
 0x631   : > { %9204 = vmatprep.mubr.f32.mxu1 %v16509_v5  ;;  %v14445_v51 = vunpack.i.h.bf16 %v16978_v30 }
 0x632   : > { %v9772_v16 = vsel %vm799_vm4, %v14409_v42, %v14410_v12  ;;  %v10240_v12 = vsel %vm867_vm5, %v14425_v43, %v14429_v58 }
 0x633   : > { %13186 = vmatmul.mubr.msk.f32.gmra.mrb[26].mxu0 %vm7560_vm11, %v13174_v33 }
 0x634   : > { %13190 = vmatmul.mubr.msk.f32.gmra.mrb[26].mxu1 %vm7560_vm11, %v13174_v33  ;;  %9392 = vmatprep.mubr.f32.mxu0 %v16509_v5  ;;  %v14399_v33 = vunpack.i.l.bf16 %v16864_v19  ;;  %v16996_v39 = vpop.permute.xlu0 %14452 }
 0x635   : > { %9481 = vmatprep.mubr.f32.mxu1 %v16509_v5  ;;  %v14454_v3 = vunpack.i.l.bf16 %v16996_v39 }
 0x636   : > { %v9764_v0 = vsel %vm799_vm4, %v14399_v33, %v14400_v31  ;;  %v9763_v6 = vsel %vm799_vm4, %v14395_v24, %v14399_v33  ;;  %v10235_v31 = vsel %vm867_vm5, %v14439_v22, %v14440_v60  ;;  %v13396_v33 = vpack.c.bf16 %v10240_v12, %v10232_v10 }
 0x637   : > { %13195 = vmatmul.mubr.msk.f32.vlgmr.msra.gmra.mrb[12].mxu0 %vm7560_vm11, %v16841_v35  ;;  %v13386_v44 = vpack.c.bf16 %v9772_v16, %v9764_v0  ;;  %v13388_v37 = vpack.c.bf16 %v9771_v27, %v9763_v6 }
 0x638   : > { %13369 = vmatpush1.bf16.msra.mxu0 %v13368_v61  ;;  %13199 = vmatmul.mubr.msk.f32.vlgmr.msra.gmra.mrb[12].mxu1 %vm7560_vm11, %v16841_v35  ;;  %v13212_v61 = vld [vmem:[%s18628_s7 + $0xa8] sm:$0xff]  ;;  %v17033_v16 = vpop.permute.xlu0 %14462 }
 0x639   : > { %13373 = vmatpush1.bf16.msra.mxu1 %v13372_v48  ;;  %13375 = vmatprep.subr.bf16.mxu0 %v13374_v38  ;;  %v16993_v48 = vpop.permute.xlu1 %14447  ;;  %v14435_v38 = vunpack.i.h.bf16 %v14433_v15  ;;  %v14465_v58 = vunpack.i.h.bf16 %v17033_v16  ;;  %v17069_v15 = vld [vmem:[%s18628_s7 + $0xc0] sm:$0xff] }
 0x63a   : > { %13379 = vmatprep.subr.bf16.mxu1 %v13378_v32  ;;  %9398 = vmatprep.mubr.f32.mxu0 %v16509_v5  ;;  %v14450_v19 = vunpack.i.h.bf16 %v16993_v48  ;;  %v14449_v32 = vunpack.i.l.bf16 %v16993_v48 }
 0x63b   : > { %13196 = vmatmul.mubr.msk.f32.gmra.mrb[14].mxu0 %vm7560_vm11, %v13192_v40  ;;  %9487 = vmatprep.mubr.f32.mxu1 %v16509_v5  ;;  %v10238_v2 = vsel %vm867_vm5, %v14435_v38, %v14424_v53 }
 0x63c   : > { %13200 = vmatmul.mubr.msk.f32.gmra.mrb[14].mxu1 %vm7560_vm11, %v13192_v40  ;;  %9404 = vmatprep.mubr.f32.mxu0 %v16509_v5  ;;  %v10243_v42 = vsel %vm867_vm5, %v14449_v32, %v14450_v19  ;;  %v13392_v57 = vpack.c.bf16 %v10238_v2, %v10230_v49  ;;  %v17045_v4 = vpop.permute.xlu0 %14472  ;;  %v10242_v53 = vsel %vm867_vm5, %v14430_v25, %v14449_v32 }
 0x63d   : > { %9493 = vmatprep.mubr.f32.mxu1 %v16509_v5  ;;  %v17027_v17 = vpop.permute.xlu1 %14457  ;;  %v13398_v13 = vpack.c.bf16 %v10243_v42, %v10235_v31  ;;  %v14474_v0 = vunpack.i.l.bf16 %v17045_v4  ;;  %v10234_v25 = vsel %vm867_vm5, %v14420_v18, %v14439_v22 }
 0x63e   : > { %v14459_v55 = vunpack.i.l.bf16 %v17027_v17  ;;  %v13400_v27 = vpack.c.bf16 %v10242_v53, %v10234_v25 }
 0x63f   : > { %13197 = vmatmul.mubr.msk.f32.gmra.mrb[16].mxu0 %vm7560_vm11, %v13193_v11 }
 0x640   : > { %13201 = vmatmul.mubr.msk.f32.gmra.mrb[16].mxu1 %vm7560_vm11, %v13193_v11  ;;  %9410 = vmatprep.mubr.f32.mxu0 %v16509_v5  ;;  %v17085_v9 = vpop.permute.xlu0 %14482 }
 0x641   : > { %9499 = vmatprep.mubr.f32.mxu1 %v16509_v5  ;;  %v14485_v38 = vunpack.i.h.bf16 %v17085_v9  ;;  %v14484_v1 = vunpack.i.l.bf16 %v17085_v9 }
 0x643   : > { %13198 = vmatmul.mubr.msk.f32.gmra.mrb[18].mxu0 %vm7560_vm11, %v13194_v14 }
 0x644   : > { %13202 = vmatmul.mubr.msk.f32.gmra.mrb[18].mxu1 %vm7560_vm11, %v13194_v14  ;;  %9570 = vmatprep.mubr.f32.mxu0 %v16509_v5 }
 0x645   : > { %9659 = vmatprep.mubr.f32.mxu1 %v16509_v5 }
 0x647   : > { %13203 = vmatmul.mubr.msk.f32.vlgmr.msra.gmra.mrb[20].mxu0 %vm7560_vm11, %v16841_v35 }
 0x648   : > { %13377 = vmatpush1.bf16.msra.mxu0 %v13376_v52  ;;  %13207 = vmatmul.mubr.msk.f32.vlgmr.msra.gmra.mrb[20].mxu1 %vm7560_vm11, %v16841_v35  ;;  %v10231_v35 = vsel %vm867_vm5, %v14414_v59, %v14415_v50  ;;  %v17040_v52 = vpop.permute.xlu1 %14467  ;;  %v14464_v50 = vunpack.i.l.bf16 %v17033_v16  ;;  %v10244_v59 = vsel %vm867_vm5, %v14450_v19, %v14454_v3 }
 0x649   : > { %13381 = vmatpush1.bf16.msra.mxu1 %v13380_v36  ;;  %13383 = vmatprep.subr.bf16.mxu0 %v13382_v56  ;;  %v13390_v41 = vpack.c.bf16 %v10239_v34, %v10231_v35  ;;  %v14470_v47 = vunpack.i.h.bf16 %v17040_v52  ;;  %v14469_v36 = vunpack.i.l.bf16 %v17040_v52  ;;  %v14475_v56 = vunpack.i.h.bf16 %v17045_v4  ;;  %v13233_v35 = vld [vmem:[%s18628_s7 + $0xd0] sm:$0xff] }
 0x64a   : > { %13387 = vmatprep.subr.bf16.mxu1 %v13386_v44  ;;  %9576 = vmatprep.mubr.f32.mxu0 %v16509_v5  ;;  %v14460_v44 = vunpack.i.h.bf16 %v17027_v17  ;;  %v10706_v18 = vsel %vm935_vm6, %v14464_v50, %v14465_v58 }
 0x64b   : > { %13204 = vmatmul.mubr.msk.f32.gmra.mrb[22].mxu0 %vm7560_vm11, %v13192_v40  ;;  %9665 = vmatprep.mubr.f32.mxu1 %v16509_v5  ;;  %v10712_v26 = vsel %vm935_vm6, %v14469_v36, %v14470_v47  ;;  %v10714_v63 = vsel %vm935_vm6, %v14474_v0, %v14475_v56 }
 0x64c   : > { %13208 = vmatmul.mubr.msk.f32.gmra.mrb[22].mxu1 %vm7560_vm11, %v13192_v40  ;;  %9582 = vmatprep.mubr.f32.mxu0 %v16509_v5  ;;  %v13214_v40 = vld [vmem:[%s18628_s7 + $0xb8] sm:$0xff]  ;;  %v14478_v43 = vpop.permute.xlu1 %14477  ;;  %v13410_v6 = vpack.c.bf16 %v10714_v63, %v10706_v18  ;;  %v10705_v22 = vsel %vm935_vm6, %v14460_v44, %v14464_v50 }
 0x64d   : > { %9671 = vmatprep.mubr.f32.mxu1 %v16509_v5  ;;  %v14479_v23 = vunpack.i.l.bf16 %v14478_v43 }
 0x64f   : > { %13205 = vmatmul.mubr.msk.f32.gmra.mrb[24].mxu0 %vm7560_vm11, %v13193_v11  ;;  %v10703_v19 = vsel %vm935_vm6, %v14479_v23, %v14459_v55 }
 0x650   : > { %13209 = vmatmul.mubr.msk.f32.gmra.mrb[24].mxu1 %vm7560_vm11, %v13193_v11  ;;  %9588 = vmatprep.mubr.f32.mxu0 %v16509_v5  ;;  %v14455_v11 = vunpack.i.h.bf16 %v16996_v39  ;;  %v17092_v45 = vpop.permute.xlu1 %14487  ;;  %v17122_v39 = vld [vmem:[#allocation2 + $0x40] sm:$0xff] }
 0x651   : > { %9677 = vmatprep.mubr.f32.mxu1 %v16509_v5  ;;  %v14490_v32 = vunpack.i.h.bf16 %v17092_v45 }
 0x652   : > { %v10245_v24 = vsel %vm867_vm5, %v14454_v3, %v14455_v11  ;;  %v10713_v11 = vsel %vm935_vm6, %v14470_v47, %v14474_v0 }
 0x653   : > { %13206 = vmatmul.mubr.msk.f32.gmra.mrb[26].mxu0 %vm7560_vm11, %v13194_v14 }
 0x654   : > { %13210 = vmatmul.mubr.msk.f32.gmra.mrb[26].mxu1 %vm7560_vm11, %v13194_v14  ;;  %9865 = vmatprep.mubr.f32.mxu0 %v16509_v5  ;;  %v14444_v14 = vunpack.i.l.bf16 %v16978_v30  ;;  %v17110_v29 = vpop.permute.xlu1 %14497 }
 0x655   : > { %9954 = vmatprep.mubr.f32.mxu1 %v16509_v5  ;;  %v14499_v48 = vunpack.i.l.bf16 %v17110_v29 }
 0x656   : > { %v10237_v54 = vsel %vm867_vm5, %v14444_v14, %v14445_v51  ;;  %v10236_v46 = vsel %vm867_vm5, %v14440_v60, %v14444_v14  ;;  %v10708_v51 = vsel %vm935_vm6, %v14484_v1, %v14485_v38  ;;  %v13412_v14 = vpack.c.bf16 %v10713_v11, %v10705_v22 }
 0x657   : > { %13215 = vmatmul.mubr.msk.f32.vlgmr.msra.gmra.mrb[12].mxu0 %vm7560_vm11, %v16955_v62  ;;  %v13402_v21 = vpack.c.bf16 %v10245_v24, %v10237_v54  ;;  %v13404_v34 = vpack.c.bf16 %v10244_v59, %v10236_v46 }
 0x658   : > { %13385 = vmatpush1.bf16.msra.mxu0 %v13384_v7  ;;  %13219 = vmatmul.mubr.msk.f32.vlgmr.msra.gmra.mrb[12].mxu1 %vm7560_vm11, %v16955_v62  ;;  %v13232_v7 = vld [vmem:[%s18628_s7 + $0xc8] sm:$0xff]  ;;  %v17149_v24 = vpop.permute.xlu1 %14507 }
 0x659   : > { %13389 = vmatpush1.bf16.msra.mxu1 %v13388_v37  ;;  %13391 = vmatprep.subr.bf16.mxu0 %v13390_v41  ;;  %v17107_v37 = vpop.permute.xlu0 %14492  ;;  %v14480_v41 = vunpack.i.h.bf16 %v14478_v43  ;;  %v14510_v0 = vunpack.i.h.bf16 %v17149_v24  ;;  %v13251_v43 = vld [vmem:[%s18628_s7 + $0xe0] sm:$0xff] }
 0x65a   : > { %13395 = vmatprep.subr.bf16.mxu1 %v13394_v20  ;;  %9871 = vmatprep.mubr.f32.mxu0 %v16509_v5  ;;  %v14495_v30 = vunpack.i.h.bf16 %v17107_v37  ;;  %v14494_v20 = vunpack.i.l.bf16 %v17107_v37 }
 0x65b   : > { %13216 = vmatmul.mubr.msk.f32.gmra.mrb[14].mxu0 %vm7560_vm11, %v13212_v61  ;;  %9960 = vmatprep.mubr.f32.mxu1 %v16509_v5 }
 0x65c   : > { %13220 = vmatmul.mubr.msk.f32.gmra.mrb[14].mxu1 %vm7560_vm11, %v13212_v61  ;;  %9877 = vmatprep.mubr.f32.mxu0 %v16509_v5  ;;  %v10716_v3 = vsel %vm935_vm6, %v14494_v20, %v14495_v30  ;;  %v17161_v17 = vpop.permute.xlu1 %14517 }
 0x65d   : > { %9966 = vmatprep.mubr.f32.mxu1 %v16509_v5  ;;  %v17143_v2 = vpop.permute.xlu0 %14502  ;;  %v13414_v12 = vpack.c.bf16 %v10716_v3, %v10708_v51  ;;  %v14519_v54 = vunpack.i.l.bf16 %v17161_v17 }
 0x65e   : > { %v14504_v52 = vunpack.i.l.bf16 %v17143_v2 }
 0x65f   : > { %13217 = vmatmul.mubr.msk.f32.gmra.mrb[16].mxu0 %vm7560_vm11, %v13213_v28 }
 0x660   : > { %13221 = vmatmul.mubr.msk.f32.gmra.mrb[16].mxu1 %vm7560_vm11, %v13213_v28  ;;  %9883 = vmatprep.mubr.f32.mxu0 %v16509_v5  ;;  %v17199_v25 = vpop.permute.xlu1 %14527 }
 0x661   : > { %9972 = vmatprep.mubr.f32.mxu1 %v16509_v5 }
 0x663   : > { %13218 = vmatmul.mubr.msk.f32.gmra.mrb[18].mxu0 %vm7560_vm11, %v13214_v40 }
 0x664   : > { %13222 = vmatmul.mubr.msk.f32.gmra.mrb[18].mxu1 %vm7560_vm11, %v13214_v40  ;;  %10043 = vmatprep.mubr.f32.mxu0 %v16509_v5 }
 0x665   : > { %10132 = vmatprep.mubr.f32.mxu1 %v16509_v5 }
 0x667   : > { %13223 = vmatmul.mubr.msk.f32.vlgmr.msra.gmra.mrb[20].mxu0 %vm7560_vm11, %v16955_v62 }
 0x668   : > { %13393 = vmatpush1.bf16.msra.mxu0 %v13392_v57  ;;  %13227 = vmatmul.mubr.msk.f32.vlgmr.msra.gmra.mrb[20].mxu1 %vm7560_vm11, %v16955_v62  ;;  %v10704_v62 = vsel %vm935_vm6, %v14459_v55, %v14460_v44  ;;  %v17156_v57 = vpop.permute.xlu0 %14512  ;;  %v14509_v44 = vunpack.i.l.bf16 %v17149_v24  ;;  %v10717_v55 = vsel %vm935_vm6, %v14495_v30, %v14499_v48  ;;  %v13273_v24 = vld [vmem:[%s18628_s7 + $0x110] sm:$0xff] }
 0x669   : > { %13397 = vmatpush1.bf16.msra.mxu1 %v13396_v33  ;;  %13399 = vmatprep.subr.bf16.mxu0 %v13398_v13  ;;  %v13406_v8 = vpack.c.bf16 %v10712_v26, %v10704_v62  ;;  %v14515_v31 = vunpack.i.h.bf16 %v17156_v57  ;;  %v14514_v33 = vunpack.i.l.bf16 %v17156_v57  ;;  %v14520_v13 = vunpack.i.h.bf16 %v17161_v17  ;;  %v13253_v62 = vld [vmem:[%s18628_s7 + $0xf0] sm:$0xff] }
 0x66a   : > { %13403 = vmatprep.subr.bf16.mxu1 %v13402_v21  ;;  %10049 = vmatprep.mubr.f32.mxu0 %v16509_v5  ;;  %v14505_v21 = vunpack.i.h.bf16 %v17143_v2 }
 0x66b   : > { %13224 = vmatmul.mubr.msk.f32.gmra.mrb[22].mxu0 %vm7560_vm11, %v13212_v61  ;;  %10138 = vmatprep.mubr.f32.mxu1 %v16509_v5  ;;  %v11185_v4 = vsel %vm1003_vm7, %v14514_v33, %v14515_v31  ;;  %v11187_v53 = vsel %vm1003_vm7, %v14519_v54, %v14520_v13 }
 0x66c   : > { %13228 = vmatmul.mubr.msk.f32.gmra.mrb[22].mxu1 %vm7560_vm11, %v13212_v61  ;;  %10055 = vmatprep.mubr.f32.mxu0 %v16509_v5  ;;  %v13234_v61 = vld [vmem:[%s18628_s7 + $0xd8] sm:$0xff]  ;;  %v14523_v47 = vpop.permute.xlu0 %14522 }
 0x66d   : > { %10144 = vmatprep.mubr.f32.mxu1 %v16509_v5  ;;  %v14524_v18 = vunpack.i.l.bf16 %v14523_v47 }
 0x66f   : > { %13225 = vmatmul.mubr.msk.f32.gmra.mrb[24].mxu0 %vm7560_vm11, %v13213_v28  ;;  %v11176_v23 = vsel %vm1003_vm7, %v14524_v18, %v14504_v52 }
 0x670   : > { %13229 = vmatmul.mubr.msk.f32.gmra.mrb[24].mxu1 %vm7560_vm11, %v13213_v28  ;;  %10061 = vmatprep.mubr.f32.mxu0 %v16509_v5  ;;  %v14500_v28 = vunpack.i.h.bf16 %v17110_v29  ;;  %v17205_v63 = vpop.permute.xlu0 %14532  ;;  %v14530_v29 = vunpack.i.h.bf16 %v17199_v25 }
 0x671   : > { %10150 = vmatprep.mubr.f32.mxu1 %v16509_v5 }
 0x672   : > { %v10718_v60 = vsel %vm935_vm6, %v14499_v48, %v14500_v28  ;;  %v11186_v28 = vsel %vm1003_vm7, %v14515_v31, %v14519_v54 }
 0x673   : > { %13226 = vmatmul.mubr.msk.f32.gmra.mrb[26].mxu0 %vm7560_vm11, %v13214_v40 }
 0x674   : > { %13230 = vmatmul.mubr.msk.f32.gmra.mrb[26].mxu1 %vm7560_vm11, %v13214_v40  ;;  %10338 = vmatprep.mubr.f32.mxu0 %v16509_v5  ;;  %v14489_v40 = vunpack.i.l.bf16 %v17092_v45  ;;  %v14543_v9 = vpop.permute.xlu0 %14542 }
 0x675   : > { %10427 = vmatprep.mubr.f32.mxu1 %v16509_v5  ;;  %v14544_v37 = vunpack.i.l.bf16 %v14543_v9 }
 0x676   : > { %v10710_v42 = vsel %vm935_vm6, %v14489_v40, %v14490_v32  ;;  %v10709_v50 = vsel %vm935_vm6, %v14485_v38, %v14489_v40 }
 0x677   : > { %13235 = vmatmul.mubr.msk.f32.vlgmr.msra.gmra.mrb[12].mxu0 %vm7560_vm11, %v17069_v15  ;;  %v13418_v10 = vpack.c.bf16 %v10718_v60, %v10710_v42  ;;  %v13420_v26 = vpack.c.bf16 %v10717_v55, %v10709_v50  ;;  %v13272_v42 = vld [vmem:[%s18628_s7 + $0x108] sm:$0xff] }
 0x678   : > { %13401 = vmatpush1.bf16.msra.mxu0 %v13400_v27  ;;  %13239 = vmatmul.mubr.msk.f32.vlgmr.msra.gmra.mrb[12].mxu1 %vm7560_vm11, %v17069_v15  ;;  %v13252_v27 = vld [vmem:[%s18628_s7 + $0xe8] sm:$0xff] }
 0x679   : > { %13405 = vmatpush1.bf16.msra.mxu1 %v13404_v34  ;;  %13407 = vmatprep.subr.bf16.mxu0 %v13406_v8  ;;  %v14538_v34 = vpop.permute.xlu1 %14537  ;;  %v14525_v8 = vunpack.i.h.bf16 %v14523_v47 }
 0x67a   : > { %13411 = vmatprep.subr.bf16.mxu1 %v13410_v6  ;;  %10344 = vmatprep.mubr.f32.mxu0 %v16509_v5  ;;  %v14540_v45 = vunpack.i.h.bf16 %v14538_v34  ;;  %v14539_v6 = vunpack.i.l.bf16 %v14538_v34 }
 0x67b   : > { %13236 = vmatmul.mubr.msk.f32.gmra.mrb[14].mxu0 %vm7560_vm11, %v13232_v7  ;;  %10433 = vmatprep.mubr.f32.mxu1 %v16509_v5  ;;  %v11184_v30 = vsel %vm1003_vm7, %v14525_v8, %v14514_v33 }
 0x67c   : > { %13240 = vmatmul.mubr.msk.f32.gmra.mrb[14].mxu1 %vm7560_vm11, %v13232_v7  ;;  %10350 = vmatprep.mubr.f32.mxu0 %v16509_v5  ;;  %v11189_v48 = vsel %vm1003_vm7, %v14539_v6, %v14540_v45  ;;  %v11188_v60 = vsel %vm1003_vm7, %v14520_v13, %v14539_v6  ;;  %v11190_v22 = vsel %vm1003_vm7, %v14540_v45, %v14544_v37 }
 0x67d   : > { %10439 = vmatprep.mubr.f32.mxu1 %v16509_v5  ;;  %v11615_v57 = vpop.permute.xlu1 %11614 }
 0x67f   : > { %13237 = vmatmul.mubr.msk.f32.gmra.mrb[16].mxu0 %vm7560_vm11, %v13233_v35 }
 0x680   : > { %13241 = vmatmul.mubr.msk.f32.gmra.mrb[16].mxu1 %vm7560_vm11, %v13233_v35  ;;  %10356 = vmatprep.mubr.f32.mxu0 %v16509_v5  ;;  %v10711_v5 = vsel %vm935_vm6, %v14480_v41, %v14469_v36  ;;  %v10715_v36 = vsel %vm935_vm6, %v14475_v56, %v14494_v20  ;;  %v10707_v56 = vsel %vm935_vm6, %v14465_v58, %v14484_v1  ;;  %v14529_v41 = vunpack.i.l.bf16 %v17199_v25 }
 0x681   : > { %10445 = vmatprep.mubr.f32.mxu1 %v17122_v39  ;;  %v13408_v49 = vpack.c.bf16 %v10711_v5, %v10703_v19  ;;  %v13416_v59 = vpack.c.bf16 %v10715_v36, %v10707_v56  ;;  %v11179_v58 = vsel %vm1003_vm7, %v14509_v44, %v14510_v0  ;;  %v14535_v20 = vunpack.i.h.bf16 %v17205_v63 }
 0x682   : > { %v13426_v46 = vpack.c.bf16 %v11187_v53, %v11179_v58  ;;  %v11178_v1 = vsel %vm1003_vm7, %v14505_v21, %v14509_v44  ;;  %v13424_v19 = vpack.c.bf16 %v11184_v30, %v11176_v23  ;;  %v11181_v5 = vsel %vm1003_vm7, %v14529_v41, %v14530_v29 }
 0x683   : > { %13238 = vmatmul.mubr.msk.f32.gmra.mrb[18].mxu0 %vm7560_vm11, %v13234_v61  ;;  %v13428_v32 = vpack.c.bf16 %v11186_v28, %v11178_v1  ;;  %v13430_v40 = vpack.c.bf16 %v11189_v48, %v11181_v5  ;;  %v11180_v2 = vsel %vm1003_vm7, %v14510_v0, %v14529_v41  ;;  %v11625_v41 = vpop.permute.xlu1 %11624 }
 0x684   : > { %13242 = vmatmul.mubr.msk.f32.gmra.mrb[18].mxu1 %vm7560_vm11, %v13234_v61  ;;  %10516 = vmatprep.mubr.f32.mxu0 %v17122_v39 }
 0x685   : > { %10605 = vmatprep.mubr.f32.mxu1 %v17122_v39 }
 0x687   : > { %13243 = vmatmul.mubr.msk.f32.vlgmr.msra.gmra.mrb[20].mxu0 %vm7560_vm11, %v17069_v15 }
 0x688   : > { %13409 = vmatpush1.bf16.msra.mxu0 %v13408_v49  ;;  %13247 = vmatmul.mubr.msk.f32.vlgmr.msra.gmra.mrb[20].mxu1 %vm7560_vm11, %v17069_v15  ;;  %v11177_v15 = vsel %vm1003_vm7, %v14504_v52, %v14505_v21  ;;  %v13271_v49 = vld [vmem:[%s18628_s7 + $0x100] sm:$0xff] }
 0x689   : > { %13413 = vmatpush1.bf16.msra.mxu1 %v13412_v14  ;;  %13415 = vmatprep.subr.bf16.mxu0 %v13414_v12  ;;  %v13422_v16 = vpack.c.bf16 %v11185_v4, %v11177_v15  ;;  %v13432_v14 = vpack.c.bf16 %v11188_v60, %v11180_v2 }
 0x68a   : > { %13419 = vmatprep.subr.bf16.mxu1 %v13418_v10  ;;  %10522 = vmatprep.mubr.f32.mxu0 %v17122_v39  ;;  %v13274_v10 = vld [vmem:[%s18628_s7 + $0x118] sm:$0xff] }
 0x68b   : > { %13244 = vmatmul.mubr.msk.f32.gmra.mrb[22].mxu0 %vm7560_vm11, %v13232_v7  ;;  %10611 = vmatprep.mubr.f32.mxu1 %v17122_v39 }
 0x68c   : > { %13248 = vmatmul.mubr.msk.f32.gmra.mrb[22].mxu1 %vm7560_vm11, %v13232_v7  ;;  %10528 = vmatprep.mubr.f32.mxu0 %v17122_v39  ;;  %v13254_v7 = vld [vmem:[%s18628_s7 + $0xf8] sm:$0xff] }
 0x68d   : > { %10617 = vmatprep.mubr.f32.mxu1 %v17122_v39 }
 0x68f   : > { %13245 = vmatmul.mubr.msk.f32.gmra.mrb[24].mxu0 %vm7560_vm11, %v13233_v35 }
 0x690   : > { %13249 = vmatmul.mubr.msk.f32.gmra.mrb[24].mxu1 %vm7560_vm11, %v13233_v35  ;;  %10534 = vmatprep.mubr.f32.mxu0 %v17122_v39  ;;  %v14545_v35 = vunpack.i.h.bf16 %v14543_v9 }
 0x691   : > { %10623 = vmatprep.mubr.f32.mxu1 %v17122_v39 }
 0x692   : > { %v11191_v38 = vsel %vm1003_vm7, %v14544_v37, %v14545_v35 }
 0x693   : > { %13246 = vmatmul.mubr.msk.f32.gmra.mrb[26].mxu0 %vm7560_vm11, %v13234_v61 }
 0x694   : > { %13250 = vmatmul.mubr.msk.f32.gmra.mrb[26].mxu1 %vm7560_vm11, %v13234_v61  ;;  %10811 = vmatprep.mubr.f32.mxu0 %v17122_v39  ;;  %v14534_v61 = vunpack.i.l.bf16 %v17205_v63 }
 0x695   : > { %10900 = vmatprep.mubr.f32.mxu1 %v17122_v39 }
 0x696   : > { %v11183_v11 = vsel %vm1003_vm7, %v14534_v61, %v14535_v20  ;;  %v11182_v51 = vsel %vm1003_vm7, %v14530_v29, %v14534_v61 }
 0x697   : > { %13255 = vmatmul.mubr.msk.f32.vlgmr.msra.gmra.mrb[12].mxu0 %vm7560_vm11, %v13251_v43  ;;  %v13434_v3 = vpack.c.bf16 %v11191_v38, %v11183_v11  ;;  %v13436_v12 = vpack.c.bf16 %v11190_v22, %v11182_v51 }
 0x698   : > { %13417 = vmatpush1.bf16.msra.mxu0 %v13416_v59  ;;  %13259 = vmatmul.mubr.msk.f32.vlgmr.msra.gmra.mrb[12].mxu1 %vm7560_vm11, %v13251_v43 }
 0x699   : > { %13421 = vmatpush1.bf16.msra.mxu1 %v13420_v26  ;;  %13423 = vmatprep.subr.bf16.mxu0 %v13422_v16 }
 0x69a   : > { %13427 = vmatprep.subr.bf16.mxu1 %v13426_v46  ;;  %10817 = vmatprep.mubr.f32.mxu0 %v17122_v39 }
 0x69b   : > { %13256 = vmatmul.mubr.msk.f32.gmra.mrb[14].mxu0 %vm7560_vm11, %v13252_v27  ;;  %10906 = vmatprep.mubr.f32.mxu1 %v17122_v39 }
 0x69c   : > { %13260 = vmatmul.mubr.msk.f32.gmra.mrb[14].mxu1 %vm7560_vm11, %v13252_v27  ;;  %10823 = vmatprep.mubr.f32.mxu0 %v17122_v39 }
 0x69d   : > { %10912 = vmatprep.mubr.f32.mxu1 %v17122_v39 }
 0x69f   : > { %13257 = vmatmul.mubr.msk.f32.gmra.mrb[16].mxu0 %vm7560_vm11, %v13253_v62 }
 0x6a0   : > { %13261 = vmatmul.mubr.msk.f32.gmra.mrb[16].mxu1 %vm7560_vm11, %v13253_v62  ;;  %10829 = vmatprep.mubr.f32.mxu0 %v17122_v39 }
 0x6a1   : > { %10918 = vmatprep.mubr.f32.mxu1 %v17122_v39 }
 0x6a3   : > { %13258 = vmatmul.mubr.msk.f32.gmra.mrb[18].mxu0 %vm7560_vm11, %v13254_v7 }
 0x6a4   : > { %13262 = vmatmul.mubr.msk.f32.gmra.mrb[18].mxu1 %vm7560_vm11, %v13254_v7  ;;  %10989 = vmatprep.mubr.f32.mxu0 %v17122_v39 }
 0x6a5   : > { %11078 = vmatprep.mubr.f32.mxu1 %v17122_v39 }
 0x6a7   : > { %13263 = vmatmul.mubr.msk.f32.vlgmr.msra.gmra.mrb[20].mxu0 %vm7560_vm11, %v13251_v43 }
 0x6a8   : > { %13425 = vmatpush1.bf16.msra.mxu0 %v13424_v19  ;;  %13267 = vmatmul.mubr.msk.f32.vlgmr.msra.gmra.mrb[20].mxu1 %vm7560_vm11, %v13251_v43 }
 0x6a9   : > { %13429 = vmatpush1.bf16.msra.mxu1 %v13428_v32  ;;  %13431 = vmatprep.subr.bf16.mxu0 %v13430_v40 }
 0x6aa   : > { %13435 = vmatprep.subr.bf16.mxu1 %v13434_v3  ;;  %10995 = vmatprep.mubr.f32.mxu0 %v17122_v39 }
 0x6ab   : > { %13264 = vmatmul.mubr.msk.f32.gmra.mrb[22].mxu0 %vm7560_vm11, %v13252_v27  ;;  %11084 = vmatprep.mubr.f32.mxu1 %v17122_v39 }
 0x6ac   : > { %13268 = vmatmul.mubr.msk.f32.gmra.mrb[22].mxu1 %vm7560_vm11, %v13252_v27  ;;  %11001 = vmatprep.mubr.f32.mxu0 %v17122_v39 }
 0x6ad   : > { %11090 = vmatprep.mubr.f32.mxu1 %v17122_v39 }
 0x6af   : > { %13265 = vmatmul.mubr.msk.f32.gmra.mrb[24].mxu0 %vm7560_vm11, %v13253_v62 }
 0x6b0   : > { %13269 = vmatmul.mubr.msk.f32.gmra.mrb[24].mxu1 %vm7560_vm11, %v13253_v62  ;;  %11007 = vmatprep.mubr.f32.mxu0 %v17122_v39  ;;  %v11620_v62 = vpop.permute.xlu0 %11619 }
 0x6b1   : > { %11096 = vmatprep.mubr.f32.mxu1 %v17122_v39 }
 0x6b3   : > { %13266 = vmatmul.mubr.msk.f32.gmra.mrb[26].mxu0 %vm7560_vm11, %v13254_v7 }
 0x6b4   : > { %13270 = vmatmul.mubr.msk.f32.gmra.mrb[26].mxu1 %vm7560_vm11, %v13254_v7  ;;  %11284 = vmatprep.mubr.f32.mxu0 %v17122_v39  ;;  %v11630_v32 = vpop.permute.xlu0 %11629 }
 0x6b5   : > { %11373 = vmatprep.mubr.f32.mxu1 %v17122_v39 }
 0x6b7   : > { %13275 = vmatmul.mubr.msk.f32.vlgmr.msra.gmra.mrb[12].mxu0 %vm7560_vm11, %v13271_v49 }
 0x6b8   : > { %13433 = vmatpush1.bf16.msra.mxu0 %v13432_v14  ;;  %13279 = vmatmul.mubr.msk.f32.vlgmr.msra.gmra.mrb[12].mxu1 %vm7560_vm11, %v13271_v49 }
 0x6b9   : > { %13437 = vmatpush1.bf16.msra.mxu1 %v13436_v12  ;;  %11290 = vmatprep.mubr.f32.mxu0 %v17122_v39 }
 0x6ba   : > { %11379 = vmatprep.mubr.f32.mxu1 %v17122_v39 }
 0x6bb   : > { %13276 = vmatmul.mubr.msk.f32.gmra.mrb[14].mxu0 %vm7560_vm11, %v13272_v42 }
 0x6bc   : > { %13280 = vmatmul.mubr.msk.f32.gmra.mrb[14].mxu1 %vm7560_vm11, %v13272_v42  ;;  %11296 = vmatprep.mubr.f32.mxu0 %v17122_v39 }
 0x6bd   : > { %11385 = vmatprep.mubr.f32.mxu1 %v17122_v39 }
 0x6bf   : > { %13277 = vmatmul.mubr.msk.f32.gmra.mrb[16].mxu0 %vm7560_vm11, %v13273_v24 }
 0x6c0   : > { %13281 = vmatmul.mubr.msk.f32.gmra.mrb[16].mxu1 %vm7560_vm11, %v13273_v24  ;;  %11302 = vmatprep.mubr.f32.mxu0 %v17122_v39 }
 0x6c1   : > { %11391 = vmatprep.mubr.f32.mxu1 %v17122_v39 }
 0x6c3   : > { %13278 = vmatmul.mubr.msk.f32.gmra.mrb[18].mxu0 %vm7560_vm11, %v13274_v10 }
 0x6c4   : > { %13282 = vmatmul.mubr.msk.f32.gmra.mrb[18].mxu1 %vm7560_vm11, %v13274_v10  ;;  %11462 = vmatprep.mubr.f32.mxu0 %v17122_v39 }
 0x6c5   : > { %11551 = vmatprep.mubr.f32.mxu1 %v17122_v39 }
 0x6c7   : > { %13283 = vmatmul.mubr.msk.f32.vlgmr.msra.gmra.mrb[20].mxu0 %vm7560_vm11, %v13271_v49 }
 0x6c8   : > { %13287 = vmatmul.mubr.msk.f32.vlgmr.msra.gmra.mrb[20].mxu1 %vm7560_vm11, %v13271_v49  ;;  %11468 = vmatprep.mubr.f32.mxu0 %v17122_v39 }
 0x6c9   : > { %11557 = vmatprep.mubr.f32.mxu1 %v17122_v39 }
 0x6cb   : > { %13284 = vmatmul.mubr.msk.f32.gmra.mrb[22].mxu0 %vm7560_vm11, %v13272_v42 }
 0x6cc   : > { %13288 = vmatmul.mubr.msk.f32.gmra.mrb[22].mxu1 %vm7560_vm11, %v13272_v42  ;;  %11474 = vmatprep.mubr.f32.mxu0 %v17122_v39 }
 0x6cd   : > { %11563 = vmatprep.mubr.f32.mxu1 %v17122_v39 }
 0x6cf   : > { %13285 = vmatmul.mubr.msk.f32.gmra.mrb[24].mxu0 %vm7560_vm11, %v13273_v24 }
 0x6d0   : > { %13289 = vmatmul.mubr.msk.f32.gmra.mrb[24].mxu1 %vm7560_vm11, %v13273_v24  ;;  %11480 = vmatprep.mubr.f32.mxu0 %v17122_v39 }
 0x6d1   : > { %11569 = vmatprep.mubr.f32.mxu1 %v17122_v39 }
 0x6d3   : > { %13286 = vmatmul.mubr.msk.f32.gmra.mrb[26].mxu0 %vm7560_vm11, %v13274_v10 }
 0x6d4   : > { %13290 = vmatmul.mubr.msk.f32.gmra.mrb[26].mxu1 %vm7560_vm11, %v13274_v10 }
 0x78a   : > { %v11286_v17 = vpop.f32.mrb[12].mxu0 }
 0x78b   : > { %v11288_v31 = vpop.f32.mrb[13].mxu0  ;;  %v11375_v33 = vpop.f32.mrb[12].mxu1  ;;  %v17344_v37 = vadd.f32 %v11615_v57, %v11286_v17 }
 0x78c   : > { %v17313_v13 = vadd.f32 %v11615_v57, %v11288_v31  ;;  %v17315_v54 = vadd.f32 %v11615_v57, %v11375_v33  ;;  %v11377_v21 = vpop.f32.mrb[13].mxu1 }
 0x78d   : > { %v17326_v16 = vadd.f32 %v11615_v57, %v11377_v21 }
 0x78e   : > { %v14546_v52 = vpack.i.bf16 %v17315_v54, %v17313_v13  ;;  %v11292_v47 = vpop.f32.mrb[14].mxu0 }
 0x78f   : > { %v11294_v36 = vpop.f32.mrb[15].mxu0  ;;  %v11381_v0 = vpop.f32.mrb[14].mxu1  ;;  %v17372_v14 = vadd.f32 %v11620_v62, %v11292_v47 }
 0x790   : > { %v11383_v39 = vpop.f32.mrb[15].mxu1  ;;  %14547 = vrot.lane.b32.xlu1 %v14546_v52, %s14731_s21  ;;  %v17338_v18 = vadd.f32 %v11620_v62, %v11294_v36  ;;  %v17340_v45 = vadd.f32 %v11620_v62, %v11381_v0 }
 0x791   : > { %v17358_v19 = vadd.f32 %v11620_v62, %v11383_v39 }
 0x792   : > { %v11298_v44 = vpop.f32.mrb[16].mxu0  ;;  %v14566_v61 = vpack.i.bf16 %v17340_v45, %v17338_v18 }
 0x793   : > { %v11300_v55 = vpop.f32.mrb[17].mxu0  ;;  %v11387_v43 = vpop.f32.mrb[16].mxu1  ;;  %v17386_v31 = vadd.f32 %v11625_v41, %v11298_v44 }
 0x794   : > { %v17320_v4 = vpop.f32.mrb[17].mxu1  ;;  %v17354_v28 = vadd.f32 %v11625_v41, %v11300_v55  ;;  %v17356_v48 = vadd.f32 %v11625_v41, %v11387_v43 }
 0x795   : > { %v17401_v0 = vadd.f32 %v11625_v41, %v17320_v4 }
 0x796   : > { %v17322_v56 = vpop.f32.mrb[18].mxu0  ;;  %v14581_v60 = vpack.i.bf16 %v17356_v48, %v17354_v28 }
 0x797   : > { %v11306_v53 = vpop.f32.mrb[19].mxu0  ;;  %v11393_v50 = vpop.f32.mrb[18].mxu1 }
 0x798   : > { %v17324_v59 = vpop.f32.mrb[19].mxu1  ;;  %v17368_v22 = vadd.f32 %v11630_v32, %v11306_v53  ;;  %v17370_v49 = vadd.f32 %v11630_v32, %v11393_v50  ;;  %v17416_v50 = vadd.f32 %v11630_v32, %v17322_v56 }
 0x79a   : > { %v11464_v15 = vpop.f32.mrb[20].mxu0  ;;  %v14586_v10 = vpack.i.bf16 %v17370_v49, %v17368_v22 }
 0x79b   : > { %v11466_v26 = vpop.f32.mrb[21].mxu0  ;;  %v11553_v25 = vpop.f32.mrb[20].mxu1  ;;  %v17334_v34 = vadd.f32 %v11615_v57, %v11464_v15 }
 0x79c   : > { %v17328_v58 = vadd.f32 %v11615_v57, %v11466_v26  ;;  %v17330_v63 = vadd.f32 %v11615_v57, %v11553_v25  ;;  %v11555_v46 = vpop.f32.mrb[21].mxu1  ;;  %v17427_v25 = vadd.f32 %v11630_v32, %v17324_v59  ;;  %v12341_v59 = vld [vmem:[%s18630_s9 + $0x408] sm:$0xff] }
 0x79d   : > { %v17332_v27 = vadd.f32 %v11615_v57, %v11555_v46  ;;  %v14561_v23 = vpack.i.bf16 %v17334_v34, %v17344_v37  ;;  %v12213_v46 = vld [vmem:[%s18630_s9 + $0x8] sm:$0xff] }
 0x79e   : > { %v14551_v9 = vpack.i.bf16 %v17328_v58, %v17326_v16  ;;  %v11470_v8 = vpop.f32.mrb[22].mxu0 }
 0x79f   : > { %v14556_v6 = vpack.i.bf16 %v17332_v27, %v17330_v63  ;;  %v11472_v7 = vpop.f32.mrb[23].mxu0  ;;  %v11559_v35 = vpop.f32.mrb[22].mxu1  ;;  %v17362_v40 = vadd.f32 %v11620_v62, %v11470_v8  ;;  %v12343_v8 = vld [vmem:[%s18630_s9 + $0x418] sm:$0xff] }
 0x7a0   : > { %v11561_v29 = vpop.f32.mrb[23].mxu1  ;;  %14552 = vrot.lane.b32.xlu0 %v14551_v9, %s14731_s21  ;;  %v17350_v30 = vadd.f32 %v11620_v62, %v11472_v7  ;;  %v17382_v57 = vadd.f32 %v11620_v62, %v11559_v35  ;;  %v12214_v7 = vld [vmem:[%s18630_s9 + $0x10] sm:$0xff]  ;;  %v13566_v35 = vpack.c.bf16 %v12343_v8, %v12341_v59  ;;  %v12227_v8 = vld [vmem:[%s18630_s9 + $0x78] sm:$0xff] }
 0x7a1   : > { %14557 = vrot.lane.b32.xlu1 %v14556_v6, %s14731_s21  ;;  %v14576_v42 = vpack.i.bf16 %v17362_v40, %v17372_v14  ;;  %v17384_v17 = vadd.f32 %v11620_v62, %v11561_v29  ;;  %v12215_v62 = vld [vmem:[%s18630_s9 + $0x18] sm:$0xff]  ;;  %v12212_v6 = vld [vmem:[%s18630_s9] sm:$0xff] }
 0x7a2   : > { %v11476_v20 = vpop.f32.mrb[24].mxu0  ;;  %v14571_v11 = vpack.i.bf16 %v17350_v30, %v17358_v19  ;;  %v13438_v9 = vpack.c.bf16 %v12215_v62, %v12213_v46  ;;  %v13440_v29 = vpack.c.bf16 %v12214_v7, %v12212_v6  ;;  %13567 = vmatprep.subr.bf16.mxu0 %v13566_v35  ;;  %v12348_v46 = vld [vmem:[%s18630_s9 + $0x440] sm:$0xff]  ;;  %v12350_v62 = vld [vmem:[%s18630_s9 + $0x450] sm:$0xff]  ;;  %v12353_v6 = vld [vmem:[%s18630_s9 + $0x468] sm:$0xff] }
 0x7a3   : > { %v11478_v38 = vpop.f32.mrb[25].mxu0  ;;  %v11565_v1 = vpop.f32.mrb[24].mxu1  ;;  %v17378_v24 = vadd.f32 %v11625_v41, %v11476_v20  ;;  %v14601_v52 = vpack.i.bf16 %v17384_v17, %v17382_v57  ;;  %v12217_v20 = vld [vmem:[%s18630_s9 + $0x28] sm:$0xff]  ;;  %v13576_v7 = vpack.c.bf16 %v12350_v62, %v12348_v46  ;;  %v12232_v62 = vld [vmem:[%s18630_s9 + $0xa0] sm:$0xff] }
 0x7a4   : > { %v11567_v5 = vpop.f32.mrb[25].mxu1  ;;  %14562 = vrot.lane.b32.xlu0 %v14561_v23, %s14731_s21  ;;  %v17392_v21 = vadd.f32 %v11625_v41, %v11478_v38  ;;  %v17396_v47 = vadd.f32 %v11625_v41, %v11565_v1  ;;  %v12342_v23 = vld [vmem:[%s18630_s9 + $0x410] sm:$0xff]  ;;  %13439 = vmatprep.subr.bf16.mxu1 %v13438_v9  ;;  %v12219_v38 = vld [vmem:[%s18630_s9 + $0x38] sm:$0xff]  ;;  %v12345_v1 = vld [vmem:[%s18630_s9 + $0x428] sm:$0xff] }
 0x7a5   : > { %14567 = vrot.lane.b32.xlu1 %v14566_v61, %s14731_s21  ;;  %v14591_v33 = vpack.i.bf16 %v17378_v24, %v17386_v31  ;;  %v17398_v36 = vadd.f32 %v11625_v41, %v11567_v5  ;;  %v12340_v41 = vld [vmem:[%s18630_s9 + $0x400] sm:$0xff]  ;;  %v12347_v5 = vld [vmem:[%s18630_s9 + $0x438] sm:$0xff]  ;;  %13441 = vmatpush1.bf16.msra.mxu1 %v13440_v29  ;;  %v12225_v9 = vld [vmem:[%s18630_s9 + $0x68] sm:$0xff] }
 0x7a6   : > { %v11482_v3 = vpop.f32.mrb[26].mxu0  ;;  %v14596_v39 = vpack.i.bf16 %v17392_v21, %v17401_v0  ;;  %v13568_v61 = vpack.c.bf16 %v12342_v23, %v12340_v41  ;;  %v13450_v35 = vpack.c.bf16 %v12227_v8, %v12225_v9  ;;  %v12355_v29 = vld [vmem:[%s18630_s9 + $0x478] sm:$0xff]  ;;  %v12224_v41 = vld [vmem:[%s18630_s9 + $0x60] sm:$0xff]  ;;  %v12226_v23 = vld [vmem:[%s18630_s9 + $0x70] sm:$0xff] }
 0x7a7   : > { %v11484_v2 = vpop.f32.mrb[27].mxu0  ;;  %v11571_v51 = vpop.f32.mrb[26].mxu1  ;;  %v17407_v44 = vadd.f32 %v11630_v32, %v11482_v3  ;;  %v14616_v55 = vpack.i.bf16 %v17398_v36, %v17396_v47  ;;  %v12216_v3 = vld [vmem:[%s18630_s9 + $0x20] sm:$0xff] }
 0x7a8   : > { %v11573_v12 = vpop.f32.mrb[27].mxu1  ;;  %14572 = vrot.lane.b32.xlu0 %v14571_v11, %s14731_s21  ;;  %v17411_v43 = vadd.f32 %v11630_v32, %v11571_v51  ;;  %v17422_v15 = vadd.f32 %v11630_v32, %v11484_v2  ;;  %v13570_v11 = vpack.c.bf16 %v12347_v5, %v12345_v1  ;;  %v12344_v2 = vld [vmem:[%s18630_s9 + $0x420] sm:$0xff]  ;;  %13569 = vmatpush1.bf16.msra.mxu0 %v13568_v61  ;;  %v12229_v1 = vld [vmem:[%s18630_s9 + $0x88] sm:$0xff]  ;;  %v12231_v5 = vld [vmem:[%s18630_s9 + $0x98] sm:$0xff] }
 0x7a9   : > { %14582 = vrot.lane.b32.xlu1 %v14581_v60, %s14731_s21  ;;  %v17413_v53 = vadd.f32 %v11630_v32, %v11573_v12  ;;  %v14606_v4 = vpack.i.bf16 %v17407_v44, %v17416_v50  ;;  %v13442_v32 = vpack.c.bf16 %v12219_v38, %v12217_v20  ;;  %v12218_v60 = vld [vmem:[%s18630_s9 + $0x30] sm:$0xff]  ;;  %v13578_v20 = vpack.c.bf16 %v12355_v29, %v12353_v6  ;;  %v12352_v61 = vld [vmem:[%s18630_s9 + $0x460] sm:$0xff]  ;;  %v12365_v29 = vld [vmem:[%s18630_s9 + $0x4c8] sm:$0xff] }
 0x7aa   : > { %v14611_v56 = vpack.i.bf16 %v17422_v15, %v17427_v25  ;;  %v13444_v51 = vpack.c.bf16 %v12218_v60, %v12216_v3  ;;  %v12346_v12 = vld [vmem:[%s18630_s9 + $0x430] sm:$0xff]  ;;  %13571 = vmatprep.subr.bf16.mxu0 %v13570_v11  ;;  %v12359_v11 = vld [vmem:[%s18630_s9 + $0x498] sm:$0xff]  ;;  %v13452_v3 = vpack.c.bf16 %v12226_v23, %v12224_v41  ;;  %v12360_v9 = vld [vmem:[%s18630_s9 + $0x4a0] sm:$0xff] }
 0x7ab   : > { %v14621_v26 = vpack.i.bf16 %v17413_v53, %v17411_v43  ;;  %13443 = vmatprep.subr.bf16.mxu1 %v13442_v32  ;;  %v12354_v38 = vld [vmem:[%s18630_s9 + $0x470] sm:$0xff]  ;;  %v12357_v32 = vld [vmem:[%s18630_s9 + $0x488] sm:$0xff]  ;;  %v12367_v41 = vld [vmem:[%s18630_s9 + $0x4d8] sm:$0xff] }
 0x7ac   : > { %14577 = vrot.lane.b32.xlu0 %v14576_v42, %s14731_s21  ;;  %v12221_v42 = vld [vmem:[%s18630_s9 + $0x48] sm:$0xff]  ;;  %13445 = vmatpush1.bf16.msra.mxu1 %v13444_v51  ;;  %v13580_v60 = vpack.c.bf16 %v12354_v38, %v12352_v61  ;;  %v12228_v51 = vld [vmem:[%s18630_s9 + $0x80] sm:$0xff]  ;;  %v12362_v6 = vld [vmem:[%s18630_s9 + $0x4b0] sm:$0xff] }
 0x7ad   : > { %14587 = vrot.lane.b32.xlu1 %v14586_v10, %s14731_s21  ;;  %v12223_v10 = vld [vmem:[%s18630_s9 + $0x58] sm:$0xff]  ;;  %v12236_v38 = vld [vmem:[%s18630_s9 + $0xc0] sm:$0xff] }
 0x7b0   : > { %14592 = vrot.lane.b32.xlu0 %v14591_v33, %s14731_s21  ;;  %v13572_v33 = vpack.c.bf16 %v12346_v12, %v12344_v2  ;;  %v13454_v2 = vpack.c.bf16 %v12231_v5, %v12229_v1  ;;  %v12230_v12 = vld [vmem:[%s18630_s9 + $0x90] sm:$0xff]  ;;  %v12364_v5 = vld [vmem:[%s18630_s9 + $0x4c0] sm:$0xff] }
 0x7b1   : > { %14602 = vrot.lane.b32.xlu1 %v14601_v52, %s14731_s21  ;;  %v13446_v52 = vpack.c.bf16 %v12223_v10, %v12221_v42  ;;  %v12356_v42 = vld [vmem:[%s18630_s9 + $0x480] sm:$0xff]  ;;  %v13582_v10 = vpack.c.bf16 %v12359_v11, %v12357_v32  ;;  %v12238_v1 = vld [vmem:[%s18630_s9 + $0xd0] sm:$0xff]  ;;  %v13590_v32 = vpack.c.bf16 %v12367_v41, %v12365_v29 }
 0x7b2   : > { %13573 = vmatpush1.bf16.msra.mxu0 %v13572_v33  ;;  %v12358_v33 = vld [vmem:[%s18630_s9 + $0x490] sm:$0xff] }
 0x7b3   : > { %13447 = vmatprep.subr.bf16.mxu1 %v13446_v52  ;;  %v12233_v52 = vld [vmem:[%s18630_s9 + $0xa8] sm:$0xff]  ;;  %v12366_v11 = vld [vmem:[%s18630_s9 + $0x4d0] sm:$0xff] }
 0x7b4   : > { %14597 = vrot.lane.b32.xlu0 %v14596_v39, %s14731_s21  ;;  %v12349_v39 = vld [vmem:[%s18630_s9 + $0x448] sm:$0xff]  ;;  %v12374_v41 = vld [vmem:[%s18630_s9 + $0x510] sm:$0xff] }
 0x7b5   : > { %14617 = vrot.lane.b32.xlu1 %v14616_v55, %s14731_s21  ;;  %v12351_v55 = vld [vmem:[%s18630_s9 + $0x458] sm:$0xff] }
 0x7b8   : > { %14607 = vrot.lane.b32.xlu0 %v14606_v4, %s14731_s21  ;;  %v12220_v4 = vld [vmem:[%s18630_s9 + $0x40] sm:$0xff] }
 0x7b9   : > { %14622 = vrot.lane.b32.xlu1 %v14621_v26, %s14731_s21  ;;  %v13574_v26 = vpack.c.bf16 %v12351_v55, %v12349_v39  ;;  %v12235_v39 = vld [vmem:[%s18630_s9 + $0xb8] sm:$0xff]  ;;  %v12361_v55 = vld [vmem:[%s18630_s9 + $0x4a8] sm:$0xff] }
 0x7ba   : > { %v13458_v46 = vpack.c.bf16 %v12235_v39, %v12233_v52  ;;  %v12242_v52 = vld [vmem:[%s18630_s9 + $0xf0] sm:$0xff]  ;;  %v12368_v39 = vld [vmem:[%s18630_s9 + $0x4e0] sm:$0xff] }
 0x7bb   : > { %13575 = vmatprep.subr.bf16.mxu0 %v13574_v26  ;;  %v13456_v26 = vpack.c.bf16 %v12230_v12, %v12228_v51  ;;  %v12371_v51 = vld [vmem:[%s18630_s9 + $0x4f8] sm:$0xff]  ;;  %v13464_v12 = vpack.c.bf16 %v12238_v1, %v12236_v38 }
 0x7bc   : > { %14612 = vrot.lane.b32.xlu0 %v14611_v56, %s14731_s21  ;;  %v12222_v56 = vld [vmem:[%s18630_s9 + $0x50] sm:$0xff]  ;;  %13577 = vmatpush1.bf16.msra.mxu0 %v13576_v7  ;;  %v12237_v7 = vld [vmem:[%s18630_s9 + $0xc8] sm:$0xff]  ;;  %v12379_v38 = vld [vmem:[%s18630_s9 + $0x538] sm:$0xff] }
 0x7bd   : > { %v13448_v59 = vpack.c.bf16 %v12222_v56, %v12220_v4  ;;  %13579 = vmatprep.subr.bf16.mxu0 %v13578_v20  ;;  %v12363_v4 = vld [vmem:[%s18630_s9 + $0x4b8] sm:$0xff]  ;;  %v13584_v56 = vpack.c.bf16 %v12358_v33, %v12356_v42  ;;  %v13588_v20 = vpack.c.bf16 %v12362_v6, %v12360_v9  ;;  %v13592_v42 = vpack.c.bf16 %v12366_v11, %v12364_v5  ;;  %v12240_v33 = vld [vmem:[%s18630_s9 + $0xe0] sm:$0xff] }
 0x7be   : > { %v13586_v8 = vpack.c.bf16 %v12363_v4, %v12361_v55  ;;  %v12370_v4 = vld [vmem:[%s18630_s9 + $0x4f0] sm:$0xff]  ;;  %v12244_v6 = vld [vmem:[%s18630_s9 + $0x100] sm:$0xff] }
 0x7bf   : > { %13449 = vmatpush1.bf16.msra.mxu1 %v13448_v59  ;;  %v12234_v59 = vld [vmem:[%s18630_s9 + $0xb0] sm:$0xff]  ;;  %v13596_v9 = vpack.c.bf16 %v12370_v4, %v12368_v39  ;;  %v12248_v11 = vld [vmem:[%s18630_s9 + $0x120] sm:$0xff] }
 0x7c0   : > { %13451 = vmatprep.subr.bf16.mxu1 %v13450_v35  ;;  %13581 = vmatpush1.bf16.msra.mxu0 %v13580_v60  ;;  %v12239_v35 = vld [vmem:[%s18630_s9 + $0xd8] sm:$0xff]  ;;  %v13460_v23 = vpack.c.bf16 %v12234_v59, %v12232_v62  ;;  %v13468_v59 = vpack.c.bf16 %v12242_v52, %v12240_v33  ;;  %v12252_v4 = vld [vmem:[%s18630_s9 + $0x140] sm:$0xff] }
 0x7c1   : > { %13583 = vmatprep.subr.bf16.mxu0 %v13582_v10  ;;  %v13462_v61 = vpack.c.bf16 %v12239_v35, %v12237_v7  ;;  %v12243_v60 = vld [vmem:[%s18630_s9 + $0xf8] sm:$0xff]  ;;  %v12246_v7 = vld [vmem:[%s18630_s9 + $0x110] sm:$0xff]  ;;  %v12372_v35 = vld [vmem:[%s18630_s9 + $0x500] sm:$0xff] }
 0x7c2   : > { %v12375_v62 = vld [vmem:[%s18630_s9 + $0x518] sm:$0xff]  ;;  %v13472_v1 = vpack.c.bf16 %v12246_v7, %v12244_v6  ;;  %v13600_v5 = vpack.c.bf16 %v12374_v41, %v12372_v35  ;;  %v12256_v41 = vld [vmem:[%s18630_s9 + $0x160] sm:$0xff] }
 0x7c3   : > { %13453 = vmatpush1.bf16.msra.mxu1 %v13452_v3  ;;  %v12241_v3 = vld [vmem:[%s18630_s9 + $0xe8] sm:$0xff]  ;;  %v12383_v33 = vld [vmem:[%s18630_s9 + $0x558] sm:$0xff] }
 0x7c4   : > { %13455 = vmatprep.subr.bf16.mxu1 %v13454_v2  ;;  %13585 = vmatpush1.bf16.msra.mxu0 %v13584_v56  ;;  %v12369_v2 = vld [vmem:[%s18630_s9 + $0x4e8] sm:$0xff]  ;;  %v13466_v10 = vpack.c.bf16 %v12243_v60, %v12241_v3  ;;  %v12247_v56 = vld [vmem:[%s18630_s9 + $0x118] sm:$0xff]  ;;  %v12250_v3 = vld [vmem:[%s18630_s9 + $0x130] sm:$0xff] }
 0x7c5   : > { %13587 = vmatprep.subr.bf16.mxu0 %v13586_v8  ;;  %v13594_v55 = vpack.c.bf16 %v12371_v51, %v12369_v2  ;;  %v12376_v60 = vld [vmem:[%s18630_s9 + $0x520] sm:$0xff]  ;;  %v12378_v51 = vld [vmem:[%s18630_s9 + $0x530] sm:$0xff]  ;;  %v13476_v52 = vpack.c.bf16 %v12250_v3, %v12248_v11  ;;  %v12387_v6 = vld [vmem:[%s18630_s9 + $0x578] sm:$0xff] }
 0x7c6   : > { %v13604_v39 = vpack.c.bf16 %v12378_v51, %v12376_v60  ;;  %v12391_v11 = vld [vmem:[%s18630_s9 + $0x598] sm:$0xff]  ;;  %v12260_v51 = vld [vmem:[%s18630_s9 + $0x180] sm:$0xff] }
 0x7c7   : > { %13457 = vmatpush1.bf16.msra.mxu1 %v13456_v26  ;;  %v12245_v26 = vld [vmem:[%s18630_s9 + $0x108] sm:$0xff] }
 0x7c8   : > { %13459 = vmatprep.subr.bf16.mxu1 %v13458_v46  ;;  %13589 = vmatpush1.bf16.msra.mxu0 %v13588_v20  ;;  %v12373_v46 = vld [vmem:[%s18630_s9 + $0x508] sm:$0xff]  ;;  %v13470_v8 = vpack.c.bf16 %v12247_v56, %v12245_v26  ;;  %v12251_v20 = vld [vmem:[%s18630_s9 + $0x138] sm:$0xff]  ;;  %v12254_v26 = vld [vmem:[%s18630_s9 + $0x150] sm:$0xff] }
 0x7c9   : > { %13591 = vmatprep.subr.bf16.mxu0 %v13590_v32  ;;  %v13598_v29 = vpack.c.bf16 %v12375_v62, %v12373_v46  ;;  %v12380_v56 = vld [vmem:[%s18630_s9 + $0x540] sm:$0xff]  ;;  %v12382_v62 = vld [vmem:[%s18630_s9 + $0x550] sm:$0xff]  ;;  %v13480_v7 = vpack.c.bf16 %v12254_v26, %v12252_v4  ;;  %v12395_v4 = vld [vmem:[%s18630_s9 + $0x5b8] sm:$0xff] }
 0x7ca   : > { %v13608_v35 = vpack.c.bf16 %v12382_v62, %v12380_v56  ;;  %v12264_v62 = vld [vmem:[%s18630_s9 + $0x1a0] sm:$0xff] }
 0x7cb   : > { %13461 = vmatpush1.bf16.msra.mxu1 %v13460_v23  ;;  %v12249_v23 = vld [vmem:[%s18630_s9 + $0x128] sm:$0xff] }
 0x7cc   : > { %13463 = vmatprep.subr.bf16.mxu1 %v13462_v61  ;;  %13593 = vmatpush1.bf16.msra.mxu0 %v13592_v42  ;;  %v12377_v61 = vld [vmem:[%s18630_s9 + $0x528] sm:$0xff]  ;;  %v13474_v32 = vpack.c.bf16 %v12251_v20, %v12249_v23  ;;  %v12255_v42 = vld [vmem:[%s18630_s9 + $0x158] sm:$0xff]  ;;  %v12258_v23 = vld [vmem:[%s18630_s9 + $0x170] sm:$0xff] }
 0x7cd   : > { %13595 = vmatprep.subr.bf16.mxu0 %v13594_v55  ;;  %v13602_v2 = vpack.c.bf16 %v12379_v38, %v12377_v61  ;;  %v12384_v20 = vld [vmem:[%s18630_s9 + $0x560] sm:$0xff]  ;;  %v12386_v38 = vld [vmem:[%s18630_s9 + $0x570] sm:$0xff]  ;;  %v13484_v3 = vpack.c.bf16 %v12258_v23, %v12256_v41  ;;  %v12269_v41 = vld [vmem:[%s18630_s9 + $0x1c8] sm:$0xff] }
 0x7ce   : > { %v13612_v60 = vpack.c.bf16 %v12386_v38, %v12384_v20  ;;  %v12271_v23 = vld [vmem:[%s18630_s9 + $0x1d8] sm:$0xff]  ;;  %v12397_v20 = vld [vmem:[%s18630_s9 + $0x5c8] sm:$0xff] }
 0x7cf   : > { %13465 = vmatpush1.bf16.msra.mxu1 %v13464_v12  ;;  %v12253_v12 = vld [vmem:[%s18630_s9 + $0x148] sm:$0xff]  ;;  %v12399_v38 = vld [vmem:[%s18630_s9 + $0x5d8] sm:$0xff] }
 0x7d0   : > { %13467 = vmatprep.subr.bf16.mxu1 %v13466_v10  ;;  %13597 = vmatpush1.bf16.msra.mxu0 %v13596_v9  ;;  %v12381_v10 = vld [vmem:[%s18630_s9 + $0x548] sm:$0xff]  ;;  %v13478_v55 = vpack.c.bf16 %v12255_v42, %v12253_v12  ;;  %v12259_v9 = vld [vmem:[%s18630_s9 + $0x178] sm:$0xff]  ;;  %v12262_v12 = vld [vmem:[%s18630_s9 + $0x190] sm:$0xff] }
 0x7d1   : > { %13599 = vmatprep.subr.bf16.mxu0 %v13598_v29  ;;  %v13606_v46 = vpack.c.bf16 %v12383_v33, %v12381_v10  ;;  %v12388_v42 = vld [vmem:[%s18630_s9 + $0x580] sm:$0xff]  ;;  %v12390_v33 = vld [vmem:[%s18630_s9 + $0x590] sm:$0xff]  ;;  %v13488_v26 = vpack.c.bf16 %v12262_v12, %v12260_v51 }
 0x7d2   : > { %v13616_v56 = vpack.c.bf16 %v12390_v33, %v12388_v42  ;;  %v12273_v42 = vld [vmem:[%s18630_s9 + $0x1e8] sm:$0xff] }
 0x7d3   : > { %13469 = vmatpush1.bf16.msra.mxu1 %v13468_v59  ;;  %v12257_v59 = vld [vmem:[%s18630_s9 + $0x168] sm:$0xff] }
 0x7d4   : > { %13471 = vmatprep.subr.bf16.mxu1 %v13470_v8  ;;  %13601 = vmatpush1.bf16.msra.mxu0 %v13600_v5  ;;  %v12385_v8 = vld [vmem:[%s18630_s9 + $0x568] sm:$0xff]  ;;  %v13482_v29 = vpack.c.bf16 %v12259_v9, %v12257_v59  ;;  %v12263_v5 = vld [vmem:[%s18630_s9 + $0x198] sm:$0xff]  ;;  %v12266_v59 = vld [vmem:[%s18630_s9 + $0x1b0] sm:$0xff] }
 0x7d5   : > { %13603 = vmatprep.subr.bf16.mxu0 %v13602_v2  ;;  %v13610_v61 = vpack.c.bf16 %v12387_v6, %v12385_v8  ;;  %v12392_v8 = vld [vmem:[%s18630_s9 + $0x5a0] sm:$0xff]  ;;  %v12394_v6 = vld [vmem:[%s18630_s9 + $0x5b0] sm:$0xff]  ;;  %v12401_v33 = vld [vmem:[%s18630_s9 + $0x5e8] sm:$0xff] }
 0x7d7   : > { %13473 = vmatpush1.bf16.msra.mxu1 %v13472_v1  ;;  %v12261_v1 = vld [vmem:[%s18630_s9 + $0x188] sm:$0xff] }
 0x7d8   : > { %13475 = vmatprep.subr.bf16.mxu1 %v13474_v32  ;;  %13605 = vmatpush1.bf16.msra.mxu0 %v13604_v39  ;;  %v12389_v32 = vld [vmem:[%s18630_s9 + $0x588] sm:$0xff]  ;;  %v13486_v2 = vpack.c.bf16 %v12263_v5, %v12261_v1  ;;  %v12267_v39 = vld [vmem:[%s18630_s9 + $0x1b8] sm:$0xff]  ;;  %v12268_v1 = vld [vmem:[%s18630_s9 + $0x1c0] sm:$0xff] }
 0x7d9   : > { %13607 = vmatprep.subr.bf16.mxu0 %v13606_v46  ;;  %v13614_v10 = vpack.c.bf16 %v12391_v11, %v12389_v32  ;;  %v12270_v5 = vld [vmem:[%s18630_s9 + $0x1d0] sm:$0xff]  ;;  %v13622_v32 = vpack.c.bf16 %v12399_v38, %v12397_v20 }
 0x7da   : > { %v13496_v11 = vpack.c.bf16 %v12270_v5, %v12268_v1 }
 0x7db   : > { %13477 = vmatpush1.bf16.msra.mxu1 %v13476_v52  ;;  %v12265_v52 = vld [vmem:[%s18630_s9 + $0x1a8] sm:$0xff] }
 0x7dc   : > { %13479 = vmatprep.subr.bf16.mxu1 %v13478_v55  ;;  %13609 = vmatpush1.bf16.msra.mxu0 %v13608_v35  ;;  %v12393_v55 = vld [vmem:[%s18630_s9 + $0x5a8] sm:$0xff]  ;;  %v13490_v46 = vpack.c.bf16 %v12267_v39, %v12265_v52  ;;  %v13620_v35 = vpack.c.bf16 %v12394_v6, %v12392_v8  ;;  %v12403_v39 = vld [vmem:[%s18630_s9 + $0x5f8] sm:$0xff] }
 0x7dd   : > { %13611 = vmatprep.subr.bf16.mxu0 %v13610_v61  ;;  %v13618_v9 = vpack.c.bf16 %v12395_v4, %v12393_v55  ;;  %v13494_v61 = vpack.c.bf16 %v12271_v23, %v12269_v41  ;;  %v12272_v55 = vld [vmem:[%s18630_s9 + $0x1e0] sm:$0xff]  ;;  %v12274_v4 = vld [vmem:[%s18630_s9 + $0x1f0] sm:$0xff] }
 0x7df   : > { %13481 = vmatpush1.bf16.msra.mxu1 %v13480_v7  ;;  %v13492_v7 = vpack.c.bf16 %v12266_v59, %v12264_v62  ;;  %v12400_v62 = vld [vmem:[%s18630_s9 + $0x5e0] sm:$0xff]  ;;  %v12402_v59 = vld [vmem:[%s18630_s9 + $0x5f0] sm:$0xff] }
 0x7e0   : > { %13483 = vmatprep.subr.bf16.mxu1 %v13482_v29  ;;  %13613 = vmatpush1.bf16.msra.mxu0 %v13612_v60  ;;  %v12398_v60 = vld [vmem:[%s18630_s9 + $0x5d0] sm:$0xff] }
 0x7e1   : > { %13615 = vmatprep.subr.bf16.mxu0 %v13614_v10  ;;  %v12275_v10 = vld [vmem:[%s18630_s9 + $0x1f8] sm:$0xff] }
 0x7e2   : > { %v13498_v52 = vpack.c.bf16 %v12275_v10, %v12273_v42 }
 0x7e3   : > { %13485 = vmatpush1.bf16.msra.mxu1 %v13484_v3  ;;  %v12396_v3 = vld [vmem:[%s18630_s9 + $0x5c0] sm:$0xff] }
 0x7e4   : > { %13487 = vmatprep.subr.bf16.mxu1 %v13486_v2  ;;  %13617 = vmatpush1.bf16.msra.mxu0 %v13616_v56  ;;  %v13624_v12 = vpack.c.bf16 %v12398_v60, %v12396_v3  ;;  %v13626_v56 = vpack.c.bf16 %v12403_v39, %v12401_v33 }
 0x7e5   : > { %13619 = vmatprep.subr.bf16.mxu0 %v13618_v9 }
 0x7e7   : > { %13489 = vmatpush1.bf16.msra.mxu1 %v13488_v26 }
 0x7e8   : > { %13491 = vmatprep.subr.bf16.mxu1 %v13490_v46  ;;  %13621 = vmatpush1.bf16.msra.mxu0 %v13620_v35  ;;  %v13500_v46 = vpack.c.bf16 %v12274_v4, %v12272_v55  ;;  %v13628_v35 = vpack.c.bf16 %v12402_v59, %v12400_v62  ;;  %v14720_v59 = vld [vmem:[#allocation2 + $0x40] sm:$0xff] }
 0x7e9   : > { %13623 = vmatprep.subr.bf16.mxu0 %v13622_v32 }
 0x7eb   : > { %13493 = vmatpush1.bf16.msra.mxu1 %v13492_v7 }
 0x7ec   : > { %13495 = vmatprep.subr.bf16.mxu1 %v13494_v61  ;;  %13625 = vmatpush1.bf16.msra.mxu0 %v13624_v12 }
 0x7ed   : > { %13627 = vmatprep.subr.bf16.mxu0 %v13626_v56 }
 0x7ef   : > { %13497 = vmatpush1.bf16.msra.mxu1 %v13496_v11 }
 0x7f0   : > { %13499 = vmatprep.subr.bf16.mxu1 %v13498_v52  ;;  %13629 = vmatpush1.bf16.msra.mxu0 %v13628_v35 }
 0x7f3   : > { %13501 = vmatpush1.bf16.msra.mxu1 %v13500_v46 }
 0x802   : > { %v14548_v29 = vpop.permute.xlu1 %14547 }
 0x803   : > { %v14550_v2 = vunpack.i.h.bf16 %v14548_v29  ;;  %v14549_v51 = vunpack.i.l.bf16 %v14548_v29 }
 0x805   : > { %v11873_v9 = vsel %vm527_vm0, %v14549_v51, %v14550_v2 }
 0x806   : > { %v17825_v20 = vmax.f32 %v17313_v13, %v11873_v9 }
 0x812   : > { %v14553_v26 = vpop.permute.xlu0 %14552 }
 0x813   : > { %v14555_v8 = vunpack.i.h.bf16 %v14553_v26  ;;  %v14554_v6 = vunpack.i.l.bf16 %v14553_v26  ;;  %v17819_v7 = vpop.permute.xlu1 %14557 }
 0x814   : > { %v14560_v29 = vunpack.i.h.bf16 %v17819_v7  ;;  %v14559_v41 = vunpack.i.l.bf16 %v17819_v7 }
 0x815   : > { %v11874_v23 = vsel %vm527_vm0, %v14550_v2, %v14554_v6 }
 0x816   : > { %v17828_v61 = vmax.f32 %v17315_v54, %v11874_v23  ;;  %v11877_v38 = vsel %vm527_vm0, %v14555_v8, %v14559_v41  ;;  %v11878_v1 = vsel %vm527_vm0, %v14559_v41, %v14560_v29  ;;  %v14563_v5 = vpop.permute.xlu0 %14562 }
 0x817   : > { %v17835_v32 = vmax.f32 %v17328_v58, %v11877_v38  ;;  %v17838_v11 = vmax.f32 %v17330_v63, %v11878_v1  ;;  %v14565_v3 = vunpack.i.h.bf16 %v14563_v5  ;;  %v14564_v60 = vunpack.i.l.bf16 %v14563_v5  ;;  %v14568_v13 = vpop.permute.xlu1 %14567 }
 0x818   : > { %v14626_v54 = vpack.i.bf16 %v17828_v61, %v17825_v20  ;;  %v14569_v55 = vunpack.i.l.bf16 %v14568_v13 }
 0x819   : > { %v11872_v2 = vsel %vm527_vm0, %v14564_v60, %v14549_v51  ;;  %v17844_v12 = vsel %vm527_vm0, %v14554_v6, %v14565_v3  ;;  %v11876_v42 = vsel %vm527_vm0, %v14565_v3, %v14555_v8  ;;  %v14636_v58 = vpack.i.bf16 %v17838_v11, %v17835_v32 }
 0x81a   : > { %v17850_v10 = vmax.f32 %v17344_v37, %v11872_v2  ;;  %v17853_v63 = vmax.f32 %v17334_v34, %v11876_v42  ;;  %14627 = vrot.lane.b32.xlu1 %v14626_v54, %s14733_s23  ;;  %v14573_v33 = vpop.permute.xlu0 %14572  ;;  %v14570_v51 = vunpack.i.h.bf16 %v14568_v13 }
 0x81b   : > { %v14574_v52 = vunpack.i.l.bf16 %v14573_v33  ;;  %v14583_v39 = vpop.permute.xlu1 %14582  ;;  %14637 = vrot.lane.b32.xlu0 %v14636_v58, %s14733_s23  ;;  %v14575_v56 = vunpack.i.h.bf16 %v14573_v33 }
 0x81c   : > { %v14631_v4 = vpack.i.bf16 %v17853_v63, %v17850_v10  ;;  %v11881_v9 = vsel %vm527_vm0, %v14569_v55, %v14570_v51  ;;  %v14585_v8 = vunpack.i.h.bf16 %v14583_v39  ;;  %v14584_v6 = vunpack.i.l.bf16 %v14583_v39 }
 0x81d   : > { %v11882_v26 = vsel %vm527_vm0, %v14570_v51, %v14574_v52  ;;  %v17875_v5 = vmax.f32 %v17338_v18, %v11881_v9 }
 0x81e   : > { %14632 = vrot.lane.b32.xlu1 %v14631_v4, %s14733_s23  ;;  %v14578_v37 = vpop.permute.xlu0 %14577  ;;  %v17866_v35 = vmax.f32 %v17340_v45, %v11882_v26  ;;  %v11889_v54 = vsel %vm527_vm0, %v14584_v6, %v14585_v8 }
 0x81f   : > { %v14580_v34 = vunpack.i.h.bf16 %v14578_v37  ;;  %v14579_v46 = vunpack.i.l.bf16 %v14578_v37  ;;  %v17861_v62 = vpop.permute.xlu1 %14587  ;;  %11816 = vrot.lane.b32.xlu0 %v14720_v59, %s14731_s21 }
 0x820   : > { %v14641_v18 = vpack.i.bf16 %v17866_v35, %v17875_v5  ;;  %v14590_v37 = vunpack.i.h.bf16 %v17861_v62 }
 0x821   : > { %v11880_v41 = vsel %vm527_vm0, %v14579_v46, %v14569_v55  ;;  %v17870_v23 = vsel %vm527_vm0, %v14574_v52, %v14580_v34  ;;  %v11884_v38 = vsel %vm527_vm0, %v14580_v34, %v14575_v56 }
 0x822   : > { %11834 = vrot.lane.b32.xlu1 %v14720_v59, %s14731_s21  ;;  %v14593_v1 = vpop.permute.xlu0 %14592  ;;  %v17881_v45 = vmax.f32 %v17372_v14, %v11880_v41  ;;  %v17884_v60 = vmax.f32 %v17362_v40, %v11884_v38  ;;  %v17896_v40 = vmax.f32 %v17354_v28, %v11889_v54  ;;  %v14589_v28 = vunpack.i.l.bf16 %v17861_v62 }
 0x823   : > { %v17877_v3 = vpop.permute.xlu1 %14602  ;;  %11852 = vrot.lane.b32.xlu0 %v14720_v59, %s14731_s21  ;;  %v14595_v58 = vunpack.i.h.bf16 %v14593_v1  ;;  %v14594_v34 = vunpack.i.l.bf16 %v14593_v1 }
 0x824   : > { %v14604_v13 = vunpack.i.l.bf16 %v17877_v3  ;;  %v14605_v2 = vunpack.i.h.bf16 %v17877_v3  ;;  %v14646_v39 = vpack.i.bf16 %v17884_v60, %v17881_v45  ;;  %v11897_v1 = vsel %vm527_vm0, %v14589_v28, %v14590_v37 }
 0x826   : > { %11870 = vrot.lane.b32.xlu1 %v14720_v59, %s14731_s21  ;;  %v14598_v42 = vpop.permute.xlu0 %14597  ;;  %v11885_v14 = vsel %vm527_vm0, %v14575_v56, %v14604_v13  ;;  %v11886_v51 = vsel %vm527_vm0, %v14604_v13, %v14605_v2  ;;  %v11888_v13 = vsel %vm527_vm0, %v14594_v34, %v14584_v6 }
 0x827   : > { %v14599_v33 = vunpack.i.l.bf16 %v14598_v42  ;;  %v17892_v52 = vpop.permute.xlu1 %14617  ;;  %14642 = vrot.lane.b32.xlu0 %v14641_v18, %s14733_s23  ;;  %v14600_v55 = vunpack.i.h.bf16 %v14598_v42  ;;  %v17915_v59 = vmax.f32 %v17350_v30, %v11885_v14  ;;  %v17918_v9 = vmax.f32 %v17382_v57, %v11886_v51 }
 0x829   : > { %v11890_v4 = vsel %vm527_vm0, %v14585_v8, %v14599_v33  ;;  %v17906_v26 = vsel %vm527_vm0, %v14599_v33, %v14595_v58  ;;  %v14619_v8 = vunpack.i.l.bf16 %v17892_v52  ;;  %v11892_v38 = vsel %vm527_vm0, %v14595_v58, %v14600_v55 }
 0x82a   : > { %v17911_v56 = vmax.f32 %v17356_v48, %v11890_v4  ;;  %v14608_v46 = vpop.permute.xlu0 %14607  ;;  %v14620_v48 = vunpack.i.h.bf16 %v17892_v52  ;;  %v17933_v14 = vmax.f32 %v17378_v24, %v11892_v38  ;;  %v17950_v24 = vmax.f32 %v17386_v31, %v11888_v13  ;;  %v12405_v13 = vld [vmem:[%s18630_s9 + $0x608] sm:$0xff] }
 0x82b   : > { %14647 = vrot.lane.b32.xlu0 %v14646_v39, %s14733_s23  ;;  %v17921_v41 = vpop.permute.xlu1 %14622  ;;  %v14610_v30 = vunpack.i.h.bf16 %v14608_v46  ;;  %v11893_v58 = vsel %vm527_vm0, %v14600_v55, %v14619_v8  ;;  %v14656_v39 = vpack.i.bf16 %v17918_v9, %v17915_v59  ;;  %v14609_v38 = vunpack.i.l.bf16 %v14608_v46 }
 0x82c   : > { %v14651_v62 = vpack.i.bf16 %v17911_v56, %v17896_v40  ;;  %v14625_v54 = vunpack.i.h.bf16 %v17921_v41  ;;  %v14624_v18 = vunpack.i.l.bf16 %v17921_v41  ;;  %v11894_v6 = vsel %vm527_vm0, %v14619_v8, %v14620_v48 }
 0x82d   : > { %v17957_v8 = vmax.f32 %v17392_v21, %v11893_v58  ;;  %v18105_v3 = vmax.f32 %v17401_v0, %v17906_v26  ;;  %v12284_v26 = vld [vmem:[%s18630_s9 + $0x240] sm:$0xff] }
 0x82e   : > { %14652 = vrot.lane.b32.xlu1 %v14651_v62, %s14733_s23  ;;  %v14613_v57 = vpop.permute.xlu0 %14612  ;;  %v17947_v62 = vmax.f32 %v17368_v22, %v11897_v1  ;;  %v12279_v1 = vld [vmem:[%s18630_s9 + $0x218] sm:$0xff] }
 0x82f   : > { %v14615_v42 = vunpack.i.h.bf16 %v14613_v57  ;;  %v14614_v33 = vunpack.i.l.bf16 %v14613_v57  ;;  %v17963_v57 = vmax.f32 %v17396_v47, %v11894_v6  ;;  %v11896_v47 = vsel %vm527_vm0, %v14609_v38, %v14589_v28 }
 0x830   : > { %v17999_v58 = vmax.f32 %v17416_v50, %v11896_v47 }
 0x831   : > { %v11901_v51 = vsel %vm527_vm0, %v14615_v42, %v14624_v18  ;;  %v11898_v4 = vsel %vm527_vm0, %v14590_v37, %v14614_v33  ;;  %v17944_v34 = vsel %vm527_vm0, %v14614_v33, %v14610_v30  ;;  %v11902_v37 = vsel %vm527_vm0, %v14624_v18, %v14625_v54 }
 0x832   : > { %v17953_v55 = vmax.f32 %v17370_v49, %v11898_v4  ;;  %14657 = vrot.lane.b32.xlu1 %v14656_v39, %s14733_s23  ;;  %v17966_v22 = vmax.f32 %v17422_v15, %v11901_v51  ;;  %v14661_v49 = vpack.i.bf16 %v17933_v14, %v17950_v24  ;;  %v11900_v21 = vsel %vm527_vm0, %v14610_v30, %v14615_v42  ;;  %v12277_v15 = vld [vmem:[%s18630_s9 + $0x208] sm:$0xff]  ;;  %v12407_v42 = vld [vmem:[%s18630_s9 + $0x618] sm:$0xff] }
 0x833   : > { %v17974_v46 = vmax.f32 %v17411_v43, %v11902_v37  ;;  %v17989_v43 = vmax.f32 %v17407_v44, %v11900_v21  ;;  %v14671_v28 = vpack.i.bf16 %v17963_v57, %v17957_v8  ;;  %v13502_v18 = vpack.c.bf16 %v12279_v1, %v12277_v15  ;;  %v12404_v1 = vld [vmem:[%s18630_s9 + $0x600] sm:$0xff] }
 0x834   : > { %v14666_v31 = vpack.i.bf16 %v17953_v55, %v17947_v62  ;;  %v13630_v33 = vpack.c.bf16 %v12407_v42, %v12405_v13  ;;  %v12406_v13 = vld [vmem:[%s18630_s9 + $0x610] sm:$0xff] }
 0x835   : > { %v14681_v30 = vpack.i.bf16 %v17974_v46, %v17966_v22  ;;  %13503 = vmatprep.subr.bf16.mxu1 %v13502_v18  ;;  %v14676_v44 = vpack.i.bf16 %v17989_v43, %v17999_v58  ;;  %v18039_v18 = vmax.f32 %v17326_v16, %v17844_v12 }
 0x836   : > { %14662 = vrot.lane.b32.xlu1 %v14661_v49, %s14733_s23  ;;  %14667 = vrot.lane.b32.xlu0 %v14666_v31, %s14733_s23  ;;  %v12276_v49 = vld [vmem:[%s18630_s9 + $0x200] sm:$0xff]  ;;  %v12278_v31 = vld [vmem:[%s18630_s9 + $0x210] sm:$0xff] }
 0x837   : > { %13631 = vmatprep.subr.bf16.mxu0 %v13630_v33  ;;  %v12281_v33 = vld [vmem:[%s18630_s9 + $0x228] sm:$0xff]  ;;  %v13504_v12 = vpack.c.bf16 %v12278_v31, %v12276_v49  ;;  %v12282_v49 = vld [vmem:[%s18630_s9 + $0x230] sm:$0xff] }
 0x83a   : > { %14682 = vrot.lane.b32.xlu1 %v14681_v30, %s14733_s23  ;;  %14672 = vrot.lane.b32.xlu0 %v14671_v28, %s14733_s23 }
 0x83e   : > { %14677 = vrot.lane.b32.xlu0 %v14676_v44, %s14733_s23  ;;  %v12283_v44 = vld [vmem:[%s18630_s9 + $0x238] sm:$0xff] }
 0x88c   : > { %v18006_v39 = vpop.permute.xlu1 %14627 }
 0x88d   : > { %v18645_v6 = vunpack.i.h.bf16 %v18006_v39  ;;  %v14629_v51 = vunpack.i.l.bf16 %v18006_v39  ;;  %v18010_v4 = vpop.permute.xlu0 %14637 }
 0x88e   : > { %v18646_v50 = vunpack.i.h.bf16 %v18010_v4  ;;  %v14639_v38 = vunpack.i.l.bf16 %v18010_v4 }
 0x88f   : > { %v12117_v37 = vsel %vm663_vm2, %v14629_v51, %v18645_v6 }
 0x890   : > { %v18023_v21 = vpop.permute.xlu1 %14632  ;;  %v12181_v47 = vmax.f32 %v17825_v20, %v12117_v37  ;;  %v12121_v15 = vsel %vm663_vm2, %v14639_v38, %v18646_v50  ;;  %v18050_v37 = vmax.f32 %v17358_v19, %v17870_v23  ;;  %v12280_v23 = vld [vmem:[%s18630_s9 + $0x220] sm:$0xff] }
 0x891   : > { %v14635_v30 = vunpack.i.h.bf16 %v18023_v21  ;;  %v14634_v28 = vunpack.i.l.bf16 %v18023_v21  ;;  %v11817_v20 = vpop.permute.xlu0 %11816  ;;  %v12185_v42 = vmax.f32 %v17835_v32, %v12121_v15  ;;  %v12409_v32 = vld [vmem:[%s18630_s9 + $0x628] sm:$0xff]  ;;  %v12411_v15 = vld [vmem:[%s18630_s9 + $0x638] sm:$0xff] }
 0x892   : > { %v11980_v6 = vmax.f32 %v11817_v20, 0.0  ;;  %v11879_v16 = vsel %vm527_vm0, %v14560_v29, %v11817_v20  ;;  %12532 = vmatprep.mubr.f32.mxu1 %v12181_v47  ;;  %v13632_v29 = vpack.c.bf16 %v12406_v13, %v12404_v1  ;;  %v12410_v1 = vld [vmem:[%s18630_s9 + $0x630] sm:$0xff]  ;;  %v12285_v13 = vld [vmem:[%s18630_s9 + $0x248] sm:$0xff]  ;;  %v13634_v20 = vpack.c.bf16 %v12411_v15, %v12409_v32 }
 0x893   : > { %v12116_v50 = vsel %vm663_vm2, %v14634_v28, %v14629_v51  ;;  %v12120_v19 = vsel %vm663_vm2, %v14635_v30, %v14639_v38  ;;  %v18066_v7 = vmax.f32 %v17332_v27, %v11879_v16  ;;  %12710 = vmatprep.mubr.f32.mxu0 %v12185_v42  ;;  %v13506_v28 = vpack.c.bf16 %v12283_v44, %v12281_v33  ;;  %v12408_v27 = vld [vmem:[%s18630_s9 + $0x620] sm:$0xff]  ;;  %v12287_v42 = vld [vmem:[%s18630_s9 + $0x258] sm:$0xff]  ;;  %v12413_v33 = vld [vmem:[%s18630_s9 + $0x648] sm:$0xff] }
 0x894   : > { %v12180_v31 = vmax.f32 %v17850_v10, %v12116_v50  ;;  %v12184_v51 = vmax.f32 %v17853_v63, %v12120_v19  ;;  %v14691_v47 = vpack.i.bf16 %v18050_v37, %v11980_v6  ;;  %v11835_v38 = vpop.permute.xlu1 %11834  ;;  %v12415_v44 = vld [vmem:[%s18630_s9 + $0x658] sm:$0xff]  ;;  %v13508_v15 = vpack.c.bf16 %v12282_v49, %v12280_v23 }
 0x895   : > { %v14686_v10 = vpack.i.bf16 %v18066_v7, %v18039_v18  ;;  %v11887_v63 = vsel %vm527_vm0, %v14605_v2, %v11835_v38  ;;  %v11989_v6 = vmax.f32 %v11835_v38, 0.0  ;;  %v11853_v50 = vpop.permute.xlu0 %11852  ;;  %v13510_v0 = vpack.c.bf16 %v12287_v42, %v12285_v13  ;;  %v12417_v13 = vld [vmem:[%s18630_s9 + $0x668] sm:$0xff] }
 0x896   : > { %v18101_v16 = vmax.f32 %v17384_v17, %v11887_v63  ;;  %v11895_v2 = vsel %vm527_vm0, %v14620_v48, %v11853_v50  ;;  %12533 = vmatmul.mubr.f32.vlgmr.msra.gmra.mrb[28].mxu1 %v12180_v31  ;;  %12711 = vmatmul.mubr.f32.vlgmr.msra.gmra.mrb[28].mxu0 %v12184_v51  ;;  %v13636_v17 = vpack.c.bf16 %v12410_v1, %v12408_v27  ;;  %v11998_v48 = vmax.f32 %v11853_v50, 0.0  ;;  %v12412_v31 = vld [vmem:[%s18630_s9 + $0x640] sm:$0xff]  ;;  %v12414_v51 = vld [vmem:[%s18630_s9 + $0x650] sm:$0xff]  ;;  %v12291_v27 = vld [vmem:[%s18630_s9 + $0x278] sm:$0xff] }
 0x897   : > { %v18111_v32 = vmax.f32 %v17398_v36, %v11895_v2  ;;  %14692 = vrot.lane.b32.xlu0 %v14691_v47, %s14733_s23  ;;  %14687 = vrot.lane.b32.xlu1 %v14686_v10, %s14733_s23  ;;  %v13638_v52 = vpack.c.bf16 %v12415_v44, %v12413_v33  ;;  %v12286_v36 = vld [vmem:[%s18630_s9 + $0x250] sm:$0xff]  ;;  %v18148_v1 = vmax.f32 %v17427_v25, %v17944_v34  ;;  %v12419_v10 = vld [vmem:[%s18630_s9 + $0x678] sm:$0xff] }
 0x898   : > { %v14696_v19 = vpack.i.bf16 %v11989_v6, %v18101_v16  ;;  %v11871_v38 = vpop.permute.xlu1 %11870  ;;  %13505 = vmatpush1.bf16.msra.mxu1 %v13504_v12  ;;  %13633 = vmatpush1.bf16.msra.mxu0 %v13632_v29  ;;  %v13640_v34 = vpack.c.bf16 %v12414_v51, %v12412_v31  ;;  %v12288_v6 = vld [vmem:[%s18630_s9 + $0x260] sm:$0xff]  ;;  %v12290_v44 = vld [vmem:[%s18630_s9 + $0x270] sm:$0xff] }
 0x899   : > { %v14701_v23 = vpack.i.bf16 %v18111_v32, %v18105_v3  ;;  %v11903_v49 = vsel %vm527_vm0, %v14625_v54, %v11871_v38  ;;  %v12007_v12 = vmax.f32 %v11871_v38, 0.0  ;;  %v18127_v29 = vpop.permute.xlu0 %14642  ;;  %13507 = vmatprep.subr.bf16.mxu1 %v13506_v28  ;;  %13635 = vmatprep.subr.bf16.mxu0 %v13634_v20  ;;  %v12289_v28 = vld [vmem:[%s18630_s9 + $0x268] sm:$0xff]  ;;  %v14706_v50 = vpack.i.bf16 %v18148_v1, %v11998_v48  ;;  %v12416_v2 = vld [vmem:[%s18630_s9 + $0x660] sm:$0xff]  ;;  %v12295_v38 = vld [vmem:[%s18630_s9 + $0x298] sm:$0xff] }
 0x89a   : > { %v18136_v47 = vmax.f32 %v17413_v53, %v11903_v49  ;;  %v14645_v41 = vunpack.i.h.bf16 %v18127_v29  ;;  %v14644_v54 = vunpack.i.l.bf16 %v18127_v29  ;;  %v13512_v53 = vpack.c.bf16 %v12286_v36, %v12284_v26  ;;  %v12292_v49 = vld [vmem:[%s18630_s9 + $0x280] sm:$0xff] }
 0x89b   : > { %14697 = vrot.lane.b32.xlu1 %v14696_v19, %s14733_s23  ;;  %14702 = vrot.lane.b32.xlu0 %v14701_v23, %s14733_s23  ;;  %v13514_v33 = vpack.c.bf16 %v12291_v27, %v12289_v28  ;;  %v13642_v19 = vpack.c.bf16 %v12419_v10, %v12417_v13  ;;  %v13516_v48 = vpack.c.bf16 %v12290_v44, %v12288_v6  ;;  %v12420_v27 = vld [vmem:[%s18630_s9 + $0x680] sm:$0xff]  ;;  %v12299_v10 = vld [vmem:[%s18630_s9 + $0x2b8] sm:$0xff] }
 0x89c   : > { %v14711_v63 = vpack.i.bf16 %v12007_v12, %v18136_v47  ;;  %v12125_v25 = vsel %vm663_vm2, %v14644_v54, %v14645_v41  ;;  %13509 = vmatpush1.bf16.msra.mxu1 %v13508_v15  ;;  %13637 = vmatpush1.bf16.msra.mxu0 %v13636_v17  ;;  %v12418_v15 = vld [vmem:[%s18630_s9 + $0x670] sm:$0xff]  ;;  %v12296_v44 = vld [vmem:[%s18630_s9 + $0x2a0] sm:$0xff] }
 0x89d   : > { %v18166_v20 = vpop.permute.xlu0 %14647  ;;  %v12189_v42 = vmax.f32 %v17875_v5, %v12125_v25  ;;  %13511 = vmatprep.subr.bf16.mxu1 %v13510_v0  ;;  %13639 = vmatprep.subr.bf16.mxu0 %v13638_v52  ;;  %v12293_v5 = vld [vmem:[%s18630_s9 + $0x288] sm:$0xff]  ;;  %v12423_v52 = vld [vmem:[%s18630_s9 + $0x698] sm:$0xff]  ;;  %v13644_v23 = vpack.c.bf16 %v12418_v15, %v12416_v2 }
 0x89e   : > { %v14649_v17 = vunpack.i.l.bf16 %v18166_v20  ;;  %v12421_v0 = vld [vmem:[%s18630_s9 + $0x688] sm:$0xff]  ;;  %v13518_v28 = vpack.c.bf16 %v12295_v38, %v12293_v5  ;;  %v14650_v2 = vunpack.i.h.bf16 %v18166_v20  ;;  %v12424_v5 = vld [vmem:[%s18630_s9 + $0x6a0] sm:$0xff]  ;;  %v12426_v38 = vld [vmem:[%s18630_s9 + $0x6b0] sm:$0xff] }
 0x89f   : > { %12538 = vmatprep.mubr.f32.mxu1 %v12189_v42  ;;  %14707 = vrot.lane.b32.xlu1 %v14706_v50, %s14733_s23  ;;  %v13646_v13 = vpack.c.bf16 %v12423_v52, %v12421_v0  ;;  %v12425_v25 = vld [vmem:[%s18630_s9 + $0x6a8] sm:$0xff] }
 0x8a0   : > { %14712 = vrot.lane.b32.xlu0 %v14711_v63, %s14733_s23  ;;  %v18193_v26 = vpop.permute.xlu1 %14652  ;;  %v12124_v36 = vsel %vm663_vm2, %v14649_v17, %v14644_v54  ;;  %13513 = vmatpush1.bf16.msra.mxu1 %v13512_v53  ;;  %v12294_v54 = vld [vmem:[%s18630_s9 + $0x290] sm:$0xff]  ;;  %v12301_v52 = vld [vmem:[%s18630_s9 + $0x2c8] sm:$0xff] }
 0x8a1   : > { %v14655_v12 = vunpack.i.h.bf16 %v18193_v26  ;;  %v14654_v31 = vunpack.i.l.bf16 %v18193_v26  ;;  %v12188_v51 = vmax.f32 %v17881_v45, %v12124_v36  ;;  %13641 = vmatpush1.bf16.msra.mxu0 %v13640_v34  ;;  %13515 = vmatprep.subr.bf16.mxu1 %v13514_v33  ;;  %v12422_v53 = vld [vmem:[%s18630_s9 + $0x690] sm:$0xff]  ;;  %v12297_v45 = vld [vmem:[%s18630_s9 + $0x2a8] sm:$0xff]  ;;  %v12427_v34 = vld [vmem:[%s18630_s9 + $0x6b8] sm:$0xff]  ;;  %v13520_v42 = vpack.c.bf16 %v12294_v54, %v12292_v49 }
 0x8a2   : > { %13643 = vmatprep.subr.bf16.mxu0 %v13642_v19  ;;  %v13648_v33 = vpack.c.bf16 %v12422_v53, %v12420_v27  ;;  %v13522_v19 = vpack.c.bf16 %v12299_v10, %v12297_v45  ;;  %v13650_v0 = vpack.c.bf16 %v12427_v34, %v12425_v25  ;;  %v12303_v36 = vld [vmem:[%s18630_s9 + $0x2d8] sm:$0xff]  ;;  %v12429_v49 = vld [vmem:[%s18630_s9 + $0x6c8] sm:$0xff]  ;;  %v13652_v10 = vpack.c.bf16 %v12426_v38, %v12424_v5  ;;  %v12428_v25 = vld [vmem:[%s18630_s9 + $0x6c0] sm:$0xff] }
 0x8a3   : > { %12539 = vmatmul.mubr.f32.gmra.mrb[30].mxu1 %v12188_v51  ;;  %v12133_v63 = vsel %vm663_vm2, %v14654_v31, %v14655_v12  ;;  %v12431_v51 = vld [vmem:[%s18630_s9 + $0x6d8] sm:$0xff]  ;;  %v12430_v34 = vld [vmem:[%s18630_s9 + $0x6d0] sm:$0xff] }
 0x8a4   : > { %v18228_v6 = vpop.permute.xlu1 %14657  ;;  %v12197_v50 = vmax.f32 %v17896_v40, %v12133_v63  ;;  %13517 = vmatpush1.bf16.msra.mxu1 %v13516_v48  ;;  %v12298_v40 = vld [vmem:[%s18630_s9 + $0x2b0] sm:$0xff]  ;;  %v13656_v38 = vpack.c.bf16 %v12430_v34, %v12428_v25  ;;  %v12304_v25 = vld [vmem:[%s18630_s9 + $0x2e0] sm:$0xff]  ;;  %v12309_v34 = vld [vmem:[%s18630_s9 + $0x308] sm:$0xff] }
 0x8a5   : > { %v14660_v15 = vunpack.i.h.bf16 %v18228_v6  ;;  %v14659_v17 = vunpack.i.l.bf16 %v18228_v6  ;;  %13645 = vmatpush1.bf16.msra.mxu0 %v13644_v23  ;;  %13519 = vmatprep.subr.bf16.mxu1 %v13518_v28  ;;  %v12300_v28 = vld [vmem:[%s18630_s9 + $0x2c0] sm:$0xff]  ;;  %v13524_v45 = vpack.c.bf16 %v12298_v40, %v12296_v44  ;;  %v12302_v63 = vld [vmem:[%s18630_s9 + $0x2d0] sm:$0xff]  ;;  %v12305_v44 = vld [vmem:[%s18630_s9 + $0x2e8] sm:$0xff]  ;;  %v13654_v40 = vpack.c.bf16 %v12431_v51, %v12429_v49 }
 0x8a6   : > { %12544 = vmatprep.mubr.f32.mxu1 %v12197_v50  ;;  %13647 = vmatprep.subr.bf16.mxu0 %v13646_v13 }
 0x8a7   : > { %v12129_v48 = vsel %vm663_vm2, %v14659_v17, %v14660_v15  ;;  %v12128_v23 = vsel %vm663_vm2, %v14650_v2, %v14659_v17  ;;  %v12307_v17 = vld [vmem:[%s18630_s9 + $0x2f8] sm:$0xff] }
 0x8a8   : > { %v18267_v54 = vpop.permute.xlu1 %14662  ;;  %v18269_v27 = vpop.permute.xlu0 %14667  ;;  %v12193_v53 = vmax.f32 %v17915_v59, %v12129_v48  ;;  %v12192_v13 = vmax.f32 %v17884_v60, %v12128_v23  ;;  %13521 = vmatpush1.bf16.msra.mxu1 %v13520_v42  ;;  %v13526_v42 = vpack.c.bf16 %v12303_v36, %v12301_v52  ;;  %v12433_v52 = vld [vmem:[%s18630_s9 + $0x6e8] sm:$0xff]  ;;  %v13530_v51 = vpack.c.bf16 %v12307_v17, %v12305_v44 }
 0x8a9   : > { %v14664_v50 = vunpack.i.l.bf16 %v18267_v54  ;;  %v18648_v59 = vunpack.i.h.bf16 %v18269_v27  ;;  %v14669_v60 = vunpack.i.l.bf16 %v18269_v27  ;;  %13649 = vmatpush1.bf16.msra.mxu0 %v13648_v33  ;;  %13523 = vmatprep.subr.bf16.mxu1 %v13522_v19  ;;  %v13528_v19 = vpack.c.bf16 %v12302_v63, %v12300_v28 }
 0x8aa   : > { %12716 = vmatprep.mubr.f32.mxu0 %v12193_v53  ;;  %13651 = vmatprep.subr.bf16.mxu0 %v13650_v0  ;;  %v12435_v0 = vld [vmem:[%s18630_s9 + $0x6f8] sm:$0xff]  ;;  %v14665_v36 = vunpack.i.h.bf16 %v18267_v54 }
 0x8ab   : > { %12717 = vmatmul.mubr.f32.gmra.mrb[30].mxu0 %v12192_v13  ;;  %v12132_v5 = vsel %vm663_vm2, %v14664_v50, %v14654_v31  ;;  %v12141_v33 = vsel %vm663_vm2, %v14669_v60, %v18648_v59  ;;  %v12311_v50 = vld [vmem:[%s18630_s9 + $0x318] sm:$0xff] }
 0x8ac   : > { %v18306_v48 = vpop.permute.xlu1 %14682  ;;  %v18308_v31 = vpop.permute.xlu0 %14672  ;;  %v12196_v23 = vmax.f32 %v17950_v24, %v12132_v5  ;;  %v12205_v49 = vmax.f32 %v17947_v62, %v12141_v33  ;;  %13525 = vmatpush1.bf16.msra.mxu1 %v13524_v45  ;;  %v12306_v62 = vld [vmem:[%s18630_s9 + $0x2f0] sm:$0xff]  ;;  %v12432_v24 = vld [vmem:[%s18630_s9 + $0x6e0] sm:$0xff]  ;;  %v13658_v45 = vpack.c.bf16 %v12435_v0, %v12433_v52  ;;  %v12439_v5 = vld [vmem:[%s18630_s9 + $0x718] sm:$0xff]  ;;  %v13534_v59 = vpack.c.bf16 %v12311_v50, %v12309_v34 }
 0x8ad   : > { %v18647_v28 = vunpack.i.h.bf16 %v18306_v48  ;;  %v14684_v53 = vunpack.i.l.bf16 %v18306_v48  ;;  %v18649_v13 = vunpack.i.h.bf16 %v18308_v31  ;;  %v14674_v63 = vunpack.i.l.bf16 %v18308_v31  ;;  %13653 = vmatpush1.bf16.msra.mxu0 %v13652_v10  ;;  %13527 = vmatprep.subr.bf16.mxu1 %v13526_v42  ;;  %v12434_v10 = vld [vmem:[%s18630_s9 + $0x6f0] sm:$0xff] }
 0x8ae   : > { %12545 = vmatmul.mubr.f32.gmra.mrb[32].mxu1 %v12196_v23  ;;  %13655 = vmatprep.subr.bf16.mxu0 %v13654_v40  ;;  %v12437_v40 = vld [vmem:[%s18630_s9 + $0x708] sm:$0xff]  ;;  %v13532_v23 = vpack.c.bf16 %v12306_v62, %v12304_v25  ;;  %v12315_v62 = vld [vmem:[%s18630_s9 + $0x338] sm:$0xff] }
 0x8af   : > { %12550 = vmatprep.mubr.f32.mxu1 %v12205_v49  ;;  %v12137_v42 = vsel %vm663_vm2, %v14674_v63, %v18649_v13  ;;  %v12136_v44 = vsel %vm663_vm2, %v14665_v36, %v14674_v63  ;;  %v12145_v17 = vsel %vm663_vm2, %v14684_v53, %v18647_v28  ;;  %v13660_v28 = vpack.c.bf16 %v12434_v10, %v12432_v24  ;;  %v12308_v13 = vld [vmem:[%s18630_s9 + $0x300] sm:$0xff]  ;;  %v12313_v25 = vld [vmem:[%s18630_s9 + $0x328] sm:$0xff]  ;;  %v12443_v10 = vld [vmem:[%s18630_s9 + $0x738] sm:$0xff] }
 0x8b0   : > { %v18349_v33 = vpop.permute.xlu0 %14677  ;;  %v12201_v52 = vmax.f32 %v17957_v8, %v12137_v42  ;;  %v12200_v0 = vmax.f32 %v17933_v14, %v12136_v44  ;;  %13529 = vmatpush1.bf16.msra.mxu1 %v13528_v19  ;;  %v12310_v8 = vld [vmem:[%s18630_s9 + $0x310] sm:$0xff]  ;;  %v12436_v14 = vld [vmem:[%s18630_s9 + $0x700] sm:$0xff]  ;;  %v12209_v19 = vmax.f32 %v17966_v22, %v12145_v17  ;;  %v13538_v44 = vpack.c.bf16 %v12315_v62, %v12313_v25  ;;  %v12323_v25 = vld [vmem:[%s18630_s9 + $0x378] sm:$0xff] }
 0x8b1   : > { %v14680_v49 = vunpack.i.h.bf16 %v18349_v33  ;;  %v14679_v63 = vunpack.i.l.bf16 %v18349_v33  ;;  %13657 = vmatpush1.bf16.msra.mxu0 %v13656_v38  ;;  %13531 = vmatprep.subr.bf16.mxu1 %v13530_v51  ;;  %v13662_v38 = vpack.c.bf16 %v12439_v5, %v12437_v40  ;;  %v12438_v51 = vld [vmem:[%s18630_s9 + $0x710] sm:$0xff]  ;;  %v13536_v42 = vpack.c.bf16 %v12310_v8, %v12308_v13  ;;  %v12319_v13 = vld [vmem:[%s18630_s9 + $0x358] sm:$0xff]  ;;  %v12445_v40 = vld [vmem:[%s18630_s9 + $0x748] sm:$0xff] }
 0x8b2   : > { %12722 = vmatprep.mubr.f32.mxu0 %v12201_v52  ;;  %13659 = vmatprep.subr.bf16.mxu0 %v13658_v45  ;;  %v12441_v45 = vld [vmem:[%s18630_s9 + $0x728] sm:$0xff]  ;;  %v12314_v17 = vld [vmem:[%s18630_s9 + $0x330] sm:$0xff]  ;;  %v12447_v5 = vld [vmem:[%s18630_s9 + $0x758] sm:$0xff] }
 0x8b3   : > { %12723 = vmatmul.mubr.f32.gmra.mrb[32].mxu0 %v12200_v0  ;;  %v12140_v24 = vsel %vm663_vm2, %v14679_v63, %v14669_v60  ;;  %v12144_v22 = vsel %vm663_vm2, %v14680_v49, %v14684_v53  ;;  %v13664_v60 = vpack.c.bf16 %v12438_v51, %v12436_v14  ;;  %v12312_v53 = vld [vmem:[%s18630_s9 + $0x320] sm:$0xff]  ;;  %v12318_v8 = vld [vmem:[%s18630_s9 + $0x350] sm:$0xff]  ;;  %v12321_v51 = vld [vmem:[%s18630_s9 + $0x368] sm:$0xff] }
 0x8b4   : > { %12728 = vmatprep.mubr.f32.mxu0 %v12209_v19  ;;  %v12204_v34 = vmax.f32 %v17999_v58, %v12140_v24  ;;  %v12208_v50 = vmax.f32 %v17989_v43, %v12144_v22  ;;  %13533 = vmatpush1.bf16.msra.mxu1 %v13532_v23  ;;  %v12440_v58 = vld [vmem:[%s18630_s9 + $0x720] sm:$0xff]  ;;  %v13666_v43 = vpack.c.bf16 %v12443_v10, %v12441_v45  ;;  %v12449_v62 = vld [vmem:[%s18630_s9 + $0x768] sm:$0xff]  ;;  %v12451_v24 = vld [vmem:[%s18630_s9 + $0x778] sm:$0xff] }
 0x8b5   : > { %13661 = vmatpush1.bf16.msra.mxu0 %v13660_v28  ;;  %13535 = vmatprep.subr.bf16.mxu1 %v13534_v59  ;;  %v12442_v59 = vld [vmem:[%s18630_s9 + $0x730] sm:$0xff]  ;;  %v12317_v28 = vld [vmem:[%s18630_s9 + $0x348] sm:$0xff]  ;;  %v13540_v52 = vpack.c.bf16 %v12314_v17, %v12312_v53  ;;  %v12316_v63 = vld [vmem:[%s18630_s9 + $0x340] sm:$0xff]  ;;  %v13670_v19 = vpack.c.bf16 %v12447_v5, %v12445_v40  ;;  %v13546_v10 = vpack.c.bf16 %v12323_v25, %v12321_v51 }
 0x8b6   : > { %12551 = vmatmul.mubr.f32.gmra.mrb[34].mxu1 %v12204_v34  ;;  %13663 = vmatprep.subr.bf16.mxu0 %v13662_v38  ;;  %v13668_v0 = vpack.c.bf16 %v12442_v59, %v12440_v58  ;;  %v13542_v23 = vpack.c.bf16 %v12319_v13, %v12317_v28  ;;  %v12444_v14 = vld [vmem:[%s18630_s9 + $0x740] sm:$0xff]  ;;  %v12446_v38 = vld [vmem:[%s18630_s9 + $0x750] sm:$0xff]  ;;  %v13544_v22 = vpack.c.bf16 %v12318_v8, %v12316_v63  ;;  %v12325_v53 = vld [vmem:[%s18630_s9 + $0x388] sm:$0xff] }
 0x8b7   : > { %12729 = vmatmul.mubr.f32.gmra.mrb[34].mxu0 %v12208_v50  ;;  %v13672_v45 = vpack.c.bf16 %v12446_v38, %v12444_v14  ;;  %v12320_v34 = vld [vmem:[%s18630_s9 + $0x360] sm:$0xff]  ;;  %v12322_v50 = vld [vmem:[%s18630_s9 + $0x370] sm:$0xff]  ;;  %v12327_v17 = vld [vmem:[%s18630_s9 + $0x398] sm:$0xff] }
 0x8b8   : > { %13537 = vmatpush1.bf16.msra.mxu1 %v13536_v42  ;;  %v12448_v42 = vld [vmem:[%s18630_s9 + $0x760] sm:$0xff]  ;;  %v12453_v58 = vld [vmem:[%s18630_s9 + $0x788] sm:$0xff]  ;;  %v13548_v59 = vpack.c.bf16 %v12322_v50, %v12320_v34  ;;  %v13550_v13 = vpack.c.bf16 %v12327_v17, %v12325_v53  ;;  %v12326_v5 = vld [vmem:[%s18630_s9 + $0x390] sm:$0xff] }
 0x8b9   : > { %13665 = vmatpush1.bf16.msra.mxu0 %v13664_v60  ;;  %13539 = vmatprep.subr.bf16.mxu1 %v13538_v44  ;;  %v13674_v60 = vpack.c.bf16 %v12451_v24, %v12449_v62  ;;  %v12450_v44 = vld [vmem:[%s18630_s9 + $0x770] sm:$0xff]  ;;  %v12324_v40 = vld [vmem:[%s18630_s9 + $0x380] sm:$0xff]  ;;  %v12329_v63 = vld [vmem:[%s18630_s9 + $0x3a8] sm:$0xff] }
 0x8ba   : > { %13667 = vmatprep.subr.bf16.mxu0 %v13666_v43  ;;  %v12455_v43 = vld [vmem:[%s18630_s9 + $0x798] sm:$0xff]  ;;  %v13676_v28 = vpack.c.bf16 %v12450_v44, %v12448_v42  ;;  %v12457_v14 = vld [vmem:[%s18630_s9 + $0x7a8] sm:$0xff]  ;;  %v13552_v38 = vpack.c.bf16 %v12326_v5, %v12324_v40  ;;  %v12328_v62 = vld [vmem:[%s18630_s9 + $0x3a0] sm:$0xff] }
 0x8bb   : > { %v12331_v8 = vld [vmem:[%s18630_s9 + $0x3b8] sm:$0xff]  ;;  %v12330_v24 = vld [vmem:[%s18630_s9 + $0x3b0] sm:$0xff]  ;;  %v12333_v34 = vld [vmem:[%s18630_s9 + $0x3c8] sm:$0xff] }
 0x8bc   : > { %13541 = vmatpush1.bf16.msra.mxu1 %v13540_v52  ;;  %v12452_v52 = vld [vmem:[%s18630_s9 + $0x780] sm:$0xff]  ;;  %v13554_v25 = vpack.c.bf16 %v12331_v8, %v12329_v63  ;;  %v12335_v50 = vld [vmem:[%s18630_s9 + $0x3d8] sm:$0xff]  ;;  %v12461_v42 = vld [vmem:[%s18630_s9 + $0x7c8] sm:$0xff]  ;;  %v13556_v44 = vpack.c.bf16 %v12330_v24, %v12328_v62 }
 0x8bd   : > { %13669 = vmatpush1.bf16.msra.mxu0 %v13668_v0  ;;  %13543 = vmatprep.subr.bf16.mxu1 %v13542_v23  ;;  %v13678_v0 = vpack.c.bf16 %v12455_v43, %v12453_v58  ;;  %v12454_v23 = vld [vmem:[%s18630_s9 + $0x790] sm:$0xff]  ;;  %v13558_v17 = vpack.c.bf16 %v12335_v50, %v12333_v34  ;;  %v12332_v58 = vld [vmem:[%s18630_s9 + $0x3c0] sm:$0xff]  ;;  %v12337_v40 = vld [vmem:[%s18630_s9 + $0x3e8] sm:$0xff] }
 0x8be   : > { %13671 = vmatprep.subr.bf16.mxu0 %v13670_v19  ;;  %v12459_v19 = vld [vmem:[%s18630_s9 + $0x7b8] sm:$0xff]  ;;  %v13680_v51 = vpack.c.bf16 %v12454_v23, %v12452_v52  ;;  %v12334_v43 = vld [vmem:[%s18630_s9 + $0x3d0] sm:$0xff]  ;;  %v12465_v52 = vld [vmem:[%s18630_s9 + $0x7e8] sm:$0xff] }
 0x8bf   : > { %v12339_v5 = vld [vmem:[%s18630_s9 + $0x3f8] sm:$0xff]  ;;  %v13560_v23 = vpack.c.bf16 %v12334_v43, %v12332_v58 }
 0x8c0   : > { %13545 = vmatpush1.bf16.msra.mxu1 %v13544_v22  ;;  %v12456_v22 = vld [vmem:[%s18630_s9 + $0x7a0] sm:$0xff]  ;;  %v13562_v8 = vpack.c.bf16 %v12339_v5, %v12337_v40 }
 0x8c1   : > { %13673 = vmatpush1.bf16.msra.mxu0 %v13672_v45  ;;  %13547 = vmatprep.subr.bf16.mxu1 %v13546_v10  ;;  %v13682_v45 = vpack.c.bf16 %v12459_v19, %v12457_v14  ;;  %v12458_v10 = vld [vmem:[%s18630_s9 + $0x7b0] sm:$0xff]  ;;  %v12336_v14 = vld [vmem:[%s18630_s9 + $0x3e0] sm:$0xff] }
 0x8c2   : > { %13675 = vmatprep.subr.bf16.mxu0 %v13674_v60  ;;  %v12463_v60 = vld [vmem:[%s18630_s9 + $0x7d8] sm:$0xff]  ;;  %v13684_v53 = vpack.c.bf16 %v12458_v10, %v12456_v22  ;;  %v12338_v19 = vld [vmem:[%s18630_s9 + $0x3f0] sm:$0xff] }
 0x8c3   : > { %v13564_v62 = vpack.c.bf16 %v12338_v19, %v12336_v14 }
 0x8c4   : > { %13549 = vmatpush1.bf16.msra.mxu1 %v13548_v59  ;;  %v12460_v59 = vld [vmem:[%s18630_s9 + $0x7c0] sm:$0xff] }
 0x8c5   : > { %13677 = vmatpush1.bf16.msra.mxu0 %v13676_v28  ;;  %13551 = vmatprep.subr.bf16.mxu1 %v13550_v13  ;;  %v13686_v28 = vpack.c.bf16 %v12463_v60, %v12461_v42  ;;  %v12462_v13 = vld [vmem:[%s18630_s9 + $0x7d0] sm:$0xff]  ;;  %v18676_v60 = vunpack.i.h.bf16 %v18010_v4 }
 0x8c6   : > { %13679 = vmatprep.subr.bf16.mxu0 %v13678_v0  ;;  %v12467_v0 = vld [vmem:[%s18630_s9 + $0x7f8] sm:$0xff]  ;;  %v13688_v63 = vpack.c.bf16 %v12462_v13, %v12460_v59 }
 0x8c8   : > { %13553 = vmatpush1.bf16.msra.mxu1 %v13552_v38  ;;  %v13690_v38 = vpack.c.bf16 %v12467_v0, %v12465_v52 }
 0x8c9   : > { %13681 = vmatpush1.bf16.msra.mxu0 %v13680_v51  ;;  %13555 = vmatprep.subr.bf16.mxu1 %v13554_v25  ;;  %v12464_v51 = vld [vmem:[%s18630_s9 + $0x7e0] sm:$0xff]  ;;  %v12466_v25 = vld [vmem:[%s18630_s9 + $0x7f0] sm:$0xff] }
 0x8ca   : > { %13683 = vmatprep.subr.bf16.mxu0 %v13682_v45  ;;  %v13692_v24 = vpack.c.bf16 %v12466_v25, %v12464_v51  ;;  %v18679_v51 = vunpack.i.h.bf16 %v18269_v27 }
 0x8cc   : > { %13557 = vmatpush1.bf16.msra.mxu1 %v13556_v44 }
 0x8cd   : > { %13685 = vmatpush1.bf16.msra.mxu0 %v13684_v53  ;;  %13559 = vmatprep.subr.bf16.mxu1 %v13558_v17  ;;  %v18677_v53 = vunpack.i.h.bf16 %v18006_v39 }
 0x8ce   : > { %13687 = vmatprep.subr.bf16.mxu0 %v13686_v28 }
 0x8d0   : > { %13561 = vmatpush1.bf16.msra.mxu1 %v13560_v23 }
 0x8d1   : > { %13689 = vmatpush1.bf16.msra.mxu0 %v13688_v63  ;;  %13563 = vmatprep.subr.bf16.mxu1 %v13562_v8 }
 0x8d2   : > { %13691 = vmatprep.subr.bf16.mxu0 %v13690_v38 }
 0x8d4   : > { %13565 = vmatpush1.bf16.msra.mxu1 %v13564_v62 }
 0x8d5   : > { %13693 = vmatpush1.bf16.msra.mxu0 %v13692_v24 }
 0x909   : > { %v14693_v22 = vpop.permute.xlu0 %14692  ;;  %v14688_v45 = vpop.permute.xlu1 %14687 }
 0x90a   : > { %v14694_v10 = vunpack.i.l.bf16 %v14693_v22  ;;  %v14690_v34 = vunpack.i.h.bf16 %v14688_v45  ;;  %v14689_v50 = vunpack.i.l.bf16 %v14688_v45  ;;  %v14695_v42 = vunpack.i.h.bf16 %v14693_v22 }
 0x90c   : > { %v12122_v44 = vsel %vm663_vm2, %v18676_v60, %v14690_v34  ;;  %v12118_v17 = vsel %vm663_vm2, %v18677_v53, %v14689_v50  ;;  %v12119_v58 = vsel %vm663_vm2, %v14689_v50, %v14635_v30  ;;  %v12123_v43 = vsel %vm663_vm2, %v14690_v34, %v14694_v10 }
 0x90d   : > { %v12186_v59 = vmax.f32 %v17838_v11, %v12122_v44  ;;  %v12182_v28 = vmax.f32 %v17828_v61, %v12118_v17  ;;  %v14698_v13 = vpop.permute.xlu1 %14697  ;;  %v14703_v40 = vpop.permute.xlu0 %14702  ;;  %v12183_v4 = vmax.f32 %v18039_v18, %v12119_v58  ;;  %v12187_v5 = vmax.f32 %v18066_v7, %v12123_v43 }
 0x90e   : > { %v14700_v52 = vunpack.i.h.bf16 %v14698_v13  ;;  %v14699_v39 = vunpack.i.l.bf16 %v14698_v13  ;;  %v14704_v0 = vunpack.i.l.bf16 %v14703_v40  ;;  %v14705_v23 = vunpack.i.h.bf16 %v14703_v40 }
 0x90f   : > { %12621 = vmatprep.mubr.f32.mxu1 %v12183_v4  ;;  %12799 = vmatprep.mubr.f32.mxu0 %v12187_v5  ;;  %v12127_v21 = vsel %vm663_vm2, %v14695_v42, %v14650_v2  ;;  %v12126_v61 = vsel %vm663_vm2, %v14645_v41, %v14695_v42 }
 0x910   : > { %12622 = vmatmul.mubr.f32.vlgmr.msra.gmra.mrb[28].mxu1 %v12182_v28  ;;  %12800 = vmatmul.mubr.f32.vlgmr.msra.gmra.mrb[28].mxu0 %v12186_v59  ;;  %v12191_v11 = vmax.f32 %v18050_v37, %v12127_v21  ;;  %v12131_v30 = vsel %vm663_vm2, %v14699_v39, %v14700_v52  ;;  %v12190_v63 = vmax.f32 %v17866_v35, %v12126_v61 }
 0x911   : > { %v14708_v18 = vpop.permute.xlu1 %14707  ;;  %v12195_v7 = vmax.f32 %v18101_v16, %v12131_v30  ;;  %v12130_v20 = vsel %vm663_vm2, %v14660_v15, %v14699_v39  ;;  %v12135_v29 = vsel %vm663_vm2, %v14704_v0, %v14665_v36  ;;  %v12134_v16 = vsel %vm663_vm2, %v14655_v12, %v14704_v0 }
 0x912   : > { %v14710_v41 = vunpack.i.h.bf16 %v14708_v18  ;;  %v14709_v2 = vunpack.i.l.bf16 %v14708_v18  ;;  %v14713_v8 = vpop.permute.xlu0 %14712  ;;  %12627 = vmatprep.mubr.f32.mxu1 %v12191_v11  ;;  %v12194_v37 = vmax.f32 %v17918_v9, %v12130_v20  ;;  %v12199_v6 = vmax.f32 %v18105_v3, %v12135_v29 }
 0x913   : > { %v14715_v14 = vunpack.i.h.bf16 %v14713_v8  ;;  %v14714_v35 = vunpack.i.l.bf16 %v14713_v8  ;;  %12805 = vmatprep.mubr.f32.mxu0 %v12195_v7  ;;  %v18678_v15 = vunpack.i.h.bf16 %v18308_v31  ;;  %v12198_v3 = vmax.f32 %v17911_v56, %v12134_v16 }
 0x914   : > { %12628 = vmatmul.mubr.f32.gmra.mrb[30].mxu1 %v12190_v63  ;;  %12806 = vmatmul.mubr.f32.gmra.mrb[30].mxu0 %v12194_v37  ;;  %v12139_v36 = vsel %vm663_vm2, %v14705_v23, %v14709_v2  ;;  %v12143_v9 = vsel %vm663_vm2, %v14710_v41, %v14680_v49  ;;  %v12142_v33 = vsel %vm663_vm2, %v18679_v51, %v14710_v41  ;;  %v18680_v49 = vunpack.i.h.bf16 %v18306_v48 }
 0x915   : > { %v12138_v54 = vsel %vm663_vm2, %v18678_v15, %v14705_v23  ;;  %12633 = vmatprep.mubr.f32.mxu1 %v12199_v6  ;;  %v12203_v26 = vmax.f32 %v18111_v32, %v12139_v36  ;;  %v12147_v12 = vsel %vm663_vm2, %v14714_v35, %v14715_v14  ;;  %v12207_v19 = vmax.f32 %v18148_v1, %v12143_v9 }
 0x916   : > { %v12202_v31 = vmax.f32 %v17963_v57, %v12138_v54  ;;  %v12211_v38 = vmax.f32 %v18136_v47, %v12147_v12  ;;  %v12146_v32 = vsel %vm663_vm2, %v18680_v49, %v14714_v35  ;;  %v12206_v56 = vmax.f32 %v17953_v55, %v12142_v33 }
 0x917   : > { %12811 = vmatprep.mubr.f32.mxu0 %v12203_v26  ;;  %v12210_v57 = vmax.f32 %v17974_v46, %v12146_v32 }
 0x918   : > { %12634 = vmatmul.mubr.f32.gmra.mrb[32].mxu1 %v12198_v3  ;;  %12812 = vmatmul.mubr.f32.gmra.mrb[32].mxu0 %v12202_v31 }
 0x919   : > { %12639 = vmatprep.mubr.f32.mxu1 %v12207_v19  ;;  %12817 = vmatprep.mubr.f32.mxu0 %v12211_v38 }
 0x91c   : > { %12640 = vmatmul.mubr.f32.gmra.mrb[34].mxu1 %v12206_v56  ;;  %12818 = vmatmul.mubr.f32.gmra.mrb[34].mxu0 %v12210_v57 }
 0x9e3   : > { %v12623_v47 = vpop.f32.mrb[28].mxu1  ;;  %v12801_v1 = vpop.f32.mrb[28].mxu0 }
 0x9e4   : > { %v13694_v27 = vadd.f32 %v12801_v1, %v12623_v47  ;;  %v12625_v25 = vpop.f32.mrb[29].mxu1  ;;  %v12803_v62 = vpop.f32.mrb[29].mxu0 }
 0x9e5   : > { %v13695_v48 = vadd.f32 %v12803_v62, %v12625_v25 }
 0x9e6   : > { %v12824_v55 = vmax.f32 %v13694_v27, 0.0 }
 0x9e7   : > { %v12825_v24 = vmax.f32 %v13695_v48, 0.0  ;;  %v12629_v46 = vpop.f32.mrb[30].mxu1  ;;  %v12807_v22 = vpop.f32.mrb[30].mxu0 }
 0x9e8   : > { %12832 = vst [vmem:[%s18604_s15] sm:$0xff] %v12824_v55  ;;  %v13696_v45 = vadd.f32 %v12807_v22, %v12629_v46  ;;  %v12631_v10 = vpop.f32.mrb[31].mxu1  ;;  %v12809_v34 = vpop.f32.mrb[31].mxu0 }
 0x9e9   : > { %12833 = vst.msk [vmem:[%s18604_s15 + $0x8] sm:$0xff] %vm7560_vm11, %v12825_v24  ;;  %v13697_v50 = vadd.f32 %v12809_v34, %v12631_v10 }
 0x9ea   : > { %v12826_v42 = vmax.f32 %v13696_v45, 0.0 }
 0x9eb   : > { %v12827_v60 = vmax.f32 %v13697_v50, 0.0  ;;  %v12635_v44 = vpop.f32.mrb[32].mxu1  ;;  %v12813_v53 = vpop.f32.mrb[32].mxu0 }
 0x9ec   : > { %12834 = vst [vmem:[%s18604_s15 + $0x10] sm:$0xff] %v12826_v42  ;;  %v13698_v17 = vadd.f32 %v12813_v53, %v12635_v44  ;;  %v12637_v58 = vpop.f32.mrb[33].mxu1  ;;  %v12815_v43 = vpop.f32.mrb[33].mxu0 }
 0x9ed   : > { %12835 = vst.msk [vmem:[%s18604_s15 + $0x18] sm:$0xff] %vm7560_vm11, %v12827_v60  ;;  %v13699_v59 = vadd.f32 %v12815_v43, %v12637_v58 }
 0x9ee   : > { %v12828_v28 = vmax.f32 %v13698_v17, 0.0 }
 0x9ef   : > { %v12829_v13 = vmax.f32 %v13699_v59, 0.0  ;;  %v12641_v40 = vpop.f32.mrb[34].mxu1  ;;  %v12819_v4 = vpop.f32.mrb[34].mxu0 }
 0x9f0   : > { %12836 = vst [vmem:[%s18604_s15 + $0x20] sm:$0xff] %v12828_v28  ;;  %v13700_v5 = vadd.f32 %v12819_v4, %v12641_v40  ;;  %v12643_v52 = vpop.f32.mrb[35].mxu1  ;;  %v12821_v39 = vpop.f32.mrb[35].mxu0 }
 0x9f1   : > { %12837 = vst.msk [vmem:[%s18604_s15 + $0x28] sm:$0xff] %vm7560_vm11, %v12829_v13  ;;  %v13701_v0 = vadd.f32 %v12821_v39, %v12643_v52 }
 0x9f2   : > { %v12830_v23 = vmax.f32 %v13700_v5, 0.0 }
 0x9f3   : > { %v12831_v21 = vmax.f32 %v13701_v0, 0.0 }
 0x9f4   : > { %12838 = vst [vmem:[%s18604_s15 + $0x30] sm:$0xff] %v12830_v23 }
 0x9f5   : > { %12839 = vst.msk [vmem:[%s18604_s15 + $0x38] sm:$0xff] %vm7560_vm11, %v12831_v21 }
 0x9f6 PF: > { %s20_s13 = sadd.s32 1, %s14727_s13  }
 0x9f7   : > { %p17_p4 = scmp.ge.s32.totalorder %s20_s13, 4  }
 0x9f9   :  { %19 = sbr.rel (!%p17_p4) target bundleno = 1 (0x1), region = 123 }

</bundles_post_ra>
